<compile_context>
chip_gen: v6e
topology: v6e:2x2x1
jax: 0.10.0
libtpu: 0.0.40
codegen_flags: <defaults>
</compile_context>

<pallas_src>
import math

import jax
import jax.numpy as jnp
from jax.experimental import pallas as pl
from jax.experimental.pallas import tpu as pltpu


def _round_up(x, m):
    return (x + m - 1) // m * m


def init_conv_params(key, cin, cout, k):
    # deterministic init mimicking PyTorch Conv2d default (uniform +-1/sqrt(fan_in))
    fan_in = cin * k * k
    bound = 1.0 / math.sqrt(fan_in)
    kw_, kb_ = jax.random.split(key)
    w = jax.random.uniform(kw_, (cout, cin, k, k), jnp.float32, -bound, bound)
    b = jax.random.uniform(kb_, (cout,), jnp.float32, -bound, bound)
    return w, b


def prepare_params(params):
    """One-time weight reorder + bf16 cast + lane padding (not in the hot path)."""
    (w1, b1), (w2, b2), (w3, b3) = params
    c1out, cin = w1.shape[0], w1.shape[1]      # (32, Cin, 8, 8)
    c2out = w2.shape[0]                        # (64, 32, 4, 4)
    c3out = w3.shape[0]                        # (64, 64, 3, 3)

    # Layer 1 weight in the space-to-depth K ordering:
    #   k = (I*2+J)*16*Cin + hi*4*Cin + wi*Cin + c   with (i, j) = (4I+hi, 4J+wi)
    w1f = (w1.reshape(c1out, cin, 2, 4, 2, 4)   # (co, c, I, hi, J, wi)
             .transpose(2, 4, 3, 5, 1, 0)       # (I, J, hi, wi, c, co)
             .reshape(4 * 16 * cin, c1out)
             .astype(jnp.bfloat16))
    # Layers 2/3: k = (i*kw + j)*Cin + c
    w2f = (w2.transpose(2, 3, 1, 0).reshape(4 * 4 * c1out, c2out)
             .astype(jnp.bfloat16))
    w3f = w3.transpose(2, 3, 1, 0).reshape(3 * 3 * c2out, c3out)
    w3f = jnp.pad(w3f, ((0, 0), (0, 128 - c3out))).astype(jnp.bfloat16)

    b1f = b1.reshape(1, -1).astype(jnp.float32)
    b2f = b2.reshape(1, -1).astype(jnp.float32)
    b3f = jnp.pad(b3.reshape(1, -1), ((0, 0), (0, 128 - c3out))).astype(jnp.float32)
    return w1f, w2f, w3f, b1f, b2f, b3f


def atari_cnn_forward(x, prepared):
    """x: (N, Cin, H, W) float32 NCHW -> (N, 64, Ho3, Wo3) float32 NCHW."""
    w1f, w2f, w3f, b1f, b2f, b3f = prepared
    N, Cin, H, W = x.shape
    assert H % 4 == 0 and W % 4 == 0

    HB, WB = H // 4, W // 4                 # stride-4 space-to-depth grid
    C0 = 16 * Cin                           # s2d channels (4*4*Cin)
    Ho1, Wo1 = HB - 1, WB - 1               # conv 8x8/s4 == conv 2x2/s1 on s2d grid
    Ho2, Wo2 = (Ho1 - 4) // 2 + 1, (Wo1 - 4) // 2 + 1
    Ho3, Wo3 = Ho2 - 2, Wo2 - 2
    assert Ho3 > 0 and Wo3 > 0

    C1, C2, C3 = w1f.shape[1], w2f.shape[1], 64       # 32, 64, 64
    K1, K2, K3 = w1f.shape[0], w2f.shape[0], w3f.shape[0]
    assert K1 == 4 * C0

    M1, M2, M3 = Ho1 * Wo1, Ho2 * Wo2, Ho3 * Wo3
    M1P, M2P, M3P = _round_up(M1, 8), _round_up(M2, 8), _round_up(M3, 8)

    # Layout-only space-to-depth of the input (no im2col expansion in HBM):
    # (N, Cin, H, W) -> (N, HB*WB, 16*Cin);  row = By*WB + Bx,
    # col = hi*4*Cin + wi*Cin + c  with (y, x) = (4*By+hi, 4*Bx+wi).
    xs = (x.transpose(0, 2, 3, 1)
           .reshape(N, HB, 4, WB, 4, Cin)
           .transpose(0, 1, 3, 2, 4, 5)
           .reshape(N, HB * WB, C0)
           .astype(jnp.bfloat16))

    def kernel(x_ref, w1_ref, w2_ref, w3_ref, b1_ref, b2_ref, b3_ref, o_ref,
               p1, a1, p2, a2, p3):
        # -- layer 1: Conv(Cin, 32, 8, s=4) as 2x2/s1 over the s2d grid --------
        for oy in range(Ho1):
            for t, (ti, tj) in enumerate(((0, 0), (0, 1), (1, 0), (1, 1))):
                src = x_ref[0, pl.ds((oy + ti) * WB + tj, Wo1), :]      # (Wo1, C0)
                p1[pl.ds(oy * Wo1, Wo1), t * C0:(t + 1) * C0] = src
        h = jnp.dot(p1[...], w1_ref[...], preferred_element_type=jnp.float32)
        a1[...] = jnp.maximum(h + b1_ref[...], 0.0)

        # -- layer 2: Conv(32, 64, 4, s=2) (stride-2 row gather from VMEM) -----
        for oy in range(Ho2):
            for i in range(4):
                for j in range(4):
                    t = i * 4 + j
                    src = a1[pl.ds((2 * oy + i) * Wo1 + j, Wo2, stride=2), :]
                    p2[pl.ds(oy * Wo2, Wo2), t * C1:(t + 1) * C1] = (
                        src.astype(jnp.bfloat16))
        h = jnp.dot(p2[...], w2_ref[...], preferred_element_type=jnp.float32)
        a2[...] = jnp.maximum(h + b2_ref[...], 0.0)

        # -- layer 3: Conv(64, 64, 3, s=1), Cout lane-padded to 128 ------------
        for oy in range(Ho3):
            for i in range(3):
                for j in range(3):
                    t = i * 3 + j
                    src = a2[pl.ds((oy + i) * Wo2 + j, Wo3), :]         # (Wo3, C2)
                    p3[pl.ds(oy * Wo3, Wo3), t * C2:(t + 1) * C2] = (
                        src.astype(jnp.bfloat16))
        h = jnp.dot(p3[...], w3_ref[...], preferred_element_type=jnp.float32)
        o_ref[0] = jnp.maximum(h + b3_ref[...], 0.0)    # (M3P, 128), lane-dense

    out = pl.pallas_call(
        kernel,
        out_shape=jax.ShapeDtypeStruct((N, M3P, 128), jnp.float32),
        grid=(N,),
        in_specs=[
            pl.BlockSpec((1, HB * WB, C0), lambda b: (b, 0, 0)),  # s2d input
            pl.BlockSpec((K1, C1), lambda b: (0, 0)),             # weights stay
            pl.BlockSpec((K2, C2), lambda b: (0, 0)),             #   VMEM-resident
            pl.BlockSpec((K3, 128), lambda b: (0, 0)),
            pl.BlockSpec((1, C1), lambda b: (0, 0)),
            pl.BlockSpec((1, C2), lambda b: (0, 0)),
            pl.BlockSpec((1, 128), lambda b: (0, 0)),
        ],
        out_specs=pl.BlockSpec((1, M3P, 128), lambda b: (b, 0, 0)),
        scratch_shapes=[
            pltpu.VMEM((M1P, K1), jnp.bfloat16),   # layer-1 patches (MXU lhs)
            pltpu.VMEM((M1P, C1), jnp.float32),    # act1
            pltpu.VMEM((M2P, K2), jnp.bfloat16),   # layer-2 patches
            pltpu.VMEM((M2P, C2), jnp.float32),    # act2
            pltpu.VMEM((M3P, K3), jnp.bfloat16),   # layer-3 patches
        ],
        compiler_params=pltpu.CompilerParams(
            dimension_semantics=("parallel",)),
    )(xs, w1f, w2f, w3f, b1f, b2f, b3f)

    # (N, M3P, 128) -> NCHW (N, 64, Ho3, Wo3); padded rows/lanes sliced off.
    return out[:, :M3, :C3].reshape(N, Ho3, Wo3, C3).transpose(0, 3, 1, 2)


def reference_forward(x, params):
    # pure-XLA float32 reference matching the PyTorch module's forward
    h = x
    for (w, b), s in zip(params, (4, 2, 1)):
        h = jax.lax.conv_general_dilated(
            h, w, window_strides=(s, s), padding="VALID",
            dimension_numbers=("NCHW", "OIHW", "NCHW"),
            precision=jax.lax.Precision.HIGHEST)
        h = jnp.maximum(h + b[None, :, None, None], 0.0)
    return h


if __name__ == "__main__":
    key = jax.random.PRNGKey(0)
    k_x, k1, k2, k3 = jax.random.split(key, 4)

    # 64x64 input -> 15x15 -> 6x6 -> 4x4, matching output_size = 64 * 4 * 4
    batch, in_channels, spatial = 2, 4, 64
    x = jax.random.normal(k_x, (batch, in_channels, spatial, spatial), jnp.float32)

    params = (
        init_conv_params(k1, in_channels, 32, 8),
        init_conv_params(k2, 32, 64, 4),
        init_conv_params(k3, 64, 64, 3),
    )
    prepared = prepare_params(params)   # one-time weight prep (outside forward)

    fwd = jax.jit(atari_cnn_forward)
    out = jax.block_until_ready(fwd(x, prepared))

    assert out.shape == (batch, 64, 4, 4), out.shape
    assert bool(jnp.all(out >= 0.0))                     # ReLU applied
    ref = reference_forward(x, params)
    max_err = float(jnp.max(jnp.abs(out - ref)))
    assert max_err < 0.1, f"mismatch vs f32 reference: {max_err}"  # bf16 MXU tol
    print("KERNEL_OK")
</pallas_src>

<mosaic_0001>
module attributes {stable_mosaic.version = 11 : i64} {
  func.func @kernel(%arg0: i32, %arg1: memref<1x256x64xbf16, #tpu.memory_space<vmem>>, %arg2: memref<256x32xbf16, #tpu.memory_space<vmem>>, %arg3: memref<512x64xbf16, #tpu.memory_space<vmem>>, %arg4: memref<576x128xbf16, #tpu.memory_space<vmem>>, %arg5: memref<1x32xf32, #tpu.memory_space<vmem>>, %arg6: memref<1x64xf32, #tpu.memory_space<vmem>>, %arg7: memref<1x128xf32, #tpu.memory_space<vmem>>, %arg8: memref<1x16x128xf32, #tpu.memory_space<vmem>>, %arg9: memref<232x256xbf16, #tpu.memory_space<vmem>>, %arg10: memref<232x32xf32, #tpu.memory_space<vmem>>, %arg11: memref<40x512xbf16, #tpu.memory_space<vmem>>, %arg12: memref<40x64xf32, #tpu.memory_space<vmem>>, %arg13: memref<16x576xbf16, #tpu.memory_space<vmem>>) attributes {dimension_semantics = [#tpu.dimension_semantics<parallel>], iteration_bounds = array<i64: 2>, scalar_prefetch = 0 : i64, scratch_operands = 5 : i64, tpu.core_type = #tpu.core_type<tc>, window_params = [{transform_indices = @transform_0, window_bounds = array<i64: 1, 256, 64>}, {pipeline_mode = #tpu.pipeline_mode<synchronous>, transform_indices = @transform_1, window_bounds = array<i64: 256, 32>}, {pipeline_mode = #tpu.pipeline_mode<synchronous>, transform_indices = @transform_2, window_bounds = array<i64: 512, 64>}, {pipeline_mode = #tpu.pipeline_mode<synchronous>, transform_indices = @transform_3, window_bounds = array<i64: 576, 128>}, {pipeline_mode = #tpu.pipeline_mode<synchronous>, transform_indices = @transform_4, window_bounds = array<i64: 1, 32>}, {pipeline_mode = #tpu.pipeline_mode<synchronous>, transform_indices = @transform_5, window_bounds = array<i64: 1, 64>}, {pipeline_mode = #tpu.pipeline_mode<synchronous>, transform_indices = @transform_6, window_bounds = array<i64: 1, 128>}, {transform_indices = @transform_7, window_bounds = array<i64: 1, 16, 128>}]} {
    %c0 = arith.constant 0 : index
    %c0_0 = arith.constant 0 : index
    %c0_1 = arith.constant 0 : index
    %0 = vector.load %arg1[%c0, %c0_0, %c0_1] : memref<1x256x64xbf16, #tpu.memory_space<vmem>>, vector<1x15x64xbf16>
    %1 = vector.shape_cast %0 : vector<1x15x64xbf16> to vector<15x64xbf16>
    %c0_2 = arith.constant 0 : index
    %c0_3 = arith.constant 0 : index
    %2 = vector.load %arg9[%c0_2, %c0_3] : memref<232x256xbf16, #tpu.memory_space<vmem>>, vector<15x64xbf16>
    tpu.vector_store %arg9[%c0_2, %c0_3], %1 {strides = array<i32>} : memref<232x256xbf16, #tpu.memory_space<vmem>>, vector<15x64xbf16>,
    %c0_4 = arith.constant 0 : index
    %c1 = arith.constant 1 : index
    %c0_5 = arith.constant 0 : index
    %3 = vector.load %arg1[%c0_4, %c1, %c0_5] : memref<1x256x64xbf16, #tpu.memory_space<vmem>>, vector<1x15x64xbf16>
    %4 = vector.shape_cast %3 : vector<1x15x64xbf16> to vector<15x64xbf16>
    %c0_6 = arith.constant 0 : index
    %c64 = arith.constant 64 : index
    %5 = vector.load %arg9[%c0_6, %c64] : memref<232x256xbf16, #tpu.memory_space<vmem>>, vector<15x64xbf16>
    tpu.vector_store %arg9[%c0_6, %c64], %4 {strides = array<i32>} : memref<232x256xbf16, #tpu.memory_space<vmem>>, vector<15x64xbf16>,
    %c0_7 = arith.constant 0 : index
    %c16 = arith.constant 16 : index
    %c0_8 = arith.constant 0 : index
    %6 = vector.load %arg1[%c0_7, %c16, %c0_8] : memref<1x256x64xbf16, #tpu.memory_space<vmem>>, vector<1x15x64xbf16>
    %7 = vector.shape_cast %6 : vector<1x15x64xbf16> to vector<15x64xbf16>
    %c0_9 = arith.constant 0 : index
    %c128 = arith.constant 128 : index
    %8 = vector.load %arg9[%c0_9, %c128] : memref<232x256xbf16, #tpu.memory_space<vmem>>, vector<15x64xbf16>
    tpu.vector_store %arg9[%c0_9, %c128], %7 {strides = array<i32>} : memref<232x256xbf16, #tpu.memory_space<vmem>>, vector<15x64xbf16>,
    %c0_10 = arith.constant 0 : index
    %c17 = arith.constant 17 : index
    %c0_11 = arith.constant 0 : index
    %9 = vector.load %arg1[%c0_10, %c17, %c0_11] : memref<1x256x64xbf16, #tpu.memory_space<vmem>>, vector<1x15x64xbf16>
    %10 = vector.shape_cast %9 : vector<1x15x64xbf16> to vector<15x64xbf16>
    %c0_12 = arith.constant 0 : index
    %c192 = arith.constant 192 : index
    %11 = vector.load %arg9[%c0_12, %c192] : memref<232x256xbf16, #tpu.memory_space<vmem>>, vector<15x64xbf16>
    tpu.vector_store %arg9[%c0_12, %c192], %10 {strides = array<i32>} : memref<232x256xbf16, #tpu.memory_space<vmem>>, vector<15x64xbf16>,
    %c0_13 = arith.constant 0 : index
    %c16_14 = arith.constant 16 : index
    %c0_15 = arith.constant 0 : index
    %12 = vector.load %arg1[%c0_13, %c16_14, %c0_15] : memref<1x256x64xbf16, #tpu.memory_space<vmem>>, vector<1x15x64xbf16>
    %13 = vector.shape_cast %12 : vector<1x15x64xbf16> to vector<15x64xbf16>
    %c15 = arith.constant 15 : index
    %c0_16 = arith.constant 0 : index
    %14 = vector.load %arg9[%c15, %c0_16] : memref<232x256xbf16, #tpu.memory_space<vmem>>, vector<15x64xbf16>
    tpu.vector_store %arg9[%c15, %c0_16], %13 {strides = array<i32>} : memref<232x256xbf16, #tpu.memory_space<vmem>>, vector<15x64xbf16>,
    %c0_17 = arith.constant 0 : index
    %c17_18 = arith.constant 17 : index
    %c0_19 = arith.constant 0 : index
    %15 = vector.load %arg1[%c0_17, %c17_18, %c0_19] : memref<1x256x64xbf16, #tpu.memory_space<vmem>>, vector<1x15x64xbf16>
    %16 = vector.shape_cast %15 : vector<1x15x64xbf16> to vector<15x64xbf16>
    %c15_20 = arith.constant 15 : index
    %c64_21 = arith.constant 64 : index
    %17 = vector.load %arg9[%c15_20, %c64_21] : memref<232x256xbf16, #tpu.memory_space<vmem>>, vector<15x64xbf16>
    tpu.vector_store %arg9[%c15_20, %c64_21], %16 {strides = array<i32>} : memref<232x256xbf16, #tpu.memory_space<vmem>>, vector<15x64xbf16>,
    %c0_22 = arith.constant 0 : index
    %c32 = arith.constant 32 : index
    %c0_23 = arith.constant 0 : index
    %18 = vector.load %arg1[%c0_22, %c32, %c0_23] : memref<1x256x64xbf16, #tpu.memory_space<vmem>>, vector<1x15x64xbf16>
    %19 = vector.shape_cast %18 : vector<1x15x64xbf16> to vector<15x64xbf16>
    %c15_24 = arith.constant 15 : index
    %c128_25 = arith.constant 128 : index
    %20 = vector.load %arg9[%c15_24, %c128_25] : memref<232x256xbf16, #tpu.memory_space<vmem>>, vector<15x64xbf16>
    tpu.vector_store %arg9[%c15_24, %c128_25], %19 {strides = array<i32>} : memref<232x256xbf16, #tpu.memory_space<vmem>>, vector<15x64xbf16>,
    %c0_26 = arith.constant 0 : index
    %c33 = arith.constant 33 : index
    %c0_27 = arith.constant 0 : index
    %21 = vector.load %arg1[%c0_26, %c33, %c0_27] : memref<1x256x64xbf16, #tpu.memory_space<vmem>>, vector<1x15x64xbf16>
    %22 = vector.shape_cast %21 : vector<1x15x64xbf16> to vector<15x64xbf16>
    %c15_28 = arith.constant 15 : index
    %c192_29 = arith.constant 192 : index
    %23 = vector.load %arg9[%c15_28, %c192_29] : memref<232x256xbf16, #tpu.memory_space<vmem>>, vector<15x64xbf16>
    tpu.vector_store %arg9[%c15_28, %c192_29], %22 {strides = array<i32>} : memref<232x256xbf16, #tpu.memory_space<vmem>>, vector<15x64xbf16>,
    %c0_30 = arith.constant 0 : index
    %c32_31 = arith.constant 32 : index
    %c0_32 = arith.constant 0 : index
    %24 = vector.load %arg1[%c0_30, %c32_31, %c0_32] : memref<1x256x64xbf16, #tpu.memory_space<vmem>>, vector<1x15x64xbf16>
    %25 = vector.shape_cast %24 : vector<1x15x64xbf16> to vector<15x64xbf16>
    %c30 = arith.constant 30 : index
    %c0_33 = arith.constant 0 : index
    %26 = vector.load %arg9[%c30, %c0_33] : memref<232x256xbf16, #tpu.memory_space<vmem>>, vector<15x64xbf16>
    tpu.vector_store %arg9[%c30, %c0_33], %25 {strides = array<i32>} : memref<232x256xbf16, #tpu.memory_space<vmem>>, vector<15x64xbf16>,
    %c0_34 = arith.constant 0 : index
    %c33_35 = arith.constant 33 : index
    %c0_36 = arith.constant 0 : index
    %27 = vector.load %arg1[%c0_34, %c33_35, %c0_36] : memref<1x256x64xbf16, #tpu.memory_space<vmem>>, vector<1x15x64xbf16>
    %28 = vector.shape_cast %27 : vector<1x15x64xbf16> to vector<15x64xbf16>
    %c30_37 = arith.constant 30 : index
    %c64_38 = arith.constant 64 : index
    %29 = vector.load %arg9[%c30_37, %c64_38] : memref<232x256xbf16, #tpu.memory_space<vmem>>, vector<15x64xbf16>
    tpu.vector_store %arg9[%c30_37, %c64_38], %28 {strides = array<i32>} : memref<232x256xbf16, #tpu.memory_space<vmem>>, vector<15x64xbf16>,
    %c0_39 = arith.constant 0 : index
    %c48 = arith.constant 48 : index
    %c0_40 = arith.constant 0 : index
    %30 = vector.load %arg1[%c0_39, %c48, %c0_40] : memref<1x256x64xbf16, #tpu.memory_space<vmem>>, vector<1x15x64xbf16>
    %31 = vector.shape_cast %30 : vector<1x15x64xbf16> to vector<15x64xbf16>
    %c30_41 = arith.constant 30 : index
    %c128_42 = arith.constant 128 : index
    %32 = vector.load %arg9[%c30_41, %c128_42] : memref<232x256xbf16, #tpu.memory_space<vmem>>, vector<15x64xbf16>
    tpu.vector_store %arg9[%c30_41, %c128_42], %31 {strides = array<i32>} : memref<232x256xbf16, #tpu.memory_space<vmem>>, vector<15x64xbf16>,
    %c0_43 = arith.constant 0 : index
    %c49 = arith.constant 49 : index
    %c0_44 = arith.constant 0 : index
    %33 = vector.load %arg1[%c0_43, %c49, %c0_44] : memref<1x256x64xbf16, #tpu.memory_space<vmem>>, vector<1x15x64xbf16>
    %34 = vector.shape_cast %33 : vector<1x15x64xbf16> to vector<15x64xbf16>
    %c30_45 = arith.constant 30 : index
    %c192_46 = arith.constant 192 : index
    %35 = vector.load %arg9[%c30_45, %c192_46] : memref<232x256xbf16, #tpu.memory_space<vmem>>, vector<15x64xbf16>
    tpu.vector_store %arg9[%c30_45, %c192_46], %34 {strides = array<i32>} : memref<232x256xbf16, #tpu.memory_space<vmem>>, vector<15x64xbf16>,
    %c0_47 = arith.constant 0 : index
    %c48_48 = arith.constant 48 : index
    %c0_49 = arith.constant 0 : index
    %36 = vector.load %arg1[%c0_47, %c48_48, %c0_49] : memref<1x256x64xbf16, #tpu.memory_space<vmem>>, vector<1x15x64xbf16>
    %37 = vector.shape_cast %36 : vector<1x15x64xbf16> to vector<15x64xbf16>
    %c45 = arith.constant 45 : index
    %c0_50 = arith.constant 0 : index
    %38 = vector.load %arg9[%c45, %c0_50] : memref<232x256xbf16, #tpu.memory_space<vmem>>, vector<15x64xbf16>
    tpu.vector_store %arg9[%c45, %c0_50], %37 {strides = array<i32>} : memref<232x256xbf16, #tpu.memory_space<vmem>>, vector<15x64xbf16>,
    %c0_51 = arith.constant 0 : index
    %c49_52 = arith.constant 49 : index
    %c0_53 = arith.constant 0 : index
    %39 = vector.load %arg1[%c0_51, %c49_52, %c0_53] : memref<1x256x64xbf16, #tpu.memory_space<vmem>>, vector<1x15x64xbf16>
    %40 = vector.shape_cast %39 : vector<1x15x64xbf16> to vector<15x64xbf16>
    %c45_54 = arith.constant 45 : index
    %c64_55 = arith.constant 64 : index
    %41 = vector.load %arg9[%c45_54, %c64_55] : memref<232x256xbf16, #tpu.memory_space<vmem>>, vector<15x64xbf16>
    tpu.vector_store %arg9[%c45_54, %c64_55], %40 {strides = array<i32>} : memref<232x256xbf16, #tpu.memory_space<vmem>>, vector<15x64xbf16>,
    %c0_56 = arith.constant 0 : index
    %c64_57 = arith.constant 64 : index
    %c0_58 = arith.constant 0 : index
    %42 = vector.load %arg1[%c0_56, %c64_57, %c0_58] : memref<1x256x64xbf16, #tpu.memory_space<vmem>>, vector<1x15x64xbf16>
    %43 = vector.shape_cast %42 : vector<1x15x64xbf16> to vector<15x64xbf16>
    %c45_59 = arith.constant 45 : index
    %c128_60 = arith.constant 128 : index
    %44 = vector.load %arg9[%c45_59, %c128_60] : memref<232x256xbf16, #tpu.memory_space<vmem>>, vector<15x64xbf16>
    tpu.vector_store %arg9[%c45_59, %c128_60], %43 {strides = array<i32>} : memref<232x256xbf16, #tpu.memory_space<vmem>>, vector<15x64xbf16>,
    %c0_61 = arith.constant 0 : index
    %c65 = arith.constant 65 : index
    %c0_62 = arith.constant 0 : index
    %45 = vector.load %arg1[%c0_61, %c65, %c0_62] : memref<1x256x64xbf16, #tpu.memory_space<vmem>>, vector<1x15x64xbf16>
    %46 = vector.shape_cast %45 : vector<1x15x64xbf16> to vector<15x64xbf16>
    %c45_63 = arith.constant 45 : index
    %c192_64 = arith.constant 192 : index
    %47 = vector.load %arg9[%c45_63, %c192_64] : memref<232x256xbf16, #tpu.memory_space<vmem>>, vector<15x64xbf16>
    tpu.vector_store %arg9[%c45_63, %c192_64], %46 {strides = array<i32>} : memref<232x256xbf16, #tpu.memory_space<vmem>>, vector<15x64xbf16>,
    %c0_65 = arith.constant 0 : index
    %c64_66 = arith.constant 64 : index
    %c0_67 = arith.constant 0 : index
    %48 = vector.load %arg1[%c0_65, %c64_66, %c0_67] : memref<1x256x64xbf16, #tpu.memory_space<vmem>>, vector<1x15x64xbf16>
    %49 = vector.shape_cast %48 : vector<1x15x64xbf16> to vector<15x64xbf16>
    %c60 = arith.constant 60 : index
    %c0_68 = arith.constant 0 : index
    %50 = vector.load %arg9[%c60, %c0_68] : memref<232x256xbf16, #tpu.memory_space<vmem>>, vector<15x64xbf16>
    tpu.vector_store %arg9[%c60, %c0_68], %49 {strides = array<i32>} : memref<232x256xbf16, #tpu.memory_space<vmem>>, vector<15x64xbf16>,
    %c0_69 = arith.constant 0 : index
    %c65_70 = arith.constant 65 : index
    %c0_71 = arith.constant 0 : index
    %51 = vector.load %arg1[%c0_69, %c65_70, %c0_71] : memref<1x256x64xbf16, #tpu.memory_space<vmem>>, vector<1x15x64xbf16>
    %52 = vector.shape_cast %51 : vector<1x15x64xbf16> to vector<15x64xbf16>
    %c60_72 = arith.constant 60 : index
    %c64_73 = arith.constant 64 : index
    %53 = vector.load %arg9[%c60_72, %c64_73] : memref<232x256xbf16, #tpu.memory_space<vmem>>, vector<15x64xbf16>
    tpu.vector_store %arg9[%c60_72, %c64_73], %52 {strides = array<i32>} : memref<232x256xbf16, #tpu.memory_space<vmem>>, vector<15x64xbf16>,
    %c0_74 = arith.constant 0 : index
    %c80 = arith.constant 80 : index
    %c0_75 = arith.constant 0 : index
    %54 = vector.load %arg1[%c0_74, %c80, %c0_75] : memref<1x256x64xbf16, #tpu.memory_space<vmem>>, vector<1x15x64xbf16>
    %55 = vector.shape_cast %54 : vector<1x15x64xbf16> to vector<15x64xbf16>
    %c60_76 = arith.constant 60 : index
    %c128_77 = arith.constant 128 : index
    %56 = vector.load %arg9[%c60_76, %c128_77] : memref<232x256xbf16, #tpu.memory_space<vmem>>, vector<15x64xbf16>
    tpu.vector_store %arg9[%c60_76, %c128_77], %55 {strides = array<i32>} : memref<232x256xbf16, #tpu.memory_space<vmem>>, vector<15x64xbf16>,
    %c0_78 = arith.constant 0 : index
    %c81 = arith.constant 81 : index
    %c0_79 = arith.constant 0 : index
    %57 = vector.load %arg1[%c0_78, %c81, %c0_79] : memref<1x256x64xbf16, #tpu.memory_space<vmem>>, vector<1x15x64xbf16>
    %58 = vector.shape_cast %57 : vector<1x15x64xbf16> to vector<15x64xbf16>
    %c60_80 = arith.constant 60 : index
    %c192_81 = arith.constant 192 : index
    %59 = vector.load %arg9[%c60_80, %c192_81] : memref<232x256xbf16, #tpu.memory_space<vmem>>, vector<15x64xbf16>
    tpu.vector_store %arg9[%c60_80, %c192_81], %58 {strides = array<i32>} : memref<232x256xbf16, #tpu.memory_space<vmem>>, vector<15x64xbf16>,
    %c0_82 = arith.constant 0 : index
    %c80_83 = arith.constant 80 : index
    %c0_84 = arith.constant 0 : index
    %60 = vector.load %arg1[%c0_82, %c80_83, %c0_84] : memref<1x256x64xbf16, #tpu.memory_space<vmem>>, vector<1x15x64xbf16>
    %61 = vector.shape_cast %60 : vector<1x15x64xbf16> to vector<15x64xbf16>
    %c75 = arith.constant 75 : index
    %c0_85 = arith.constant 0 : index
    %62 = vector.load %arg9[%c75, %c0_85] : memref<232x256xbf16, #tpu.memory_space<vmem>>, vector<15x64xbf16>
    tpu.vector_store %arg9[%c75, %c0_85], %61 {strides = array<i32>} : memref<232x256xbf16, #tpu.memory_space<vmem>>, vector<15x64xbf16>,
    %c0_86 = arith.constant 0 : index
    %c81_87 = arith.constant 81 : index
    %c0_88 = arith.constant 0 : index
    %63 = vector.load %arg1[%c0_86, %c81_87, %c0_88] : memref<1x256x64xbf16, #tpu.memory_space<vmem>>, vector<1x15x64xbf16>
    %64 = vector.shape_cast %63 : vector<1x15x64xbf16> to vector<15x64xbf16>
    %c75_89 = arith.constant 75 : index
    %c64_90 = arith.constant 64 : index
    %65 = vector.load %arg9[%c75_89, %c64_90] : memref<232x256xbf16, #tpu.memory_space<vmem>>, vector<15x64xbf16>
    tpu.vector_store %arg9[%c75_89, %c64_90], %64 {strides = array<i32>} : memref<232x256xbf16, #tpu.memory_space<vmem>>, vector<15x64xbf16>,
    %c0_91 = arith.constant 0 : index
    %c96 = arith.constant 96 : index
    %c0_92 = arith.constant 0 : index
    %66 = vector.load %arg1[%c0_91, %c96, %c0_92] : memref<1x256x64xbf16, #tpu.memory_space<vmem>>, vector<1x15x64xbf16>
    %67 = vector.shape_cast %66 : vector<1x15x64xbf16> to vector<15x64xbf16>
    %c75_93 = arith.constant 75 : index
    %c128_94 = arith.constant 128 : index
    %68 = vector.load %arg9[%c75_93, %c128_94] : memref<232x256xbf16, #tpu.memory_space<vmem>>, vector<15x64xbf16>
    tpu.vector_store %arg9[%c75_93, %c128_94], %67 {strides = array<i32>} : memref<232x256xbf16, #tpu.memory_space<vmem>>, vector<15x64xbf16>,
    %c0_95 = arith.constant 0 : index
    %c97 = arith.constant 97 : index
    %c0_96 = arith.constant 0 : index
    %69 = vector.load %arg1[%c0_95, %c97, %c0_96] : memref<1x256x64xbf16, #tpu.memory_space<vmem>>, vector<1x15x64xbf16>
    %70 = vector.shape_cast %69 : vector<1x15x64xbf16> to vector<15x64xbf16>
    %c75_97 = arith.constant 75 : index
    %c192_98 = arith.constant 192 : index
    %71 = vector.load %arg9[%c75_97, %c192_98] : memref<232x256xbf16, #tpu.memory_space<vmem>>, vector<15x64xbf16>
    tpu.vector_store %arg9[%c75_97, %c192_98], %70 {strides = array<i32>} : memref<232x256xbf16, #tpu.memory_space<vmem>>, vector<15x64xbf16>,
    %c0_99 = arith.constant 0 : index
    %c96_100 = arith.constant 96 : index
    %c0_101 = arith.constant 0 : index
    %72 = vector.load %arg1[%c0_99, %c96_100, %c0_101] : memref<1x256x64xbf16, #tpu.memory_space<vmem>>, vector<1x15x64xbf16>
    %73 = vector.shape_cast %72 : vector<1x15x64xbf16> to vector<15x64xbf16>
    %c90 = arith.constant 90 : index
    %c0_102 = arith.constant 0 : index
    %74 = vector.load %arg9[%c90, %c0_102] : memref<232x256xbf16, #tpu.memory_space<vmem>>, vector<15x64xbf16>
    tpu.vector_store %arg9[%c90, %c0_102], %73 {strides = array<i32>} : memref<232x256xbf16, #tpu.memory_space<vmem>>, vector<15x64xbf16>,
    %c0_103 = arith.constant 0 : index
    %c97_104 = arith.constant 97 : index
    %c0_105 = arith.constant 0 : index
    %75 = vector.load %arg1[%c0_103, %c97_104, %c0_105] : memref<1x256x64xbf16, #tpu.memory_space<vmem>>, vector<1x15x64xbf16>
    %76 = vector.shape_cast %75 : vector<1x15x64xbf16> to vector<15x64xbf16>
    %c90_106 = arith.constant 90 : index
    %c64_107 = arith.constant 64 : index
    %77 = vector.load %arg9[%c90_106, %c64_107] : memref<232x256xbf16, #tpu.memory_space<vmem>>, vector<15x64xbf16>
    tpu.vector_store %arg9[%c90_106, %c64_107], %76 {strides = array<i32>} : memref<232x256xbf16, #tpu.memory_space<vmem>>, vector<15x64xbf16>,
    %c0_108 = arith.constant 0 : index
    %c112 = arith.constant 112 : index
    %c0_109 = arith.constant 0 : index
    %78 = vector.load %arg1[%c0_108, %c112, %c0_109] : memref<1x256x64xbf16, #tpu.memory_space<vmem>>, vector<1x15x64xbf16>
    %79 = vector.shape_cast %78 : vector<1x15x64xbf16> to vector<15x64xbf16>
    %c90_110 = arith.constant 90 : index
    %c128_111 = arith.constant 128 : index
    %80 = vector.load %arg9[%c90_110, %c128_111] : memref<232x256xbf16, #tpu.memory_space<vmem>>, vector<15x64xbf16>
    tpu.vector_store %arg9[%c90_110, %c128_111], %79 {strides = array<i32>} : memref<232x256xbf16, #tpu.memory_space<vmem>>, vector<15x64xbf16>,
    %c0_112 = arith.constant 0 : index
    %c113 = arith.constant 113 : index
    %c0_113 = arith.constant 0 : index
    %81 = vector.load %arg1[%c0_112, %c113, %c0_113] : memref<1x256x64xbf16, #tpu.memory_space<vmem>>, vector<1x15x64xbf16>
    %82 = vector.shape_cast %81 : vector<1x15x64xbf16> to vector<15x64xbf16>
    %c90_114 = arith.constant 90 : index
    %c192_115 = arith.constant 192 : index
    %83 = vector.load %arg9[%c90_114, %c192_115] : memref<232x256xbf16, #tpu.memory_space<vmem>>, vector<15x64xbf16>
    tpu.vector_store %arg9[%c90_114, %c192_115], %82 {strides = array<i32>} : memref<232x256xbf16, #tpu.memory_space<vmem>>, vector<15x64xbf16>,
    %c0_116 = arith.constant 0 : index
    %c112_117 = arith.constant 112 : index
    %c0_118 = arith.constant 0 : index
    %84 = vector.load %arg1[%c0_116, %c112_117, %c0_118] : memref<1x256x64xbf16, #tpu.memory_space<vmem>>, vector<1x15x64xbf16>
    %85 = vector.shape_cast %84 : vector<1x15x64xbf16> to vector<15x64xbf16>
    %c105 = arith.constant 105 : index
    %c0_119 = arith.constant 0 : index
    %86 = vector.load %arg9[%c105, %c0_119] : memref<232x256xbf16, #tpu.memory_space<vmem>>, vector<15x64xbf16>
    tpu.vector_store %arg9[%c105, %c0_119], %85 {strides = array<i32>} : memref<232x256xbf16, #tpu.memory_space<vmem>>, vector<15x64xbf16>,
    %c0_120 = arith.constant 0 : index
    %c113_121 = arith.constant 113 : index
    %c0_122 = arith.constant 0 : index
    %87 = vector.load %arg1[%c0_120, %c113_121, %c0_122] : memref<1x256x64xbf16, #tpu.memory_space<vmem>>, vector<1x15x64xbf16>
    %88 = vector.shape_cast %87 : vector<1x15x64xbf16> to vector<15x64xbf16>
    %c105_123 = arith.constant 105 : index
    %c64_124 = arith.constant 64 : index
    %89 = vector.load %arg9[%c105_123, %c64_124] : memref<232x256xbf16, #tpu.memory_space<vmem>>, vector<15x64xbf16>
    tpu.vector_store %arg9[%c105_123, %c64_124], %88 {strides = array<i32>} : memref<232x256xbf16, #tpu.memory_space<vmem>>, vector<15x64xbf16>,
    %c0_125 = arith.constant 0 : index
    %c128_126 = arith.constant 128 : index
    %c0_127 = arith.constant 0 : index
    %90 = vector.load %arg1[%c0_125, %c128_126, %c0_127] : memref<1x256x64xbf16, #tpu.memory_space<vmem>>, vector<1x15x64xbf16>
    %91 = vector.shape_cast %90 : vector<1x15x64xbf16> to vector<15x64xbf16>
    %c105_128 = arith.constant 105 : index
    %c128_129 = arith.constant 128 : index
    %92 = vector.load %arg9[%c105_128, %c128_129] : memref<232x256xbf16, #tpu.memory_space<vmem>>, vector<15x64xbf16>
    tpu.vector_store %arg9[%c105_128, %c128_129], %91 {strides = array<i32>} : memref<232x256xbf16, #tpu.memory_space<vmem>>, vector<15x64xbf16>,
    %c0_130 = arith.constant 0 : index
    %c129 = arith.constant 129 : index
    %c0_131 = arith.constant 0 : index
    %93 = vector.load %arg1[%c0_130, %c129, %c0_131] : memref<1x256x64xbf16, #tpu.memory_space<vmem>>, vector<1x15x64xbf16>
    %94 = vector.shape_cast %93 : vector<1x15x64xbf16> to vector<15x64xbf16>
    %c105_132 = arith.constant 105 : index
    %c192_133 = arith.constant 192 : index
    %95 = vector.load %arg9[%c105_132, %c192_133] : memref<232x256xbf16, #tpu.memory_space<vmem>>, vector<15x64xbf16>
    tpu.vector_store %arg9[%c105_132, %c192_133], %94 {strides = array<i32>} : memref<232x256xbf16, #tpu.memory_space<vmem>>, vector<15x64xbf16>,
    %c0_134 = arith.constant 0 : index
    %c128_135 = arith.constant 128 : index
    %c0_136 = arith.constant 0 : index
    %96 = vector.load %arg1[%c0_134, %c128_135, %c0_136] : memref<1x256x64xbf16, #tpu.memory_space<vmem>>, vector<1x15x64xbf16>
    %97 = vector.shape_cast %96 : vector<1x15x64xbf16> to vector<15x64xbf16>
    %c120 = arith.constant 120 : index
    %c0_137 = arith.constant 0 : index
    %98 = vector.load %arg9[%c120, %c0_137] : memref<232x256xbf16, #tpu.memory_space<vmem>>, vector<15x64xbf16>
    tpu.vector_store %arg9[%c120, %c0_137], %97 {strides = array<i32>} : memref<232x256xbf16, #tpu.memory_space<vmem>>, vector<15x64xbf16>,
    %c0_138 = arith.constant 0 : index
    %c129_139 = arith.constant 129 : index
    %c0_140 = arith.constant 0 : index
    %99 = vector.load %arg1[%c0_138, %c129_139, %c0_140] : memref<1x256x64xbf16, #tpu.memory_space<vmem>>, vector<1x15x64xbf16>
    %100 = vector.shape_cast %99 : vector<1x15x64xbf16> to vector<15x64xbf16>
    %c120_141 = arith.constant 120 : index
    %c64_142 = arith.constant 64 : index
    %101 = vector.load %arg9[%c120_141, %c64_142] : memref<232x256xbf16, #tpu.memory_space<vmem>>, vector<15x64xbf16>
    tpu.vector_store %arg9[%c120_141, %c64_142], %100 {strides = array<i32>} : memref<232x256xbf16, #tpu.memory_space<vmem>>, vector<15x64xbf16>,
    %c0_143 = arith.constant 0 : index
    %c144 = arith.constant 144 : index
    %c0_144 = arith.constant 0 : index
    %102 = vector.load %arg1[%c0_143, %c144, %c0_144] : memref<1x256x64xbf16, #tpu.memory_space<vmem>>, vector<1x15x64xbf16>
    %103 = vector.shape_cast %102 : vector<1x15x64xbf16> to vector<15x64xbf16>
    %c120_145 = arith.constant 120 : index
    %c128_146 = arith.constant 128 : index
    %104 = vector.load %arg9[%c120_145, %c128_146] : memref<232x256xbf16, #tpu.memory_space<vmem>>, vector<15x64xbf16>
    tpu.vector_store %arg9[%c120_145, %c128_146], %103 {strides = array<i32>} : memref<232x256xbf16, #tpu.memory_space<vmem>>, vector<15x64xbf16>,
    %c0_147 = arith.constant 0 : index
    %c145 = arith.constant 145 : index
    %c0_148 = arith.constant 0 : index
    %105 = vector.load %arg1[%c0_147, %c145, %c0_148] : memref<1x256x64xbf16, #tpu.memory_space<vmem>>, vector<1x15x64xbf16>
    %106 = vector.shape_cast %105 : vector<1x15x64xbf16> to vector<15x64xbf16>
    %c120_149 = arith.constant 120 : index
    %c192_150 = arith.constant 192 : index
    %107 = vector.load %arg9[%c120_149, %c192_150] : memref<232x256xbf16, #tpu.memory_space<vmem>>, vector<15x64xbf16>
    tpu.vector_store %arg9[%c120_149, %c192_150], %106 {strides = array<i32>} : memref<232x256xbf16, #tpu.memory_space<vmem>>, vector<15x64xbf16>,
    %c0_151 = arith.constant 0 : index
    %c144_152 = arith.constant 144 : index
    %c0_153 = arith.constant 0 : index
    %108 = vector.load %arg1[%c0_151, %c144_152, %c0_153] : memref<1x256x64xbf16, #tpu.memory_space<vmem>>, vector<1x15x64xbf16>
    %109 = vector.shape_cast %108 : vector<1x15x64xbf16> to vector<15x64xbf16>
    %c135 = arith.constant 135 : index
    %c0_154 = arith.constant 0 : index
    %110 = vector.load %arg9[%c135, %c0_154] : memref<232x256xbf16, #tpu.memory_space<vmem>>, vector<15x64xbf16>
    tpu.vector_store %arg9[%c135, %c0_154], %109 {strides = array<i32>} : memref<232x256xbf16, #tpu.memory_space<vmem>>, vector<15x64xbf16>,
    %c0_155 = arith.constant 0 : index
    %c145_156 = arith.constant 145 : index
    %c0_157 = arith.constant 0 : index
    %111 = vector.load %arg1[%c0_155, %c145_156, %c0_157] : memref<1x256x64xbf16, #tpu.memory_space<vmem>>, vector<1x15x64xbf16>
    %112 = vector.shape_cast %111 : vector<1x15x64xbf16> to vector<15x64xbf16>
    %c135_158 = arith.constant 135 : index
    %c64_159 = arith.constant 64 : index
    %113 = vector.load %arg9[%c135_158, %c64_159] : memref<232x256xbf16, #tpu.memory_space<vmem>>, vector<15x64xbf16>
    tpu.vector_store %arg9[%c135_158, %c64_159], %112 {strides = array<i32>} : memref<232x256xbf16, #tpu.memory_space<vmem>>, vector<15x64xbf16>,
    %c0_160 = arith.constant 0 : index
    %c160 = arith.constant 160 : index
    %c0_161 = arith.constant 0 : index
    %114 = vector.load %arg1[%c0_160, %c160, %c0_161] : memref<1x256x64xbf16, #tpu.memory_space<vmem>>, vector<1x15x64xbf16>
    %115 = vector.shape_cast %114 : vector<1x15x64xbf16> to vector<15x64xbf16>
    %c135_162 = arith.constant 135 : index
    %c128_163 = arith.constant 128 : index
    %116 = vector.load %arg9[%c135_162, %c128_163] : memref<232x256xbf16, #tpu.memory_space<vmem>>, vector<15x64xbf16>
    tpu.vector_store %arg9[%c135_162, %c128_163], %115 {strides = array<i32>} : memref<232x256xbf16, #tpu.memory_space<vmem>>, vector<15x64xbf16>,
    %c0_164 = arith.constant 0 : index
    %c161 = arith.constant 161 : index
    %c0_165 = arith.constant 0 : index
    %117 = vector.load %arg1[%c0_164, %c161, %c0_165] : memref<1x256x64xbf16, #tpu.memory_space<vmem>>, vector<1x15x64xbf16>
    %118 = vector.shape_cast %117 : vector<1x15x64xbf16> to vector<15x64xbf16>
    %c135_166 = arith.constant 135 : index
    %c192_167 = arith.constant 192 : index
    %119 = vector.load %arg9[%c135_166, %c192_167] : memref<232x256xbf16, #tpu.memory_space<vmem>>, vector<15x64xbf16>
    tpu.vector_store %arg9[%c135_166, %c192_167], %118 {strides = array<i32>} : memref<232x256xbf16, #tpu.memory_space<vmem>>, vector<15x64xbf16>,
    %c0_168 = arith.constant 0 : index
    %c160_169 = arith.constant 160 : index
    %c0_170 = arith.constant 0 : index
    %120 = vector.load %arg1[%c0_168, %c160_169, %c0_170] : memref<1x256x64xbf16, #tpu.memory_space<vmem>>, vector<1x15x64xbf16>
    %121 = vector.shape_cast %120 : vector<1x15x64xbf16> to vector<15x64xbf16>
    %c150 = arith.constant 150 : index
    %c0_171 = arith.constant 0 : index
    %122 = vector.load %arg9[%c150, %c0_171] : memref<232x256xbf16, #tpu.memory_space<vmem>>, vector<15x64xbf16>
    tpu.vector_store %arg9[%c150, %c0_171], %121 {strides = array<i32>} : memref<232x256xbf16, #tpu.memory_space<vmem>>, vector<15x64xbf16>,
    %c0_172 = arith.constant 0 : index
    %c161_173 = arith.constant 161 : index
    %c0_174 = arith.constant 0 : index
    %123 = vector.load %arg1[%c0_172, %c161_173, %c0_174] : memref<1x256x64xbf16, #tpu.memory_space<vmem>>, vector<1x15x64xbf16>
    %124 = vector.shape_cast %123 : vector<1x15x64xbf16> to vector<15x64xbf16>
    %c150_175 = arith.constant 150 : index
    %c64_176 = arith.constant 64 : index
    %125 = vector.load %arg9[%c150_175, %c64_176] : memref<232x256xbf16, #tpu.memory_space<vmem>>, vector<15x64xbf16>
    tpu.vector_store %arg9[%c150_175, %c64_176], %124 {strides = array<i32>} : memref<232x256xbf16, #tpu.memory_space<vmem>>, vector<15x64xbf16>,
    %c0_177 = arith.constant 0 : index
    %c176 = arith.constant 176 : index
    %c0_178 = arith.constant 0 : index
    %126 = vector.load %arg1[%c0_177, %c176, %c0_178] : memref<1x256x64xbf16, #tpu.memory_space<vmem>>, vector<1x15x64xbf16>
    %127 = vector.shape_cast %126 : vector<1x15x64xbf16> to vector<15x64xbf16>
    %c150_179 = arith.constant 150 : index
    %c128_180 = arith.constant 128 : index
    %128 = vector.load %arg9[%c150_179, %c128_180] : memref<232x256xbf16, #tpu.memory_space<vmem>>, vector<15x64xbf16>
    tpu.vector_store %arg9[%c150_179, %c128_180], %127 {strides = array<i32>} : memref<232x256xbf16, #tpu.memory_space<vmem>>, vector<15x64xbf16>,
    %c0_181 = arith.constant 0 : index
    %c177 = arith.constant 177 : index
    %c0_182 = arith.constant 0 : index
    %129 = vector.load %arg1[%c0_181, %c177, %c0_182] : memref<1x256x64xbf16, #tpu.memory_space<vmem>>, vector<1x15x64xbf16>
    %130 = vector.shape_cast %129 : vector<1x15x64xbf16> to vector<15x64xbf16>
    %c150_183 = arith.constant 150 : index
    %c192_184 = arith.constant 192 : index
    %131 = vector.load %arg9[%c150_183, %c192_184] : memref<232x256xbf16, #tpu.memory_space<vmem>>, vector<15x64xbf16>
    tpu.vector_store %arg9[%c150_183, %c192_184], %130 {strides = array<i32>} : memref<232x256xbf16, #tpu.memory_space<vmem>>, vector<15x64xbf16>,
    %c0_185 = arith.constant 0 : index
    %c176_186 = arith.constant 176 : index
    %c0_187 = arith.constant 0 : index
    %132 = vector.load %arg1[%c0_185, %c176_186, %c0_187] : memref<1x256x64xbf16, #tpu.memory_space<vmem>>, vector<1x15x64xbf16>
    %133 = vector.shape_cast %132 : vector<1x15x64xbf16> to vector<15x64xbf16>
    %c165 = arith.constant 165 : index
    %c0_188 = arith.constant 0 : index
    %134 = vector.load %arg9[%c165, %c0_188] : memref<232x256xbf16, #tpu.memory_space<vmem>>, vector<15x64xbf16>
    tpu.vector_store %arg9[%c165, %c0_188], %133 {strides = array<i32>} : memref<232x256xbf16, #tpu.memory_space<vmem>>, vector<15x64xbf16>,
    %c0_189 = arith.constant 0 : index
    %c177_190 = arith.constant 177 : index
    %c0_191 = arith.constant 0 : index
    %135 = vector.load %arg1[%c0_189, %c177_190, %c0_191] : memref<1x256x64xbf16, #tpu.memory_space<vmem>>, vector<1x15x64xbf16>
    %136 = vector.shape_cast %135 : vector<1x15x64xbf16> to vector<15x64xbf16>
    %c165_192 = arith.constant 165 : index
    %c64_193 = arith.constant 64 : index
    %137 = vector.load %arg9[%c165_192, %c64_193] : memref<232x256xbf16, #tpu.memory_space<vmem>>, vector<15x64xbf16>
    tpu.vector_store %arg9[%c165_192, %c64_193], %136 {strides = array<i32>} : memref<232x256xbf16, #tpu.memory_space<vmem>>, vector<15x64xbf16>,
    %c0_194 = arith.constant 0 : index
    %c192_195 = arith.constant 192 : index
    %c0_196 = arith.constant 0 : index
    %138 = vector.load %arg1[%c0_194, %c192_195, %c0_196] : memref<1x256x64xbf16, #tpu.memory_space<vmem>>, vector<1x15x64xbf16>
    %139 = vector.shape_cast %138 : vector<1x15x64xbf16> to vector<15x64xbf16>
    %c165_197 = arith.constant 165 : index
    %c128_198 = arith.constant 128 : index
    %140 = vector.load %arg9[%c165_197, %c128_198] : memref<232x256xbf16, #tpu.memory_space<vmem>>, vector<15x64xbf16>
    tpu.vector_store %arg9[%c165_197, %c128_198], %139 {strides = array<i32>} : memref<232x256xbf16, #tpu.memory_space<vmem>>, vector<15x64xbf16>,
    %c0_199 = arith.constant 0 : index
    %c193 = arith.constant 193 : index
    %c0_200 = arith.constant 0 : index
    %141 = vector.load %arg1[%c0_199, %c193, %c0_200] : memref<1x256x64xbf16, #tpu.memory_space<vmem>>, vector<1x15x64xbf16>
    %142 = vector.shape_cast %141 : vector<1x15x64xbf16> to vector<15x64xbf16>
    %c165_201 = arith.constant 165 : index
    %c192_202 = arith.constant 192 : index
    %143 = vector.load %arg9[%c165_201, %c192_202] : memref<232x256xbf16, #tpu.memory_space<vmem>>, vector<15x64xbf16>
    tpu.vector_store %arg9[%c165_201, %c192_202], %142 {strides = array<i32>} : memref<232x256xbf16, #tpu.memory_space<vmem>>, vector<15x64xbf16>,
    %c0_203 = arith.constant 0 : index
    %c192_204 = arith.constant 192 : index
    %c0_205 = arith.constant 0 : index
    %144 = vector.load %arg1[%c0_203, %c192_204, %c0_205] : memref<1x256x64xbf16, #tpu.memory_space<vmem>>, vector<1x15x64xbf16>
    %145 = vector.shape_cast %144 : vector<1x15x64xbf16> to vector<15x64xbf16>
    %c180 = arith.constant 180 : index
    %c0_206 = arith.constant 0 : index
    %146 = vector.load %arg9[%c180, %c0_206] : memref<232x256xbf16, #tpu.memory_space<vmem>>, vector<15x64xbf16>
    tpu.vector_store %arg9[%c180, %c0_206], %145 {strides = array<i32>} : memref<232x256xbf16, #tpu.memory_space<vmem>>, vector<15x64xbf16>,
    %c0_207 = arith.constant 0 : index
    %c193_208 = arith.constant 193 : index
    %c0_209 = arith.constant 0 : index
    %147 = vector.load %arg1[%c0_207, %c193_208, %c0_209] : memref<1x256x64xbf16, #tpu.memory_space<vmem>>, vector<1x15x64xbf16>
    %148 = vector.shape_cast %147 : vector<1x15x64xbf16> to vector<15x64xbf16>
    %c180_210 = arith.constant 180 : index
    %c64_211 = arith.constant 64 : index
    %149 = vector.load %arg9[%c180_210, %c64_211] : memref<232x256xbf16, #tpu.memory_space<vmem>>, vector<15x64xbf16>
    tpu.vector_store %arg9[%c180_210, %c64_211], %148 {strides = array<i32>} : memref<232x256xbf16, #tpu.memory_space<vmem>>, vector<15x64xbf16>,
    %c0_212 = arith.constant 0 : index
    %c208 = arith.constant 208 : index
    %c0_213 = arith.constant 0 : index
    %150 = vector.load %arg1[%c0_212, %c208, %c0_213] : memref<1x256x64xbf16, #tpu.memory_space<vmem>>, vector<1x15x64xbf16>
    %151 = vector.shape_cast %150 : vector<1x15x64xbf16> to vector<15x64xbf16>
    %c180_214 = arith.constant 180 : index
    %c128_215 = arith.constant 128 : index
    %152 = vector.load %arg9[%c180_214, %c128_215] : memref<232x256xbf16, #tpu.memory_space<vmem>>, vector<15x64xbf16>
    tpu.vector_store %arg9[%c180_214, %c128_215], %151 {strides = array<i32>} : memref<232x256xbf16, #tpu.memory_space<vmem>>, vector<15x64xbf16>,
    %c0_216 = arith.constant 0 : index
    %c209 = arith.constant 209 : index
    %c0_217 = arith.constant 0 : index
    %153 = vector.load %arg1[%c0_216, %c209, %c0_217] : memref<1x256x64xbf16, #tpu.memory_space<vmem>>, vector<1x15x64xbf16>
    %154 = vector.shape_cast %153 : vector<1x15x64xbf16> to vector<15x64xbf16>
    %c180_218 = arith.constant 180 : index
    %c192_219 = arith.constant 192 : index
    %155 = vector.load %arg9[%c180_218, %c192_219] : memref<232x256xbf16, #tpu.memory_space<vmem>>, vector<15x64xbf16>
    tpu.vector_store %arg9[%c180_218, %c192_219], %154 {strides = array<i32>} : memref<232x256xbf16, #tpu.memory_space<vmem>>, vector<15x64xbf16>,
    %c0_220 = arith.constant 0 : index
    %c208_221 = arith.constant 208 : index
    %c0_222 = arith.constant 0 : index
    %156 = vector.load %arg1[%c0_220, %c208_221, %c0_222] : memref<1x256x64xbf16, #tpu.memory_space<vmem>>, vector<1x15x64xbf16>
    %157 = vector.shape_cast %156 : vector<1x15x64xbf16> to vector<15x64xbf16>
    %c195 = arith.constant 195 : index
    %c0_223 = arith.constant 0 : index
    %158 = vector.load %arg9[%c195, %c0_223] : memref<232x256xbf16, #tpu.memory_space<vmem>>, vector<15x64xbf16>
    tpu.vector_store %arg9[%c195, %c0_223], %157 {strides = array<i32>} : memref<232x256xbf16, #tpu.memory_space<vmem>>, vector<15x64xbf16>,
    %c0_224 = arith.constant 0 : index
    %c209_225 = arith.constant 209 : index
    %c0_226 = arith.constant 0 : index
    %159 = vector.load %arg1[%c0_224, %c209_225, %c0_226] : memref<1x256x64xbf16, #tpu.memory_space<vmem>>, vector<1x15x64xbf16>
    %160 = vector.shape_cast %159 : vector<1x15x64xbf16> to vector<15x64xbf16>
    %c195_227 = arith.constant 195 : index
    %c64_228 = arith.constant 64 : index
    %161 = vector.load %arg9[%c195_227, %c64_228] : memref<232x256xbf16, #tpu.memory_space<vmem>>, vector<15x64xbf16>
    tpu.vector_store %arg9[%c195_227, %c64_228], %160 {strides = array<i32>} : memref<232x256xbf16, #tpu.memory_space<vmem>>, vector<15x64xbf16>,
    %c0_229 = arith.constant 0 : index
    %c224 = arith.constant 224 : index
    %c0_230 = arith.constant 0 : index
    %162 = vector.load %arg1[%c0_229, %c224, %c0_230] : memref<1x256x64xbf16, #tpu.memory_space<vmem>>, vector<1x15x64xbf16>
    %163 = vector.shape_cast %162 : vector<1x15x64xbf16> to vector<15x64xbf16>
    %c195_231 = arith.constant 195 : index
    %c128_232 = arith.constant 128 : index
    %164 = vector.load %arg9[%c195_231, %c128_232] : memref<232x256xbf16, #tpu.memory_space<vmem>>, vector<15x64xbf16>
    tpu.vector_store %arg9[%c195_231, %c128_232], %163 {strides = array<i32>} : memref<232x256xbf16, #tpu.memory_space<vmem>>, vector<15x64xbf16>,
    %c0_233 = arith.constant 0 : index
    %c225 = arith.constant 225 : index
    %c0_234 = arith.constant 0 : index
    %165 = vector.load %arg1[%c0_233, %c225, %c0_234] : memref<1x256x64xbf16, #tpu.memory_space<vmem>>, vector<1x15x64xbf16>
    %166 = vector.shape_cast %165 : vector<1x15x64xbf16> to vector<15x64xbf16>
    %c195_235 = arith.constant 195 : index
    %c192_236 = arith.constant 192 : index
    %167 = vector.load %arg9[%c195_235, %c192_236] : memref<232x256xbf16, #tpu.memory_space<vmem>>, vector<15x64xbf16>
    tpu.vector_store %arg9[%c195_235, %c192_236], %166 {strides = array<i32>} : memref<232x256xbf16, #tpu.memory_space<vmem>>, vector<15x64xbf16>,
    %c0_237 = arith.constant 0 : index
    %c224_238 = arith.constant 224 : index
    %c0_239 = arith.constant 0 : index
    %168 = vector.load %arg1[%c0_237, %c224_238, %c0_239] : memref<1x256x64xbf16, #tpu.memory_space<vmem>>, vector<1x15x64xbf16>
    %169 = vector.shape_cast %168 : vector<1x15x64xbf16> to vector<15x64xbf16>
    %c210 = arith.constant 210 : index
    %c0_240 = arith.constant 0 : index
    %170 = vector.load %arg9[%c210, %c0_240] : memref<232x256xbf16, #tpu.memory_space<vmem>>, vector<15x64xbf16>
    tpu.vector_store %arg9[%c210, %c0_240], %169 {strides = array<i32>} : memref<232x256xbf16, #tpu.memory_space<vmem>>, vector<15x64xbf16>,
    %c0_241 = arith.constant 0 : index
    %c225_242 = arith.constant 225 : index
    %c0_243 = arith.constant 0 : index
    %171 = vector.load %arg1[%c0_241, %c225_242, %c0_243] : memref<1x256x64xbf16, #tpu.memory_space<vmem>>, vector<1x15x64xbf16>
    %172 = vector.shape_cast %171 : vector<1x15x64xbf16> to vector<15x64xbf16>
    %c210_244 = arith.constant 210 : index
    %c64_245 = arith.constant 64 : index
    %173 = vector.load %arg9[%c210_244, %c64_245] : memref<232x256xbf16, #tpu.memory_space<vmem>>, vector<15x64xbf16>
    tpu.vector_store %arg9[%c210_244, %c64_245], %172 {strides = array<i32>} : memref<232x256xbf16, #tpu.memory_space<vmem>>, vector<15x64xbf16>,
    %c0_246 = arith.constant 0 : index
    %c240 = arith.constant 240 : index
    %c0_247 = arith.constant 0 : index
    %174 = vector.load %arg1[%c0_246, %c240, %c0_247] : memref<1x256x64xbf16, #tpu.memory_space<vmem>>, vector<1x15x64xbf16>
    %175 = vector.shape_cast %174 : vector<1x15x64xbf16> to vector<15x64xbf16>
    %c210_248 = arith.constant 210 : index
    %c128_249 = arith.constant 128 : index
    %176 = vector.load %arg9[%c210_248, %c128_249] : memref<232x256xbf16, #tpu.memory_space<vmem>>, vector<15x64xbf16>
    tpu.vector_store %arg9[%c210_248, %c128_249], %175 {strides = array<i32>} : memref<232x256xbf16, #tpu.memory_space<vmem>>, vector<15x64xbf16>,
    %c0_250 = arith.constant 0 : index
    %c241 = arith.constant 241 : index
    %c0_251 = arith.constant 0 : index
    %177 = vector.load %arg1[%c0_250, %c241, %c0_251] : memref<1x256x64xbf16, #tpu.memory_space<vmem>>, vector<1x15x64xbf16>
    %178 = vector.shape_cast %177 : vector<1x15x64xbf16> to vector<15x64xbf16>
    %c210_252 = arith.constant 210 : index
    %c192_253 = arith.constant 192 : index
    %179 = vector.load %arg9[%c210_252, %c192_253] : memref<232x256xbf16, #tpu.memory_space<vmem>>, vector<15x64xbf16>
    tpu.vector_store %arg9[%c210_252, %c192_253], %178 {strides = array<i32>} : memref<232x256xbf16, #tpu.memory_space<vmem>>, vector<15x64xbf16>,
    %c0_254 = arith.constant 0 : index
    %c0_255 = arith.constant 0 : index
    %180 = vector.load %arg9[%c0_254, %c0_255] : memref<232x256xbf16, #tpu.memory_space<vmem>>, vector<232x256xbf16>
    %c0_256 = arith.constant 0 : index
    %c0_257 = arith.constant 0 : index
    %181 = vector.load %arg2[%c0_256, %c0_257] : memref<256x32xbf16, #tpu.memory_space<vmem>>, vector<256x32xbf16>
    %cst = arith.constant dense<0.000000e+00> : vector<232x32xf32>
    %182 = tpu.matmul %180, %181, %cst {dimension_numbers = #tpu.dot_dimension_numbers<[1], [0], [0], [1], [0, 0, 1, 1], [], []>} : vector<232x256xbf16>, vector<256x32xbf16>, vector<232x32xf32> -> vector<232x32xf32>
    %c0_258 = arith.constant 0 : index
    %c0_259 = arith.constant 0 : index
    %183 = vector.load %arg5[%c0_258, %c0_259] : memref<1x32xf32, #tpu.memory_space<vmem>>, vector<1x32xf32>
    %184 = vector.broadcast %183 : vector<1x32xf32> to vector<232x32xf32>
    %185 = arith.addf %182, %184 : vector<232x32xf32>
    %cst_260 = arith.constant 0.000000e+00 : f32
    %186 = vector.broadcast %cst_260 : f32 to vector<232x32xf32>
    %187 = arith.maximumf %185, %186 : vector<232x32xf32>
    %c0_261 = arith.constant 0 : index
    %c0_262 = arith.constant 0 : index
    %188 = vector.load %arg10[%c0_261, %c0_262] : memref<232x32xf32, #tpu.memory_space<vmem>>, vector<232x32xf32>
    tpu.vector_store %arg10[%c0_261, %c0_262], %187 {strides = array<i32>} : memref<232x32xf32, #tpu.memory_space<vmem>>, vector<232x32xf32>,
    %c0_263 = arith.constant 0 : index
    %c0_264 = arith.constant 0 : index
    %189 = tpu.strided_load %arg10[%c0_263, %c0_264] {strides = array<i32: 2, 1>} : memref<232x32xf32, #tpu.memory_space<vmem>>, vector<6x32xf32>
    %190 = arith.truncf %189 : vector<6x32xf32> to vector<6x32xbf16>
    %c0_265 = arith.constant 0 : index
    %c0_266 = arith.constant 0 : index
    %191 = vector.load %arg11[%c0_265, %c0_266] : memref<40x512xbf16, #tpu.memory_space<vmem>>, vector<6x32xbf16>
    tpu.vector_store %arg11[%c0_265, %c0_266], %190 {strides = array<i32>} : memref<40x512xbf16, #tpu.memory_space<vmem>>, vector<6x32xbf16>,
    %c1_267 = arith.constant 1 : index
    %c0_268 = arith.constant 0 : index
    %192 = tpu.strided_load %arg10[%c1_267, %c0_268] {strides = array<i32: 2, 1>} : memref<232x32xf32, #tpu.memory_space<vmem>>, vector<6x32xf32>
    %193 = arith.truncf %192 : vector<6x32xf32> to vector<6x32xbf16>
    %c0_269 = arith.constant 0 : index
    %c32_270 = arith.constant 32 : index
    %194 = vector.load %arg11[%c0_269, %c32_270] : memref<40x512xbf16, #tpu.memory_space<vmem>>, vector<6x32xbf16>
    tpu.vector_store %arg11[%c0_269, %c32_270], %193 {strides = array<i32>} : memref<40x512xbf16, #tpu.memory_space<vmem>>, vector<6x32xbf16>,
    %c2 = arith.constant 2 : index
    %c0_271 = arith.constant 0 : index
    %195 = tpu.strided_load %arg10[%c2, %c0_271] {strides = array<i32: 2, 1>} : memref<232x32xf32, #tpu.memory_space<vmem>>, vector<6x32xf32>
    %196 = arith.truncf %195 : vector<6x32xf32> to vector<6x32xbf16>
    %c0_272 = arith.constant 0 : index
    %c64_273 = arith.constant 64 : index
    %197 = vector.load %arg11[%c0_272, %c64_273] : memref<40x512xbf16, #tpu.memory_space<vmem>>, vector<6x32xbf16>
    tpu.vector_store %arg11[%c0_272, %c64_273], %196 {strides = array<i32>} : memref<40x512xbf16, #tpu.memory_space<vmem>>, vector<6x32xbf16>,
    %c3 = arith.constant 3 : index
    %c0_274 = arith.constant 0 : index
    %198 = tpu.strided_load %arg10[%c3, %c0_274] {strides = array<i32: 2, 1>} : memref<232x32xf32, #tpu.memory_space<vmem>>, vector<6x32xf32>
    %199 = arith.truncf %198 : vector<6x32xf32> to vector<6x32xbf16>
    %c0_275 = arith.constant 0 : index
    %c96_276 = arith.constant 96 : index
    %200 = vector.load %arg11[%c0_275, %c96_276] : memref<40x512xbf16, #tpu.memory_space<vmem>>, vector<6x32xbf16>
    tpu.vector_store %arg11[%c0_275, %c96_276], %199 {strides = array<i32>} : memref<40x512xbf16, #tpu.memory_space<vmem>>, vector<6x32xbf16>,
    %c15_277 = arith.constant 15 : index
    %c0_278 = arith.constant 0 : index
    %201 = tpu.strided_load %arg10[%c15_277, %c0_278] {strides = array<i32: 2, 1>} : memref<232x32xf32, #tpu.memory_space<vmem>>, vector<6x32xf32>
    %202 = arith.truncf %201 : vector<6x32xf32> to vector<6x32xbf16>
    %c0_279 = arith.constant 0 : index
    %c128_280 = arith.constant 128 : index
    %203 = vector.load %arg11[%c0_279, %c128_280] : memref<40x512xbf16, #tpu.memory_space<vmem>>, vector<6x32xbf16>
    tpu.vector_store %arg11[%c0_279, %c128_280], %202 {strides = array<i32>} : memref<40x512xbf16, #tpu.memory_space<vmem>>, vector<6x32xbf16>,
    %c16_281 = arith.constant 16 : index
    %c0_282 = arith.constant 0 : index
    %204 = tpu.strided_load %arg10[%c16_281, %c0_282] {strides = array<i32: 2, 1>} : memref<232x32xf32, #tpu.memory_space<vmem>>, vector<6x32xf32>
    %205 = arith.truncf %204 : vector<6x32xf32> to vector<6x32xbf16>
    %c0_283 = arith.constant 0 : index
    %c160_284 = arith.constant 160 : index
    %206 = vector.load %arg11[%c0_283, %c160_284] : memref<40x512xbf16, #tpu.memory_space<vmem>>, vector<6x32xbf16>
    tpu.vector_store %arg11[%c0_283, %c160_284], %205 {strides = array<i32>} : memref<40x512xbf16, #tpu.memory_space<vmem>>, vector<6x32xbf16>,
    %c17_285 = arith.constant 17 : index
    %c0_286 = arith.constant 0 : index
    %207 = tpu.strided_load %arg10[%c17_285, %c0_286] {strides = array<i32: 2, 1>} : memref<232x32xf32, #tpu.memory_space<vmem>>, vector<6x32xf32>
    %208 = arith.truncf %207 : vector<6x32xf32> to vector<6x32xbf16>
    %c0_287 = arith.constant 0 : index
    %c192_288 = arith.constant 192 : index
    %209 = vector.load %arg11[%c0_287, %c192_288] : memref<40x512xbf16, #tpu.memory_space<vmem>>, vector<6x32xbf16>
    tpu.vector_store %arg11[%c0_287, %c192_288], %208 {strides = array<i32>} : memref<40x512xbf16, #tpu.memory_space<vmem>>, vector<6x32xbf16>,
    %c18 = arith.constant 18 : index
    %c0_289 = arith.constant 0 : index
    %210 = tpu.strided_load %arg10[%c18, %c0_289] {strides = array<i32: 2, 1>} : memref<232x32xf32, #tpu.memory_space<vmem>>, vector<6x32xf32>
    %211 = arith.truncf %210 : vector<6x32xf32> to vector<6x32xbf16>
    %c0_290 = arith.constant 0 : index
    %c224_291 = arith.constant 224 : index
    %212 = vector.load %arg11[%c0_290, %c224_291] : memref<40x512xbf16, #tpu.memory_space<vmem>>, vector<6x32xbf16>
    tpu.vector_store %arg11[%c0_290, %c224_291], %211 {strides = array<i32>} : memref<40x512xbf16, #tpu.memory_space<vmem>>, vector<6x32xbf16>,
    %c30_292 = arith.constant 30 : index
    %c0_293 = arith.constant 0 : index
    %213 = tpu.strided_load %arg10[%c30_292, %c0_293] {strides = array<i32: 2, 1>} : memref<232x32xf32, #tpu.memory_space<vmem>>, vector<6x32xf32>
    %214 = arith.truncf %213 : vector<6x32xf32> to vector<6x32xbf16>
    %c0_294 = arith.constant 0 : index
    %c256 = arith.constant 256 : index
    %215 = vector.load %arg11[%c0_294, %c256] : memref<40x512xbf16, #tpu.memory_space<vmem>>, vector<6x32xbf16>
    tpu.vector_store %arg11[%c0_294, %c256], %214 {strides = array<i32>} : memref<40x512xbf16, #tpu.memory_space<vmem>>, vector<6x32xbf16>,
    %c31 = arith.constant 31 : index
    %c0_295 = arith.constant 0 : index
    %216 = tpu.strided_load %arg10[%c31, %c0_295] {strides = array<i32: 2, 1>} : memref<232x32xf32, #tpu.memory_space<vmem>>, vector<6x32xf32>
    %217 = arith.truncf %216 : vector<6x32xf32> to vector<6x32xbf16>
    %c0_296 = arith.constant 0 : index
    %c288 = arith.constant 288 : index
    %218 = vector.load %arg11[%c0_296, %c288] : memref<40x512xbf16, #tpu.memory_space<vmem>>, vector<6x32xbf16>
    tpu.vector_store %arg11[%c0_296, %c288], %217 {strides = array<i32>} : memref<40x512xbf16, #tpu.memory_space<vmem>>, vector<6x32xbf16>,
    %c32_297 = arith.constant 32 : index
    %c0_298 = arith.constant 0 : index
    %219 = tpu.strided_load %arg10[%c32_297, %c0_298] {strides = array<i32: 2, 1>} : memref<232x32xf32, #tpu.memory_space<vmem>>, vector<6x32xf32>
    %220 = arith.truncf %219 : vector<6x32xf32> to vector<6x32xbf16>
    %c0_299 = arith.constant 0 : index
    %c320 = arith.constant 320 : index
    %221 = vector.load %arg11[%c0_299, %c320] : memref<40x512xbf16, #tpu.memory_space<vmem>>, vector<6x32xbf16>
    tpu.vector_store %arg11[%c0_299, %c320], %220 {strides = array<i32>} : memref<40x512xbf16, #tpu.memory_space<vmem>>, vector<6x32xbf16>,
    %c33_300 = arith.constant 33 : index
    %c0_301 = arith.constant 0 : index
    %222 = tpu.strided_load %arg10[%c33_300, %c0_301] {strides = array<i32: 2, 1>} : memref<232x32xf32, #tpu.memory_space<vmem>>, vector<6x32xf32>
    %223 = arith.truncf %222 : vector<6x32xf32> to vector<6x32xbf16>
    %c0_302 = arith.constant 0 : index
    %c352 = arith.constant 352 : index
    %224 = vector.load %arg11[%c0_302, %c352] : memref<40x512xbf16, #tpu.memory_space<vmem>>, vector<6x32xbf16>
    tpu.vector_store %arg11[%c0_302, %c352], %223 {strides = array<i32>} : memref<40x512xbf16, #tpu.memory_space<vmem>>, vector<6x32xbf16>,
    %c45_303 = arith.constant 45 : index
    %c0_304 = arith.constant 0 : index
    %225 = tpu.strided_load %arg10[%c45_303, %c0_304] {strides = array<i32: 2, 1>} : memref<232x32xf32, #tpu.memory_space<vmem>>, vector<6x32xf32>
    %226 = arith.truncf %225 : vector<6x32xf32> to vector<6x32xbf16>
    %c0_305 = arith.constant 0 : index
    %c384 = arith.constant 384 : index
    %227 = vector.load %arg11[%c0_305, %c384] : memref<40x512xbf16, #tpu.memory_space<vmem>>, vector<6x32xbf16>
    tpu.vector_store %arg11[%c0_305, %c384], %226 {strides = array<i32>} : memref<40x512xbf16, #tpu.memory_space<vmem>>, vector<6x32xbf16>,
    %c46 = arith.constant 46 : index
    %c0_306 = arith.constant 0 : index
    %228 = tpu.strided_load %arg10[%c46, %c0_306] {strides = array<i32: 2, 1>} : memref<232x32xf32, #tpu.memory_space<vmem>>, vector<6x32xf32>
    %229 = arith.truncf %228 : vector<6x32xf32> to vector<6x32xbf16>
    %c0_307 = arith.constant 0 : index
    %c416 = arith.constant 416 : index
    %230 = vector.load %arg11[%c0_307, %c416] : memref<40x512xbf16, #tpu.memory_space<vmem>>, vector<6x32xbf16>
    tpu.vector_store %arg11[%c0_307, %c416], %229 {strides = array<i32>} : memref<40x512xbf16, #tpu.memory_space<vmem>>, vector<6x32xbf16>,
    %c47 = arith.constant 47 : index
    %c0_308 = arith.constant 0 : index
    %231 = tpu.strided_load %arg10[%c47, %c0_308] {strides = array<i32: 2, 1>} : memref<232x32xf32, #tpu.memory_space<vmem>>, vector<6x32xf32>
    %232 = arith.truncf %231 : vector<6x32xf32> to vector<6x32xbf16>
    %c0_309 = arith.constant 0 : index
    %c448 = arith.constant 448 : index
    %233 = vector.load %arg11[%c0_309, %c448] : memref<40x512xbf16, #tpu.memory_space<vmem>>, vector<6x32xbf16>
    tpu.vector_store %arg11[%c0_309, %c448], %232 {strides = array<i32>} : memref<40x512xbf16, #tpu.memory_space<vmem>>, vector<6x32xbf16>,
    %c48_310 = arith.constant 48 : index
    %c0_311 = arith.constant 0 : index
    %234 = tpu.strided_load %arg10[%c48_310, %c0_311] {strides = array<i32: 2, 1>} : memref<232x32xf32, #tpu.memory_space<vmem>>, vector<6x32xf32>
    %235 = arith.truncf %234 : vector<6x32xf32> to vector<6x32xbf16>
    %c0_312 = arith.constant 0 : index
    %c480 = arith.constant 480 : index
    %236 = vector.load %arg11[%c0_312, %c480] : memref<40x512xbf16, #tpu.memory_space<vmem>>, vector<6x32xbf16>
    tpu.vector_store %arg11[%c0_312, %c480], %235 {strides = array<i32>} : memref<40x512xbf16, #tpu.memory_space<vmem>>, vector<6x32xbf16>,
    %c30_313 = arith.constant 30 : index
    %c0_314 = arith.constant 0 : index
    %237 = tpu.strided_load %arg10[%c30_313, %c0_314] {strides = array<i32: 2, 1>} : memref<232x32xf32, #tpu.memory_space<vmem>>, vector<6x32xf32>
    %238 = arith.truncf %237 : vector<6x32xf32> to vector<6x32xbf16>
    %c6 = arith.constant 6 : index
    %c0_315 = arith.constant 0 : index
    %239 = vector.load %arg11[%c6, %c0_315] : memref<40x512xbf16, #tpu.memory_space<vmem>>, vector<6x32xbf16>
    tpu.vector_store %arg11[%c6, %c0_315], %238 {strides = array<i32>} : memref<40x512xbf16, #tpu.memory_space<vmem>>, vector<6x32xbf16>,
    %c31_316 = arith.constant 31 : index
    %c0_317 = arith.constant 0 : index
    %240 = tpu.strided_load %arg10[%c31_316, %c0_317] {strides = array<i32: 2, 1>} : memref<232x32xf32, #tpu.memory_space<vmem>>, vector<6x32xf32>
    %241 = arith.truncf %240 : vector<6x32xf32> to vector<6x32xbf16>
    %c6_318 = arith.constant 6 : index
    %c32_319 = arith.constant 32 : index
    %242 = vector.load %arg11[%c6_318, %c32_319] : memref<40x512xbf16, #tpu.memory_space<vmem>>, vector<6x32xbf16>
    tpu.vector_store %arg11[%c6_318, %c32_319], %241 {strides = array<i32>} : memref<40x512xbf16, #tpu.memory_space<vmem>>, vector<6x32xbf16>,
    %c32_320 = arith.constant 32 : index
    %c0_321 = arith.constant 0 : index
    %243 = tpu.strided_load %arg10[%c32_320, %c0_321] {strides = array<i32: 2, 1>} : memref<232x32xf32, #tpu.memory_space<vmem>>, vector<6x32xf32>
    %244 = arith.truncf %243 : vector<6x32xf32> to vector<6x32xbf16>
    %c6_322 = arith.constant 6 : index
    %c64_323 = arith.constant 64 : index
    %245 = vector.load %arg11[%c6_322, %c64_323] : memref<40x512xbf16, #tpu.memory_space<vmem>>, vector<6x32xbf16>
    tpu.vector_store %arg11[%c6_322, %c64_323], %244 {strides = array<i32>} : memref<40x512xbf16, #tpu.memory_space<vmem>>, vector<6x32xbf16>,
    %c33_324 = arith.constant 33 : index
    %c0_325 = arith.constant 0 : index
    %246 = tpu.strided_load %arg10[%c33_324, %c0_325] {strides = array<i32: 2, 1>} : memref<232x32xf32, #tpu.memory_space<vmem>>, vector<6x32xf32>
    %247 = arith.truncf %246 : vector<6x32xf32> to vector<6x32xbf16>
    %c6_326 = arith.constant 6 : index
    %c96_327 = arith.constant 96 : index
    %248 = vector.load %arg11[%c6_326, %c96_327] : memref<40x512xbf16, #tpu.memory_space<vmem>>, vector<6x32xbf16>
    tpu.vector_store %arg11[%c6_326, %c96_327], %247 {strides = array<i32>} : memref<40x512xbf16, #tpu.memory_space<vmem>>, vector<6x32xbf16>,
    %c45_328 = arith.constant 45 : index
    %c0_329 = arith.constant 0 : index
    %249 = tpu.strided_load %arg10[%c45_328, %c0_329] {strides = array<i32: 2, 1>} : memref<232x32xf32, #tpu.memory_space<vmem>>, vector<6x32xf32>
    %250 = arith.truncf %249 : vector<6x32xf32> to vector<6x32xbf16>
    %c6_330 = arith.constant 6 : index
    %c128_331 = arith.constant 128 : index
    %251 = vector.load %arg11[%c6_330, %c128_331] : memref<40x512xbf16, #tpu.memory_space<vmem>>, vector<6x32xbf16>
    tpu.vector_store %arg11[%c6_330, %c128_331], %250 {strides = array<i32>} : memref<40x512xbf16, #tpu.memory_space<vmem>>, vector<6x32xbf16>,
    %c46_332 = arith.constant 46 : index
    %c0_333 = arith.constant 0 : index
    %252 = tpu.strided_load %arg10[%c46_332, %c0_333] {strides = array<i32: 2, 1>} : memref<232x32xf32, #tpu.memory_space<vmem>>, vector<6x32xf32>
    %253 = arith.truncf %252 : vector<6x32xf32> to vector<6x32xbf16>
    %c6_334 = arith.constant 6 : index
    %c160_335 = arith.constant 160 : index
    %254 = vector.load %arg11[%c6_334, %c160_335] : memref<40x512xbf16, #tpu.memory_space<vmem>>, vector<6x32xbf16>
    tpu.vector_store %arg11[%c6_334, %c160_335], %253 {strides = array<i32>} : memref<40x512xbf16, #tpu.memory_space<vmem>>, vector<6x32xbf16>,
    %c47_336 = arith.constant 47 : index
    %c0_337 = arith.constant 0 : index
    %255 = tpu.strided_load %arg10[%c47_336, %c0_337] {strides = array<i32: 2, 1>} : memref<232x32xf32, #tpu.memory_space<vmem>>, vector<6x32xf32>
    %256 = arith.truncf %255 : vector<6x32xf32> to vector<6x32xbf16>
    %c6_338 = arith.constant 6 : index
    %c192_339 = arith.constant 192 : index
    %257 = vector.load %arg11[%c6_338, %c192_339] : memref<40x512xbf16, #tpu.memory_space<vmem>>, vector<6x32xbf16>
    tpu.vector_store %arg11[%c6_338, %c192_339], %256 {strides = array<i32>} : memref<40x512xbf16, #tpu.memory_space<vmem>>, vector<6x32xbf16>,
    %c48_340 = arith.constant 48 : index
    %c0_341 = arith.constant 0 : index
    %258 = tpu.strided_load %arg10[%c48_340, %c0_341] {strides = array<i32: 2, 1>} : memref<232x32xf32, #tpu.memory_space<vmem>>, vector<6x32xf32>
    %259 = arith.truncf %258 : vector<6x32xf32> to vector<6x32xbf16>
    %c6_342 = arith.constant 6 : index
    %c224_343 = arith.constant 224 : index
    %260 = vector.load %arg11[%c6_342, %c224_343] : memref<40x512xbf16, #tpu.memory_space<vmem>>, vector<6x32xbf16>
    tpu.vector_store %arg11[%c6_342, %c224_343], %259 {strides = array<i32>} : memref<40x512xbf16, #tpu.memory_space<vmem>>, vector<6x32xbf16>,
    %c60_344 = arith.constant 60 : index
    %c0_345 = arith.constant 0 : index
    %261 = tpu.strided_load %arg10[%c60_344, %c0_345] {strides = array<i32: 2, 1>} : memref<232x32xf32, #tpu.memory_space<vmem>>, vector<6x32xf32>
    %262 = arith.truncf %261 : vector<6x32xf32> to vector<6x32xbf16>
    %c6_346 = arith.constant 6 : index
    %c256_347 = arith.constant 256 : index
    %263 = vector.load %arg11[%c6_346, %c256_347] : memref<40x512xbf16, #tpu.memory_space<vmem>>, vector<6x32xbf16>
    tpu.vector_store %arg11[%c6_346, %c256_347], %262 {strides = array<i32>} : memref<40x512xbf16, #tpu.memory_space<vmem>>, vector<6x32xbf16>,
    %c61 = arith.constant 61 : index
    %c0_348 = arith.constant 0 : index
    %264 = tpu.strided_load %arg10[%c61, %c0_348] {strides = array<i32: 2, 1>} : memref<232x32xf32, #tpu.memory_space<vmem>>, vector<6x32xf32>
    %265 = arith.truncf %264 : vector<6x32xf32> to vector<6x32xbf16>
    %c6_349 = arith.constant 6 : index
    %c288_350 = arith.constant 288 : index
    %266 = vector.load %arg11[%c6_349, %c288_350] : memref<40x512xbf16, #tpu.memory_space<vmem>>, vector<6x32xbf16>
    tpu.vector_store %arg11[%c6_349, %c288_350], %265 {strides = array<i32>} : memref<40x512xbf16, #tpu.memory_space<vmem>>, vector<6x32xbf16>,
    %c62 = arith.constant 62 : index
    %c0_351 = arith.constant 0 : index
    %267 = tpu.strided_load %arg10[%c62, %c0_351] {strides = array<i32: 2, 1>} : memref<232x32xf32, #tpu.memory_space<vmem>>, vector<6x32xf32>
    %268 = arith.truncf %267 : vector<6x32xf32> to vector<6x32xbf16>
    %c6_352 = arith.constant 6 : index
    %c320_353 = arith.constant 320 : index
    %269 = vector.load %arg11[%c6_352, %c320_353] : memref<40x512xbf16, #tpu.memory_space<vmem>>, vector<6x32xbf16>
    tpu.vector_store %arg11[%c6_352, %c320_353], %268 {strides = array<i32>} : memref<40x512xbf16, #tpu.memory_space<vmem>>, vector<6x32xbf16>,
    %c63 = arith.constant 63 : index
    %c0_354 = arith.constant 0 : index
    %270 = tpu.strided_load %arg10[%c63, %c0_354] {strides = array<i32: 2, 1>} : memref<232x32xf32, #tpu.memory_space<vmem>>, vector<6x32xf32>
    %271 = arith.truncf %270 : vector<6x32xf32> to vector<6x32xbf16>
    %c6_355 = arith.constant 6 : index
    %c352_356 = arith.constant 352 : index
    %272 = vector.load %arg11[%c6_355, %c352_356] : memref<40x512xbf16, #tpu.memory_space<vmem>>, vector<6x32xbf16>
    tpu.vector_store %arg11[%c6_355, %c352_356], %271 {strides = array<i32>} : memref<40x512xbf16, #tpu.memory_space<vmem>>, vector<6x32xbf16>,
    %c75_357 = arith.constant 75 : index
    %c0_358 = arith.constant 0 : index
    %273 = tpu.strided_load %arg10[%c75_357, %c0_358] {strides = array<i32: 2, 1>} : memref<232x32xf32, #tpu.memory_space<vmem>>, vector<6x32xf32>
    %274 = arith.truncf %273 : vector<6x32xf32> to vector<6x32xbf16>
    %c6_359 = arith.constant 6 : index
    %c384_360 = arith.constant 384 : index
    %275 = vector.load %arg11[%c6_359, %c384_360] : memref<40x512xbf16, #tpu.memory_space<vmem>>, vector<6x32xbf16>
    tpu.vector_store %arg11[%c6_359, %c384_360], %274 {strides = array<i32>} : memref<40x512xbf16, #tpu.memory_space<vmem>>, vector<6x32xbf16>,
    %c76 = arith.constant 76 : index
    %c0_361 = arith.constant 0 : index
    %276 = tpu.strided_load %arg10[%c76, %c0_361] {strides = array<i32: 2, 1>} : memref<232x32xf32, #tpu.memory_space<vmem>>, vector<6x32xf32>
    %277 = arith.truncf %276 : vector<6x32xf32> to vector<6x32xbf16>
    %c6_362 = arith.constant 6 : index
    %c416_363 = arith.constant 416 : index
    %278 = vector.load %arg11[%c6_362, %c416_363] : memref<40x512xbf16, #tpu.memory_space<vmem>>, vector<6x32xbf16>
    tpu.vector_store %arg11[%c6_362, %c416_363], %277 {strides = array<i32>} : memref<40x512xbf16, #tpu.memory_space<vmem>>, vector<6x32xbf16>,
    %c77 = arith.constant 77 : index
    %c0_364 = arith.constant 0 : index
    %279 = tpu.strided_load %arg10[%c77, %c0_364] {strides = array<i32: 2, 1>} : memref<232x32xf32, #tpu.memory_space<vmem>>, vector<6x32xf32>
    %280 = arith.truncf %279 : vector<6x32xf32> to vector<6x32xbf16>
    %c6_365 = arith.constant 6 : index
    %c448_366 = arith.constant 448 : index
    %281 = vector.load %arg11[%c6_365, %c448_366] : memref<40x512xbf16, #tpu.memory_space<vmem>>, vector<6x32xbf16>
    tpu.vector_store %arg11[%c6_365, %c448_366], %280 {strides = array<i32>} : memref<40x512xbf16, #tpu.memory_space<vmem>>, vector<6x32xbf16>,
    %c78 = arith.constant 78 : index
    %c0_367 = arith.constant 0 : index
    %282 = tpu.strided_load %arg10[%c78, %c0_367] {strides = array<i32: 2, 1>} : memref<232x32xf32, #tpu.memory_space<vmem>>, vector<6x32xf32>
    %283 = arith.truncf %282 : vector<6x32xf32> to vector<6x32xbf16>
    %c6_368 = arith.constant 6 : index
    %c480_369 = arith.constant 480 : index
    %284 = vector.load %arg11[%c6_368, %c480_369] : memref<40x512xbf16, #tpu.memory_space<vmem>>, vector<6x32xbf16>
    tpu.vector_store %arg11[%c6_368, %c480_369], %283 {strides = array<i32>} : memref<40x512xbf16, #tpu.memory_space<vmem>>, vector<6x32xbf16>,
    %c60_370 = arith.constant 60 : index
    %c0_371 = arith.constant 0 : index
    %285 = tpu.strided_load %arg10[%c60_370, %c0_371] {strides = array<i32: 2, 1>} : memref<232x32xf32, #tpu.memory_space<vmem>>, vector<6x32xf32>
    %286 = arith.truncf %285 : vector<6x32xf32> to vector<6x32xbf16>
    %c12 = arith.constant 12 : index
    %c0_372 = arith.constant 0 : index
    %287 = vector.load %arg11[%c12, %c0_372] : memref<40x512xbf16, #tpu.memory_space<vmem>>, vector<6x32xbf16>
    tpu.vector_store %arg11[%c12, %c0_372], %286 {strides = array<i32>} : memref<40x512xbf16, #tpu.memory_space<vmem>>, vector<6x32xbf16>,
    %c61_373 = arith.constant 61 : index
    %c0_374 = arith.constant 0 : index
    %288 = tpu.strided_load %arg10[%c61_373, %c0_374] {strides = array<i32: 2, 1>} : memref<232x32xf32, #tpu.memory_space<vmem>>, vector<6x32xf32>
    %289 = arith.truncf %288 : vector<6x32xf32> to vector<6x32xbf16>
    %c12_375 = arith.constant 12 : index
    %c32_376 = arith.constant 32 : index
    %290 = vector.load %arg11[%c12_375, %c32_376] : memref<40x512xbf16, #tpu.memory_space<vmem>>, vector<6x32xbf16>
    tpu.vector_store %arg11[%c12_375, %c32_376], %289 {strides = array<i32>} : memref<40x512xbf16, #tpu.memory_space<vmem>>, vector<6x32xbf16>,
    %c62_377 = arith.constant 62 : index
    %c0_378 = arith.constant 0 : index
    %291 = tpu.strided_load %arg10[%c62_377, %c0_378] {strides = array<i32: 2, 1>} : memref<232x32xf32, #tpu.memory_space<vmem>>, vector<6x32xf32>
    %292 = arith.truncf %291 : vector<6x32xf32> to vector<6x32xbf16>
    %c12_379 = arith.constant 12 : index
    %c64_380 = arith.constant 64 : index
    %293 = vector.load %arg11[%c12_379, %c64_380] : memref<40x512xbf16, #tpu.memory_space<vmem>>, vector<6x32xbf16>
    tpu.vector_store %arg11[%c12_379, %c64_380], %292 {strides = array<i32>} : memref<40x512xbf16, #tpu.memory_space<vmem>>, vector<6x32xbf16>,
    %c63_381 = arith.constant 63 : index
    %c0_382 = arith.constant 0 : index
    %294 = tpu.strided_load %arg10[%c63_381, %c0_382] {strides = array<i32: 2, 1>} : memref<232x32xf32, #tpu.memory_space<vmem>>, vector<6x32xf32>
    %295 = arith.truncf %294 : vector<6x32xf32> to vector<6x32xbf16>
    %c12_383 = arith.constant 12 : index
    %c96_384 = arith.constant 96 : index
    %296 = vector.load %arg11[%c12_383, %c96_384] : memref<40x512xbf16, #tpu.memory_space<vmem>>, vector<6x32xbf16>
    tpu.vector_store %arg11[%c12_383, %c96_384], %295 {strides = array<i32>} : memref<40x512xbf16, #tpu.memory_space<vmem>>, vector<6x32xbf16>,
    %c75_385 = arith.constant 75 : index
    %c0_386 = arith.constant 0 : index
    %297 = tpu.strided_load %arg10[%c75_385, %c0_386] {strides = array<i32: 2, 1>} : memref<232x32xf32, #tpu.memory_space<vmem>>, vector<6x32xf32>
    %298 = arith.truncf %297 : vector<6x32xf32> to vector<6x32xbf16>
    %c12_387 = arith.constant 12 : index
    %c128_388 = arith.constant 128 : index
    %299 = vector.load %arg11[%c12_387, %c128_388] : memref<40x512xbf16, #tpu.memory_space<vmem>>, vector<6x32xbf16>
    tpu.vector_store %arg11[%c12_387, %c128_388], %298 {strides = array<i32>} : memref<40x512xbf16, #tpu.memory_space<vmem>>, vector<6x32xbf16>,
    %c76_389 = arith.constant 76 : index
    %c0_390 = arith.constant 0 : index
    %300 = tpu.strided_load %arg10[%c76_389, %c0_390] {strides = array<i32: 2, 1>} : memref<232x32xf32, #tpu.memory_space<vmem>>, vector<6x32xf32>
    %301 = arith.truncf %300 : vector<6x32xf32> to vector<6x32xbf16>
    %c12_391 = arith.constant 12 : index
    %c160_392 = arith.constant 160 : index
    %302 = vector.load %arg11[%c12_391, %c160_392] : memref<40x512xbf16, #tpu.memory_space<vmem>>, vector<6x32xbf16>
    tpu.vector_store %arg11[%c12_391, %c160_392], %301 {strides = array<i32>} : memref<40x512xbf16, #tpu.memory_space<vmem>>, vector<6x32xbf16>,
    %c77_393 = arith.constant 77 : index
    %c0_394 = arith.constant 0 : index
    %303 = tpu.strided_load %arg10[%c77_393, %c0_394] {strides = array<i32: 2, 1>} : memref<232x32xf32, #tpu.memory_space<vmem>>, vector<6x32xf32>
    %304 = arith.truncf %303 : vector<6x32xf32> to vector<6x32xbf16>
    %c12_395 = arith.constant 12 : index
    %c192_396 = arith.constant 192 : index
    %305 = vector.load %arg11[%c12_395, %c192_396] : memref<40x512xbf16, #tpu.memory_space<vmem>>, vector<6x32xbf16>
    tpu.vector_store %arg11[%c12_395, %c192_396], %304 {strides = array<i32>} : memref<40x512xbf16, #tpu.memory_space<vmem>>, vector<6x32xbf16>,
    %c78_397 = arith.constant 78 : index
    %c0_398 = arith.constant 0 : index
    %306 = tpu.strided_load %arg10[%c78_397, %c0_398] {strides = array<i32: 2, 1>} : memref<232x32xf32, #tpu.memory_space<vmem>>, vector<6x32xf32>
    %307 = arith.truncf %306 : vector<6x32xf32> to vector<6x32xbf16>
    %c12_399 = arith.constant 12 : index
    %c224_400 = arith.constant 224 : index
    %308 = vector.load %arg11[%c12_399, %c224_400] : memref<40x512xbf16, #tpu.memory_space<vmem>>, vector<6x32xbf16>
    tpu.vector_store %arg11[%c12_399, %c224_400], %307 {strides = array<i32>} : memref<40x512xbf16, #tpu.memory_space<vmem>>, vector<6x32xbf16>,
    %c90_401 = arith.constant 90 : index
    %c0_402 = arith.constant 0 : index
    %309 = tpu.strided_load %arg10[%c90_401, %c0_402] {strides = array<i32: 2, 1>} : memref<232x32xf32, #tpu.memory_space<vmem>>, vector<6x32xf32>
    %310 = arith.truncf %309 : vector<6x32xf32> to vector<6x32xbf16>
    %c12_403 = arith.constant 12 : index
    %c256_404 = arith.constant 256 : index
    %311 = vector.load %arg11[%c12_403, %c256_404] : memref<40x512xbf16, #tpu.memory_space<vmem>>, vector<6x32xbf16>
    tpu.vector_store %arg11[%c12_403, %c256_404], %310 {strides = array<i32>} : memref<40x512xbf16, #tpu.memory_space<vmem>>, vector<6x32xbf16>,
    %c91 = arith.constant 91 : index
    %c0_405 = arith.constant 0 : index
    %312 = tpu.strided_load %arg10[%c91, %c0_405] {strides = array<i32: 2, 1>} : memref<232x32xf32, #tpu.memory_space<vmem>>, vector<6x32xf32>
    %313 = arith.truncf %312 : vector<6x32xf32> to vector<6x32xbf16>
    %c12_406 = arith.constant 12 : index
    %c288_407 = arith.constant 288 : index
    %314 = vector.load %arg11[%c12_406, %c288_407] : memref<40x512xbf16, #tpu.memory_space<vmem>>, vector<6x32xbf16>
    tpu.vector_store %arg11[%c12_406, %c288_407], %313 {strides = array<i32>} : memref<40x512xbf16, #tpu.memory_space<vmem>>, vector<6x32xbf16>,
    %c92 = arith.constant 92 : index
    %c0_408 = arith.constant 0 : index
    %315 = tpu.strided_load %arg10[%c92, %c0_408] {strides = array<i32: 2, 1>} : memref<232x32xf32, #tpu.memory_space<vmem>>, vector<6x32xf32>
    %316 = arith.truncf %315 : vector<6x32xf32> to vector<6x32xbf16>
    %c12_409 = arith.constant 12 : index
    %c320_410 = arith.constant 320 : index
    %317 = vector.load %arg11[%c12_409, %c320_410] : memref<40x512xbf16, #tpu.memory_space<vmem>>, vector<6x32xbf16>
    tpu.vector_store %arg11[%c12_409, %c320_410], %316 {strides = array<i32>} : memref<40x512xbf16, #tpu.memory_space<vmem>>, vector<6x32xbf16>,
    %c93 = arith.constant 93 : index
    %c0_411 = arith.constant 0 : index
    %318 = tpu.strided_load %arg10[%c93, %c0_411] {strides = array<i32: 2, 1>} : memref<232x32xf32, #tpu.memory_space<vmem>>, vector<6x32xf32>
    %319 = arith.truncf %318 : vector<6x32xf32> to vector<6x32xbf16>
    %c12_412 = arith.constant 12 : index
    %c352_413 = arith.constant 352 : index
    %320 = vector.load %arg11[%c12_412, %c352_413] : memref<40x512xbf16, #tpu.memory_space<vmem>>, vector<6x32xbf16>
    tpu.vector_store %arg11[%c12_412, %c352_413], %319 {strides = array<i32>} : memref<40x512xbf16, #tpu.memory_space<vmem>>, vector<6x32xbf16>,
    %c105_414 = arith.constant 105 : index
    %c0_415 = arith.constant 0 : index
    %321 = tpu.strided_load %arg10[%c105_414, %c0_415] {strides = array<i32: 2, 1>} : memref<232x32xf32, #tpu.memory_space<vmem>>, vector<6x32xf32>
    %322 = arith.truncf %321 : vector<6x32xf32> to vector<6x32xbf16>
    %c12_416 = arith.constant 12 : index
    %c384_417 = arith.constant 384 : index
    %323 = vector.load %arg11[%c12_416, %c384_417] : memref<40x512xbf16, #tpu.memory_space<vmem>>, vector<6x32xbf16>
    tpu.vector_store %arg11[%c12_416, %c384_417], %322 {strides = array<i32>} : memref<40x512xbf16, #tpu.memory_space<vmem>>, vector<6x32xbf16>,
    %c106 = arith.constant 106 : index
    %c0_418 = arith.constant 0 : index
    %324 = tpu.strided_load %arg10[%c106, %c0_418] {strides = array<i32: 2, 1>} : memref<232x32xf32, #tpu.memory_space<vmem>>, vector<6x32xf32>
    %325 = arith.truncf %324 : vector<6x32xf32> to vector<6x32xbf16>
    %c12_419 = arith.constant 12 : index
    %c416_420 = arith.constant 416 : index
    %326 = vector.load %arg11[%c12_419, %c416_420] : memref<40x512xbf16, #tpu.memory_space<vmem>>, vector<6x32xbf16>
    tpu.vector_store %arg11[%c12_419, %c416_420], %325 {strides = array<i32>} : memref<40x512xbf16, #tpu.memory_space<vmem>>, vector<6x32xbf16>,
    %c107 = arith.constant 107 : index
    %c0_421 = arith.constant 0 : index
    %327 = tpu.strided_load %arg10[%c107, %c0_421] {strides = array<i32: 2, 1>} : memref<232x32xf32, #tpu.memory_space<vmem>>, vector<6x32xf32>
    %328 = arith.truncf %327 : vector<6x32xf32> to vector<6x32xbf16>
    %c12_422 = arith.constant 12 : index
    %c448_423 = arith.constant 448 : index
    %329 = vector.load %arg11[%c12_422, %c448_423] : memref<40x512xbf16, #tpu.memory_space<vmem>>, vector<6x32xbf16>
    tpu.vector_store %arg11[%c12_422, %c448_423], %328 {strides = array<i32>} : memref<40x512xbf16, #tpu.memory_space<vmem>>, vector<6x32xbf16>,
    %c108 = arith.constant 108 : index
    %c0_424 = arith.constant 0 : index
    %330 = tpu.strided_load %arg10[%c108, %c0_424] {strides = array<i32: 2, 1>} : memref<232x32xf32, #tpu.memory_space<vmem>>, vector<6x32xf32>
    %331 = arith.truncf %330 : vector<6x32xf32> to vector<6x32xbf16>
    %c12_425 = arith.constant 12 : index
    %c480_426 = arith.constant 480 : index
    %332 = vector.load %arg11[%c12_425, %c480_426] : memref<40x512xbf16, #tpu.memory_space<vmem>>, vector<6x32xbf16>
    tpu.vector_store %arg11[%c12_425, %c480_426], %331 {strides = array<i32>} : memref<40x512xbf16, #tpu.memory_space<vmem>>, vector<6x32xbf16>,
    %c90_427 = arith.constant 90 : index
    %c0_428 = arith.constant 0 : index
    %333 = tpu.strided_load %arg10[%c90_427, %c0_428] {strides = array<i32: 2, 1>} : memref<232x32xf32, #tpu.memory_space<vmem>>, vector<6x32xf32>
    %334 = arith.truncf %333 : vector<6x32xf32> to vector<6x32xbf16>
    %c18_429 = arith.constant 18 : index
    %c0_430 = arith.constant 0 : index
    %335 = vector.load %arg11[%c18_429, %c0_430] : memref<40x512xbf16, #tpu.memory_space<vmem>>, vector<6x32xbf16>
    tpu.vector_store %arg11[%c18_429, %c0_430], %334 {strides = array<i32>} : memref<40x512xbf16, #tpu.memory_space<vmem>>, vector<6x32xbf16>,
    %c91_431 = arith.constant 91 : index
    %c0_432 = arith.constant 0 : index
    %336 = tpu.strided_load %arg10[%c91_431, %c0_432] {strides = array<i32: 2, 1>} : memref<232x32xf32, #tpu.memory_space<vmem>>, vector<6x32xf32>
    %337 = arith.truncf %336 : vector<6x32xf32> to vector<6x32xbf16>
    %c18_433 = arith.constant 18 : index
    %c32_434 = arith.constant 32 : index
    %338 = vector.load %arg11[%c18_433, %c32_434] : memref<40x512xbf16, #tpu.memory_space<vmem>>, vector<6x32xbf16>
    tpu.vector_store %arg11[%c18_433, %c32_434], %337 {strides = array<i32>} : memref<40x512xbf16, #tpu.memory_space<vmem>>, vector<6x32xbf16>,
    %c92_435 = arith.constant 92 : index
    %c0_436 = arith.constant 0 : index
    %339 = tpu.strided_load %arg10[%c92_435, %c0_436] {strides = array<i32: 2, 1>} : memref<232x32xf32, #tpu.memory_space<vmem>>, vector<6x32xf32>
    %340 = arith.truncf %339 : vector<6x32xf32> to vector<6x32xbf16>
    %c18_437 = arith.constant 18 : index
    %c64_438 = arith.constant 64 : index
    %341 = vector.load %arg11[%c18_437, %c64_438] : memref<40x512xbf16, #tpu.memory_space<vmem>>, vector<6x32xbf16>
    tpu.vector_store %arg11[%c18_437, %c64_438], %340 {strides = array<i32>} : memref<40x512xbf16, #tpu.memory_space<vmem>>, vector<6x32xbf16>,
    %c93_439 = arith.constant 93 : index
    %c0_440 = arith.constant 0 : index
    %342 = tpu.strided_load %arg10[%c93_439, %c0_440] {strides = array<i32: 2, 1>} : memref<232x32xf32, #tpu.memory_space<vmem>>, vector<6x32xf32>
    %343 = arith.truncf %342 : vector<6x32xf32> to vector<6x32xbf16>
    %c18_441 = arith.constant 18 : index
    %c96_442 = arith.constant 96 : index
    %344 = vector.load %arg11[%c18_441, %c96_442] : memref<40x512xbf16, #tpu.memory_space<vmem>>, vector<6x32xbf16>
    tpu.vector_store %arg11[%c18_441, %c96_442], %343 {strides = array<i32>} : memref<40x512xbf16, #tpu.memory_space<vmem>>, vector<6x32xbf16>,
    %c105_443 = arith.constant 105 : index
    %c0_444 = arith.constant 0 : index
    %345 = tpu.strided_load %arg10[%c105_443, %c0_444] {strides = array<i32: 2, 1>} : memref<232x32xf32, #tpu.memory_space<vmem>>, vector<6x32xf32>
    %346 = arith.truncf %345 : vector<6x32xf32> to vector<6x32xbf16>
    %c18_445 = arith.constant 18 : index
    %c128_446 = arith.constant 128 : index
    %347 = vector.load %arg11[%c18_445, %c128_446] : memref<40x512xbf16, #tpu.memory_space<vmem>>, vector<6x32xbf16>
    tpu.vector_store %arg11[%c18_445, %c128_446], %346 {strides = array<i32>} : memref<40x512xbf16, #tpu.memory_space<vmem>>, vector<6x32xbf16>,
    %c106_447 = arith.constant 106 : index
    %c0_448 = arith.constant 0 : index
    %348 = tpu.strided_load %arg10[%c106_447, %c0_448] {strides = array<i32: 2, 1>} : memref<232x32xf32, #tpu.memory_space<vmem>>, vector<6x32xf32>
    %349 = arith.truncf %348 : vector<6x32xf32> to vector<6x32xbf16>
    %c18_449 = arith.constant 18 : index
    %c160_450 = arith.constant 160 : index
    %350 = vector.load %arg11[%c18_449, %c160_450] : memref<40x512xbf16, #tpu.memory_space<vmem>>, vector<6x32xbf16>
    tpu.vector_store %arg11[%c18_449, %c160_450], %349 {strides = array<i32>} : memref<40x512xbf16, #tpu.memory_space<vmem>>, vector<6x32xbf16>,
    %c107_451 = arith.constant 107 : index
    %c0_452 = arith.constant 0 : index
    %351 = tpu.strided_load %arg10[%c107_451, %c0_452] {strides = array<i32: 2, 1>} : memref<232x32xf32, #tpu.memory_space<vmem>>, vector<6x32xf32>
    %352 = arith.truncf %351 : vector<6x32xf32> to vector<6x32xbf16>
    %c18_453 = arith.constant 18 : index
    %c192_454 = arith.constant 192 : index
    %353 = vector.load %arg11[%c18_453, %c192_454] : memref<40x512xbf16, #tpu.memory_space<vmem>>, vector<6x32xbf16>
    tpu.vector_store %arg11[%c18_453, %c192_454], %352 {strides = array<i32>} : memref<40x512xbf16, #tpu.memory_space<vmem>>, vector<6x32xbf16>,
    %c108_455 = arith.constant 108 : index
    %c0_456 = arith.constant 0 : index
    %354 = tpu.strided_load %arg10[%c108_455, %c0_456] {strides = array<i32: 2, 1>} : memref<232x32xf32, #tpu.memory_space<vmem>>, vector<6x32xf32>
    %355 = arith.truncf %354 : vector<6x32xf32> to vector<6x32xbf16>
    %c18_457 = arith.constant 18 : index
    %c224_458 = arith.constant 224 : index
    %356 = vector.load %arg11[%c18_457, %c224_458] : memref<40x512xbf16, #tpu.memory_space<vmem>>, vector<6x32xbf16>
    tpu.vector_store %arg11[%c18_457, %c224_458], %355 {strides = array<i32>} : memref<40x512xbf16, #tpu.memory_space<vmem>>, vector<6x32xbf16>,
    %c120_459 = arith.constant 120 : index
    %c0_460 = arith.constant 0 : index
    %357 = tpu.strided_load %arg10[%c120_459, %c0_460] {strides = array<i32: 2, 1>} : memref<232x32xf32, #tpu.memory_space<vmem>>, vector<6x32xf32>
    %358 = arith.truncf %357 : vector<6x32xf32> to vector<6x32xbf16>
    %c18_461 = arith.constant 18 : index
    %c256_462 = arith.constant 256 : index
    %359 = vector.load %arg11[%c18_461, %c256_462] : memref<40x512xbf16, #tpu.memory_space<vmem>>, vector<6x32xbf16>
    tpu.vector_store %arg11[%c18_461, %c256_462], %358 {strides = array<i32>} : memref<40x512xbf16, #tpu.memory_space<vmem>>, vector<6x32xbf16>,
    %c121 = arith.constant 121 : index
    %c0_463 = arith.constant 0 : index
    %360 = tpu.strided_load %arg10[%c121, %c0_463] {strides = array<i32: 2, 1>} : memref<232x32xf32, #tpu.memory_space<vmem>>, vector<6x32xf32>
    %361 = arith.truncf %360 : vector<6x32xf32> to vector<6x32xbf16>
    %c18_464 = arith.constant 18 : index
    %c288_465 = arith.constant 288 : index
    %362 = vector.load %arg11[%c18_464, %c288_465] : memref<40x512xbf16, #tpu.memory_space<vmem>>, vector<6x32xbf16>
    tpu.vector_store %arg11[%c18_464, %c288_465], %361 {strides = array<i32>} : memref<40x512xbf16, #tpu.memory_space<vmem>>, vector<6x32xbf16>,
    %c122 = arith.constant 122 : index
    %c0_466 = arith.constant 0 : index
    %363 = tpu.strided_load %arg10[%c122, %c0_466] {strides = array<i32: 2, 1>} : memref<232x32xf32, #tpu.memory_space<vmem>>, vector<6x32xf32>
    %364 = arith.truncf %363 : vector<6x32xf32> to vector<6x32xbf16>
    %c18_467 = arith.constant 18 : index
    %c320_468 = arith.constant 320 : index
    %365 = vector.load %arg11[%c18_467, %c320_468] : memref<40x512xbf16, #tpu.memory_space<vmem>>, vector<6x32xbf16>
    tpu.vector_store %arg11[%c18_467, %c320_468], %364 {strides = array<i32>} : memref<40x512xbf16, #tpu.memory_space<vmem>>, vector<6x32xbf16>,
    %c123 = arith.constant 123 : index
    %c0_469 = arith.constant 0 : index
    %366 = tpu.strided_load %arg10[%c123, %c0_469] {strides = array<i32: 2, 1>} : memref<232x32xf32, #tpu.memory_space<vmem>>, vector<6x32xf32>
    %367 = arith.truncf %366 : vector<6x32xf32> to vector<6x32xbf16>
    %c18_470 = arith.constant 18 : index
    %c352_471 = arith.constant 352 : index
    %368 = vector.load %arg11[%c18_470, %c352_471] : memref<40x512xbf16, #tpu.memory_space<vmem>>, vector<6x32xbf16>
    tpu.vector_store %arg11[%c18_470, %c352_471], %367 {strides = array<i32>} : memref<40x512xbf16, #tpu.memory_space<vmem>>, vector<6x32xbf16>,
    %c135_472 = arith.constant 135 : index
    %c0_473 = arith.constant 0 : index
    %369 = tpu.strided_load %arg10[%c135_472, %c0_473] {strides = array<i32: 2, 1>} : memref<232x32xf32, #tpu.memory_space<vmem>>, vector<6x32xf32>
    %370 = arith.truncf %369 : vector<6x32xf32> to vector<6x32xbf16>
    %c18_474 = arith.constant 18 : index
    %c384_475 = arith.constant 384 : index
    %371 = vector.load %arg11[%c18_474, %c384_475] : memref<40x512xbf16, #tpu.memory_space<vmem>>, vector<6x32xbf16>
    tpu.vector_store %arg11[%c18_474, %c384_475], %370 {strides = array<i32>} : memref<40x512xbf16, #tpu.memory_space<vmem>>, vector<6x32xbf16>,
    %c136 = arith.constant 136 : index
    %c0_476 = arith.constant 0 : index
    %372 = tpu.strided_load %arg10[%c136, %c0_476] {strides = array<i32: 2, 1>} : memref<232x32xf32, #tpu.memory_space<vmem>>, vector<6x32xf32>
    %373 = arith.truncf %372 : vector<6x32xf32> to vector<6x32xbf16>
    %c18_477 = arith.constant 18 : index
    %c416_478 = arith.constant 416 : index
    %374 = vector.load %arg11[%c18_477, %c416_478] : memref<40x512xbf16, #tpu.memory_space<vmem>>, vector<6x32xbf16>
    tpu.vector_store %arg11[%c18_477, %c416_478], %373 {strides = array<i32>} : memref<40x512xbf16, #tpu.memory_space<vmem>>, vector<6x32xbf16>,
    %c137 = arith.constant 137 : index
    %c0_479 = arith.constant 0 : index
    %375 = tpu.strided_load %arg10[%c137, %c0_479] {strides = array<i32: 2, 1>} : memref<232x32xf32, #tpu.memory_space<vmem>>, vector<6x32xf32>
    %376 = arith.truncf %375 : vector<6x32xf32> to vector<6x32xbf16>
    %c18_480 = arith.constant 18 : index
    %c448_481 = arith.constant 448 : index
    %377 = vector.load %arg11[%c18_480, %c448_481] : memref<40x512xbf16, #tpu.memory_space<vmem>>, vector<6x32xbf16>
    tpu.vector_store %arg11[%c18_480, %c448_481], %376 {strides = array<i32>} : memref<40x512xbf16, #tpu.memory_space<vmem>>, vector<6x32xbf16>,
    %c138 = arith.constant 138 : index
    %c0_482 = arith.constant 0 : index
    %378 = tpu.strided_load %arg10[%c138, %c0_482] {strides = array<i32: 2, 1>} : memref<232x32xf32, #tpu.memory_space<vmem>>, vector<6x32xf32>
    %379 = arith.truncf %378 : vector<6x32xf32> to vector<6x32xbf16>
    %c18_483 = arith.constant 18 : index
    %c480_484 = arith.constant 480 : index
    %380 = vector.load %arg11[%c18_483, %c480_484] : memref<40x512xbf16, #tpu.memory_space<vmem>>, vector<6x32xbf16>
    tpu.vector_store %arg11[%c18_483, %c480_484], %379 {strides = array<i32>} : memref<40x512xbf16, #tpu.memory_space<vmem>>, vector<6x32xbf16>,
    %c120_485 = arith.constant 120 : index
    %c0_486 = arith.constant 0 : index
    %381 = tpu.strided_load %arg10[%c120_485, %c0_486] {strides = array<i32: 2, 1>} : memref<232x32xf32, #tpu.memory_space<vmem>>, vector<6x32xf32>
    %382 = arith.truncf %381 : vector<6x32xf32> to vector<6x32xbf16>
    %c24 = arith.constant 24 : index
    %c0_487 = arith.constant 0 : index
    %383 = vector.load %arg11[%c24, %c0_487] : memref<40x512xbf16, #tpu.memory_space<vmem>>, vector<6x32xbf16>
    tpu.vector_store %arg11[%c24, %c0_487], %382 {strides = array<i32>} : memref<40x512xbf16, #tpu.memory_space<vmem>>, vector<6x32xbf16>,
    %c121_488 = arith.constant 121 : index
    %c0_489 = arith.constant 0 : index
    %384 = tpu.strided_load %arg10[%c121_488, %c0_489] {strides = array<i32: 2, 1>} : memref<232x32xf32, #tpu.memory_space<vmem>>, vector<6x32xf32>
    %385 = arith.truncf %384 : vector<6x32xf32> to vector<6x32xbf16>
    %c24_490 = arith.constant 24 : index
    %c32_491 = arith.constant 32 : index
    %386 = vector.load %arg11[%c24_490, %c32_491] : memref<40x512xbf16, #tpu.memory_space<vmem>>, vector<6x32xbf16>
    tpu.vector_store %arg11[%c24_490, %c32_491], %385 {strides = array<i32>} : memref<40x512xbf16, #tpu.memory_space<vmem>>, vector<6x32xbf16>,
    %c122_492 = arith.constant 122 : index
    %c0_493 = arith.constant 0 : index
    %387 = tpu.strided_load %arg10[%c122_492, %c0_493] {strides = array<i32: 2, 1>} : memref<232x32xf32, #tpu.memory_space<vmem>>, vector<6x32xf32>
    %388 = arith.truncf %387 : vector<6x32xf32> to vector<6x32xbf16>
    %c24_494 = arith.constant 24 : index
    %c64_495 = arith.constant 64 : index
    %389 = vector.load %arg11[%c24_494, %c64_495] : memref<40x512xbf16, #tpu.memory_space<vmem>>, vector<6x32xbf16>
    tpu.vector_store %arg11[%c24_494, %c64_495], %388 {strides = array<i32>} : memref<40x512xbf16, #tpu.memory_space<vmem>>, vector<6x32xbf16>,
    %c123_496 = arith.constant 123 : index
    %c0_497 = arith.constant 0 : index
    %390 = tpu.strided_load %arg10[%c123_496, %c0_497] {strides = array<i32: 2, 1>} : memref<232x32xf32, #tpu.memory_space<vmem>>, vector<6x32xf32>
    %391 = arith.truncf %390 : vector<6x32xf32> to vector<6x32xbf16>
    %c24_498 = arith.constant 24 : index
    %c96_499 = arith.constant 96 : index
    %392 = vector.load %arg11[%c24_498, %c96_499] : memref<40x512xbf16, #tpu.memory_space<vmem>>, vector<6x32xbf16>
    tpu.vector_store %arg11[%c24_498, %c96_499], %391 {strides = array<i32>} : memref<40x512xbf16, #tpu.memory_space<vmem>>, vector<6x32xbf16>,
    %c135_500 = arith.constant 135 : index
    %c0_501 = arith.constant 0 : index
    %393 = tpu.strided_load %arg10[%c135_500, %c0_501] {strides = array<i32: 2, 1>} : memref<232x32xf32, #tpu.memory_space<vmem>>, vector<6x32xf32>
    %394 = arith.truncf %393 : vector<6x32xf32> to vector<6x32xbf16>
    %c24_502 = arith.constant 24 : index
    %c128_503 = arith.constant 128 : index
    %395 = vector.load %arg11[%c24_502, %c128_503] : memref<40x512xbf16, #tpu.memory_space<vmem>>, vector<6x32xbf16>
    tpu.vector_store %arg11[%c24_502, %c128_503], %394 {strides = array<i32>} : memref<40x512xbf16, #tpu.memory_space<vmem>>, vector<6x32xbf16>,
    %c136_504 = arith.constant 136 : index
    %c0_505 = arith.constant 0 : index
    %396 = tpu.strided_load %arg10[%c136_504, %c0_505] {strides = array<i32: 2, 1>} : memref<232x32xf32, #tpu.memory_space<vmem>>, vector<6x32xf32>
    %397 = arith.truncf %396 : vector<6x32xf32> to vector<6x32xbf16>
    %c24_506 = arith.constant 24 : index
    %c160_507 = arith.constant 160 : index
    %398 = vector.load %arg11[%c24_506, %c160_507] : memref<40x512xbf16, #tpu.memory_space<vmem>>, vector<6x32xbf16>
    tpu.vector_store %arg11[%c24_506, %c160_507], %397 {strides = array<i32>} : memref<40x512xbf16, #tpu.memory_space<vmem>>, vector<6x32xbf16>,
    %c137_508 = arith.constant 137 : index
    %c0_509 = arith.constant 0 : index
    %399 = tpu.strided_load %arg10[%c137_508, %c0_509] {strides = array<i32: 2, 1>} : memref<232x32xf32, #tpu.memory_space<vmem>>, vector<6x32xf32>
    %400 = arith.truncf %399 : vector<6x32xf32> to vector<6x32xbf16>
    %c24_510 = arith.constant 24 : index
    %c192_511 = arith.constant 192 : index
    %401 = vector.load %arg11[%c24_510, %c192_511] : memref<40x512xbf16, #tpu.memory_space<vmem>>, vector<6x32xbf16>
    tpu.vector_store %arg11[%c24_510, %c192_511], %400 {strides = array<i32>} : memref<40x512xbf16, #tpu.memory_space<vmem>>, vector<6x32xbf16>,
    %c138_512 = arith.constant 138 : index
    %c0_513 = arith.constant 0 : index
    %402 = tpu.strided_load %arg10[%c138_512, %c0_513] {strides = array<i32: 2, 1>} : memref<232x32xf32, #tpu.memory_space<vmem>>, vector<6x32xf32>
    %403 = arith.truncf %402 : vector<6x32xf32> to vector<6x32xbf16>
    %c24_514 = arith.constant 24 : index
    %c224_515 = arith.constant 224 : index
    %404 = vector.load %arg11[%c24_514, %c224_515] : memref<40x512xbf16, #tpu.memory_space<vmem>>, vector<6x32xbf16>
    tpu.vector_store %arg11[%c24_514, %c224_515], %403 {strides = array<i32>} : memref<40x512xbf16, #tpu.memory_space<vmem>>, vector<6x32xbf16>,
    %c150_516 = arith.constant 150 : index
    %c0_517 = arith.constant 0 : index
    %405 = tpu.strided_load %arg10[%c150_516, %c0_517] {strides = array<i32: 2, 1>} : memref<232x32xf32, #tpu.memory_space<vmem>>, vector<6x32xf32>
    %406 = arith.truncf %405 : vector<6x32xf32> to vector<6x32xbf16>
    %c24_518 = arith.constant 24 : index
    %c256_519 = arith.constant 256 : index
    %407 = vector.load %arg11[%c24_518, %c256_519] : memref<40x512xbf16, #tpu.memory_space<vmem>>, vector<6x32xbf16>
    tpu.vector_store %arg11[%c24_518, %c256_519], %406 {strides = array<i32>} : memref<40x512xbf16, #tpu.memory_space<vmem>>, vector<6x32xbf16>,
    %c151 = arith.constant 151 : index
    %c0_520 = arith.constant 0 : index
    %408 = tpu.strided_load %arg10[%c151, %c0_520] {strides = array<i32: 2, 1>} : memref<232x32xf32, #tpu.memory_space<vmem>>, vector<6x32xf32>
    %409 = arith.truncf %408 : vector<6x32xf32> to vector<6x32xbf16>
    %c24_521 = arith.constant 24 : index
    %c288_522 = arith.constant 288 : index
    %410 = vector.load %arg11[%c24_521, %c288_522] : memref<40x512xbf16, #tpu.memory_space<vmem>>, vector<6x32xbf16>
    tpu.vector_store %arg11[%c24_521, %c288_522], %409 {strides = array<i32>} : memref<40x512xbf16, #tpu.memory_space<vmem>>, vector<6x32xbf16>,
    %c152 = arith.constant 152 : index
    %c0_523 = arith.constant 0 : index
    %411 = tpu.strided_load %arg10[%c152, %c0_523] {strides = array<i32: 2, 1>} : memref<232x32xf32, #tpu.memory_space<vmem>>, vector<6x32xf32>
    %412 = arith.truncf %411 : vector<6x32xf32> to vector<6x32xbf16>
    %c24_524 = arith.constant 24 : index
    %c320_525 = arith.constant 320 : index
    %413 = vector.load %arg11[%c24_524, %c320_525] : memref<40x512xbf16, #tpu.memory_space<vmem>>, vector<6x32xbf16>
    tpu.vector_store %arg11[%c24_524, %c320_525], %412 {strides = array<i32>} : memref<40x512xbf16, #tpu.memory_space<vmem>>, vector<6x32xbf16>,
    %c153 = arith.constant 153 : index
    %c0_526 = arith.constant 0 : index
    %414 = tpu.strided_load %arg10[%c153, %c0_526] {strides = array<i32: 2, 1>} : memref<232x32xf32, #tpu.memory_space<vmem>>, vector<6x32xf32>
    %415 = arith.truncf %414 : vector<6x32xf32> to vector<6x32xbf16>
    %c24_527 = arith.constant 24 : index
    %c352_528 = arith.constant 352 : index
    %416 = vector.load %arg11[%c24_527, %c352_528] : memref<40x512xbf16, #tpu.memory_space<vmem>>, vector<6x32xbf16>
    tpu.vector_store %arg11[%c24_527, %c352_528], %415 {strides = array<i32>} : memref<40x512xbf16, #tpu.memory_space<vmem>>, vector<6x32xbf16>,
    %c165_529 = arith.constant 165 : index
    %c0_530 = arith.constant 0 : index
    %417 = tpu.strided_load %arg10[%c165_529, %c0_530] {strides = array<i32: 2, 1>} : memref<232x32xf32, #tpu.memory_space<vmem>>, vector<6x32xf32>
    %418 = arith.truncf %417 : vector<6x32xf32> to vector<6x32xbf16>
    %c24_531 = arith.constant 24 : index
    %c384_532 = arith.constant 384 : index
    %419 = vector.load %arg11[%c24_531, %c384_532] : memref<40x512xbf16, #tpu.memory_space<vmem>>, vector<6x32xbf16>
    tpu.vector_store %arg11[%c24_531, %c384_532], %418 {strides = array<i32>} : memref<40x512xbf16, #tpu.memory_space<vmem>>, vector<6x32xbf16>,
    %c166 = arith.constant 166 : index
    %c0_533 = arith.constant 0 : index
    %420 = tpu.strided_load %arg10[%c166, %c0_533] {strides = array<i32: 2, 1>} : memref<232x32xf32, #tpu.memory_space<vmem>>, vector<6x32xf32>
    %421 = arith.truncf %420 : vector<6x32xf32> to vector<6x32xbf16>
    %c24_534 = arith.constant 24 : index
    %c416_535 = arith.constant 416 : index
    %422 = vector.load %arg11[%c24_534, %c416_535] : memref<40x512xbf16, #tpu.memory_space<vmem>>, vector<6x32xbf16>
    tpu.vector_store %arg11[%c24_534, %c416_535], %421 {strides = array<i32>} : memref<40x512xbf16, #tpu.memory_space<vmem>>, vector<6x32xbf16>,
    %c167 = arith.constant 167 : index
    %c0_536 = arith.constant 0 : index
    %423 = tpu.strided_load %arg10[%c167, %c0_536] {strides = array<i32: 2, 1>} : memref<232x32xf32, #tpu.memory_space<vmem>>, vector<6x32xf32>
    %424 = arith.truncf %423 : vector<6x32xf32> to vector<6x32xbf16>
    %c24_537 = arith.constant 24 : index
    %c448_538 = arith.constant 448 : index
    %425 = vector.load %arg11[%c24_537, %c448_538] : memref<40x512xbf16, #tpu.memory_space<vmem>>, vector<6x32xbf16>
    tpu.vector_store %arg11[%c24_537, %c448_538], %424 {strides = array<i32>} : memref<40x512xbf16, #tpu.memory_space<vmem>>, vector<6x32xbf16>,
    %c168 = arith.constant 168 : index
    %c0_539 = arith.constant 0 : index
    %426 = tpu.strided_load %arg10[%c168, %c0_539] {strides = array<i32: 2, 1>} : memref<232x32xf32, #tpu.memory_space<vmem>>, vector<6x32xf32>
    %427 = arith.truncf %426 : vector<6x32xf32> to vector<6x32xbf16>
    %c24_540 = arith.constant 24 : index
    %c480_541 = arith.constant 480 : index
    %428 = vector.load %arg11[%c24_540, %c480_541] : memref<40x512xbf16, #tpu.memory_space<vmem>>, vector<6x32xbf16>
    tpu.vector_store %arg11[%c24_540, %c480_541], %427 {strides = array<i32>} : memref<40x512xbf16, #tpu.memory_space<vmem>>, vector<6x32xbf16>,
    %c150_542 = arith.constant 150 : index
    %c0_543 = arith.constant 0 : index
    %429 = tpu.strided_load %arg10[%c150_542, %c0_543] {strides = array<i32: 2, 1>} : memref<232x32xf32, #tpu.memory_space<vmem>>, vector<6x32xf32>
    %430 = arith.truncf %429 : vector<6x32xf32> to vector<6x32xbf16>
    %c30_544 = arith.constant 30 : index
    %c0_545 = arith.constant 0 : index
    %431 = vector.load %arg11[%c30_544, %c0_545] : memref<40x512xbf16, #tpu.memory_space<vmem>>, vector<6x32xbf16>
    tpu.vector_store %arg11[%c30_544, %c0_545], %430 {strides = array<i32>} : memref<40x512xbf16, #tpu.memory_space<vmem>>, vector<6x32xbf16>,
    %c151_546 = arith.constant 151 : index
    %c0_547 = arith.constant 0 : index
    %432 = tpu.strided_load %arg10[%c151_546, %c0_547] {strides = array<i32: 2, 1>} : memref<232x32xf32, #tpu.memory_space<vmem>>, vector<6x32xf32>
    %433 = arith.truncf %432 : vector<6x32xf32> to vector<6x32xbf16>
    %c30_548 = arith.constant 30 : index
    %c32_549 = arith.constant 32 : index
    %434 = vector.load %arg11[%c30_548, %c32_549] : memref<40x512xbf16, #tpu.memory_space<vmem>>, vector<6x32xbf16>
    tpu.vector_store %arg11[%c30_548, %c32_549], %433 {strides = array<i32>} : memref<40x512xbf16, #tpu.memory_space<vmem>>, vector<6x32xbf16>,
    %c152_550 = arith.constant 152 : index
    %c0_551 = arith.constant 0 : index
    %435 = tpu.strided_load %arg10[%c152_550, %c0_551] {strides = array<i32: 2, 1>} : memref<232x32xf32, #tpu.memory_space<vmem>>, vector<6x32xf32>
    %436 = arith.truncf %435 : vector<6x32xf32> to vector<6x32xbf16>
    %c30_552 = arith.constant 30 : index
    %c64_553 = arith.constant 64 : index
    %437 = vector.load %arg11[%c30_552, %c64_553] : memref<40x512xbf16, #tpu.memory_space<vmem>>, vector<6x32xbf16>
    tpu.vector_store %arg11[%c30_552, %c64_553], %436 {strides = array<i32>} : memref<40x512xbf16, #tpu.memory_space<vmem>>, vector<6x32xbf16>,
    %c153_554 = arith.constant 153 : index
    %c0_555 = arith.constant 0 : index
    %438 = tpu.strided_load %arg10[%c153_554, %c0_555] {strides = array<i32: 2, 1>} : memref<232x32xf32, #tpu.memory_space<vmem>>, vector<6x32xf32>
    %439 = arith.truncf %438 : vector<6x32xf32> to vector<6x32xbf16>
    %c30_556 = arith.constant 30 : index
    %c96_557 = arith.constant 96 : index
    %440 = vector.load %arg11[%c30_556, %c96_557] : memref<40x512xbf16, #tpu.memory_space<vmem>>, vector<6x32xbf16>
    tpu.vector_store %arg11[%c30_556, %c96_557], %439 {strides = array<i32>} : memref<40x512xbf16, #tpu.memory_space<vmem>>, vector<6x32xbf16>,
    %c165_558 = arith.constant 165 : index
    %c0_559 = arith.constant 0 : index
    %441 = tpu.strided_load %arg10[%c165_558, %c0_559] {strides = array<i32: 2, 1>} : memref<232x32xf32, #tpu.memory_space<vmem>>, vector<6x32xf32>
    %442 = arith.truncf %441 : vector<6x32xf32> to vector<6x32xbf16>
    %c30_560 = arith.constant 30 : index
    %c128_561 = arith.constant 128 : index
    %443 = vector.load %arg11[%c30_560, %c128_561] : memref<40x512xbf16, #tpu.memory_space<vmem>>, vector<6x32xbf16>
    tpu.vector_store %arg11[%c30_560, %c128_561], %442 {strides = array<i32>} : memref<40x512xbf16, #tpu.memory_space<vmem>>, vector<6x32xbf16>,
    %c166_562 = arith.constant 166 : index
    %c0_563 = arith.constant 0 : index
    %444 = tpu.strided_load %arg10[%c166_562, %c0_563] {strides = array<i32: 2, 1>} : memref<232x32xf32, #tpu.memory_space<vmem>>, vector<6x32xf32>
    %445 = arith.truncf %444 : vector<6x32xf32> to vector<6x32xbf16>
    %c30_564 = arith.constant 30 : index
    %c160_565 = arith.constant 160 : index
    %446 = vector.load %arg11[%c30_564, %c160_565] : memref<40x512xbf16, #tpu.memory_space<vmem>>, vector<6x32xbf16>
    tpu.vector_store %arg11[%c30_564, %c160_565], %445 {strides = array<i32>} : memref<40x512xbf16, #tpu.memory_space<vmem>>, vector<6x32xbf16>,
    %c167_566 = arith.constant 167 : index
    %c0_567 = arith.constant 0 : index
    %447 = tpu.strided_load %arg10[%c167_566, %c0_567] {strides = array<i32: 2, 1>} : memref<232x32xf32, #tpu.memory_space<vmem>>, vector<6x32xf32>
    %448 = arith.truncf %447 : vector<6x32xf32> to vector<6x32xbf16>
    %c30_568 = arith.constant 30 : index
    %c192_569 = arith.constant 192 : index
    %449 = vector.load %arg11[%c30_568, %c192_569] : memref<40x512xbf16, #tpu.memory_space<vmem>>, vector<6x32xbf16>
    tpu.vector_store %arg11[%c30_568, %c192_569], %448 {strides = array<i32>} : memref<40x512xbf16, #tpu.memory_space<vmem>>, vector<6x32xbf16>,
    %c168_570 = arith.constant 168 : index
    %c0_571 = arith.constant 0 : index
    %450 = tpu.strided_load %arg10[%c168_570, %c0_571] {strides = array<i32: 2, 1>} : memref<232x32xf32, #tpu.memory_space<vmem>>, vector<6x32xf32>
    %451 = arith.truncf %450 : vector<6x32xf32> to vector<6x32xbf16>
    %c30_572 = arith.constant 30 : index
    %c224_573 = arith.constant 224 : index
    %452 = vector.load %arg11[%c30_572, %c224_573] : memref<40x512xbf16, #tpu.memory_space<vmem>>, vector<6x32xbf16>
    tpu.vector_store %arg11[%c30_572, %c224_573], %451 {strides = array<i32>} : memref<40x512xbf16, #tpu.memory_space<vmem>>, vector<6x32xbf16>,
    %c180_574 = arith.constant 180 : index
    %c0_575 = arith.constant 0 : index
    %453 = tpu.strided_load %arg10[%c180_574, %c0_575] {strides = array<i32: 2, 1>} : memref<232x32xf32, #tpu.memory_space<vmem>>, vector<6x32xf32>
    %454 = arith.truncf %453 : vector<6x32xf32> to vector<6x32xbf16>
    %c30_576 = arith.constant 30 : index
    %c256_577 = arith.constant 256 : index
    %455 = vector.load %arg11[%c30_576, %c256_577] : memref<40x512xbf16, #tpu.memory_space<vmem>>, vector<6x32xbf16>
    tpu.vector_store %arg11[%c30_576, %c256_577], %454 {strides = array<i32>} : memref<40x512xbf16, #tpu.memory_space<vmem>>, vector<6x32xbf16>,
    %c181 = arith.constant 181 : index
    %c0_578 = arith.constant 0 : index
    %456 = tpu.strided_load %arg10[%c181, %c0_578] {strides = array<i32: 2, 1>} : memref<232x32xf32, #tpu.memory_space<vmem>>, vector<6x32xf32>
    %457 = arith.truncf %456 : vector<6x32xf32> to vector<6x32xbf16>
    %c30_579 = arith.constant 30 : index
    %c288_580 = arith.constant 288 : index
    %458 = vector.load %arg11[%c30_579, %c288_580] : memref<40x512xbf16, #tpu.memory_space<vmem>>, vector<6x32xbf16>
    tpu.vector_store %arg11[%c30_579, %c288_580], %457 {strides = array<i32>} : memref<40x512xbf16, #tpu.memory_space<vmem>>, vector<6x32xbf16>,
    %c182 = arith.constant 182 : index
    %c0_581 = arith.constant 0 : index
    %459 = tpu.strided_load %arg10[%c182, %c0_581] {strides = array<i32: 2, 1>} : memref<232x32xf32, #tpu.memory_space<vmem>>, vector<6x32xf32>
    %460 = arith.truncf %459 : vector<6x32xf32> to vector<6x32xbf16>
    %c30_582 = arith.constant 30 : index
    %c320_583 = arith.constant 320 : index
    %461 = vector.load %arg11[%c30_582, %c320_583] : memref<40x512xbf16, #tpu.memory_space<vmem>>, vector<6x32xbf16>
    tpu.vector_store %arg11[%c30_582, %c320_583], %460 {strides = array<i32>} : memref<40x512xbf16, #tpu.memory_space<vmem>>, vector<6x32xbf16>,
    %c183 = arith.constant 183 : index
    %c0_584 = arith.constant 0 : index
    %462 = tpu.strided_load %arg10[%c183, %c0_584] {strides = array<i32: 2, 1>} : memref<232x32xf32, #tpu.memory_space<vmem>>, vector<6x32xf32>
    %463 = arith.truncf %462 : vector<6x32xf32> to vector<6x32xbf16>
    %c30_585 = arith.constant 30 : index
    %c352_586 = arith.constant 352 : index
    %464 = vector.load %arg11[%c30_585, %c352_586] : memref<40x512xbf16, #tpu.memory_space<vmem>>, vector<6x32xbf16>
    tpu.vector_store %arg11[%c30_585, %c352_586], %463 {strides = array<i32>} : memref<40x512xbf16, #tpu.memory_space<vmem>>, vector<6x32xbf16>,
    %c195_587 = arith.constant 195 : index
    %c0_588 = arith.constant 0 : index
    %465 = tpu.strided_load %arg10[%c195_587, %c0_588] {strides = array<i32: 2, 1>} : memref<232x32xf32, #tpu.memory_space<vmem>>, vector<6x32xf32>
    %466 = arith.truncf %465 : vector<6x32xf32> to vector<6x32xbf16>
    %c30_589 = arith.constant 30 : index
    %c384_590 = arith.constant 384 : index
    %467 = vector.load %arg11[%c30_589, %c384_590] : memref<40x512xbf16, #tpu.memory_space<vmem>>, vector<6x32xbf16>
    tpu.vector_store %arg11[%c30_589, %c384_590], %466 {strides = array<i32>} : memref<40x512xbf16, #tpu.memory_space<vmem>>, vector<6x32xbf16>,
    %c196 = arith.constant 196 : index
    %c0_591 = arith.constant 0 : index
    %468 = tpu.strided_load %arg10[%c196, %c0_591] {strides = array<i32: 2, 1>} : memref<232x32xf32, #tpu.memory_space<vmem>>, vector<6x32xf32>
    %469 = arith.truncf %468 : vector<6x32xf32> to vector<6x32xbf16>
    %c30_592 = arith.constant 30 : index
    %c416_593 = arith.constant 416 : index
    %470 = vector.load %arg11[%c30_592, %c416_593] : memref<40x512xbf16, #tpu.memory_space<vmem>>, vector<6x32xbf16>
    tpu.vector_store %arg11[%c30_592, %c416_593], %469 {strides = array<i32>} : memref<40x512xbf16, #tpu.memory_space<vmem>>, vector<6x32xbf16>,
    %c197 = arith.constant 197 : index
    %c0_594 = arith.constant 0 : index
    %471 = tpu.strided_load %arg10[%c197, %c0_594] {strides = array<i32: 2, 1>} : memref<232x32xf32, #tpu.memory_space<vmem>>, vector<6x32xf32>
    %472 = arith.truncf %471 : vector<6x32xf32> to vector<6x32xbf16>
    %c30_595 = arith.constant 30 : index
    %c448_596 = arith.constant 448 : index
    %473 = vector.load %arg11[%c30_595, %c448_596] : memref<40x512xbf16, #tpu.memory_space<vmem>>, vector<6x32xbf16>
    tpu.vector_store %arg11[%c30_595, %c448_596], %472 {strides = array<i32>} : memref<40x512xbf16, #tpu.memory_space<vmem>>, vector<6x32xbf16>,
    %c198 = arith.constant 198 : index
    %c0_597 = arith.constant 0 : index
    %474 = tpu.strided_load %arg10[%c198, %c0_597] {strides = array<i32: 2, 1>} : memref<232x32xf32, #tpu.memory_space<vmem>>, vector<6x32xf32>
    %475 = arith.truncf %474 : vector<6x32xf32> to vector<6x32xbf16>
    %c30_598 = arith.constant 30 : index
    %c480_599 = arith.constant 480 : index
    %476 = vector.load %arg11[%c30_598, %c480_599] : memref<40x512xbf16, #tpu.memory_space<vmem>>, vector<6x32xbf16>
    tpu.vector_store %arg11[%c30_598, %c480_599], %475 {strides = array<i32>} : memref<40x512xbf16, #tpu.memory_space<vmem>>, vector<6x32xbf16>,
    %c0_600 = arith.constant 0 : index
    %c0_601 = arith.constant 0 : index
    %477 = vector.load %arg11[%c0_600, %c0_601] : memref<40x512xbf16, #tpu.memory_space<vmem>>, vector<40x512xbf16>
    %c0_602 = arith.constant 0 : index
    %c0_603 = arith.constant 0 : index
    %478 = vector.load %arg3[%c0_602, %c0_603] : memref<512x64xbf16, #tpu.memory_space<vmem>>, vector<512x64xbf16>
    %cst_604 = arith.constant dense<0.000000e+00> : vector<40x64xf32>
    %479 = tpu.matmul %477, %478, %cst_604 {dimension_numbers = #tpu.dot_dimension_numbers<[1], [0], [0], [1], [0, 0, 1, 1], [], []>} : vector<40x512xbf16>, vector<512x64xbf16>, vector<40x64xf32> -> vector<40x64xf32>
    %c0_605 = arith.constant 0 : index
    %c0_606 = arith.constant 0 : index
    %480 = vector.load %arg6[%c0_605, %c0_606] : memref<1x64xf32, #tpu.memory_space<vmem>>, vector<1x64xf32>
    %481 = vector.broadcast %480 : vector<1x64xf32> to vector<40x64xf32>
    %482 = arith.addf %479, %481 : vector<40x64xf32>
    %cst_607 = arith.constant 0.000000e+00 : f32
    %483 = vector.broadcast %cst_607 : f32 to vector<40x64xf32>
    %484 = arith.maximumf %482, %483 : vector<40x64xf32>
    %c0_608 = arith.constant 0 : index
    %c0_609 = arith.constant 0 : index
    %485 = vector.load %arg12[%c0_608, %c0_609] : memref<40x64xf32, #tpu.memory_space<vmem>>, vector<40x64xf32>
    tpu.vector_store %arg12[%c0_608, %c0_609], %484 {strides = array<i32>} : memref<40x64xf32, #tpu.memory_space<vmem>>, vector<40x64xf32>,
    %c0_610 = arith.constant 0 : index
    %c0_611 = arith.constant 0 : index
    %486 = vector.load %arg12[%c0_610, %c0_611] : memref<40x64xf32, #tpu.memory_space<vmem>>, vector<4x64xf32>
    %487 = arith.truncf %486 : vector<4x64xf32> to vector<4x64xbf16>
    %c0_612 = arith.constant 0 : index
    %c0_613 = arith.constant 0 : index
    %488 = vector.load %arg13[%c0_612, %c0_613] : memref<16x576xbf16, #tpu.memory_space<vmem>>, vector<4x64xbf16>
    tpu.vector_store %arg13[%c0_612, %c0_613], %487 {strides = array<i32>} : memref<16x576xbf16, #tpu.memory_space<vmem>>, vector<4x64xbf16>,
    %c1_614 = arith.constant 1 : index
    %c0_615 = arith.constant 0 : index
    %489 = vector.load %arg12[%c1_614, %c0_615] : memref<40x64xf32, #tpu.memory_space<vmem>>, vector<4x64xf32>
    %490 = arith.truncf %489 : vector<4x64xf32> to vector<4x64xbf16>
    %c0_616 = arith.constant 0 : index
    %c64_617 = arith.constant 64 : index
    %491 = vector.load %arg13[%c0_616, %c64_617] : memref<16x576xbf16, #tpu.memory_space<vmem>>, vector<4x64xbf16>
    tpu.vector_store %arg13[%c0_616, %c64_617], %490 {strides = array<i32>} : memref<16x576xbf16, #tpu.memory_space<vmem>>, vector<4x64xbf16>,
    %c2_618 = arith.constant 2 : index
    %c0_619 = arith.constant 0 : index
    %492 = vector.load %arg12[%c2_618, %c0_619] : memref<40x64xf32, #tpu.memory_space<vmem>>, vector<4x64xf32>
    %493 = arith.truncf %492 : vector<4x64xf32> to vector<4x64xbf16>
    %c0_620 = arith.constant 0 : index
    %c128_621 = arith.constant 128 : index
    %494 = vector.load %arg13[%c0_620, %c128_621] : memref<16x576xbf16, #tpu.memory_space<vmem>>, vector<4x64xbf16>
    tpu.vector_store %arg13[%c0_620, %c128_621], %493 {strides = array<i32>} : memref<16x576xbf16, #tpu.memory_space<vmem>>, vector<4x64xbf16>,
    %c6_622 = arith.constant 6 : index
    %c0_623 = arith.constant 0 : index
    %495 = vector.load %arg12[%c6_622, %c0_623] : memref<40x64xf32, #tpu.memory_space<vmem>>, vector<4x64xf32>
    %496 = arith.truncf %495 : vector<4x64xf32> to vector<4x64xbf16>
    %c0_624 = arith.constant 0 : index
    %c192_625 = arith.constant 192 : index
    %497 = vector.load %arg13[%c0_624, %c192_625] : memref<16x576xbf16, #tpu.memory_space<vmem>>, vector<4x64xbf16>
    tpu.vector_store %arg13[%c0_624, %c192_625], %496 {strides = array<i32>} : memref<16x576xbf16, #tpu.memory_space<vmem>>, vector<4x64xbf16>,
    %c7 = arith.constant 7 : index
    %c0_626 = arith.constant 0 : index
    %498 = vector.load %arg12[%c7, %c0_626] : memref<40x64xf32, #tpu.memory_space<vmem>>, vector<4x64xf32>
    %499 = arith.truncf %498 : vector<4x64xf32> to vector<4x64xbf16>
    %c0_627 = arith.constant 0 : index
    %c256_628 = arith.constant 256 : index
    %500 = vector.load %arg13[%c0_627, %c256_628] : memref<16x576xbf16, #tpu.memory_space<vmem>>, vector<4x64xbf16>
    tpu.vector_store %arg13[%c0_627, %c256_628], %499 {strides = array<i32>} : memref<16x576xbf16, #tpu.memory_space<vmem>>, vector<4x64xbf16>,
    %c8 = arith.constant 8 : index
    %c0_629 = arith.constant 0 : index
    %501 = vector.load %arg12[%c8, %c0_629] : memref<40x64xf32, #tpu.memory_space<vmem>>, vector<4x64xf32>
    %502 = arith.truncf %501 : vector<4x64xf32> to vector<4x64xbf16>
    %c0_630 = arith.constant 0 : index
    %c320_631 = arith.constant 320 : index
    %503 = vector.load %arg13[%c0_630, %c320_631] : memref<16x576xbf16, #tpu.memory_space<vmem>>, vector<4x64xbf16>
    tpu.vector_store %arg13[%c0_630, %c320_631], %502 {strides = array<i32>} : memref<16x576xbf16, #tpu.memory_space<vmem>>, vector<4x64xbf16>,
    %c12_632 = arith.constant 12 : index
    %c0_633 = arith.constant 0 : index
    %504 = vector.load %arg12[%c12_632, %c0_633] : memref<40x64xf32, #tpu.memory_space<vmem>>, vector<4x64xf32>
    %505 = arith.truncf %504 : vector<4x64xf32> to vector<4x64xbf16>
    %c0_634 = arith.constant 0 : index
    %c384_635 = arith.constant 384 : index
    %506 = vector.load %arg13[%c0_634, %c384_635] : memref<16x576xbf16, #tpu.memory_space<vmem>>, vector<4x64xbf16>
    tpu.vector_store %arg13[%c0_634, %c384_635], %505 {strides = array<i32>} : memref<16x576xbf16, #tpu.memory_space<vmem>>, vector<4x64xbf16>,
    %c13 = arith.constant 13 : index
    %c0_636 = arith.constant 0 : index
    %507 = vector.load %arg12[%c13, %c0_636] : memref<40x64xf32, #tpu.memory_space<vmem>>, vector<4x64xf32>
    %508 = arith.truncf %507 : vector<4x64xf32> to vector<4x64xbf16>
    %c0_637 = arith.constant 0 : index
    %c448_638 = arith.constant 448 : index
    %509 = vector.load %arg13[%c0_637, %c448_638] : memref<16x576xbf16, #tpu.memory_space<vmem>>, vector<4x64xbf16>
    tpu.vector_store %arg13[%c0_637, %c448_638], %508 {strides = array<i32>} : memref<16x576xbf16, #tpu.memory_space<vmem>>, vector<4x64xbf16>,
    %c14 = arith.constant 14 : index
    %c0_639 = arith.constant 0 : index
    %510 = vector.load %arg12[%c14, %c0_639] : memref<40x64xf32, #tpu.memory_space<vmem>>, vector<4x64xf32>
    %511 = arith.truncf %510 : vector<4x64xf32> to vector<4x64xbf16>
    %c0_640 = arith.constant 0 : index
    %c512 = arith.constant 512 : index
    %512 = vector.load %arg13[%c0_640, %c512] : memref<16x576xbf16, #tpu.memory_space<vmem>>, vector<4x64xbf16>
    tpu.vector_store %arg13[%c0_640, %c512], %511 {strides = array<i32>} : memref<16x576xbf16, #tpu.memory_space<vmem>>, vector<4x64xbf16>,
    %c6_641 = arith.constant 6 : index
    %c0_642 = arith.constant 0 : index
    %513 = vector.load %arg12[%c6_641, %c0_642] : memref<40x64xf32, #tpu.memory_space<vmem>>, vector<4x64xf32>
    %514 = arith.truncf %513 : vector<4x64xf32> to vector<4x64xbf16>
    %c4 = arith.constant 4 : index
    %c0_643 = arith.constant 0 : index
    %515 = vector.load %arg13[%c4, %c0_643] : memref<16x576xbf16, #tpu.memory_space<vmem>>, vector<4x64xbf16>
    tpu.vector_store %arg13[%c4, %c0_643], %514 {strides = array<i32>} : memref<16x576xbf16, #tpu.memory_space<vmem>>, vector<4x64xbf16>,
    %c7_644 = arith.constant 7 : index
    %c0_645 = arith.constant 0 : index
    %516 = vector.load %arg12[%c7_644, %c0_645] : memref<40x64xf32, #tpu.memory_space<vmem>>, vector<4x64xf32>
    %517 = arith.truncf %516 : vector<4x64xf32> to vector<4x64xbf16>
    %c4_646 = arith.constant 4 : index
    %c64_647 = arith.constant 64 : index
    %518 = vector.load %arg13[%c4_646, %c64_647] : memref<16x576xbf16, #tpu.memory_space<vmem>>, vector<4x64xbf16>
    tpu.vector_store %arg13[%c4_646, %c64_647], %517 {strides = array<i32>} : memref<16x576xbf16, #tpu.memory_space<vmem>>, vector<4x64xbf16>,
    %c8_648 = arith.constant 8 : index
    %c0_649 = arith.constant 0 : index
    %519 = vector.load %arg12[%c8_648, %c0_649] : memref<40x64xf32, #tpu.memory_space<vmem>>, vector<4x64xf32>
    %520 = arith.truncf %519 : vector<4x64xf32> to vector<4x64xbf16>
    %c4_650 = arith.constant 4 : index
    %c128_651 = arith.constant 128 : index
    %521 = vector.load %arg13[%c4_650, %c128_651] : memref<16x576xbf16, #tpu.memory_space<vmem>>, vector<4x64xbf16>
    tpu.vector_store %arg13[%c4_650, %c128_651], %520 {strides = array<i32>} : memref<16x576xbf16, #tpu.memory_space<vmem>>, vector<4x64xbf16>,
    %c12_652 = arith.constant 12 : index
    %c0_653 = arith.constant 0 : index
    %522 = vector.load %arg12[%c12_652, %c0_653] : memref<40x64xf32, #tpu.memory_space<vmem>>, vector<4x64xf32>
    %523 = arith.truncf %522 : vector<4x64xf32> to vector<4x64xbf16>
    %c4_654 = arith.constant 4 : index
    %c192_655 = arith.constant 192 : index
    %524 = vector.load %arg13[%c4_654, %c192_655] : memref<16x576xbf16, #tpu.memory_space<vmem>>, vector<4x64xbf16>
    tpu.vector_store %arg13[%c4_654, %c192_655], %523 {strides = array<i32>} : memref<16x576xbf16, #tpu.memory_space<vmem>>, vector<4x64xbf16>,
    %c13_656 = arith.constant 13 : index
    %c0_657 = arith.constant 0 : index
    %525 = vector.load %arg12[%c13_656, %c0_657] : memref<40x64xf32, #tpu.memory_space<vmem>>, vector<4x64xf32>
    %526 = arith.truncf %525 : vector<4x64xf32> to vector<4x64xbf16>
    %c4_658 = arith.constant 4 : index
    %c256_659 = arith.constant 256 : index
    %527 = vector.load %arg13[%c4_658, %c256_659] : memref<16x576xbf16, #tpu.memory_space<vmem>>, vector<4x64xbf16>
    tpu.vector_store %arg13[%c4_658, %c256_659], %526 {strides = array<i32>} : memref<16x576xbf16, #tpu.memory_space<vmem>>, vector<4x64xbf16>,
    %c14_660 = arith.constant 14 : index
    %c0_661 = arith.constant 0 : index
    %528 = vector.load %arg12[%c14_660, %c0_661] : memref<40x64xf32, #tpu.memory_space<vmem>>, vector<4x64xf32>
    %529 = arith.truncf %528 : vector<4x64xf32> to vector<4x64xbf16>
    %c4_662 = arith.constant 4 : index
    %c320_663 = arith.constant 320 : index
    %530 = vector.load %arg13[%c4_662, %c320_663] : memref<16x576xbf16, #tpu.memory_space<vmem>>, vector<4x64xbf16>
    tpu.vector_store %arg13[%c4_662, %c320_663], %529 {strides = array<i32>} : memref<16x576xbf16, #tpu.memory_space<vmem>>, vector<4x64xbf16>,
    %c18_664 = arith.constant 18 : index
    %c0_665 = arith.constant 0 : index
    %531 = vector.load %arg12[%c18_664, %c0_665] : memref<40x64xf32, #tpu.memory_space<vmem>>, vector<4x64xf32>
    %532 = arith.truncf %531 : vector<4x64xf32> to vector<4x64xbf16>
    %c4_666 = arith.constant 4 : index
    %c384_667 = arith.constant 384 : index
    %533 = vector.load %arg13[%c4_666, %c384_667] : memref<16x576xbf16, #tpu.memory_space<vmem>>, vector<4x64xbf16>
    tpu.vector_store %arg13[%c4_666, %c384_667], %532 {strides = array<i32>} : memref<16x576xbf16, #tpu.memory_space<vmem>>, vector<4x64xbf16>,
    %c19 = arith.constant 19 : index
    %c0_668 = arith.constant 0 : index
    %534 = vector.load %arg12[%c19, %c0_668] : memref<40x64xf32, #tpu.memory_space<vmem>>, vector<4x64xf32>
    %535 = arith.truncf %534 : vector<4x64xf32> to vector<4x64xbf16>
    %c4_669 = arith.constant 4 : index
    %c448_670 = arith.constant 448 : index
    %536 = vector.load %arg13[%c4_669, %c448_670] : memref<16x576xbf16, #tpu.memory_space<vmem>>, vector<4x64xbf16>
    tpu.vector_store %arg13[%c4_669, %c448_670], %535 {strides = array<i32>} : memref<16x576xbf16, #tpu.memory_space<vmem>>, vector<4x64xbf16>,
    %c20 = arith.constant 20 : index
    %c0_671 = arith.constant 0 : index
    %537 = vector.load %arg12[%c20, %c0_671] : memref<40x64xf32, #tpu.memory_space<vmem>>, vector<4x64xf32>
    %538 = arith.truncf %537 : vector<4x64xf32> to vector<4x64xbf16>
    %c4_672 = arith.constant 4 : index
    %c512_673 = arith.constant 512 : index
    %539 = vector.load %arg13[%c4_672, %c512_673] : memref<16x576xbf16, #tpu.memory_space<vmem>>, vector<4x64xbf16>
    tpu.vector_store %arg13[%c4_672, %c512_673], %538 {strides = array<i32>} : memref<16x576xbf16, #tpu.memory_space<vmem>>, vector<4x64xbf16>,
    %c12_674 = arith.constant 12 : index
    %c0_675 = arith.constant 0 : index
    %540 = vector.load %arg12[%c12_674, %c0_675] : memref<40x64xf32, #tpu.memory_space<vmem>>, vector<4x64xf32>
    %541 = arith.truncf %540 : vector<4x64xf32> to vector<4x64xbf16>
    %c8_676 = arith.constant 8 : index
    %c0_677 = arith.constant 0 : index
    %542 = vector.load %arg13[%c8_676, %c0_677] : memref<16x576xbf16, #tpu.memory_space<vmem>>, vector<4x64xbf16>
    tpu.vector_store %arg13[%c8_676, %c0_677], %541 {strides = array<i32>} : memref<16x576xbf16, #tpu.memory_space<vmem>>, vector<4x64xbf16>,
    %c13_678 = arith.constant 13 : index
    %c0_679 = arith.constant 0 : index
    %543 = vector.load %arg12[%c13_678, %c0_679] : memref<40x64xf32, #tpu.memory_space<vmem>>, vector<4x64xf32>
    %544 = arith.truncf %543 : vector<4x64xf32> to vector<4x64xbf16>
    %c8_680 = arith.constant 8 : index
    %c64_681 = arith.constant 64 : index
    %545 = vector.load %arg13[%c8_680, %c64_681] : memref<16x576xbf16, #tpu.memory_space<vmem>>, vector<4x64xbf16>
    tpu.vector_store %arg13[%c8_680, %c64_681], %544 {strides = array<i32>} : memref<16x576xbf16, #tpu.memory_space<vmem>>, vector<4x64xbf16>,
    %c14_682 = arith.constant 14 : index
    %c0_683 = arith.constant 0 : index
    %546 = vector.load %arg12[%c14_682, %c0_683] : memref<40x64xf32, #tpu.memory_space<vmem>>, vector<4x64xf32>
    %547 = arith.truncf %546 : vector<4x64xf32> to vector<4x64xbf16>
    %c8_684 = arith.constant 8 : index
    %c128_685 = arith.constant 128 : index
    %548 = vector.load %arg13[%c8_684, %c128_685] : memref<16x576xbf16, #tpu.memory_space<vmem>>, vector<4x64xbf16>
    tpu.vector_store %arg13[%c8_684, %c128_685], %547 {strides = array<i32>} : memref<16x576xbf16, #tpu.memory_space<vmem>>, vector<4x64xbf16>,
    %c18_686 = arith.constant 18 : index
    %c0_687 = arith.constant 0 : index
    %549 = vector.load %arg12[%c18_686, %c0_687] : memref<40x64xf32, #tpu.memory_space<vmem>>, vector<4x64xf32>
    %550 = arith.truncf %549 : vector<4x64xf32> to vector<4x64xbf16>
    %c8_688 = arith.constant 8 : index
    %c192_689 = arith.constant 192 : index
    %551 = vector.load %arg13[%c8_688, %c192_689] : memref<16x576xbf16, #tpu.memory_space<vmem>>, vector<4x64xbf16>
    tpu.vector_store %arg13[%c8_688, %c192_689], %550 {strides = array<i32>} : memref<16x576xbf16, #tpu.memory_space<vmem>>, vector<4x64xbf16>,
    %c19_690 = arith.constant 19 : index
    %c0_691 = arith.constant 0 : index
    %552 = vector.load %arg12[%c19_690, %c0_691] : memref<40x64xf32, #tpu.memory_space<vmem>>, vector<4x64xf32>
    %553 = arith.truncf %552 : vector<4x64xf32> to vector<4x64xbf16>
    %c8_692 = arith.constant 8 : index
    %c256_693 = arith.constant 256 : index
    %554 = vector.load %arg13[%c8_692, %c256_693] : memref<16x576xbf16, #tpu.memory_space<vmem>>, vector<4x64xbf16>
    tpu.vector_store %arg13[%c8_692, %c256_693], %553 {strides = array<i32>} : memref<16x576xbf16, #tpu.memory_space<vmem>>, vector<4x64xbf16>,
    %c20_694 = arith.constant 20 : index
    %c0_695 = arith.constant 0 : index
    %555 = vector.load %arg12[%c20_694, %c0_695] : memref<40x64xf32, #tpu.memory_space<vmem>>, vector<4x64xf32>
    %556 = arith.truncf %555 : vector<4x64xf32> to vector<4x64xbf16>
    %c8_696 = arith.constant 8 : index
    %c320_697 = arith.constant 320 : index
    %557 = vector.load %arg13[%c8_696, %c320_697] : memref<16x576xbf16, #tpu.memory_space<vmem>>, vector<4x64xbf16>
    tpu.vector_store %arg13[%c8_696, %c320_697], %556 {strides = array<i32>} : memref<16x576xbf16, #tpu.memory_space<vmem>>, vector<4x64xbf16>,
    %c24_698 = arith.constant 24 : index
    %c0_699 = arith.constant 0 : index
    %558 = vector.load %arg12[%c24_698, %c0_699] : memref<40x64xf32, #tpu.memory_space<vmem>>, vector<4x64xf32>
    %559 = arith.truncf %558 : vector<4x64xf32> to vector<4x64xbf16>
    %c8_700 = arith.constant 8 : index
    %c384_701 = arith.constant 384 : index
    %560 = vector.load %arg13[%c8_700, %c384_701] : memref<16x576xbf16, #tpu.memory_space<vmem>>, vector<4x64xbf16>
    tpu.vector_store %arg13[%c8_700, %c384_701], %559 {strides = array<i32>} : memref<16x576xbf16, #tpu.memory_space<vmem>>, vector<4x64xbf16>,
    %c25 = arith.constant 25 : index
    %c0_702 = arith.constant 0 : index
    %561 = vector.load %arg12[%c25, %c0_702] : memref<40x64xf32, #tpu.memory_space<vmem>>, vector<4x64xf32>
    %562 = arith.truncf %561 : vector<4x64xf32> to vector<4x64xbf16>
    %c8_703 = arith.constant 8 : index
    %c448_704 = arith.constant 448 : index
    %563 = vector.load %arg13[%c8_703, %c448_704] : memref<16x576xbf16, #tpu.memory_space<vmem>>, vector<4x64xbf16>
    tpu.vector_store %arg13[%c8_703, %c448_704], %562 {strides = array<i32>} : memref<16x576xbf16, #tpu.memory_space<vmem>>, vector<4x64xbf16>,
    %c26 = arith.constant 26 : index
    %c0_705 = arith.constant 0 : index
    %564 = vector.load %arg12[%c26, %c0_705] : memref<40x64xf32, #tpu.memory_space<vmem>>, vector<4x64xf32>
    %565 = arith.truncf %564 : vector<4x64xf32> to vector<4x64xbf16>
    %c8_706 = arith.constant 8 : index
    %c512_707 = arith.constant 512 : index
    %566 = vector.load %arg13[%c8_706, %c512_707] : memref<16x576xbf16, #tpu.memory_space<vmem>>, vector<4x64xbf16>
    tpu.vector_store %arg13[%c8_706, %c512_707], %565 {strides = array<i32>} : memref<16x576xbf16, #tpu.memory_space<vmem>>, vector<4x64xbf16>,
    %c18_708 = arith.constant 18 : index
    %c0_709 = arith.constant 0 : index
    %567 = vector.load %arg12[%c18_708, %c0_709] : memref<40x64xf32, #tpu.memory_space<vmem>>, vector<4x64xf32>
    %568 = arith.truncf %567 : vector<4x64xf32> to vector<4x64xbf16>
    %c12_710 = arith.constant 12 : index
    %c0_711 = arith.constant 0 : index
    %569 = vector.load %arg13[%c12_710, %c0_711] : memref<16x576xbf16, #tpu.memory_space<vmem>>, vector<4x64xbf16>
    tpu.vector_store %arg13[%c12_710, %c0_711], %568 {strides = array<i32>} : memref<16x576xbf16, #tpu.memory_space<vmem>>, vector<4x64xbf16>,
    %c19_712 = arith.constant 19 : index
    %c0_713 = arith.constant 0 : index
    %570 = vector.load %arg12[%c19_712, %c0_713] : memref<40x64xf32, #tpu.memory_space<vmem>>, vector<4x64xf32>
    %571 = arith.truncf %570 : vector<4x64xf32> to vector<4x64xbf16>
    %c12_714 = arith.constant 12 : index
    %c64_715 = arith.constant 64 : index
    %572 = vector.load %arg13[%c12_714, %c64_715] : memref<16x576xbf16, #tpu.memory_space<vmem>>, vector<4x64xbf16>
    tpu.vector_store %arg13[%c12_714, %c64_715], %571 {strides = array<i32>} : memref<16x576xbf16, #tpu.memory_space<vmem>>, vector<4x64xbf16>,
    %c20_716 = arith.constant 20 : index
    %c0_717 = arith.constant 0 : index
    %573 = vector.load %arg12[%c20_716, %c0_717] : memref<40x64xf32, #tpu.memory_space<vmem>>, vector<4x64xf32>
    %574 = arith.truncf %573 : vector<4x64xf32> to vector<4x64xbf16>
    %c12_718 = arith.constant 12 : index
    %c128_719 = arith.constant 128 : index
    %575 = vector.load %arg13[%c12_718, %c128_719] : memref<16x576xbf16, #tpu.memory_space<vmem>>, vector<4x64xbf16>
    tpu.vector_store %arg13[%c12_718, %c128_719], %574 {strides = array<i32>} : memref<16x576xbf16, #tpu.memory_space<vmem>>, vector<4x64xbf16>,
    %c24_720 = arith.constant 24 : index
    %c0_721 = arith.constant 0 : index
    %576 = vector.load %arg12[%c24_720, %c0_721] : memref<40x64xf32, #tpu.memory_space<vmem>>, vector<4x64xf32>
    %577 = arith.truncf %576 : vector<4x64xf32> to vector<4x64xbf16>
    %c12_722 = arith.constant 12 : index
    %c192_723 = arith.constant 192 : index
    %578 = vector.load %arg13[%c12_722, %c192_723] : memref<16x576xbf16, #tpu.memory_space<vmem>>, vector<4x64xbf16>
    tpu.vector_store %arg13[%c12_722, %c192_723], %577 {strides = array<i32>} : memref<16x576xbf16, #tpu.memory_space<vmem>>, vector<4x64xbf16>,
    %c25_724 = arith.constant 25 : index
    %c0_725 = arith.constant 0 : index
    %579 = vector.load %arg12[%c25_724, %c0_725] : memref<40x64xf32, #tpu.memory_space<vmem>>, vector<4x64xf32>
    %580 = arith.truncf %579 : vector<4x64xf32> to vector<4x64xbf16>
    %c12_726 = arith.constant 12 : index
    %c256_727 = arith.constant 256 : index
    %581 = vector.load %arg13[%c12_726, %c256_727] : memref<16x576xbf16, #tpu.memory_space<vmem>>, vector<4x64xbf16>
    tpu.vector_store %arg13[%c12_726, %c256_727], %580 {strides = array<i32>} : memref<16x576xbf16, #tpu.memory_space<vmem>>, vector<4x64xbf16>,
    %c26_728 = arith.constant 26 : index
    %c0_729 = arith.constant 0 : index
    %582 = vector.load %arg12[%c26_728, %c0_729] : memref<40x64xf32, #tpu.memory_space<vmem>>, vector<4x64xf32>
    %583 = arith.truncf %582 : vector<4x64xf32> to vector<4x64xbf16>
    %c12_730 = arith.constant 12 : index
    %c320_731 = arith.constant 320 : index
    %584 = vector.load %arg13[%c12_730, %c320_731] : memref<16x576xbf16, #tpu.memory_space<vmem>>, vector<4x64xbf16>
    tpu.vector_store %arg13[%c12_730, %c320_731], %583 {strides = array<i32>} : memref<16x576xbf16, #tpu.memory_space<vmem>>, vector<4x64xbf16>,
    %c30_732 = arith.constant 30 : index
    %c0_733 = arith.constant 0 : index
    %585 = vector.load %arg12[%c30_732, %c0_733] : memref<40x64xf32, #tpu.memory_space<vmem>>, vector<4x64xf32>
    %586 = arith.truncf %585 : vector<4x64xf32> to vector<4x64xbf16>
    %c12_734 = arith.constant 12 : index
    %c384_735 = arith.constant 384 : index
    %587 = vector.load %arg13[%c12_734, %c384_735] : memref<16x576xbf16, #tpu.memory_space<vmem>>, vector<4x64xbf16>
    tpu.vector_store %arg13[%c12_734, %c384_735], %586 {strides = array<i32>} : memref<16x576xbf16, #tpu.memory_space<vmem>>, vector<4x64xbf16>,
    %c31_736 = arith.constant 31 : index
    %c0_737 = arith.constant 0 : index
    %588 = vector.load %arg12[%c31_736, %c0_737] : memref<40x64xf32, #tpu.memory_space<vmem>>, vector<4x64xf32>
    %589 = arith.truncf %588 : vector<4x64xf32> to vector<4x64xbf16>
    %c12_738 = arith.constant 12 : index
    %c448_739 = arith.constant 448 : index
    %590 = vector.load %arg13[%c12_738, %c448_739] : memref<16x576xbf16, #tpu.memory_space<vmem>>, vector<4x64xbf16>
    tpu.vector_store %arg13[%c12_738, %c448_739], %589 {strides = array<i32>} : memref<16x576xbf16, #tpu.memory_space<vmem>>, vector<4x64xbf16>,
    %c32_740 = arith.constant 32 : index
    %c0_741 = arith.constant 0 : index
    %591 = vector.load %arg12[%c32_740, %c0_741] : memref<40x64xf32, #tpu.memory_space<vmem>>, vector<4x64xf32>
    %592 = arith.truncf %591 : vector<4x64xf32> to vector<4x64xbf16>
    %c12_742 = arith.constant 12 : index
    %c512_743 = arith.constant 512 : index
    %593 = vector.load %arg13[%c12_742, %c512_743] : memref<16x576xbf16, #tpu.memory_space<vmem>>, vector<4x64xbf16>
    tpu.vector_store %arg13[%c12_742, %c512_743], %592 {strides = array<i32>} : memref<16x576xbf16, #tpu.memory_space<vmem>>, vector<4x64xbf16>,
    %c0_744 = arith.constant 0 : index
    %c0_745 = arith.constant 0 : index
    %594 = vector.load %arg13[%c0_744, %c0_745] : memref<16x576xbf16, #tpu.memory_space<vmem>>, vector<16x576xbf16>
    %c0_746 = arith.constant 0 : index
    %c0_747 = arith.constant 0 : index
    %595 = vector.load %arg4[%c0_746, %c0_747] : memref<576x128xbf16, #tpu.memory_space<vmem>>, vector<576x128xbf16>
    %cst_748 = arith.constant dense<0.000000e+00> : vector<16x128xf32>
    %596 = tpu.matmul %594, %595, %cst_748 {dimension_numbers = #tpu.dot_dimension_numbers<[1], [0], [0], [1], [0, 0, 1, 1], [], []>} : vector<16x576xbf16>, vector<576x128xbf16>, vector<16x128xf32> -> vector<16x128xf32>
    %c0_749 = arith.constant 0 : index
    %c0_750 = arith.constant 0 : index
    %597 = vector.load %arg7[%c0_749, %c0_750] : memref<1x128xf32, #tpu.memory_space<vmem>>, vector<1x128xf32>
    %598 = vector.broadcast %597 : vector<1x128xf32> to vector<16x128xf32>
    %599 = arith.addf %596, %598 : vector<16x128xf32>
    %cst_751 = arith.constant 0.000000e+00 : f32
    %600 = vector.broadcast %cst_751 : f32 to vector<16x128xf32>
    %601 = arith.maximumf %599, %600 : vector<16x128xf32>
    %c0_752 = arith.constant 0 : index
    %c0_753 = arith.constant 0 : index
    %c0_754 = arith.constant 0 : index
    %602 = vector.load %arg8[%c0_752, %c0_753, %c0_754] : memref<1x16x128xf32, #tpu.memory_space<vmem>>, vector<1x16x128xf32>
    %603 = vector.shape_cast %602 : vector<1x16x128xf32> to vector<16x128xf32>
    %604 = vector.shape_cast %601 : vector<16x128xf32> to vector<1x16x128xf32>
    tpu.vector_store %arg8[%c0_752, %c0_753, %c0_754], %604 {strides = array<i32>} : memref<1x16x128xf32, #tpu.memory_space<vmem>>, vector<1x16x128xf32>,
    return
  }
  func.func @transform_0(%arg0: i32) -> (i32, i32, i32) {
    %c0_i32 = arith.constant 0 : i32
    %c0_i32_0 = arith.constant 0 : i32
    %c0_i32_1 = arith.constant 0 : i32
    return %arg0, %c0_i32, %c0_i32_0 : i32, i32, i32
  }
  func.func @transform_1(%arg0: i32) -> (i32, i32) {
    %c0_i32 = arith.constant 0 : i32
    %c0_i32_0 = arith.constant 0 : i32
    %c0_i32_1 = arith.constant 0 : i32
    return %c0_i32, %c0_i32_0 : i32, i32
  }
  func.func @transform_2(%arg0: i32) -> (i32, i32) {
    %c0_i32 = arith.constant 0 : i32
    %c0_i32_0 = arith.constant 0 : i32
    %c0_i32_1 = arith.constant 0 : i32
    return %c0_i32, %c0_i32_0 : i32, i32
  }
  func.func @transform_3(%arg0: i32) -> (i32, i32) {
    %c0_i32 = arith.constant 0 : i32
    %c0_i32_0 = arith.constant 0 : i32
    %c0_i32_1 = arith.constant 0 : i32
    return %c0_i32, %c0_i32_0 : i32, i32
  }
  func.func @transform_4(%arg0: i32) -> (i32, i32) {
    %c0_i32 = arith.constant 0 : i32
    %c0_i32_0 = arith.constant 0 : i32
    %c0_i32_1 = arith.constant 0 : i32
    return %c0_i32, %c0_i32_0 : i32, i32
  }
  func.func @transform_5(%arg0: i32) -> (i32, i32) {
    %c0_i32 = arith.constant 0 : i32
    %c0_i32_0 = arith.constant 0 : i32
    %c0_i32_1 = arith.constant 0 : i32
    return %c0_i32, %c0_i32_0 : i32, i32
  }
  func.func @transform_6(%arg0: i32) -> (i32, i32) {
    %c0_i32 = arith.constant 0 : i32
    %c0_i32_0 = arith.constant 0 : i32
    %c0_i32_1 = arith.constant 0 : i32
    return %c0_i32, %c0_i32_0 : i32, i32
  }
  func.func @transform_7(%arg0: i32) -> (i32, i32, i32) {
    %c0_i32 = arith.constant 0 : i32
    %c0_i32_0 = arith.constant 0 : i32
    %c0_i32_1 = arith.constant 0 : i32
    return %arg0, %c0_i32, %c0_i32_0 : i32, i32, i32
  }
}

</mosaic_0001>

<bundles_post_ra>
// kernel: atari_cnn_forward.1
= control target key start
LH: loop header
LB: loop body
LE: loop exit
PB: predicated region body
PF: predicated region fallthrough
CT: control target
= control target key end

     0   :  { %12 = vsyncpa [#allocation8], 0  ;;  %s7631_s0 = inlined_call_operand.vmem [shape: bf16[2,256,64], index: 0, kind: input, shape index: {}]   ;;  %s7632_s1 = inlined_call_operand.vmem [shape: bf16[256,32], index: 1, kind: input, shape index: {}]   ;;  %s7633_s2 = inlined_call_operand.vmem [shape: bf16[512,64], index: 2, kind: input, shape index: {}]   ;;  %s7634_s3 = inlined_call_operand.vmem [shape: bf16[576,128], index: 3, kind: input, shape index: {}]   ;;  %s7635_s4 = inlined_call_operand.vmem [shape: f32[1,32], index: 4, kind: input, shape index: {}]   ;;  %s7636_s5 = inlined_call_operand.vmem [shape: f32[1,64], index: 5, kind: input, shape index: {}]   ;;  %s7637_s6 = inlined_call_operand.vmem [shape: f32[1,128], index: 6, kind: input, shape index: {}]   ;;  %s7638_s7 = inlined_call_operand.hbm [shape: f32[2,16,128], index: 7, kind: output, shape index: {}]  }
   0x1   :  { %14 = vsyncpa [#allocation8 + $0x1], 0  ;;  %s5634_s24 = smov 0   ;;  %s5636_s25 = smov 0  }
   0x2   :  { %s5638_s26 = smov 0   ;;  %s5640_s27 = smov 0  }
   0x3 LB: > { %s5655_s28 = sadd.s32 4294967295, %s5584_s27   ;;  %s4720_s29 = sadd.s32 4294967294, %s5584_s27   ;;  %s5584_s27 = sphi %s5640_s27, %s7914_s27   ;;  %s5580_s26 = sphi %s5638_s26, %s7913_s26   ;;  %s5576_s25 = sphi %s5636_s25, %s7912_s25   ;;  %s5572_s24 = sphi %s5634_s24, %s7911_s24  }
   0x4   : > { %s5659_s30 = sadd.s32 1, %s5584_s27   ;;  %s179_s8 = sadd.s32 1, %s5580_s26 }
   0x5   : > { %s176_s9 = ssub.s32 %s5584_s27, %s5659_s30  ;;  %p189_p0 = scmp.ne.s32.totalorder %s5580_s26, %s5576_s25 }
   0x6   : > { %p177_p1 = scmp.eq.s32.totalorder %s176_s9, 0  ;;  %p190_p2 = scmp.eq.s32.totalorder %s5655_s28, 1 }
   0x7   : > { %p195_p3 = scmp.ne.s32.totalorder %s5576_s25, %s5572_s24  ;;  %p196_p4 = scmp.eq.s32.totalorder %s4720_s29, 1 }
   0x8   : > { %s5670_s10 = scalar_select %p177_p1, %s5580_s26, %s179_s8  }
   0x9   : > { %p5672_p5 = por %p190_p2, %p189_p0  ;;  %p5676_p6 = por %p196_p4, %p195_p3 }
   0xa   : > { %p4723_p7 = scmp.ge.s32.totalorder %s5584_s27, 1  ;;  %p240_p8 = scmp.lt.s32.totalorder %s5584_s27, 3 }
   0xc   : > { %p241_p9 = pnand %p4723_p7, %p240_p8 }
   0xe   : > { %244 = sbr.rel (%p241_p9) target bundleno = 1354 (0x54a), region = 48 }
  0x13   : > { %p272_p10 = scmp.lt.s32.totalorder %s5655_s28, 1  ;;  %vm398_vm0 = vcmask 1042432   ;;  %vm399_vm1 = vcmask 1046532   ;;  %vm7643_vm2 = vsmask.f32 3328  ;;  %v5378_v7 = vld [vmem:[%s7632_s1 + $0x78] sm:$0xff]  }
  0x14   : > { %vm290_vm3 = vsmask.f32 7440  ;;  %vm5699_vm4 = vmor %vm398_vm0, %vm399_vm1  ;;  %s5586_s20 = smov 64   ;;  %5097 = vmatprep.subr.bf16.mxu0 %v5378_v7  ;;  %v5379_v27 = vld [vmem:[%s7632_s1 + $0x38] sm:$0xff]   ;;  %v5380_v32 = vld [vmem:[%s7632_s1 + $0x70] sm:$0xff]   ;;  %vm625_vm8 = vcmask 1041408  }
  0x15   : > { %s273_s13 = scalar_select %p272_p10, %s5655_s28, 1  ;;  %5098 = vmatpush3.bf16.msra.mxu0 %v5379_v27  ;;  %v5381_v41 = vld [vmem:[%s7632_s1 + $0x30] sm:$0xff]   ;;  %v5382_v46 = vld [vmem:[%s7632_s1 + $0x68] sm:$0xff]   ;;  %vm5743_vm5 = vmor %vm7643_vm2, %vm290_vm3  ;;  %vm7650_vm6 = vsmask.f32 2304  ;;  %vm626_vm9 = vcmask 1045508  }
  0x16   : > { %5099 = vmatprep.subr.bf16.mxu0 %v5380_v32  ;;  %v5383_v58 = vld [vmem:[%s7632_s1 + $0x28] sm:$0xff]   ;;  %v5384_v63 = vld [vmem:[%s7632_s1 + $0x60] sm:$0xff]   ;;  %v5388_v27 = vld [vmem:[%s7632_s1 + $0x50] sm:$0xff]   ;;  %vm498_vm7 = vsmask.f32 6416  ;;  %vm852_vm11 = vcmask 1040384  }
  0x17   : > { %s4981_s14 = sshll.u32 %s273_s13, 7  ;;  %vm5835_vm10 = vmor %vm7650_vm6, %vm498_vm7  ;;  %vm853_vm12 = vcmask 1044484   ;;  %vm7649_vm13 = vsmask.f32 1280  ;;  %vm725_vm14 = vsmask.f32 5392 }
  0x18   : > { %s5687_s17 = scalar_lea.vmem %s7631_s0, %s4981_s14  ;;  %vm5900_vm15 = vmor %vm625_vm8, %vm626_vm9  ;;  %vm7673_vm0 = vcmask 519168   ;;  %vm7644_vm1 = vcmask 518144   ;;  %s5587_s14 = smov 32  }
  0x19   : > { %v5690_v0 = vld [vmem:[%s5687_s17 + $0x10] sm:$0xf]  ;;  %v394_v1 = vld [vmem:[%s5687_s17 + $0x8] sm:$0xf]  ;;  %v395_v2 = vld [vmem:[%s5687_s17 + $0xc] sm:$0xf]  ;;  %5100 = vmatpush3.bf16.msra.mxu0 %v5381_v41 }
  0x1a   : > { %v456_v3 = vrot.slane %v5690_v0, 5  ;;  %v401_v4 = vrot.slane %v394_v1, 5  ;;  %v403_v5 = vrot.slane %v395_v2, 5  ;;  %v497_v6 = vld [vmem:[%s5687_s17 + $0x14] sm:$0xf]  ;;  %5101 = vmatprep.subr.bf16.mxu0 %v5382_v46  ;;  %vm5944_vm3 = vmor %vm852_vm11, %vm853_vm12  ;;  %vm7658_vm11 = vcmask 519171  }
  0x1b   : > { %v510_v9 = vshrl.u32 %v497_v6, 16  ;;  %v513_v10 = vshll.u32 %v497_v6, 16  ;;  %v289_v11 = vld [vmem:[%s5687_s17 + $0x4] sm:$0xf]  ;;  %v554_v12 = vld [vmem:[%s5687_s17 + $0x1c] sm:$0xf]  ;;  %vm5965_vm7 = vmor %vm7649_vm13, %vm725_vm14 }
  0x1c   : > { %461 = vrot.lane.b32.xlu1 %v456_v3, %s5586_s20  ;;  %406 = vrot.lane.b32.xlu0 %v401_v4, %s5586_s20  ;;  %v402_v13 = vrot.slane %v401_v4, 4  ;;  %v405_v14 = vrot.slane %v403_v5, 4  ;;  %v302_v15 = vshll.u32 %v289_v11, 16  ;;  %v331_v16 = vld [vmem:[%s5687_s17 + $0xc] sm:$0xf]  ;;  %v306_v19 = vshrl.u32 %v289_v11, 16  ;;  %vm6006_vm8 = vmand %vm7673_vm0, %vm7643_vm2 }
  0x1d   : > { %v512_v17 = vrot.slane %v510_v9, 5  ;;  %v515_v18 = vrot.slane %v513_v10, 6  ;;  %v565_v20 = vshrl.u32 %v554_v12, 16  ;;  %v330_v21 = vld [vmem:[%s5687_s17 + $0x8] sm:$0xf]  ;;  %v568_v24 = vshll.u32 %v554_v12, 16  ;;  %5102 = vmatpush3.bf16.msra.mxu0 %v5383_v58  ;;  %vm6015_vm9 = vmand %vm7644_vm1, %vm7650_vm6 }
  0x1e   : > { %v404_v22 = vsel %vm5699_vm4, %v402_v13, %v403_v5  ;;  %v5713_v23 = vrot.slane %v302_v15, 5  ;;  %v342_v25 = vshll.u32 %v331_v16, 16  ;;  %v288_v26 = vld [vmem:[%s5687_s17] sm:$0xf]  ;;  %v308_v29 = vrot.slane %v306_v19, 4  ;;  %5103 = vmatprep.subr.bf16.mxu0 %v5384_v63  ;;  %v5389_v41 = vld [vmem:[%s7632_s1 + $0x10] sm:$0xff]  }
  0x1f   : > { %v5719_v28 = vor.u32 %v515_v18, %v512_v17  ;;  %v567_v30 = vrot.slane %v565_v20, 5  ;;  %v346_v31 = vshrl.u32 %v331_v16, 16  ;;  %v570_v33 = vrot.slane %v568_v24, 6  ;;  %v453_v53 = vld [vmem:[%s5687_s17 + $0x14] sm:$0xf]  ;;  %v5385_v13 = vld [vmem:[%s7632_s1 + $0x20] sm:$0xff]  }
  0x20   : > { %410 = vrot.lane.b32.xlu1 %v405_v14, %s5586_s20  ;;  %408 = vrot.lane.b32.xlu0 %v404_v22, %s5586_s20  ;;  %v344_v34 = vrot.slane %v342_v25, 5  ;;  %v333_v35 = vshrl.u32 %v330_v21, 16  ;;  %v336_v36 = vshll.u32 %v330_v21, 16  ;;  %v309_v38 = vor.u32 %v308_v29, %v5713_v23  ;;  %v553_v54 = vld [vmem:[%s5687_s17 + $0x18] sm:$0xf]  ;;  %s5588_s15 = smov 96  }
  0x21   : > { %v518_v37 = vrot.slane %v5719_v28, 4  ;;  %v348_v39 = vrot.slane %v346_v31, 4  ;;  %v293_v40 = vshrl.u32 %v288_v26, 16  ;;  %v5731_v42 = vor.u32 %v570_v33, %v567_v30  ;;  %v781_v57 = vld [vmem:[%s5687_s17 + $0x2c] sm:$0xf]  ;;  %v5386_v17 = vld [vmem:[%s7632_s1 + $0x58] sm:$0xff]   ;;  %5104 = vmatpush3.bf16.msra.mxu0 %v5385_v13 }
  0x22   : > { %v335_v43 = vrot.slane %v333_v35, 4  ;;  %v338_v44 = vrot.slane %v336_v36, 5  ;;  %v296_v45 = vshll.u32 %v288_v26, 16  ;;  %v310_v47 = vrot.slane %v309_v38, 4  ;;  %v496_v61 = vld [vmem:[%s5687_s17 + $0x10] sm:$0xf]  ;;  %5105 = vmatprep.subr.bf16.mxu0 %v5386_v17 }
  0x23   : > { %v349_v48 = vor.u32 %v348_v39, %v344_v34  ;;  %v295_v49 = vrot.slane %v293_v40, 4  ;;  %v573_v50 = vrot.slane %v5731_v42, 4  ;;  %v724_v62 = vld [vmem:[%s5687_s17 + $0x24] sm:$0xf]  ;;  %v458_v1 = vrot.slane %v453_v53, 5  ;;  %v5387_v25 = vld [vmem:[%s7632_s1 + $0x18] sm:$0xff]  }
  0x24   : > { %523 = vrot.lane.b32.xlu1 %v518_v37, %s5586_s20  ;;  %v339_v51 = vor.u32 %v338_v44, %v335_v43  ;;  %v298_v52 = vrot.slane %v296_v45, 5  ;;  %313 = vrot.lane.b32.xlu0 %v310_v47, %s5586_s20  ;;  %v556_v2 = vshrl.u32 %v553_v54, 16  ;;  %v559_v5 = vshll.u32 %v553_v54, 16  ;;  %v5787_v31 = vld [vmem:[%s5687_s17 + $0x20] sm:$0xf]  ;;  %v5390_v47 = vld [vmem:[%s7632_s1 + $0x48] sm:$0xff]  }
  0x25   : > { %v350_v55 = vrot.slane %v349_v48, 4  ;;  %v792_v6 = vshrl.u32 %v781_v57, 16  ;;  %v795_v7 = vshll.u32 %v781_v57, 16  ;;  %v501_v10 = vshrl.u32 %v496_v61, 16  ;;  %v780_v35 = vld [vmem:[%s5687_s17 + $0x28] sm:$0xf]  ;;  %5106 = vmatpush3.bf16.msra.mxu0 %v5387_v25 }
  0x26   : > { %v340_v59 = vrot.slane %v339_v51, 4  ;;  %v299_v60 = vor.u32 %v298_v52, %v295_v49  ;;  %v504_v11 = vshll.u32 %v496_v61, 16  ;;  %v737_v12 = vshrl.u32 %v724_v62, 16  ;;  %v5797_v36 = vld [vmem:[%s5687_s17 + $0x1c] sm:$0xf]  ;;  %5107 = vmatprep.subr.bf16.mxu0 %v5388_v27  ;;  %s269_s16 = sand.u32 1, %s5576_s25  }
  0x27   : > { %v457_v14 = vrot.slane %v456_v3, 4  ;;  %v740_v16 = vshll.u32 %v724_v62, 16  ;;  %v460_v18 = vrot.slane %v458_v1, 4  ;;  %v558_v19 = vrot.slane %v556_v2, 5  ;;  %v5800_v37 = vld [vmem:[%s5687_s17 + $0x24] sm:$0xf] }
  0x28   : > { %578 = vrot.lane.b32.xlu1 %v573_v50, %s5586_s20  ;;  %v300_v4 = vrot.slane %v299_v60, 4  ;;  %353 = vrot.lane.b32.xlu0 %v350_v55, %s5586_s20  ;;  %v345_v9 = vsel %vm5743_vm5, %v340_v59, %v344_v34  ;;  %v561_v20 = vrot.slane %v559_v5, 6  ;;  %v794_v21 = vrot.slane %v792_v6, 6  ;;  %v5793_v34 = vld [vmem:[%s5687_s17 + $0x18] sm:$0xf]  ;;  %v5391_v2 = vld [vmem:[%s7632_s1 + $0x8] sm:$0xff]  }
  0x29   : > { %v797_v22 = vrot.slane %v795_v7, 7  ;;  %v503_v0 = vrot.slane %v501_v10, 5  ;;  %v506_v3 = vrot.slane %v504_v11, 6  ;;  %v742_v24 = vrot.slane %v740_v16, 7  ;;  %v723_v39 = vld [vmem:[%s5687_s17 + $0x20] sm:$0xf]  ;;  %5108 = vmatpush3.bf16.msra.mxu0 %v5389_v41 }
  0x2a   : > { %v305_v15 = vsel %vm5743_vm5, %v300_v4, %v5713_v23  ;;  %v739_v23 = vrot.slane %v737_v12, 6  ;;  %v459_v26 = vsel %vm5699_vm4, %v457_v14, %v458_v1  ;;  %v5782_v29 = vor.u32 %v561_v20, %v558_v19  ;;  %v5805_v40 = vld [vmem:[%s5687_s17 + $0x3c] sm:$0xf]  ;;  %v5822_v51 = vld [vmem:[%s5687_s17 + $0x34] sm:$0xf]  ;;  %5109 = vmatprep.subr.bf16.mxu0 %v5390_v47  ;;  %v5393_v14 = vld [vmem:[%s7632_s1] sm:$0xff]  }
  0x2b   : > { %v5784_v30 = vor.u32 %v797_v22, %v794_v21  ;;  %v507_v32 = vor.u32 %v506_v3, %v503_v0  ;;  %v683_v38 = vrot.slane %v5787_v31, 6  ;;  %v628_v44 = vrot.slane %v5793_v34, 6  ;;  %v5830_v57 = vld [vmem:[%s5687_s17 + $0x30] sm:$0xf]  ;;  %v1161_v58 = vld [vmem:[%s5687_s17 + $0x4c] sm:$0xf] }
  0x2c   : > { %351 = vrot.lane.b32.xlu1 %v345_v9, %s5586_s20  ;;  %311 = vrot.lane.b32.xlu0 %v305_v15, %s5586_s20  ;;  %v5790_v33 = vor.u32 %v742_v24, %v739_v23  ;;  %v783_v45 = vshrl.u32 %v780_v35, 16  ;;  %v786_v46 = vshll.u32 %v780_v35, 16  ;;  %v630_v49 = vrot.slane %v5797_v36, 6  ;;  %v5841_v63 = vld [vmem:[%s5687_s17 + $0x28] sm:$0xf]  ;;  %v5392_v9 = vld [vmem:[%s7632_s1 + $0x40] sm:$0xff]  }
  0x2d   : > { %v800_v43 = vrot.slane %v5784_v30, 4  ;;  %v685_v50 = vrot.slane %v5800_v37, 6  ;;  %v563_v52 = vrot.slane %v5782_v29, 4  ;;  %v508_v53 = vrot.slane %v507_v32, 4  ;;  %v1124_v1 = vld [vmem:[%s5687_s17 + $0x44] sm:$0xf]  ;;  %5110 = vmatpush3.bf16.msra.mxu0 %v5391_v2 }
  0x2e   : > { %v745_v48 = vrot.slane %v5790_v33, 4  ;;  %v5825_v54 = vrot.slane %v683_v38, 4  ;;  %v5827_v55 = vrot.slane %v628_v44, 4  ;;  %v728_v60 = vshrl.u32 %v723_v39, 16  ;;  %v5850_v7 = vld [vmem:[%s5687_s17 + $0x2c] sm:$0xf]  ;;  %5111 = vmatprep.subr.bf16.mxu0 %v5392_v9 }
  0x2f   : > { %v731_v61 = vshll.u32 %v723_v39, 16  ;;  %v1016_v62 = vshrl.u32 %v5805_v40, 16  ;;  %v785_v4 = vrot.slane %v783_v45, 6  ;;  %v788_v5 = vrot.slane %v786_v46, 7  ;;  %v5872_v17 = vld [vmem:[%s5687_s17 + $0x34] sm:$0xf] }
  0x30   : > { %465 = vrot.lane.b32.xlu1 %v460_v18, %s5586_s20  ;;  %463 = vrot.lane.b32.xlu0 %v459_v26, %s5586_s20  ;;  %v963_v6 = vshrl.u32 %v5822_v51, 16  ;;  %v632_v10 = vrot.slane %v630_v49, 4  ;;  %v5860_v11 = vrot.slane %v685_v50, 4  ;;  %v1172_v12 = vshll.u32 %v1161_v58, 16  ;;  %v5875_v18 = vld [vmem:[%s5687_s17 + $0x38] sm:$0xf] }
  0x31   : > { %v1176_v13 = vshrl.u32 %v1161_v58, 16  ;;  %v572_v15 = vsel %vm5835_vm10, %v563_v52, %v5731_v42  ;;  %v517_v16 = vsel %vm5835_vm10, %v508_v53, %v5719_v28  ;;  %v1135_v19 = vshll.u32 %v1124_v1, 16  ;;  %v5881_v42 = vld [vmem:[%s5687_s17 + $0x30] sm:$0xf]  ;;  %5112 = vmatpush3.bf16.msra.mxu0 %v5393_v14  ;;  %v1160_v46 = vld [vmem:[%s5687_s17 + $0x48] sm:$0xf] }
  0x32   : > { %v1139_v20 = vshrl.u32 %v1124_v1, 16  ;;  %v730_v21 = vrot.slane %v728_v60, 6  ;;  %v733_v22 = vrot.slane %v731_v61, 7  ;;  %v5877_v0 = vrot.slane %v1016_v62, 7  ;;  %v1123_v52 = vld [vmem:[%s5687_s17 + $0x40] sm:$0xf] }
  0x33   : > { %v910_v3 = vrot.slane %v5830_v57, 7  ;;  %v5884_v28 = vor.u32 %v788_v5, %v785_v4  ;;  %v5886_v23 = vrot.slane %v963_v6, 7  ;;  %v7641_v24 = vrot.slane %v5841_v63, 7  ;;  %v362_v14 = vld [vmem:[%s5687_s17 + $0xc] sm:$0xf]  ;;  %s4724_s18 = sshll.u32 %s269_s16, 4 }
  0x34   : > { %574 = vrot.lane.b32.xlu1 %v5782_v29, %s5586_s20  ;;  %519 = vrot.lane.b32.xlu0 %v507_v32, %s5586_s20  ;;  %v857_v25 = vrot.slane %v5850_v7, 7  ;;  %v1008_v27 = vshrl.u32 %v5875_v18, 16  ;;  %v5896_v29 = vrot.slane %v1172_v12, 5  ;;  %v1178_v31 = vrot.slane %v1176_v13, 4  ;;  %v6088_v57 = vld [vmem:[%s5687_s17 + $0x4c] sm:$0xf] }
  0x35   : > { %v5893_v26 = vrot.slane %v910_v3, 4  ;;  %v7639_v34 = vrot.slane %v5872_v17, 7  ;;  %v955_v35 = vshrl.u32 %v5881_v42, 16  ;;  %v1141_v39 = vrot.slane %v1139_v20, 4  ;;  %s7591_s29 = scalar_lea.sflag [#allocation8], %s269_s16 }
  0x36   : > { %v790_v41 = vrot.slane %v5884_v28, 4  ;;  %v856_v45 = vrot.slane %v7641_v24, 4  ;;  %v970_v47 = vrot.slane %v5886_v23, 4  ;;  %v631_v53 = vsel %vm5900_vm15, %v5827_v55, %v630_v49  ;;  %v6023_v49 = vld [vmem:[%s5687_s17 + $0x50] sm:$0xf] }
  0x37   : > { %v5927_v60 = vrot.slane %v1008_v27, 7  ;;  %v1179_v61 = vor.u32 %v1178_v31, %v5896_v29  ;;  %v5932_v62 = vrot.slane %v7639_v34, 4  ;;  %v5934_v1 = vrot.slane %v955_v35, 7  ;;  %v5974_v31 = vld [vmem:[%s5687_s17 + $0x5c] sm:$0xf] }
  0x38   : > { %805 = vrot.lane.b32.xlu1 %v800_v43, %s5586_s20  ;;  %750 = vrot.lane.b32.xlu0 %v745_v48, %s5586_s20  ;;  %v5909_v43 = vor.u32 %v733_v22, %v730_v21  ;;  %v5917_v48 = vrot.slane %v857_v25, 4  ;;  %v1163_v36 = vshrl.u32 %v1160_v46, 16  ;;  %v1166_v12 = vshll.u32 %v1160_v46, 16  ;;  %v285_v35 = vld [vmem:[#allocation2 + $0x8] sm:$0xf] }
  0x39   : > { %v1126_v13 = vshrl.u32 %v1123_v52, 16  ;;  %v686_v20 = vsel %vm5900_vm15, %v5825_v54, %v685_v50  ;;  %v5978_v37 = vsel %vm5944_vm3, %v856_v45, %v857_v25  ;;  %v5982_v50 = vld [vmem:[%s5687_s17 + $0x1c] sm:$0xf]  ;;  %v5987_v54 = vld [vmem:[%s5687_s17 + $0x54] sm:$0xf]  ;;  %v373_v46 = vshll.u32 %v362_v14, 16 }
  0x3a   : > { %v735_v58 = vrot.slane %v5909_v43, 4  ;;  %v5971_v27 = vrot.slane %v1163_v36, 4  ;;  %v325_v36 = vld [vmem:[%s5687_s17 + $0xc] sm:$0xf]  ;;  %v5994_v25 = vsel %vm5965_vm7, %v790_v41, %v5784_v30  ;;  %v6001_v45 = vrot.slane %v1166_v12, 5 }
  0x3b   : > { %v324_v30 = vld [vmem:[%s5687_s17 + $0x8] sm:$0xf]  ;;  %v375_v41 = vrot.slane %v373_v46, 5  ;;  %v278_v12 = vld [vmem:[%s5687_s17] sm:$0xf]  ;;  %v1128_v9 = vrot.slane %v1126_v13, 4 }
  0x3c   : > { %688 = vrot.lane.b32.xlu1 %v683_v38, %s5586_s20  ;;  %633 = vrot.lane.b32.xlu0 %v628_v44, %s5586_s20  ;;  %v5906_v38 = vrot.slane %v1135_v19, 5  ;;  %v1023_v44 = vrot.slane %v5877_v0, 4  ;;  %v5956_v19 = vld [vmem:[%s5687_s17 + $0x14] sm:$0xf]  ;;  %326 = vst.msk [vmem:[#allocation2 + $0x4] sm:$0xf] %vm7673_vm0, %v324_v30 }
  0x3d   : > { %v1376_v55 = vshrl.u32 %v5974_v31, 16  ;;  %281 = vst.msk [vmem:[#allocation2] sm:$0xf] %vm7673_vm0, %v278_v12  ;;  %v1379_v30 = vshll.u32 %v5974_v31, 16  ;;  %v1324_v12 = vshrl.u32 %v5987_v54, 16  ;;  %v1169_v31 = vor.u32 %v6001_v45, %v5971_v27 }
  0x3e   : > { %v1142_v2 = vor.u32 %v1141_v39, %v5906_v38  ;;  %v279_v39 = vld [vmem:[%s5687_s17 + $0x4] sm:$0xf]  ;;  %v424_v24 = vld [vmem:[%s5687_s17 + $0x14] sm:$0xf]  ;;  %vm7662_vm12 = vsmask.f32 256 }
  0x3f   : > { %v286_v13 = vsel %vm6006_vm8, %v279_v39, %v285_v35  ;;  %v1327_v39 = vshll.u32 %v5987_v54, 16  ;;  %v7646_v54 = vrot.slane %v6023_v49, 5  ;;  %v1378_v45 = vrot.slane %v1376_v55, 5 }
  0x40   : > { %576 = vrot.lane.b32.xlu1 %v572_v15, %s5586_s20  ;;  %521 = vrot.lane.b32.xlu0 %v517_v16, %s5586_s20  ;;  %v1129_v15 = vshll.u32 %v1123_v52, 16  ;;  %v361_v16 = vld [vmem:[%s5687_s17 + $0x8] sm:$0xf]  ;;  %v5969_v22 = vrot.slane %v1142_v2, 4  ;;  %v377_v52 = vshrl.u32 %v362_v14, 16  ;;  %v7640_v14 = vrot.slane %v5956_v19, 5 }
  0x41   : > { %v493_v2 = vld [vmem:[#allocation2 + $0x28] sm:$0x7]  ;;  %287 = vst [vmem:[#allocation2 + $0x8] sm:$0xf] %v286_v13  ;;  %vm952_vm14 = vsmask.f32 4368 }
  0x42   : > { %v379_v7 = vrot.slane %v377_v52, 4  ;;  %v1131_v5 = vrot.slane %v1129_v15, 5  ;;  %v483_v46 = vrot.slane %v7640_v14, 4  ;;  %v1312_v52 = vld [vmem:[%s5687_s17 + $0x50] sm:$0xf]  ;;  %v7642_v15 = vrot.slane %v5982_v50, 5 }
  0x43   : > { %v1318_v13 = vshll.u32 %v1312_v52, 16  ;;  %vm7672_vm2 = vcmask 517120   ;;  %vm7675_vm6 = vcmask 519170  }
  0x44   : > { %637 = vrot.lane.b32.xlu1 %v632_v10, %s5586_s20  ;;  %635 = vrot.lane.b32.xlu0 %v631_v53, %s5586_s20  ;;  %v5952_v10 = vrot.slane %v1179_v61, 4  ;;  %v364_v53 = vshll.u32 %v361_v16, 16  ;;  %v367_v61 = vshrl.u32 %v361_v16, 16  ;;  %v1132_v14 = vor.u32 %v1131_v5, %v1128_v9 }
  0x45   : > { %v435_v9 = vshll.u32 %v424_v24, 16 }
  0x46   : > { %v6011_v4 = vrot.slane %v364_v53, 5  ;;  %v380_v53 = vor.u32 %v379_v7, %v375_v41  ;;  %v550_v7 = vld [vmem:[#allocation2 + $0x2c] sm:$0x7] }
  0x48   : > { %692 = vrot.lane.b32.xlu1 %v5860_v11, %s5586_s20  ;;  %690 = vrot.lane.b32.xlu0 %v686_v20, %s5586_s20  ;;  %v5999_v11 = vsel %vm5965_vm7, %v735_v58, %v5790_v33  ;;  %v327_v20 = vld [vmem:[#allocation2 + $0xc] sm:$0xf]  ;;  %7705 = vst [vmem:[#allocation10_spill] sm:$0xff] %v6011_v4  ;;  %v369_v33 = vrot.slane %v367_v61, 4  ;;  %v321_v8 = vld [vmem:[#allocation2 + $0x8] sm:$0xf] }
  0x49   : > { %v328_v35 = vsel %vm6006_vm8, %v325_v36, %v327_v20  ;;  %v423_v36 = vld [vmem:[%s5687_s17 + $0x10] sm:$0xf]  ;;  %v1381_v20 = vrot.slane %v1379_v30, 6 }
  0x4a   : > { %v370_v61 = vor.u32 %v369_v33, %v6011_v4  ;;  %v381_v33 = vrot.slane %v380_v53, 4  ;;  %329 = vst [vmem:[#allocation2 + $0xc] sm:$0xf] %v328_v35  ;;  %v426_v53 = vshll.u32 %v423_v36, 16  ;;  %v6068_v35 = vld [vmem:[%s5687_s17 + $0x54] sm:$0xf] }
  0x4b   : > { %v6257_v4 = vld [vmem:[%s5687_s17 + $0x3c] sm:$0xf] }
  0x4c   : > { %801 = vrot.lane.b32.xlu1 %v5884_v28, %s5586_s20  ;;  %746 = vrot.lane.b32.xlu0 %v5909_v43, %s5586_s20  ;;  %v494_v28 = vsel %vm6015_vm9, %v483_v46, %v493_v2  ;;  %v371_v34 = vrot.slane %v370_v61, 4  ;;  %v544_v43 = vrot.slane %v7642_v15, 4  ;;  %v6049_v2 = vld [vmem:[%s5687_s17 + $0x48] sm:$0xf]  ;;  %v1315_v46 = vshrl.u32 %v1312_v52, 16 }
  0x4d   : > { %495 = vst [vmem:[#allocation2 + $0x28] sm:$0x7] %v494_v28  ;;  %393 = vst.msk [vmem:[#allocation2 + $0x18] sm:$0x7] %vm7644_vm1, %v381_v33  ;;  %v439_v52 = vshrl.u32 %v424_v24, 16  ;;  %v1326_v61 = vrot.slane %v1324_v12, 5 }
  0x4e   : > { %v376_v27 = vsel %vm5743_vm5, %v371_v34, %v375_v41  ;;  %v551_v5 = vsel %vm6015_vm9, %v544_v43, %v550_v7  ;;  %v1329_v28 = vrot.slane %v1327_v39, 6  ;;  %v437_v34 = vrot.slane %v435_v9, 5  ;;  %v475_v9 = vld [vmem:[%s5687_s17 + $0x10] sm:$0xf] }
  0x4f   : > { %391 = vst.msk [vmem:[#allocation2 + $0x10] sm:$0xf] %vm7673_vm0, %v376_v27  ;;  %552 = vst [vmem:[#allocation2 + $0x2c] sm:$0x7] %v551_v5  ;;  %v429_v41 = vshrl.u32 %v423_v36, 16  ;;  %v1317_v7 = vrot.slane %v1315_v46, 5  ;;  %v6090_v36 = vor.u32 %v1381_v20, %v1378_v45 }
  0x50   : > { %1028 = vrot.lane.b32.xlu1 %v1023_v44, %s5586_s20  ;;  %975 = vrot.lane.b32.xlu0 %v970_v47, %s5586_s20  ;;  %v1364_v44 = vld [vmem:[%s5687_s17 + $0x58] sm:$0xf]  ;;  %v1320_v33 = vrot.slane %v1318_v13, 6  ;;  %v441_v43 = vrot.slane %v439_v52, 4  ;;  %v6070_v15 = vrot.slane %v426_v53, 5  ;;  %v7645_v24 = vrot.slane %v6049_v2, 5 }
  0x51   : > { %v1367_v47 = vshrl.u32 %v1364_v44, 16  ;;  %v1370_v55 = vshll.u32 %v1364_v44, 16  ;;  %v431_v30 = vrot.slane %v429_v41, 4  ;;  %v7709_v12 = vrot.slane %v5841_v63, 7 }
  0x52   : > { %7708 = vst [vmem:[#allocation11_spill] sm:$0xff] %v6070_v15  ;;  %v6079_v39 = vrot.slane %v1169_v31, 4  ;;  %v6081_v46 = vrot.slane %v1132_v14, 4  ;;  %v6085_v13 = vrot.slane %v7646_v54, 4  ;;  %v6092_v27 = vor.u32 %v1329_v28, %v1326_v61  ;;  %v536_v31 = vld [vmem:[%s5687_s17 + $0x18] sm:$0xf] }
  0x53   : > { %v7648_v5 = vrot.slane %v6068_v35, 5  ;;  %v432_v63 = vor.u32 %v431_v30, %v6070_v15  ;;  %v6098_v14 = vor.u32 %v1320_v33, %v1317_v7  ;;  %v540_v52 = vrot.slane %v536_v31, 5  ;;  %v6106_v28 = vld [vmem:[%s5687_s17 + $0x60] sm:$0xf] }
  0x54   : > { %915 = vrot.lane.b32.xlu1 %v910_v3, %s5586_s20  ;;  %860 = vrot.lane.b32.xlu0 %v7709_v12, %s5586_s20  ;;  %v442_v3 = vor.u32 %v441_v43, %v437_v34  ;;  %v479_v53 = vrot.slane %v475_v9, 5  ;;  %v1369_v41 = vrot.slane %v1367_v47, 5  ;;  %v1372_v45 = vrot.slane %v1370_v55, 6  ;;  %v6129_v12 = vld [vmem:[%s5687_s17 + $0x2c] sm:$0xf] }
  0x55   : > { %v433_v20 = vrot.slane %v432_v63, 4  ;;  %v7647_v61 = vrot.slane %v6088_v57, 5  ;;  %v541_v7 = vrot.slane %v540_v52, 4  ;;  %548 = vst.msk [vmem:[#allocation2 + $0x1c] sm:$0x8] %vm7658_vm11, %v540_v52  ;;  %v6118_v43 = vrot.slane %v7648_v5, 4 }
  0x56   : > { %v443_v44 = vrot.slane %v442_v3, 4  ;;  %488 = vst.msk [vmem:[#allocation2 + $0x18] sm:$0x8] %vm7658_vm11, %v479_v53  ;;  %v7710_v3 = vrot.slane %v5982_v50, 5  ;;  %v7711_v31 = vrot.slane %v5956_v19, 5  ;;  %v7652_v52 = vrot.slane %v6106_v28, 6 }
  0x57   : > { %v438_v47 = vsel %vm5743_vm5, %v433_v20, %v437_v34  ;;  %v6125_v30 = vrot.slane %v7647_v61, 4  ;;  %v7654_v19 = vrot.slane %v6129_v12, 6  ;;  %v7714_v20 = vrot.slane %v5872_v17, 7 }
  0x58   : > { %803 = vrot.lane.b32.xlu1 %v5994_v25, %s5586_s20  ;;  %748 = vrot.lane.b32.xlu0 %v5999_v11, %s5586_s20  ;;  %451 = vst.msk [vmem:[#allocation2 + $0x1c] sm:$0x7] %vm7644_vm1, %v443_v44  ;;  %v480_v25 = vrot.slane %v479_v53, 4  ;;  %v6114_v11 = vrot.slane %v7645_v24, 4  ;;  %v543_v63 = vsel %vm5699_vm4, %v541_v7, %v7710_v3  ;;  %v6142_v44 = vor.u32 %v1372_v45, %v1369_v41  ;;  %v6146_v53 = vld [vmem:[%s5687_s17 + $0x58] sm:$0xf]  ;;  %vm6150_vm1 = vmand %vm7672_vm2, %vm7649_vm13 }
  0x59   : > { %450 = vst.msk [vmem:[#allocation2 + $0x14] sm:$0xf] %vm7673_vm0, %v438_v47  ;;  %549 = vst.msk [vmem:[#allocation2 + $0x24] sm:$0xf] %vm7673_vm0, %v543_v63  ;;  %v777_v41 = vld [vmem:[#allocation2 + $0x4c] sm:$0x3]  ;;  %v913_v7 = vsel %vm5944_vm3, %v5893_v26, %v7714_v20 }
  0x5a   : > { %v482_v34 = vsel %vm5699_vm4, %v480_v25, %v7711_v31  ;;  %v6161_v45 = vld [vmem:[%s5687_s17 + $0x24] sm:$0xf]  ;;  %v771_v47 = vrot.slane %v7654_v19, 4  ;;  %v7716_v31 = vshll.u32 %v5881_v42, 16  ;;  %v720_v26 = vld [vmem:[#allocation2 + $0x48] sm:$0x3]  ;;  %vm6210_vm13 = vmor %vm7662_vm12, %vm952_vm14 }
  0x5b   : > { %489 = vst.msk [vmem:[#allocation2 + $0x20] sm:$0xf] %vm7673_vm0, %v482_v34  ;;  %v6169_v25 = vld [vmem:[%s5687_s17 + $0x64] sm:$0xf]  ;;  %v7653_v3 = vrot.slane %v6161_v45, 6  ;;  %v7717_v34 = vshll.u32 %v5805_v40, 16 }
  0x5c   : > { %864 = vrot.lane.b32.xlu1 %v5917_v48, %s5586_s20  ;;  %862 = vrot.lane.b32.xlu0 %v5978_v37, %s5586_s20  ;;  %v1573_v48 = vld [vmem:[%s5687_s17 + $0x6c] sm:$0xf]  ;;  %v7715_v37 = vshll.u32 %v5875_v18, 16  ;;  %v960_v17 = vor.u32 %v7716_v31, %v5934_v1  ;;  %v7718_v20 = vshll.u32 %v5822_v51, 16  ;;  %v6190_v18 = vld [vmem:[%s5687_s17 + $0x64] sm:$0xf]  ;;  %v778_v42 = vsel %vm6150_vm1, %v771_v47, %v777_v41 }
  0x5d   : > { %v1021_v24 = vor.u32 %v7717_v34, %v5877_v0  ;;  %v650_v40 = vld [vmem:[%s5687_s17 + $0x20] sm:$0xf]  ;;  %v588_v0 = vld [vmem:[%s5687_s17 + $0x18] sm:$0xf]  ;;  %779 = vst [vmem:[#allocation2 + $0x4c] sm:$0x3] %v778_v42 }
  0x5e   : > { %v1013_v63 = vor.u32 %v7715_v37, %v5927_v60  ;;  %v968_v9 = vor.u32 %v7718_v20, %v5886_v23  ;;  %v710_v37 = vrot.slane %v7653_v3, 4  ;;  %v653_v31 = vshrl.u32 %v650_v40, 16  ;;  %v1064_v3 = vld [vmem:[%s5687_s17 + $0x38] sm:$0xf] }
  0x5f   : > { %v656_v51 = vshll.u32 %v650_v40, 16  ;;  %v591_v23 = vshrl.u32 %v588_v0, 16  ;;  %v1584_v34 = vshrl.u32 %v1573_v48, 16  ;;  %v1587_v20 = vshll.u32 %v1573_v48, 16 }
  0x60   : > { %919 = vrot.lane.b32.xlu1 %v5932_v62, %s5586_s20  ;;  %917 = vrot.lane.b32.xlu0 %v913_v7, %s5586_s20  ;;  %v7651_v62 = vrot.slane %v6146_v53, 6  ;;  %v721_v54 = vsel %vm6150_vm1, %v710_v37, %v720_v26  ;;  %v594_v61 = vshll.u32 %v588_v0, 16  ;;  %v6204_v41 = vrot.slane %v7652_v52, 4 }
  0x61   : > { %v1532_v47 = vshrl.u32 %v6169_v25, 16  ;;  %722 = vst [vmem:[#allocation2 + $0x48] sm:$0x3] %v721_v54  ;;  %v655_v7 = vrot.slane %v653_v31, 5  ;;  %v658_v5 = vrot.slane %v656_v51, 6  ;;  %v593_v26 = vrot.slane %v591_v23, 5 }
  0x62   : > { %v596_v42 = vrot.slane %v594_v61, 6  ;;  %v6217_v54 = vrot.slane %v7651_v62, 4  ;;  %v1586_v40 = vrot.slane %v1584_v34, 6  ;;  %v1589_v0 = vrot.slane %v1587_v20, 7  ;;  %v1520_v31 = vld [vmem:[%s5687_s17 + $0x60] sm:$0xf] }
  0x63   : > { %v7721_v51 = vrot.slane %v5927_v60, 4  ;;  %v589_v60 = vld [vmem:[%s5687_s17 + $0x1c] sm:$0xf]  ;;  %v651_v20 = vld [vmem:[%s5687_s17 + $0x24] sm:$0xf]  ;;  %v1523_v52 = vshrl.u32 %v1520_v31, 16 }
  0x64   : > { %1024 = vrot.lane.b32.xlu1 %v1013_v63, %s5586_s20  ;;  %971 = vrot.lane.b32.xlu0 %v960_v17, %s5586_s20  ;;  %v1535_v63 = vshll.u32 %v6169_v25, 16  ;;  %v7722_v17 = vrot.slane %v5934_v1, 4  ;;  %v1103_v1 = vld [vmem:[%s5687_s17 + $0x40] sm:$0xf]  ;;  %v600_v62 = vshrl.u32 %v589_v60, 16  ;;  %v603_v55 = vshll.u32 %v589_v60, 16 }
  0x65   : > { %v1022_v61 = vsel %vm6210_vm13, %v7721_v51, %v1021_v24  ;;  %v1534_v24 = vrot.slane %v1532_v47, 6  ;;  %v6245_v51 = vor.u32 %v596_v42, %v593_v26  ;;  %v662_v33 = vshrl.u32 %v651_v20, 16  ;;  %v763_v25 = vld [vmem:[%s5687_s17 + $0x28] sm:$0xf] }
  0x66   : > { %v969_v23 = vsel %vm6210_vm13, %v7722_v17, %v968_v9  ;;  %v6243_v9 = vor.u32 %v658_v5, %v655_v7  ;;  %v1572_v17 = vld [vmem:[%s5687_s17 + $0x68] sm:$0xf]  ;;  %v665_v34 = vshll.u32 %v651_v20, 16  ;;  %v602_v47 = vrot.slane %v600_v62, 5  ;;  %v6261_v62 = vld [vmem:[%s5687_s17 + $0x5c] sm:$0xf] }
  0x67   : > { %7724 = vst [vmem:[#allocation13_spill] sm:$0xff] %v6245_v51  ;;  %v598_v5 = vrot.slane %v6245_v51, 4  ;;  %v605_v26 = vrot.slane %v603_v55, 6  ;;  %v664_v42 = vrot.slane %v662_v33, 5  ;;  %v767_v37 = vrot.slane %v763_v25, 6 }
  0x68   : > { %1183 = vrot.lane.b32.xlu1 %v5952_v10, %s5586_s20  ;;  %7723 = vst [vmem:[#allocation12_spill] sm:$0xff] %v6243_v9  ;;  %1146 = vrot.lane.b32.xlu0 %v5969_v22, %s5586_s20  ;;  %v1526_v10 = vshll.u32 %v1520_v31, 16  ;;  %v660_v7 = vrot.slane %v6243_v9, 4  ;;  %v667_v19 = vrot.slane %v665_v34, 6  ;;  %v702_v22 = vld [vmem:[%s5687_s17 + $0x20] sm:$0xf] }
  0x69   : > { %v1537_v60 = vrot.slane %v1535_v63, 7  ;;  %v1575_v20 = vshrl.u32 %v1572_v17, 16  ;;  %v706_v15 = vrot.slane %v702_v22, 6  ;;  %vm7669_vm14 = vcmask 516096   ;;  %775 = vst.msk [vmem:[#allocation2 + $0x3c] sm:$0xc] %vm7675_vm6, %v767_v37 }
  0x6a   : > { %v1578_v31 = vshll.u32 %v1572_v17, 16  ;;  %v606_v9 = vor.u32 %v605_v26, %v602_v47  ;;  %v668_v55 = vor.u32 %v667_v19, %v664_v42  ;;  %v7661_v33 = vrot.slane %v6257_v4, 7  ;;  %v6266_v25 = vld [vmem:[%s5687_s17 + $0x34] sm:$0xf]  ;;  %v1002_v22 = vld [vmem:[#allocation2 + $0x6c] sm:$0x1]  ;;  %vm6278_vm11 = vmand %vm7669_vm14, %vm7662_vm12 }
  0x6b   : > { %v6268_v63 = vor.u32 %v1589_v0, %v1586_v40  ;;  %v1525_v34 = vrot.slane %v1523_v52, 6  ;;  %715 = vst.msk [vmem:[#allocation2 + $0x38] sm:$0xc] %vm7675_vm6, %v706_v15  ;;  %v7725_v52 = vmov 0  ;;  %v947_v40 = vld [vmem:[#allocation2 + $0x68] sm:$0x1]  ;;  %v6294_v51 = vor.u32 %v1537_v60, %v1534_v24 }
  0x6c   : > { %1107 = vrot.lane.b32.xlu1 %v1103_v1, %s5586_s20  ;;  %1068 = vrot.lane.b32.xlu0 %v1064_v3, %s5586_s20  ;;  %v1528_v1 = vrot.slane %v1526_v10, 7  ;;  %v7660_v3 = vrot.slane %v6266_v25, 7  ;;  %v608_v17 = vrot.slane %v606_v9, 4  ;;  %v607_v19 = vsel %vm5835_vm10, %v598_v5, %v606_v9  ;;  %v877_v0 = vld [vmem:[%s5687_s17 + $0x30] sm:$0xf] }
  0x6d   : > { %v670_v47 = vrot.slane %v668_v55, 4  ;;  %v669_v26 = vsel %vm5835_vm10, %v660_v7, %v668_v55  ;;  %v7726_v52 = vsel %vm6278_vm11, 4294967295, %v7725_v52  ;;  %618 = vst.msk [vmem:[#allocation2 + $0x30] sm:$0xf] %vm7673_vm0, %v607_v19  ;;  %v768_v9 = vrot.slane %v767_v37, 4 }
  0x6e   : > { %7727 = vst [vmem:[#allocation14_spill] sm:$0xff] %v7726_v52  ;;  %677 = vst.msk [vmem:[#allocation2 + $0x34] sm:$0xf] %vm7673_vm0, %v669_v26  ;;  %v707_v10 = vrot.slane %v706_v15, 4  ;;  %v996_v5 = vrot.slane %v7661_v33, 4  ;;  %v937_v7 = vrot.slane %v7660_v3, 4 }
  0x6f   : > { %v815_v42 = vld [vmem:[%s5687_s17 + $0x28] sm:$0xf]  ;;  %v1104_v55 = vld [vmem:[%s5687_s17 + $0x44] sm:$0xf]  ;;  %v1577_v19 = vrot.slane %v1575_v20, 6  ;;  %v1580_v26 = vrot.slane %v1578_v31, 7 }
  0x70   : > { %1026 = vrot.lane.b32.xlu1 %v1022_v61, %s5586_s20  ;;  %973 = vrot.lane.b32.xlu0 %v969_v23, %s5586_s20  ;;  %620 = vst.msk [vmem:[#allocation2 + $0x38] sm:$0x3] %vm7672_vm2, %v608_v17  ;;  %678 = vst.msk [vmem:[#allocation2 + $0x3c] sm:$0x3] %vm7672_vm2, %v670_v47  ;;  %v1065_v15 = vld [vmem:[%s5687_s17 + $0x3c] sm:$0xf]  ;;  %v1003_v37 = vsel %vm6278_vm11, %v996_v5, %v1002_v22  ;;  %v948_v23 = vsel %vm6278_vm11, %v937_v7, %v947_v40 }
  0x71   : > { %v880_v3 = vshrl.u32 %v877_v0, 16  ;;  %v883_v33 = vshll.u32 %v877_v0, 16  ;;  %v816_v61 = vld [vmem:[%s5687_s17 + $0x2c] sm:$0xf]  ;;  %v7728_v24 = vrot.slane %v6190_v18, 6  ;;  %v7729_v20 = vrot.slane %v6261_v62, 6 }
  0x72   : > { %1004 = vst [vmem:[#allocation2 + $0x6c] sm:$0x1] %v1003_v37  ;;  %949 = vst [vmem:[#allocation2 + $0x68] sm:$0x1] %v948_v23  ;;  %v6313_v17 = vld [vmem:[%s5687_s17 + $0x70] sm:$0xf]  ;;  %v6317_v0 = vor.u32 %v1528_v1, %v1525_v34 }
  0x73   : > { %v6306_v60 = vrot.slane %v7728_v24, 4  ;;  %v6310_v31 = vrot.slane %v7729_v20, 4  ;;  %v818_v22 = vshrl.u32 %v815_v42, 16  ;;  %v821_v47 = vshll.u32 %v815_v42, 16  ;;  %v6320_v5 = vld [vmem:[%s5687_s17 + $0x68] sm:$0xf] }
  0x74   : > { %1109 = vrot.lane.b32.xlu1 %v1104_v55, %s5586_s20  ;;  %v7730_v7 = vrot.slane %v6129_v12, 6  ;;  %v7731_v37 = vrot.slane %v6161_v45, 6  ;;  %1070 = vrot.lane.b32.xlu0 %v1065_v15, %s5586_s20  ;;  %v6331_v42 = vor.u32 %v1580_v26, %v1577_v19  ;;  %v827_v12 = vshrl.u32 %v816_v61, 16  ;;  %v878_v1 = vld [vmem:[%s5687_s17 + $0x34] sm:$0xf] }
  0x75   : > { %v820_v55 = vrot.slane %v818_v22, 6  ;;  %v823_v34 = vrot.slane %v821_v47, 7  ;;  %v882_v20 = vrot.slane %v880_v3, 6  ;;  %v7663_v15 = vrot.slane %v6320_v5, 7  ;;  %v6342_v26 = vld [vmem:[%s5687_s17 + $0x74] sm:$0xf] }
  0x76   : > { %v770_v24 = vsel %vm5900_vm15, %v768_v9, %v7730_v7  ;;  %v709_v23 = vsel %vm5900_vm15, %v707_v10, %v7731_v37  ;;  %v7664_v9 = vrot.slane %v6313_v17, 7  ;;  %v885_v10 = vrot.slane %v883_v33, 7  ;;  %v6352_v3 = vld [vmem:[%s5687_s17 + $0x6c] sm:$0xf]  ;;  %v1038_v40 = vld [vmem:[%s5687_s17 + $0x38] sm:$0xf] }
  0x77   : > { %776 = vst.msk [vmem:[#allocation2 + $0x44] sm:$0xf] %vm7673_vm0, %v770_v24  ;;  %716 = vst.msk [vmem:[#allocation2 + $0x40] sm:$0xf] %vm7673_vm0, %v709_v23  ;;  %v6339_v19 = vor.u32 %v823_v34, %v820_v55  ;;  %v829_v22 = vrot.slane %v827_v12, 6  ;;  %v830_v47 = vshll.u32 %v816_v61, 16  ;;  %v7732_v7 = vsel %vm5743_vm5, %v6079_v39, %v5896_v29 }
  0x78   : > { %1181 = vrot.lane.b32.xlu1 %v7732_v7, %s5586_s20  ;;  %vm7671_vm12 = vcmask 519169   ;;  %v889_v33 = vshrl.u32 %v878_v1, 16  ;;  %v1155_v37 = vld [vmem:[%s5687_s17 + $0x4c] sm:$0xf]  ;;  %v7733_v61 = vsel %vm5743_vm5, %v6081_v46, %v5906_v38  ;;  %v892_v39 = vshll.u32 %v878_v1, 16 }
  0x79   : > { %1144 = vrot.lane.b32.xlu0 %v7733_v61, %s5586_s20  ;;  %v832_v55 = vrot.slane %v830_v47, 7  ;;  %v825_v29 = vrot.slane %v6339_v19, 4  ;;  %v1157_v34 = vld [vmem:[#allocation2 + $0x84] sm:$0xf]  ;;  %v6365_v12 = vrot.slane %v7664_v9, 4  ;;  %v6367_v7 = vor.u32 %v885_v10, %v882_v20 }
  0x7a   : > { %v891_v24 = vrot.slane %v889_v33, 6  ;;  %v1158_v38 = vsel %vm6006_vm8, %v1155_v37, %v1157_v34  ;;  %v6373_v46 = vrot.slane %v7663_v15, 4  ;;  %v7665_v47 = vrot.slane %v6342_v26, 7  ;;  %v988_v37 = vld [vmem:[%s5687_s17 + $0x38] sm:$0xf] }
  0x7b   : > { %v833_v1 = vor.u32 %v832_v55, %v829_v22  ;;  %v894_v61 = vrot.slane %v892_v39, 7  ;;  %1159 = vst [vmem:[#allocation2 + $0x84] sm:$0xf] %v1158_v38  ;;  %v7734_v20 = vrot.slane %v6090_v36, 4  ;;  %v7666_v10 = vrot.slane %v6352_v3, 7 }
  0x7c   : > { %v887_v33 = vrot.slane %v6367_v7, 4  ;;  %v929_v34 = vld [vmem:[%s5687_s17 + $0x30] sm:$0xf]  ;;  %v7735_v15 = vrot.slane %v6092_v27, 4  ;;  %v6388_v22 = vrot.slane %v7665_v47, 4  ;;  %v7736_v45 = vrot.slane %v6068_v35, 5 }
  0x7d   : > { %1389 = vrot.lane.b32.xlu1 %v7734_v20, %s5586_s20  ;;  %v835_v55 = vrot.slane %v833_v1, 4  ;;  %v834_v39 = vsel %vm5965_vm7, %v825_v29, %v833_v1  ;;  %v6393_v38 = vld [vmem:[%s5687_s17 + $0x70] sm:$0xf]  ;;  %v6396_v20 = vld [vmem:[%s5687_s17 + $0x74] sm:$0xf]  ;;  %v895_v9 = vor.u32 %v894_v61, %v891_v24  ;;  %v7737_v47 = vrot.slane %v6088_v57, 5 }
  0x7e   : > { %1337 = vrot.lane.b32.xlu0 %v7735_v15, %s5586_s20  ;;  %v6399_v23 = vld [vmem:[%s5687_s17 + $0x50] sm:$0xf]  ;;  %v1279_v15 = vsel %vm5699_vm4, %v6085_v13, %v7736_v45  ;;  %845 = vst.msk [vmem:[#allocation2 + $0x50] sm:$0xf] %vm7673_vm0, %v834_v39  ;;  %v1118_v1 = vld [vmem:[%s5687_s17 + $0x44] sm:$0xf] }
  0x7f   : > { %v1227_v29 = vsel %vm5699_vm4, %v6114_v11, %v7737_v47  ;;  %v1120_v24 = vld [vmem:[#allocation2 + $0x80] sm:$0xf]  ;;  %v6414_v61 = vld [vmem:[%s5687_s17 + $0x48] sm:$0xf]  ;;  %847 = vst.msk [vmem:[#allocation2 + $0x58] sm:$0x1] %vm7669_vm14, %v835_v55  ;;  %v896_v13 = vsel %vm5965_vm7, %v887_v33, %v895_v9 }
  0x80   : > { %v897_v35 = vrot.slane %v895_v9, 4  ;;  %v992_v45 = vrot.slane %v988_v37, 7  ;;  %v933_v57 = vrot.slane %v929_v34, 7  ;;  %v7738_v11 = vrot.slane %v6023_v49, 5  ;;  %904 = vst.msk [vmem:[#allocation2 + $0x54] sm:$0xf] %vm7673_vm0, %v896_v13 }
  0x81   : > { %v7739_v47 = vrot.slane %v6098_v14, 4  ;;  %v7740_v55 = vrot.slane %v6142_v44, 4  ;;  %v6439_v49 = vrot.slane %v7666_v10, 4  ;;  %v1246_v33 = vshll.u32 %v6399_v23, 16  ;;  %v1079_v37 = vld [vmem:[%s5687_s17 + $0x40] sm:$0xf] }
  0x82   : > { %1281 = vrot.lane.b32.xlu1 %v7738_v11, %s5586_s20  ;;  %v1154_v34 = vld [vmem:[%s5687_s17 + $0x48] sm:$0xf]  ;;  %v7742_v11 = vrot.slane %v6190_v18, 6  ;;  %905 = vst.msk [vmem:[#allocation2 + $0x5c] sm:$0x1] %vm7669_vm14, %v897_v35  ;;  %v934_v13 = vrot.slane %v933_v57, 4 }
  0x83   : > { %v6428_v39 = vsel %vm5835_vm10, %v7739_v47, %v6092_v27  ;;  %v6435_v9 = vsel %vm5835_vm10, %v7740_v55, %v6090_v36  ;;  %v7741_v27 = vrot.slane %v6049_v2, 5  ;;  %v993_v47 = vrot.slane %v992_v45, 4  ;;  %1000 = vst.msk [vmem:[#allocation2 + $0x5c] sm:$0xe] %vm7671_vm12, %v992_v45  ;;  %942 = vst.msk [vmem:[#allocation2 + $0x58] sm:$0xe] %vm7671_vm12, %v933_v57 }
  0x84   : > { %v6453_v36 = vsel %vm5900_vm15, %v6204_v41, %v7742_v11  ;;  %v1121_v2 = vsel %vm6006_vm8, %v1118_v1, %v1120_v24  ;;  %v1080_v55 = vld [vmem:[%s5687_s17 + $0x44] sm:$0xf]  ;;  %1156 = vst.msk [vmem:[#allocation2 + $0x7c] sm:$0xf] %vm7673_vm0, %v1154_v34  ;;  %v1117_v18 = vld [vmem:[%s5687_s17 + $0x40] sm:$0xf] }
  0x85   : > { %1229 = vrot.lane.b32.xlu0 %v7741_v27, %s5586_s20  ;;  %1122 = vst [vmem:[#allocation2 + $0x80] sm:$0xf] %v1121_v2  ;;  %v1041_v35 = vshrl.u32 %v1038_v40, 16  ;;  %v1044_v11 = vshll.u32 %v1038_v40, 16  ;;  %v1039_v10 = vld [vmem:[%s5687_s17 + $0x3c] sm:$0xf] }
  0x86   : > { %1119 = vst.msk [vmem:[#allocation2 + $0x78] sm:$0xf] %vm7673_vm0, %v1117_v18  ;;  %v6467_v45 = vrot.slane %v1246_v33, 5  ;;  %v1194_v16 = vshll.u32 %v6414_v61, 16  ;;  %v1082_v1 = vshrl.u32 %v1079_v37, 16  ;;  %v1085_v24 = vshll.u32 %v1079_v37, 16  ;;  %1283 = vrot.lane.b32.xlu1 %v1279_v15, %s5586_s20 }
  0x87   : > { %v1043_v57 = vrot.slane %v1041_v35, 7  ;;  %v7743_v34 = vrot.slane %v6257_v4, 7  ;;  %v7744_v40 = vrot.slane %v6266_v25, 7  ;;  %v1090_v33 = vshrl.u32 %v1080_v55, 16  ;;  %v6480_v41 = vld [vmem:[%s5687_s17 + $0x5c] sm:$0xf] }
  0x88   : > { %v1084_v27 = vrot.slane %v1082_v1, 7  ;;  %v1093_v4 = vshll.u32 %v1080_v55, 16  ;;  %v1049_v15 = vshrl.u32 %v1039_v10, 16  ;;  %v1052_v37 = vshll.u32 %v1039_v10, 16  ;;  %v6486_v35 = vld [vmem:[%s5687_s17 + $0x54] sm:$0xf] }
  0x89   : > { %v995_v2 = vsel %vm5944_vm3, %v993_v47, %v7743_v34  ;;  %v936_v18 = vsel %vm5944_vm3, %v934_v13, %v7744_v40  ;;  %1231 = vrot.lane.b32.xlu0 %v1227_v29, %s5586_s20  ;;  %v1361_v47 = vld [vmem:[#allocation2 + $0xa4] sm:$0x7]  ;;  %v6488_v25 = vor.u32 %v1044_v11, %v1043_v57  ;;  %v1092_v13 = vrot.slane %v1090_v33, 7  ;;  %v1309_v29 = vld [vmem:[#allocation2 + $0xa0] sm:$0x7] }
  0x8a   : > { %1001 = vst.msk [vmem:[#allocation2 + $0x64] sm:$0xf] %vm7673_vm0, %v995_v2  ;;  %943 = vst.msk [vmem:[#allocation2 + $0x60] sm:$0xf] %vm7673_vm0, %v936_v18  ;;  %v1047_v34 = vrot.slane %v1043_v57, 4  ;;  %v7670_v40 = vrot.slane %v6480_v41, 5  ;;  %v6491_v1 = vor.u32 %v1085_v24, %v1084_v27  ;;  %1285 = vrot.lane.b32.xlu1 %v6118_v43, %s5586_s20 }
  0x8b   : > { %7745 = vst [vmem:[#allocation15_spill] sm:$0xff] %v6488_v25  ;;  %v1088_v2 = vrot.slane %v1084_v27, 4  ;;  %v1051_v52 = vrot.slane %v1049_v15, 7  ;;  %v1301_v18 = vrot.slane %v6486_v35, 5  ;;  %v1244_v55 = vld [vmem:[%s5687_s17 + $0x54] sm:$0xf]  ;;  %v1095_v10 = vor.u32 %v1093_v4, %v1092_v13 }
  0x8c   : > { %7746 = vst [vmem:[#allocation16_spill] sm:$0xff] %v6491_v1  ;;  %vm7676_vm8 = vcmask 1043968   ;;  %v1355_v11 = vrot.slane %v7670_v40, 4  ;;  %v1249_v57 = vshrl.u32 %v6399_v23, 16  ;;  %v1255_v33 = vshll.u32 %v1244_v55, 16 }
  0x8d   : > { %v1192_v24 = vld [vmem:[%s5687_s17 + $0x4c] sm:$0xf]  ;;  %1233 = vrot.lane.b32.xlu0 %v6125_v30, %s5586_s20  ;;  %vm7674_vm14 = vcmask 1042944   ;;  %v1054_v27 = vor.u32 %v1052_v37, %v1051_v52  ;;  %v1303_v15 = vrot.slane %v1301_v18, 4  ;;  %v1197_v35 = vshrl.u32 %v6414_v61, 16 }
  0x8e   : > { %v1203_v43 = vshll.u32 %v1192_v24, 16  ;;  %v6504_v25 = vrot.slane %v1194_v16, 5  ;;  %v1096_v4 = vsel %vm6210_vm13, %v1088_v2, %v1095_v10  ;;  %v1362_v13 = vsel %vm6015_vm9, %v1355_v11, %v1361_v47  ;;  %v1295_v40 = vld [vmem:[%s5687_s17 + $0x50] sm:$0xf]  ;;  %v1347_v1 = vld [vmem:[%s5687_s17 + $0x58] sm:$0xf]  ;;  %1335 = vrot.lane.b32.xlu1 %v6428_v39, %s5586_s20 }
  0x8f   : > { %v1251_v23 = vrot.slane %v1249_v57, 4  ;;  %1102 = vst.msk [vmem:[#allocation2 + $0x74] sm:$0xf] %vm7673_vm0, %v1096_v4  ;;  %v1055_v30 = vsel %vm6210_vm13, %v1047_v34, %v1054_v27  ;;  %1363 = vst [vmem:[#allocation2 + $0xa4] sm:$0x7] %v1362_v13  ;;  %v1310_v52 = vsel %vm6015_vm9, %v1303_v15, %v1309_v29  ;;  %v1257_v61 = vrot.slane %v1255_v33, 5  ;;  %v6531_v57 = vpop.permute.xlu1 %461 }
  0x90   : > { %v1199_v16 = vrot.slane %v1197_v35, 4  ;;  %1063 = vst.msk [vmem:[#allocation2 + $0x70] sm:$0xf] %vm7673_vm0, %v1055_v30  ;;  %1311 = vst [vmem:[#allocation2 + $0xa0] sm:$0x7] %v1310_v52  ;;  %v1259_v47 = vshrl.u32 %v1244_v55, 16  ;;  %v6533_v55 = vpop.permute.xlu0 %406 }
  0x91   : > { %v1252_v37 = vor.u32 %v1251_v23, %v6467_v45  ;;  %v1207_v2 = vshrl.u32 %v1192_v24, 16  ;;  %v1299_v10 = vrot.slane %v1295_v40, 5  ;;  %1333 = vrot.lane.b32.xlu0 %v6098_v14, %s5586_s20  ;;  %v7747_v58 = vrot.slane %v6261_v62, 6  ;;  %v1451_v62 = vld [vmem:[%s5687_s17 + $0x60] sm:$0xf] }
  0x92   : > { %v1200_v39 = vor.u32 %v1199_v16, %v6504_v25  ;;  %v1205_v29 = vrot.slane %v1203_v43, 5  ;;  %v1351_v11 = vrot.slane %v1347_v1, 5  ;;  %v1261_v33 = vrot.slane %v1259_v47, 4  ;;  %v1399_v35 = vld [vmem:[%s5687_s17 + $0x58] sm:$0xf]  ;;  %1387 = vrot.lane.b32.xlu1 %v6435_v9, %s5586_s20 }
  0x93   : > { %v6528_v34 = vsel %vm5900_vm15, %v6217_v54, %v7747_v58  ;;  %v1253_v40 = vrot.slane %v1252_v37, 4  ;;  %v1209_v24 = vrot.slane %v1207_v2, 4  ;;  %v1300_v14 = vrot.slane %v1299_v10, 4  ;;  %v1452_v30 = vld [vmem:[%s5687_s17 + $0x64] sm:$0xf]  ;;  %v411_v2 = vpop.permute.xlu1 %410 }
  0x94   : > { %vm7748_vm9 = vcmask 519171   ;;  %vm386_vm12 = vsmask.f32 7950  ;;  %v1201_v54 = vrot.slane %v1200_v39, 4  ;;  %v1352_v27 = vrot.slane %v1351_v11, 4 }
  0x95   : > { %1307 = vst.msk [vmem:[#allocation2 + $0x90] sm:$0x8] %vm7748_vm9, %v1299_v10  ;;  %vm7749_vm2 = vmmov %vm7748_vm9  ;;  %v1454_v15 = vshrl.u32 %v1451_v62, 16  ;;  %v1457_v1 = vshll.u32 %v1451_v62, 16  ;;  %v1258_v43 = vsel %vm5743_vm5, %v1253_v40, %v1257_v61  ;;  %v1262_v4 = vor.u32 %v1261_v33, %v1257_v61  ;;  %v1400_v52 = vld [vmem:[%s5687_s17 + $0x5c] sm:$0xf]  ;;  %1385 = vrot.lane.b32.xlu0 %v6142_v44, %s5586_s20  ;;  %v409_v44 = vpop.permute.xlu0 %408 }
  0x96   : > { %1359 = vst.msk [vmem:[#allocation2 + $0x94] sm:$0x8] %vm7749_vm2, %v1351_v11  ;;  %v1210_v13 = vor.u32 %v1209_v24, %v1205_v29  ;;  %v1302_v23 = vsel %vm5699_vm4, %v1300_v14, %v1301_v18  ;;  %v1206_v16 = vsel %vm5743_vm5, %v1201_v54, %v1205_v29  ;;  %v7750_v9 = vrot.slane %v6480_v41, 5  ;;  %v6558_v47 = vld [vmem:[%s5687_s17 + $0x6c] sm:$0xf] }
  0x97   : > { %1270 = vst.msk [vmem:[#allocation2 + $0x8c] sm:$0xf] %vm7673_vm0, %v1258_v43  ;;  %1308 = vst.msk [vmem:[#allocation2 + $0x98] sm:$0xf] %vm7673_vm0, %v1302_v23  ;;  %v1456_v37 = vrot.slane %v1454_v15, 5  ;;  %v1459_v18 = vrot.slane %v1457_v1, 6 }
  0x98   : > { %v1354_v61 = vsel %vm5699_vm4, %v1352_v27, %v7750_v9  ;;  %v533_v10 = vld [vmem:[#allocation2 + $0x28] sm:$0x7]  ;;  %1218 = vst.msk [vmem:[#allocation2 + $0x88] sm:$0xf] %vm7673_vm0, %v1206_v16  ;;  %v1263_v58 = vrot.slane %v1262_v4, 4  ;;  %v1211_v56 = vrot.slane %v1210_v13, 4 }
  0x99   : > { %1360 = vst.msk [vmem:[#allocation2 + $0x9c] sm:$0xf] %vm7673_vm0, %v1354_v61  ;;  %v1402_v39 = vshrl.u32 %v1399_v35, 16  ;;  %v1405_v29 = vshll.u32 %v1399_v35, 16  ;;  %v6564_v41 = vor.u32 %v1459_v18, %v1456_v37  ;;  %v1463_v11 = vshrl.u32 %v1452_v30, 16 }
  0x9a   : > { %422 = vst.msk [vmem:[#allocation2 + $0x18] sm:$0x7] %vm7674_vm14, %v411_v2  ;;  %v1466_v40 = vshll.u32 %v1452_v30, 16  ;;  %v1411_v33 = vshrl.u32 %v1400_v52, 16  ;;  %v1504_v24 = vld [vmem:[%s5687_s17 + $0x64] sm:$0xf] }
  0x9b   : > { %420 = vst.msk [vmem:[#allocation2 + $0x10] sm:$0xf] %vm7676_vm8, %v409_v44  ;;  %vm7751_vm4 = vsmask.f32 2304  ;;  %v7754_v62 = vrot.slane %v6106_v28, 6  ;;  %vm7755_vm9 = vcmask 518144  }
  0x9c   : > { %vm6569_vm5 = vmand %vm7674_vm14, %vm7751_vm4  ;;  %1271 = vst.msk [vmem:[#allocation2 + $0x94] sm:$0x7] %vm7755_vm9, %v1263_v58  ;;  %v1404_v54 = vrot.slane %v1402_v39, 5  ;;  %v1407_v27 = vrot.slane %v1405_v29, 6  ;;  %v1414_v15 = vshll.u32 %v1400_v52, 16  ;;  %v1561_v1 = vrot.slane %v6558_v47, 6  ;;  %v524_v52 = vpop.permute.xlu1 %523  ;;  %v314_v58 = vpop.permute.xlu0 %313 }
  0x9d   : > { %1489 = vrot.lane.b32.xlu1 %v7754_v62, %s5586_s20  ;;  %vm7756_vm2 = vmmov %vm7755_vm9  ;;  %v1569_v35 = vld [vmem:[#allocation2 + $0xc4] sm:$0x3]  ;;  %vm7757_vm0 = vsmask.f32 3328  ;;  %v7760_v28 = vrot.slane %v6146_v53, 6  ;;  %v1461_v4 = vrot.slane %v6564_v41, 4  ;;  %v534_v53 = vsel %vm6569_vm5, %v524_v52, %v533_v10 }
  0x9e   : > { %1219 = vst.msk [vmem:[#allocation2 + $0x90] sm:$0x7] %vm7756_vm2, %v1211_v56  ;;  %vm6581_vm4 = vmand %vm7676_vm8, %vm7757_vm0  ;;  %v1465_v13 = vrot.slane %v1463_v11, 5  ;;  %v1468_v23 = vrot.slane %v1466_v40, 6  ;;  %v1413_v30 = vrot.slane %v1411_v33, 5  ;;  %v6590_v61 = vor.u32 %v1407_v27, %v1404_v54 }
  0x9f   : > { %1437 = vrot.lane.b32.xlu0 %v7760_v28, %s5586_s20  ;;  %v1503_v16 = vld [vmem:[%s5687_s17 + $0x60] sm:$0xf]  ;;  %v585_v9 = vld [vmem:[#allocation2 + $0x2c] sm:$0x7]  ;;  %v1416_v37 = vrot.slane %v1414_v15, 6  ;;  %v1563_v18 = vrot.slane %v1561_v1, 4  ;;  %v322_v40 = vsel %vm6581_vm4, %v314_v58, %v321_v8 }
  0xa0   : > { %v1509_v2 = vrot.slane %v1504_v24, 6  ;;  %v1517_v44 = vld [vmem:[#allocation2 + $0xc0] sm:$0x3]  ;;  %v358_v56 = vld [vmem:[#allocation2 + $0xc] sm:$0xf]  ;;  %v1742_v39 = vshll.u32 %v6396_v20, 16  ;;  %v1469_v29 = vor.u32 %v1468_v23, %v1465_v13  ;;  %v354_v23 = vpop.permute.xlu0 %353 }
  0xa1   : > { %v1507_v11 = vrot.slane %v1503_v16, 6  ;;  %535 = vst [vmem:[#allocation2 + $0x28] sm:$0x7] %v534_v53  ;;  %1491 = vrot.lane.b32.xlu1 %v6453_v36, %s5586_s20  ;;  %v1409_v33 = vrot.slane %v6590_v61, 4  ;;  %v1417_v24 = vor.u32 %v1416_v37, %v1413_v30  ;;  %v1570_v62 = vsel %vm6150_vm1, %v1563_v18, %v1569_v35  ;;  %v1555_v10 = vld [vmem:[%s5687_s17 + $0x68] sm:$0xf]  ;;  %v579_v36 = vpop.permute.xlu1 %578 }
  0xa2   : > { %323 = vst [vmem:[#allocation2 + $0x8] sm:$0xf] %v322_v40  ;;  %v1470_v54 = vsel %vm5835_vm10, %v1461_v4, %v1469_v29  ;;  %1571 = vst [vmem:[#allocation2 + $0xc4] sm:$0x3] %v1570_v62  ;;  %v1511_v27 = vrot.slane %v1509_v2, 4  ;;  %v1471_v8 = vrot.slane %v1469_v29, 4  ;;  %v586_v13 = vsel %vm6569_vm5, %v579_v36, %v585_v9 }
  0xa3   : > { %1439 = vrot.lane.b32.xlu0 %v6528_v34, %s5586_s20  ;;  %v1508_v15 = vrot.slane %v1507_v11, 4  ;;  %1515 = vst.msk [vmem:[#allocation2 + $0xb0] sm:$0xc] %vm7675_vm6, %v1507_v11  ;;  %vm7761_vm0 = vcmask 519171   ;;  %vm7764_vm9 = vcmask 519168   ;;  %v1418_v34 = vsel %vm5835_vm10, %v1409_v33, %v1417_v24  ;;  %v7776_v40 = vld [vmem:[#allocation13_spill] sm:$0xff] }
  0xa4   : > { %vm6612_vm2 = vmand %vm7761_vm0, %vm386_vm12  ;;  %1478 = vst.msk [vmem:[#allocation2 + $0xac] sm:$0xf] %vm7764_vm9, %v1470_v54  ;;  %v1419_v35 = vrot.slane %v1417_v24, 4  ;;  %v1559_v4 = vrot.slane %v1555_v10, 6  ;;  %v1518_v30 = vsel %vm6150_vm1, %v1511_v27, %v1517_v44  ;;  %vm7766_vm0 = vcmask 517120   ;;  %v7778_v24 = vld [vmem:[#allocation10_spill] sm:$0xff] }
  0xa5   : > { %vm7765_vm14 = vmmov %vm7764_vm9  ;;  %1479 = vst.msk [vmem:[#allocation2 + $0xb4] sm:$0x3] %vm7766_vm0, %v1471_v8  ;;  %v1510_v16 = vsel %vm5900_vm15, %v1508_v15, %v1509_v2  ;;  %v359_v59 = vsel %vm6581_vm4, %v354_v23, %v358_v56  ;;  %vm7677_vm10 = vcmask 1043971   ;;  %v7767_v52 = vrot.slane %v6268_v63, 4  ;;  %v352_v44 = vpop.permute.xlu1 %351  ;;  %v6649_v53 = vld [vmem:[%s5687_s17 + $0x78] sm:$0xf]  ;;  %v312_v56 = vpop.permute.xlu0 %311 }
  0xa6   : > { %1426 = vst.msk [vmem:[#allocation2 + $0xa8] sm:$0xf] %vm7765_vm14, %v1418_v34  ;;  %587 = vst [vmem:[#allocation2 + $0x2c] sm:$0x7] %v586_v13  ;;  %vm7768_vm9 = vsmask.f32 7946 }
  0xa7   : > { %1597 = vrot.lane.b32.xlu1 %v7767_v52, %s5586_s20  ;;  %vm6634_vm14 = vmand %vm7675_vm6, %vm7768_vm9  ;;  %v7771_v9 = vshrl.u32 %v6393_v38, 16  ;;  %1519 = vst [vmem:[#allocation2 + $0xc0] sm:$0x3] %v1518_v30  ;;  %v1560_v18 = vrot.slane %v1559_v4, 4  ;;  %v7774_v2 = vrot.slane %v6294_v51, 4  ;;  %vm7679_vm9 = vcmask 1041920  }
  0xa8   : > { %vm7772_vm1 = vmmov %vm7766_vm0  ;;  %vm7773_vm0 = vcmask 519168   ;;  %1567 = vst.msk [vmem:[#allocation2 + $0xb4] sm:$0xc] %vm7675_vm6, %v1559_v4  ;;  %v615_v29 = vld [vmem:[#allocation2 + $0x28] sm:$0xc]  ;;  %v7777_v32 = vshrl.u32 %v6396_v20, 16 }
  0xa9   : > { %v6640_v37 = vrot.slane %v7771_v9, 7  ;;  %1427 = vst.msk [vmem:[#allocation2 + $0xb0] sm:$0x3] %vm7772_vm1, %v1419_v35  ;;  %360 = vst [vmem:[#allocation2 + $0xc] sm:$0xf] %v359_v59  ;;  %1545 = vrot.lane.b32.xlu0 %v7774_v2, %s5586_s20  ;;  %v1562_v58 = vsel %vm5900_vm15, %v1560_v18, %v1561_v1  ;;  %v616_v47 = vsel %vm6634_vm14, %v7776_v40, %v615_v29  ;;  %v1734_v33 = vshll.u32 %v6393_v38, 16  ;;  %v466_v54 = vpop.permute.xlu1 %465  ;;  %v464_v27 = vpop.permute.xlu0 %463 }
  0xaa   : > { %1516 = vst.msk [vmem:[#allocation2 + $0xb8] sm:$0xf] %vm7773_vm0, %v1510_v16  ;;  %vm7775_vm1 = vmmov %vm7773_vm0  ;;  %v388_v11 = vld [vmem:[#allocation2 + $0x8] sm:$0x8]  ;;  %v6665_v1 = vrot.slane %v7777_v32, 7  ;;  %vm7678_vm15 = vcmask 1043970  }
  0xab   : > { %357 = vst.msk [vmem:[#allocation2 + $0x4] sm:$0xf] %vm7676_vm8, %v352_v44  ;;  %318 = vst.msk [vmem:[#allocation2] sm:$0xf] %vm7676_vm8, %v312_v56  ;;  %1493 = vrot.lane.b32.xlu1 %v6306_v60, %s5586_s20  ;;  %v389_v62 = vsel %vm6612_vm2, %v7778_v24, %v388_v11  ;;  %v7779_v60 = vrot.slane %v6317_v0, 4  ;;  %vm7780_vm0 = vcmask 1042944  }
  0xac   : > { %1568 = vst.msk [vmem:[#allocation2 + $0xbc] sm:$0xf] %vm7775_vm1, %v1562_v58  ;;  %617 = vst [vmem:[#allocation2 + $0x28] sm:$0xc] %v616_v47  ;;  %v1737_v15 = vrot.slane %v6640_v37, 4  ;;  %v7781_v35 = vld [vmem:[#allocation12_spill] sm:$0xff] }
  0xad   : > { %1441 = vrot.lane.b32.xlu0 %v6310_v31, %s5586_s20  ;;  %v1539_v10 = vsel %vm5965_vm7, %v7779_v60, %v6294_v51  ;;  %390 = vst [vmem:[#allocation2 + $0x8] sm:$0x8] %v389_v62  ;;  %474 = vst.msk [vmem:[#allocation2 + $0x1c] sm:$0x7] %vm7780_vm0, %v466_v54  ;;  %v674_v8 = vld [vmem:[#allocation2 + $0x2c] sm:$0xc]  ;;  %v575_v16 = vpop.permute.xlu1 %574 }
  0xae   : > { %v6681_v36 = vld [vmem:[%s5687_s17 + $0x7c] sm:$0xf]  ;;  %v1781_v31 = vshrl.u32 %v6649_v53, 16  ;;  %473 = vst.msk [vmem:[#allocation2 + $0x14] sm:$0xf] %vm7676_vm8, %v464_v27  ;;  %v675_v51 = vsel %vm6634_vm14, %v7781_v35, %v674_v8  ;;  %v7783_v23 = vrot.slane %v6331_v42, 4  ;;  %vm6718_vm0 = vmand %vm7677_vm10, %vm386_vm12 }
  0xaf   : > { %1543 = vrot.lane.b32.xlu1 %v1539_v10, %s5586_s20  ;;  %v7782_v4 = vld [vmem:[#allocation11_spill] sm:$0xff]  ;;  %676 = vst [vmem:[#allocation2 + $0x2c] sm:$0xc] %v675_v51  ;;  %v812_v59 = vld [vmem:[#allocation2 + $0x4c] sm:$0x3]  ;;  %v7784_v52 = vrot.slane %v6342_v26, 7 }
  0xb0   : > { %v447_v34 = vld [vmem:[#allocation2 + $0xc] sm:$0x8]  ;;  %v1591_v30 = vsel %vm5965_vm7, %v7783_v23, %v6268_v63  ;;  %vm840_vm1 = vsmask.f32 7942  ;;  %v7785_v18 = vrot.slane %v6352_v3, 7  ;;  %v1789_v40 = vshrl.u32 %v6681_v36, 16 }
  0xb1   : > { %v448_v13 = vsel %vm6612_vm2, %v7782_v4, %v447_v34  ;;  %1541 = vrot.lane.b32.xlu0 %v6317_v0, %s5586_s20  ;;  %v6704_v9 = vsel %vm5944_vm3, %v6365_v12, %v7784_v52  ;;  %v1659_v2 = vld [vmem:[%s5687_s17 + $0x70] sm:$0xf]  ;;  %v1607_v63 = vld [vmem:[%s5687_s17 + $0x68] sm:$0xf]  ;;  %v1660_v44 = vld [vmem:[%s5687_s17 + $0x74] sm:$0xf]  ;;  %v520_v12 = vpop.permute.xlu0 %519  ;;  %v806_v35 = vpop.permute.xlu1 %805 }
  0xb2   : > { %449 = vst [vmem:[#allocation2 + $0xc] sm:$0x8] %v448_v13  ;;  %v6711_v0 = vsel %vm5944_vm3, %v6373_v46, %v7785_v18  ;;  %583 = vst.msk [vmem:[#allocation2 + $0x1c] sm:$0x8] %vm7677_vm10, %v575_v16  ;;  %v760_v58 = vld [vmem:[#allocation2 + $0x48] sm:$0x3] }
  0xb3   : > { %v1662_v3 = vshrl.u32 %v1659_v2, 16  ;;  %v1665_v56 = vshll.u32 %v1659_v2, 16  ;;  %v1610_v29 = vshrl.u32 %v1607_v63, 16  ;;  %v1613_v11 = vshll.u32 %v1607_v63, 16  ;;  %529 = vst.msk [vmem:[#allocation2 + $0x18] sm:$0x8] %vm7677_vm10, %v520_v12  ;;  %1595 = vrot.lane.b32.xlu1 %v1591_v30, %s5586_s20 }
  0xb4   : > { %vm7788_vm6 = vsmask.f32 1280  ;;  %v7789_v46 = vmov 0  ;;  %v1792_v47 = vshll.u32 %v6681_v36, 16  ;;  %v1671_v32 = vshrl.u32 %v1660_v44, 16  ;;  %v5512_v36 = vld [vmem:[%s7634_s3 + $0xc8] sm:$0xff]  }
  0xb5   : > { %vm6726_vm8 = vmand %vm7679_vm9, %vm7788_vm6  ;;  %v1674_v24 = vshll.u32 %v1660_v44, 16  ;;  %v1608_v62 = vld [vmem:[%s5687_s17 + $0x6c] sm:$0xf]  ;;  %v417_v60 = vld [vmem:[#allocation2 + $0x8] sm:$0x8]  ;;  %1593 = vrot.lane.b32.xlu0 %v6331_v42, %s5586_s20  ;;  %v1664_v10 = vrot.slane %v1662_v3, 6  ;;  %v751_v42 = vpop.permute.xlu0 %750 }
  0xb6   : > { %v7790_v46 = vsel %vm6726_vm8, 4294967295, %v7789_v46  ;;  %v1667_v54 = vrot.slane %v1665_v56, 7  ;;  %v1612_v27 = vrot.slane %v1610_v29, 6  ;;  %v1615_v8 = vrot.slane %v1613_v11, 7  ;;  %v1711_v23 = vld [vmem:[%s5687_s17 + $0x70] sm:$0xf] }
  0xb7   : > { %v418_v34 = vsel %vm6718_vm0, %v6533_v55, %v417_v60  ;;  %v1673_v51 = vrot.slane %v1671_v32, 6  ;;  %v1676_v4 = vrot.slane %v1674_v24, 7  ;;  %v1619_v13 = vshrl.u32 %v1608_v62, 16  ;;  %v644_v16 = vld [vmem:[#allocation2 + $0x28] sm:$0xc] }
  0xb8   : > { %419 = vst [vmem:[#allocation2 + $0x8] sm:$0x8] %v418_v34  ;;  %v813_v30 = vsel %vm6726_vm8, %v806_v35, %v812_v59  ;;  %v6742_v52 = vor.u32 %v1667_v54, %v1664_v10  ;;  %v6744_v18 = vor.u32 %v1615_v8, %v1612_v27  ;;  %v1622_v2 = vshll.u32 %v1608_v62, 16  ;;  %v6747_v63 = vld [vmem:[%s5687_s17 + $0x74] sm:$0xf]  ;;  %v689_v54 = vpop.permute.xlu1 %688 }
  0xb9   : > { %814 = vst [vmem:[#allocation2 + $0x4c] sm:$0x3] %v813_v30  ;;  %v761_v55 = vsel %vm6726_vm8, %v751_v42, %v760_v58  ;;  %vm7791_vm6 = vsmask.f32 7946  ;;  %v697_v59 = vld [vmem:[#allocation2 + $0x2c] sm:$0xc]  ;;  %v1677_v3 = vor.u32 %v1676_v4, %v1673_v51  ;;  %v634_v51 = vpop.permute.xlu0 %633 }
  0xba   : > { %vm6753_vm12 = vmand %vm7678_vm15, %vm7791_vm6  ;;  %v7794_v12 = vrot.slane %v6313_v17, 7  ;;  %v1621_v56 = vrot.slane %v1619_v13, 6  ;;  %v1715_v29 = vrot.slane %v1711_v23, 7  ;;  %v1761_v11 = vld [vmem:[%s5687_s17 + $0x78] sm:$0xf]  ;;  %v7795_v58 = vrot.slane %v6320_v5, 7 }
  0xbb   : > { %v470_v32 = vld [vmem:[#allocation2 + $0xc] sm:$0x8]  ;;  %762 = vst [vmem:[#allocation2 + $0x48] sm:$0x3] %v761_v55  ;;  %v1669_v24 = vrot.slane %v6742_v52, 4  ;;  %v1617_v62 = vrot.slane %v6744_v18, 4  ;;  %v698_v35 = vsel %vm6753_vm12, %v689_v54, %v697_v59  ;;  %v645_v23 = vsel %vm6753_vm12, %v634_v51, %v644_v16 }
  0xbc   : > { %1697 = vrot.lane.b32.xlu1 %v7794_v12, %s5586_s20  ;;  %1645 = vrot.lane.b32.xlu0 %v7795_v58, %s5586_s20  ;;  %v1624_v60 = vrot.slane %v1622_v2, 7  ;;  %v1717_v10 = vrot.slane %v6747_v63, 7  ;;  %v471_v17 = vsel %vm6718_vm0, %v6531_v57, %v470_v32  ;;  %v1679_v27 = vrot.slane %v1677_v3, 4  ;;  %v6772_v34 = vld [vmem:[%s5687_s17 + $0x7c] sm:$0xf]  ;;  %v577_v59 = vpop.permute.xlu1 %576  ;;  %v1813_v58 = vld [vmem:[#allocation2 + $0x10] sm:$0xff] }
  0xbd   : > { %v1716_v8 = vrot.slane %v1715_v29, 4  ;;  %vm7796_vm6 = vcmask 519169   ;;  %v1765_v5 = vrot.slane %v1761_v11, 7  ;;  %472 = vst [vmem:[#allocation2 + $0xc] sm:$0x8] %v471_v17  ;;  %v1783_v4 = vrot.slane %v1781_v31, 7  ;;  %v522_v12 = vpop.permute.xlu0 %521 }
  0xbe   : > { %1723 = vst.msk [vmem:[#allocation2 + $0xd0] sm:$0xe] %vm7796_vm6, %v1715_v29  ;;  %v1678_v13 = vsel %vm5965_vm7, %v1669_v24, %v1677_v3  ;;  %v1625_v57 = vor.u32 %v1624_v60, %v1621_v56  ;;  %699 = vst [vmem:[#allocation2 + $0x2c] sm:$0xc] %v698_v35  ;;  %v6784_v30 = vrot.slane %v1789_v40, 7  ;;  %vm7797_vm6 = vcmask 519168  }
  0xbf   : > { %1686 = vst.msk [vmem:[#allocation2 + $0xcc] sm:$0xf] %vm7797_vm6, %v1678_v13  ;;  %vm7798_vm10 = vcmask 516096   ;;  %v1718_v31 = vsel %vm5944_vm3, %v1716_v8, %v1717_v10  ;;  %v1766_v42 = vrot.slane %v1765_v5, 4  ;;  %vm7799_vm15 = vcmask 519169  }
  0xc0   : > { %1699 = vrot.lane.b32.xlu1 %v6704_v9, %s5586_s20  ;;  %1687 = vst.msk [vmem:[#allocation2 + $0xd4] sm:$0x1] %vm7798_vm10, %v1679_v27  ;;  %646 = vst [vmem:[#allocation2 + $0x28] sm:$0xc] %v645_v23  ;;  %v7801_v16 = vmov 0  ;;  %1647 = vrot.lane.b32.xlu0 %v6711_v0, %s5586_s20  ;;  %v1744_v9 = vor.u32 %v1742_v39, %v6665_v1  ;;  %v1626_v40 = vsel %vm5965_vm7, %v1617_v62, %v1625_v57  ;;  %v1627_v2 = vrot.slane %v1625_v57, 4  ;;  %v638_v29 = vpop.permute.xlu1 %637 }
  0xc1   : > { %1773 = vst.msk [vmem:[#allocation2 + $0xd4] sm:$0xe] %vm7799_vm15, %v1765_v5  ;;  %vm7800_vm9 = vmmov %vm7799_vm15  ;;  %v1767_v55 = vrot.slane %v6772_v34, 7  ;;  %vm7805_vm15 = vcmask 1043968   ;;  %v901_v3 = vld [vmem:[#allocation2 + $0x4c] sm:$0xe] }
  0xc2   : > { %vm6795_vm11 = vmand %vm7800_vm9, %vm840_vm1  ;;  %584 = vst.msk [vmem:[#allocation2 + $0x24] sm:$0xf] %vm7805_vm15, %v577_v59  ;;  %v1787_v0 = vrot.slane %v1783_v4, 4  ;;  %v1784_v56 = vshll.u32 %v6649_v53, 16  ;;  %v842_v39 = vld [vmem:[#allocation2 + $0x48] sm:$0xe]  ;;  %v1745_v6 = vsel %vm6210_vm13, %v1737_v15, %v1744_v9 }
  0xc3   : > { %v7802_v16 = vsel %vm6795_vm11, 4294967295, %v7801_v16  ;;  %vm7803_vm10 = vmmov %vm7797_vm6  ;;  %v1768_v21 = vsel %vm5944_vm3, %v1766_v42, %v1767_v55  ;;  %v902_v20 = vsel %vm6795_vm11, %v6367_v7, %v901_v3  ;;  %v843_v53 = vsel %vm6795_vm11, %v6339_v19, %v842_v39  ;;  %v5394_v11 = vld [vmem:[#allocation2] ss:$8 sps:$4 sm:$0xff]   ;;  %v5397_v19 = vld [vmem:[#allocation2 + $0x14] ss:$8 sps:$4 sm:$0xff]  }
  0xc4   : > { %1724 = vst.msk [vmem:[#allocation2 + $0xd8] sm:$0xf] %vm7803_vm10, %v1718_v31  ;;  %vm7804_vm9 = vmmov %vm7797_vm6  ;;  %vm7806_vm6 = vcmask 516096   ;;  %1701 = vrot.lane.b32.xlu1 %v6388_v22, %s5586_s20  ;;  %1649 = vrot.lane.b32.xlu0 %v6439_v49, %s5586_s20  ;;  %v1736_v7 = vor.u32 %v1734_v33, %v6640_v37  ;;  %v1794_v22 = vor.u32 %v1792_v47, %v6784_v30  ;;  %v5396_v32 = vld [vmem:[#allocation2 + $0x4] ss:$8 sps:$4 sm:$0xff]   ;;  %vm875_vm3 = vcmask 1040896   ;;  %v636_v49 = vpop.permute.xlu0 %635  ;;  %v693_v33 = vpop.permute.xlu1 %692 }
  0xc5   : > { %1634 = vst.msk [vmem:[#allocation2 + $0xc8] sm:$0xf] %vm7804_vm9, %v1626_v40  ;;  %vm7807_vm7 = vmmov %vm7805_vm15  ;;  %2154 = vmatprep.mubr.bf16.mxu0 %v5396_v32  ;;  %v1786_v37 = vor.u32 %v1784_v56, %v1783_v4  ;;  %v1814_v47 = vld [vmem:[#allocation2 + $0x18] sm:$0xff]  ;;  %vm7816_vm11 = vcmask 1043969   ;;  %v1035_v62 = vld [vmem:[#allocation2 + $0x6c] sm:$0x1] }
  0xc6   : > { %1635 = vst.msk [vmem:[#allocation2 + $0xd0] sm:$0x1] %vm7806_vm6, %v1627_v2  ;;  %vm7808_vm10 = vmmov %vm7804_vm9  ;;  %vm7809_vm9 = vcmask 1041920   ;;  %2155 = vmatmul.mubr.bf16.vlgmr.msra.gmra.mxu0 %v5394_v11  ;;  %v1795_v38 = vsel %vm6210_vm13, %v1787_v0, %v1794_v22  ;;  %vm7815_vm6 = vcmask 1043968   ;;  %vm7819_vm13 = vcmask 1043970   ;;  %v7826_v56 = vld [vmem:[#allocation16_spill] sm:$0xff] }
  0xc7   : > { %530 = vst.msk [vmem:[#allocation2 + $0x20] sm:$0xf] %vm7807_vm7, %v522_v12  ;;  %903 = vst [vmem:[#allocation2 + $0x4c] sm:$0xe] %v902_v20  ;;  %2162 = vmatprep.mubr.bf16.mxu0 %v5397_v19  ;;  %v4730_v54 = vcombine.low %v1813_v58, %v1814_v47  ;;  %v985_v27 = vld [vmem:[#allocation2 + $0x68] sm:$0x1] }
  0xc8   : > { %1774 = vst.msk [vmem:[#allocation2 + $0xdc] sm:$0xf] %vm7808_vm10, %v1768_v21  ;;  %844 = vst [vmem:[#allocation2 + $0x48] sm:$0xe] %v843_v53  ;;  %1749 = vrot.lane.b32.xlu1 %v1745_v6, %s5586_s20  ;;  %1747 = vrot.lane.b32.xlu0 %v1736_v7, %s5586_s20  ;;  %v691_v15 = vpop.permute.xlu0 %690  ;;  %vm7812_vm10 = vsmask.f32 256  ;;  %v802_v24 = vpop.permute.xlu1 %801 }
  0xc9   : > { %649 = vst.msk [vmem:[#allocation2 + $0x38] sm:$0x3] %vm7809_vm9, %v638_v29  ;;  %vm7810_vm15 = vmmov %vm7807_vm7  ;;  %v5399_v60 = vld [vmem:[#allocation2 + $0x24] ss:$8 sps:$4 sm:$0xff]   ;;  %v7827_v39 = vld [vmem:[#allocation15_spill] sm:$0xff] }
  0xca   : > { %647 = vst.msk [vmem:[#allocation2 + $0x30] sm:$0xf] %vm7810_vm15, %v636_v49  ;;  %vm7811_vm7 = vmmov %vm7809_vm9  ;;  %vm1058_vm15 = vsmask.f32 7938 }
  0xcb   : > { %701 = vst.msk [vmem:[#allocation2 + $0x3c] sm:$0x3] %vm7811_vm7, %v693_v33  ;;  %vm6847_vm9 = vmand %vm875_vm3, %vm7812_vm10  ;;  %vm7824_vm7 = vcmask 1043968   ;;  %v1188_v33 = vld [vmem:[#allocation2 + $0x84] sm:$0xf] }
  0xcc   : > { %700 = vst.msk [vmem:[#allocation2 + $0x34] sm:$0xf] %vm7815_vm6, %v691_v15  ;;  %vm6854_vm8 = vmand %vm7816_vm11, %vm840_vm1  ;;  %1799 = vrot.lane.b32.xlu1 %v1795_v38, %s5586_s20  ;;  %1797 = vrot.lane.b32.xlu0 %v1786_v37, %s5586_s20  ;;  %v747_v17 = vpop.permute.xlu0 %746  ;;  %vm7821_vm11 = vcmask 519168   ;;  %v1029_v5 = vpop.permute.xlu1 %1028  ;;  %v1151_v15 = vld [vmem:[#allocation2 + $0x80] sm:$0xf] }
  0xcd   : > { %810 = vst.msk [vmem:[#allocation2 + $0x3c] sm:$0xc] %vm7819_vm13, %v802_v24  ;;  %vm7820_vm6 = vmmov %vm7819_vm13  ;;  %v1036_v51 = vsel %vm6847_vm9, %v1029_v5, %v1035_v62 }
  0xce   : > { %756 = vst.msk [vmem:[#allocation2 + $0x38] sm:$0xc] %vm7820_vm6, %v747_v17  ;;  %2163 = vmatmul.mubr.bf16.gmra.mxu0 %v4730_v54  ;;  %vm6864_vm1 = vmand %vm7821_vm11, %vm1058_vm15  ;;  %v924_v35 = vld [vmem:[#allocation2 + $0x4c] sm:$0xe]  ;;  %v5401_v9 = vld [vmem:[#allocation2 + $0x20] ss:$8 sps:$4 sm:$0xff]  }
  0xcf   : > { %2170 = vmatprep.mubr.bf16.mxu0 %v5399_v60  ;;  %v871_v13 = vld [vmem:[#allocation2 + $0x48] sm:$0xe]  ;;  %1037 = vst [vmem:[#allocation2 + $0x6c] sm:$0x1] %v1036_v51  ;;  %vm7825_vm10 = vmmov %vm7824_vm7  ;;  %vm7830_vm11 = vcmask 1043969  }
  0xd0   : > { %v976_v4 = vpop.permute.xlu0 %975  ;;  %v916_v23 = vpop.permute.xlu1 %915  ;;  %vm7828_vm13 = vmmov %vm7824_vm7 }
  0xd1   : > { %v986_v57 = vsel %vm6847_vm9, %v976_v4, %v985_v27  ;;  %v925_v31 = vsel %vm6854_vm8, %v916_v23, %v924_v35  ;;  %vm7829_vm6 = vmmov %vm7824_vm7 }
  0xd2   : > { %987 = vst [vmem:[#allocation2 + $0x68] sm:$0x1] %v986_v57  ;;  %926 = vst [vmem:[#allocation2 + $0x4c] sm:$0xe] %v925_v31 }
  0xd4   : > { %v861_v42 = vpop.permute.xlu0 %860  ;;  %v5402_v40 = vld [vmem:[#allocation2 + $0x34] ss:$8 sps:$4 sm:$0xff]   ;;  %v804_v59 = vpop.permute.xlu1 %803 }
  0xd5   : > { %v872_v2 = vsel %vm6854_vm8, %v861_v42, %v871_v13  ;;  %811 = vst.msk [vmem:[#allocation2 + $0x44] sm:$0xf] %vm7824_vm7, %v804_v59  ;;  %v5404_v3 = vld [vmem:[#allocation2 + $0x30] ss:$8 sps:$4 sm:$0xff]   ;;  %vm7832_vm7 = vmmov %vm7829_vm6 }
  0xd6   : > { %873 = vst [vmem:[#allocation2 + $0x48] sm:$0xe] %v872_v2  ;;  %2171 = vmatmul.mubr.bf16.gmra.mxu0 %v5401_v9  ;;  %v1099_v0 = vld [vmem:[#allocation2 + $0x6c] sm:$0xf] }
  0xd7   : > { %2178 = vmatprep.mubr.bf16.mxu0 %v5402_v40  ;;  %v1100_v21 = vsel %vm6864_vm1, %v7826_v56, %v1099_v0 }
  0xd8   : > { %v749_v12 = vpop.permute.xlu0 %748  ;;  %1101 = vst [vmem:[#allocation2 + $0x6c] sm:$0xf] %v1100_v21  ;;  %v865_v6 = vpop.permute.xlu1 %864 }
  0xd9   : > { %757 = vst.msk [vmem:[#allocation2 + $0x40] sm:$0xf] %vm7825_vm10, %v749_v12  ;;  %v1060_v20 = vld [vmem:[#allocation2 + $0x68] sm:$0xf]  ;;  %vm1074_vm10 = vmand %vm7832_vm7, %vm1058_vm15  ;;  %v1396_v12 = vld [vmem:[#allocation2 + $0xa4] sm:$0x7] }
  0xda   : > { %v1061_v53 = vsel %vm6864_vm1, %v7827_v39, %v1060_v20  ;;  %876 = vst.msk [vmem:[#allocation2 + $0x58] sm:$0x1] %vm875_vm3, %v865_v6  ;;  %vm7831_vm1 = vmmov %vm7830_vm11 }
  0xdb   : > { %1062 = vst [vmem:[#allocation2 + $0x68] sm:$0xf] %v1061_v53 }
  0xdc   : > { %v863_v7 = vpop.permute.xlu0 %862  ;;  %v920_v22 = vpop.permute.xlu1 %919  ;;  %v5405_v11 = vld [vmem:[#allocation2 + $0x44] ss:$8 sps:$4 sm:$0xff]  }
  0xdd   : > { %874 = vst.msk [vmem:[#allocation2 + $0x50] sm:$0xf] %vm7828_vm13, %v863_v7  ;;  %v1820_v19 = vld [vmem:[#allocation2 + $0x48] sm:$0xff]  ;;  %vm7833_vm13 = vmmov %vm7829_vm6 }
  0xde   : > { %2179 = vmatmul.mubr.bf16.gmra.mxu0 %v5404_v3  ;;  %928 = vst.msk [vmem:[#allocation2 + $0x5c] sm:$0x1] %vm875_vm3, %v920_v22  ;;  %v1344_v3 = vld [vmem:[#allocation2 + $0xa0] sm:$0x7] }
  0xdf   : > { %2186 = vmatprep.mubr.bf16.mxu0 %v5405_v11  ;;  %v1113_v60 = vld [vmem:[#allocation2 + $0x6c] sm:$0xf] }
  0xe0   : > { %v918_v29 = vpop.permute.xlu0 %917  ;;  %v1819_v32 = vld [vmem:[#allocation2 + $0x40] sm:$0xff]  ;;  %v1025_v49 = vpop.permute.xlu1 %1024 }
  0xe1   : > { %927 = vst.msk [vmem:[#allocation2 + $0x54] sm:$0xf] %vm7829_vm6, %v918_v29  ;;  %v4736_v37 = vcombine.low %v1819_v32, %v1820_v19 }
  0xe2   : > { %1033 = vst.msk [vmem:[#allocation2 + $0x5c] sm:$0xe] %vm7830_vm11, %v1025_v49  ;;  %v1075_v17 = vld [vmem:[#allocation2 + $0x68] sm:$0xf] }
  0xe4   : > { %v972_v38 = vpop.permute.xlu0 %971  ;;  %v1184_v47 = vpop.permute.xlu1 %1183 }
  0xe5   : > { %981 = vst.msk [vmem:[#allocation2 + $0x58] sm:$0xe] %vm7831_vm1, %v972_v38  ;;  %v1189_v58 = vsel %vm6581_vm4, %v1184_v47, %v1188_v33 }
  0xe6   : > { %2187 = vmatmul.mubr.bf16.gmra.mxu0 %v4736_v37  ;;  %1190 = vst [vmem:[#allocation2 + $0x84] sm:$0xf] %v1189_v58 }
  0xe8   : > { %v1147_v24 = vpop.permute.xlu0 %1146  ;;  %v1108_v54 = vpop.permute.xlu1 %1107 }
  0xe9   : > { %v1152_v62 = vsel %vm6581_vm4, %v1147_v24, %v1151_v15  ;;  %v1114_v27 = vsel %vm1074_vm10, %v1108_v54, %v1113_v60  ;;  %v5407_v5 = vld [vmem:[#allocation2 + $0x54] ss:$8 sps:$4 sm:$0xff]   ;;  %vm7834_vm4 = vmmov %vm7829_vm6 }
  0xea   : > { %1153 = vst [vmem:[#allocation2 + $0x80] sm:$0xf] %v1152_v62  ;;  %1115 = vst [vmem:[#allocation2 + $0x6c] sm:$0xf] %v1114_v27  ;;  %2194 = vmatprep.mubr.bf16.mxu0 %v5407_v5 }
  0xeb   : > { %vm7835_vm15 = vmmov %vm7834_vm4 }
  0xec   : > { %v1069_v8 = vpop.permute.xlu0 %1068  ;;  %v5409_v35 = vld [vmem:[#allocation2 + $0x50] ss:$8 sps:$4 sm:$0xff]   ;;  %v1027_v4 = vpop.permute.xlu1 %1026  ;;  %vm7836_vm6 = vmmov %vm7834_vm4 }
  0xed   : > { %v1076_v51 = vsel %vm1074_vm10, %v1069_v8, %v1075_v17  ;;  %v1267_v13 = vld [vmem:[#allocation2 + $0x84] sm:$0x8]  ;;  %1034 = vst.msk [vmem:[#allocation2 + $0x64] sm:$0xf] %vm7833_vm13, %v1027_v4  ;;  %vm7837_vm11 = vmmov %vm7834_vm4  ;;  %vm7844_vm13 = vcmask 1043971  }
  0xee   : > { %1077 = vst [vmem:[#allocation2 + $0x68] sm:$0xf] %v1076_v51  ;;  %2195 = vmatmul.mubr.bf16.gmra.mxu0 %v5409_v35  ;;  %v1268_v57 = vsel %vm6612_vm2, %v6467_v45, %v1267_v13  ;;  %vm7838_vm1 = vmmov %vm7834_vm4  ;;  %v1604_v13 = vld [vmem:[#allocation2 + $0xc4] sm:$0x3] }
  0xef   : > { %1269 = vst [vmem:[#allocation2 + $0x84] sm:$0x8] %v1268_v57  ;;  %vm7843_vm10 = vmmov %vm7838_vm1 }
  0xf0   : > { %v974_v43 = vpop.permute.xlu0 %973  ;;  %v1110_v42 = vpop.permute.xlu1 %1109 }
  0xf1   : > { %v1215_v23 = vld [vmem:[#allocation2 + $0x80] sm:$0x8]  ;;  %982 = vst.msk [vmem:[#allocation2 + $0x60] sm:$0xf] %vm7834_vm4, %v974_v43  ;;  %vm7845_vm4 = vmmov %vm7838_vm1  ;;  %v1552_v43 = vld [vmem:[#allocation2 + $0xc0] sm:$0x3] }
  0xf2   : > { %v1216_v31 = vsel %vm6612_vm2, %v6504_v25, %v1215_v23  ;;  %1116 = vst.msk [vmem:[#allocation2 + $0x74] sm:$0xf] %vm7835_vm15, %v1110_v42  ;;  %vm7840_vm2 = vmmov %vm7838_vm1 }
  0xf3   : > { %1217 = vst [vmem:[#allocation2 + $0x80] sm:$0x8] %v1216_v31  ;;  %vm7847_vm15 = vmmov %vm7838_vm1 }
  0xf4   : > { %v1071_v9 = vpop.permute.xlu0 %1070  ;;  %v1182_v40 = vpop.permute.xlu1 %1181  ;;  %v5410_v45 = vld [vmem:[#allocation2 + $0x64] ss:$8 sps:$4 sm:$0xff]  }
  0xf5   : > { %1078 = vst.msk [vmem:[#allocation2 + $0x70] sm:$0xf] %vm7836_vm6, %v1071_v9  ;;  %2202 = vmatprep.mubr.bf16.mxu0 %v5410_v45  ;;  %vm7848_vm6 = vmmov %vm7838_vm1 }
  0xf6   : > { %1187 = vst.msk [vmem:[#allocation2 + $0x7c] sm:$0xf] %vm7837_vm11, %v1182_v40  ;;  %v1290_v21 = vld [vmem:[#allocation2 + $0x84] sm:$0x8]  ;;  %vm7849_vm11 = vnez %v7790_v46 }
  0xf8   : > { %v1145_v2 = vpop.permute.xlu0 %1144  ;;  %v5412_v59 = vld [vmem:[#allocation2 + $0x60] ss:$8 sps:$4 sm:$0xff]   ;;  %v1390_v28 = vpop.permute.xlu1 %1389 }
  0xf9   : > { %1150 = vst.msk [vmem:[#allocation2 + $0x78] sm:$0xf] %vm7838_vm1, %v1145_v2  ;;  %2203 = vmatmul.mubr.bf16.gmra.mxu0 %v5412_v59  ;;  %v1397_v25 = vsel %vm6569_vm5, %v1390_v28, %v1396_v12 }
  0xfa   : > { %1398 = vst [vmem:[#allocation2 + $0xa4] sm:$0x7] %v1397_v25  ;;  %v1238_v20 = vld [vmem:[#allocation2 + $0x80] sm:$0x8] }
  0xfc   : > { %v1338_v0 = vpop.permute.xlu0 %1337  ;;  %v1825_v39 = vld [vmem:[#allocation2 + $0x70] sm:$0xff]  ;;  %v1282_v53 = vpop.permute.xlu1 %1281 }
  0xfd   : > { %v1345_v56 = vsel %vm6569_vm5, %v1338_v0, %v1344_v3  ;;  %v1291_v6 = vsel %vm6718_vm0, %v1282_v53, %v1290_v21  ;;  %v5413_v29 = vld [vmem:[#allocation2 + $0x74] ss:$8 sps:$4 sm:$0xff]   ;;  %vm7839_vm5 = vmmov %vm7838_vm1 }
  0xfe   : > { %1346 = vst [vmem:[#allocation2 + $0xa0] sm:$0x7] %v1345_v56  ;;  %1292 = vst [vmem:[#allocation2 + $0x84] sm:$0x8] %v1291_v6  ;;  %2210 = vmatprep.mubr.bf16.mxu0 %v5413_v29 }
 0x100   : > { %v1230_v7 = vpop.permute.xlu0 %1229  ;;  %v1826_v22 = vld [vmem:[#allocation2 + $0x78] sm:$0xff]  ;;  %v1284_v14 = vpop.permute.xlu1 %1283 }
 0x101   : > { %v1239_v11 = vsel %vm6718_vm0, %v1230_v7, %v1238_v20  ;;  %v4742_v32 = vcombine.low %v1825_v39, %v1826_v22  ;;  %1293 = vst.msk [vmem:[#allocation2 + $0x8c] sm:$0xf] %vm7839_vm5, %v1284_v14  ;;  %v1475_v49 = vld [vmem:[#allocation2 + $0xa4] sm:$0xc]  ;;  %vm7841_vm0 = vcmask 1042944   ;;  %vm7852_vm5 = vmmov %vm7840_vm2 }
 0x102   : > { %1240 = vst [vmem:[#allocation2 + $0x80] sm:$0x8] %v1239_v11  ;;  %v1476_v38 = vsel %vm6634_vm14, %v6564_v41, %v1475_v49  ;;  %vm7842_vm7 = vmmov %vm7841_vm0 }
 0x103   : > { %2211 = vmatmul.mubr.bf16.gmra.mxu0 %v4742_v32  ;;  %1477 = vst [vmem:[#allocation2 + $0xa4] sm:$0xc] %v1476_v38 }
 0x104   : > { %v1232_v19 = vpop.permute.xlu0 %1231  ;;  %v1286_v33 = vpop.permute.xlu1 %1285 }
 0x105   : > { %1241 = vst.msk [vmem:[#allocation2 + $0x88] sm:$0xf] %vm7840_vm2, %v1232_v19  ;;  %v1423_v37 = vld [vmem:[#allocation2 + $0xa0] sm:$0xc]  ;;  %vm7853_vm2 = vcmask 1043970  }
 0x106   : > { %v1424_v26 = vsel %vm6634_vm14, %v6590_v61, %v1423_v37  ;;  %1294 = vst.msk [vmem:[#allocation2 + $0x94] sm:$0x7] %vm7841_vm0, %v1286_v33  ;;  %vm7846_vm14 = vmmov %vm7844_vm13  ;;  %vm7854_vm0 = vnez %v7802_v16  ;;  %v6967_v33 = vld [vmem:[%s7635_s4] ss:$0 sm:$0xff] }
 0x107   : > { %1425 = vst [vmem:[#allocation2 + $0xa0] sm:$0xc] %v1424_v26 }
 0x108   : > { %v1234_v15 = vpop.permute.xlu0 %1233  ;;  %v1336_v47 = vpop.permute.xlu1 %1335  ;;  %v5415_v24 = vld [vmem:[#allocation2 + $0x84] ss:$8 sps:$4 sm:$0xff]  }
 0x109   : > { %1242 = vst.msk [vmem:[#allocation2 + $0x90] sm:$0x7] %vm7842_vm7, %v1234_v15  ;;  %2218 = vmatprep.mubr.bf16.mxu0 %v5415_v24  ;;  %vm7855_vm7 = vmmov %vm7845_vm4 }
 0x10a   : > { %1343 = vst.msk [vmem:[#allocation2 + $0x98] sm:$0xf] %vm7843_vm10, %v1336_v47  ;;  %v1498_v50 = vld [vmem:[#allocation2 + $0xa4] sm:$0xc]  ;;  %vm7856_vm10 = vmmov %vm7853_vm2 }
 0x10c   : > { %v1334_v58 = vpop.permute.xlu0 %1333  ;;  %v5417_v62 = vld [vmem:[#allocation2 + $0x80] ss:$8 sps:$4 sm:$0xff]   ;;  %v1388_v41 = vpop.permute.xlu1 %1387 }
 0x10d   : > { %1342 = vst.msk [vmem:[#allocation2 + $0x90] sm:$0x8] %vm7844_vm13, %v1334_v58  ;;  %2219 = vmatmul.mubr.bf16.gmra.mxu0 %v5417_v62  ;;  %vm7857_vm13 = vmmov %vm7845_vm4 }
 0x10e   : > { %1395 = vst.msk [vmem:[#allocation2 + $0x9c] sm:$0xf] %vm7845_vm4, %v1388_v41  ;;  %v1446_v60 = vld [vmem:[#allocation2 + $0xa0] sm:$0xc] }
 0x110   : > { %v1386_v61 = vpop.permute.xlu0 %1385  ;;  %v1490_v17 = vpop.permute.xlu1 %1489 }
 0x111   : > { %1394 = vst.msk [vmem:[#allocation2 + $0x94] sm:$0x8] %vm7846_vm14, %v1386_v61  ;;  %v1499_v54 = vsel %vm6753_vm12, %v1490_v17, %v1498_v50  ;;  %vm7858_vm14 = vmmov %vm7845_vm4 }
 0x112   : > { %1500 = vst [vmem:[#allocation2 + $0xa4] sm:$0xc] %v1499_v54 }
 0x114   : > { %v1438_v27 = vpop.permute.xlu0 %1437  ;;  %v1492_v5 = vpop.permute.xlu1 %1491  ;;  %v5420_v51 = vld [vmem:[#allocation2 + $0x90] ss:$8 sps:$4 sm:$0xff]  }
 0x115   : > { %v1447_v8 = vsel %vm6753_vm12, %v1438_v27, %v1446_v60  ;;  %1501 = vst.msk [vmem:[#allocation2 + $0xac] sm:$0xf] %vm7847_vm15, %v1492_v5  ;;  %vm7850_vm12 = vcmask 1041920   ;;  %vm7860_vm15 = vmmov %vm7845_vm4 }
 0x116   : > { %1448 = vst [vmem:[#allocation2 + $0xa0] sm:$0xc] %v1447_v8  ;;  %vm7851_vm1 = vmmov %vm7850_vm12 }
 0x118   : > { %v5418_v35 = vld [vmem:[#allocation2 + $0x94] ss:$8 sps:$4 sm:$0xff]   ;;  %v1440_v4 = vpop.permute.xlu0 %1439 }
 0x119   : > { %1449 = vst.msk [vmem:[#allocation2 + $0xa8] sm:$0xf] %vm7848_vm6, %v1440_v4  ;;  %2226 = vmatprep.mubr.bf16.mxu0 %v5418_v35  ;;  %v1598_v57 = vpop.permute.xlu1 %1597 }
 0x11a   : > { %2227 = vmatmul.mubr.bf16.gmra.mxu0 %v5420_v51  ;;  %v1605_v23 = vsel %vm7849_vm11, %v1598_v57, %v1604_v13 }
 0x11b   : > { %1606 = vst [vmem:[#allocation2 + $0xc4] sm:$0x3] %v1605_v23 }
 0x11c   : > { %v1546_v31 = vpop.permute.xlu0 %1545  ;;  %v5421_v40 = vld [vmem:[#allocation2 + $0xa4] ss:$8 sps:$4 sm:$0xff]  }
 0x11d   : > { %v1553_v44 = vsel %vm7849_vm11, %v1546_v31, %v1552_v43  ;;  %v1494_v42 = vpop.permute.xlu1 %1493  ;;  %2234 = vmatprep.mubr.bf16.mxu0 %v5421_v40  ;;  %vm2335_vm11 = vcmask 256000  }
 0x11e   : > { %1554 = vst [vmem:[#allocation2 + $0xc0] sm:$0x3] %v1553_v44  ;;  %1502 = vst.msk [vmem:[#allocation2 + $0xb4] sm:$0x3] %vm7850_vm12, %v1494_v42  ;;  %vm2481_vm12 = vcmask 257027  }
 0x120   : > { %v1442_v9 = vpop.permute.xlu0 %1441  ;;  %v5423_v2 = vld [vmem:[#allocation2 + $0xa0] ss:$8 sps:$4 sm:$0xff]  }
 0x121   : > { %1450 = vst.msk [vmem:[#allocation2 + $0xb0] sm:$0x3] %vm7851_vm1, %v1442_v9  ;;  %v1544_v45 = vpop.permute.xlu1 %1543  ;;  %vm2483_vm1 = vcmask 254976  }
 0x122   : > { %2235 = vmatmul.mubr.bf16.gmra.mxu0 %v5423_v2  ;;  %1551 = vst.msk [vmem:[#allocation2 + $0xb8] sm:$0xf] %vm7852_vm5, %v1544_v45  ;;  %v1683_v12 = vld [vmem:[#allocation2 + $0xc4] sm:$0xe]  ;;  %vm2721_vm5 = vcmask 257026  }
 0x123   : > { %v1684_v46 = vsel %vm7854_vm0, %v6742_v52, %v1683_v12 }
 0x124   : > { %v1542_v59 = vpop.permute.xlu0 %1541  ;;  %1685 = vst [vmem:[#allocation2 + $0xc4] sm:$0xe] %v1684_v46 }
 0x125   : > { %1550 = vst.msk [vmem:[#allocation2 + $0xb0] sm:$0xc] %vm7853_vm2, %v1542_v59  ;;  %v1631_v3 = vld [vmem:[#allocation2 + $0xc0] sm:$0xe]  ;;  %v1596_v25 = vpop.permute.xlu1 %1595  ;;  %vm2723_vm2 = vcmask 253952  }
 0x126   : > { %v1632_v28 = vsel %vm7854_vm0, %v6744_v18, %v1631_v3  ;;  %1603 = vst.msk [vmem:[#allocation2 + $0xbc] sm:$0xf] %vm7855_vm7, %v1596_v25  ;;  %vm2959_vm0 = vcmask 257025   ;;  %vm2346_vm7 = vcmask 518400  }
 0x127   : > { %1633 = vst [vmem:[#allocation2 + $0xc0] sm:$0xe] %v1632_v28 }
 0x128   : > { %v1594_v0 = vpop.permute.xlu0 %1593 }
 0x129   : > { %1602 = vst.msk [vmem:[#allocation2 + $0xb4] sm:$0xc] %vm7856_vm10, %v1594_v0  ;;  %vm2357_vm10 = vcmask 780800  }
 0x12b   : > { %v1706_v20 = vld [vmem:[#allocation2 + $0xc4] sm:$0xe] }
 0x12c   : > { %v5426_v6 = vld [vmem:[#allocation2 + $0xb0] ss:$8 sps:$4 sm:$0xff]  }
 0x12e   : > { %v1698_v56 = vpop.permute.xlu1 %1697  ;;  %v1646_v21 = vpop.permute.xlu0 %1645  ;;  %v1654_v52 = vld [vmem:[#allocation2 + $0xc0] sm:$0xe] }
 0x12f   : > { %v1707_v39 = vsel %vm6854_vm8, %v1698_v56, %v1706_v20  ;;  %v1655_v53 = vsel %vm6854_vm8, %v1646_v21, %v1654_v52  ;;  %vm7859_vm8 = vcmask 1043969  }
 0x130   : > { %1708 = vst [vmem:[#allocation2 + $0xc4] sm:$0xe] %v1707_v39  ;;  %v5424_v18 = vld [vmem:[#allocation2 + $0xb4] ss:$8 sps:$4 sm:$0xff]   ;;  %1656 = vst [vmem:[#allocation2 + $0xc0] sm:$0xe] %v1655_v53 }
 0x131   : > { %2242 = vmatprep.mubr.bf16.mxu0 %v5424_v18  ;;  %vm7861_vm6 = vmmov %vm7859_vm8 }
 0x132   : > { %v1700_v16 = vpop.permute.xlu1 %1699  ;;  %v1648_v7 = vpop.permute.xlu0 %1647  ;;  %2243 = vmatmul.mubr.bf16.gmra.mxu0 %v5426_v6 }
 0x133   : > { %1709 = vst.msk [vmem:[#allocation2 + $0xcc] sm:$0xf] %vm7857_vm13, %v1700_v16  ;;  %vm2368_vm13 = vcmask 1043200  }
 0x134   : > { %1657 = vst.msk [vmem:[#allocation2 + $0xc8] sm:$0xf] %vm7845_vm4, %v1648_v7  ;;  %vm7687_vm4 = vcmask 517376  }
 0x136   : > { %v1702_v22 = vpop.permute.xlu1 %1701  ;;  %v1650_v29 = vpop.permute.xlu0 %1649 }
 0x137   : > { %1710 = vst.msk [vmem:[#allocation2 + $0xd4] sm:$0x1] %vm875_vm3, %v1702_v22  ;;  %1658 = vst.msk [vmem:[#allocation2 + $0xd0] sm:$0x1] %vm875_vm3, %v1650_v29  ;;  %vm2303_vm3 = vcmask 261120  }
 0x13a   : > { %v1750_v11 = vpop.permute.xlu1 %1749  ;;  %v1748_v48 = vpop.permute.xlu0 %1747  ;;  %v5427_v32 = vld [vmem:[#allocation2 + $0xc4] ss:$8 sps:$4 sm:$0xff]  }
 0x13b   : > { %1757 = vst.msk [vmem:[#allocation2 + $0xd8] sm:$0xf] %vm7858_vm14, %v1750_v11  ;;  %v5429_v14 = vld [vmem:[#allocation2 + $0xc0] ss:$8 sps:$4 sm:$0xff]   ;;  %2250 = vmatprep.mubr.bf16.mxu0 %v5427_v32  ;;  %vm7686_vm14 = vcmask 779776  }
 0x13c   : > { %1756 = vst.msk [vmem:[#allocation2 + $0xd0] sm:$0xe] %vm7859_vm8, %v1748_v48  ;;  %2251 = vmatmul.mubr.bf16.gmra.mxu0 %v5429_v14  ;;  %vm7688_vm8 = vcmask 1042176  }
 0x13e   : > { %v1800_v19 = vpop.permute.xlu1 %1799  ;;  %v1798_v49 = vpop.permute.xlu0 %1797 }
 0x13f   : > { %1807 = vst.msk [vmem:[#allocation2 + $0xdc] sm:$0xf] %vm7860_vm15, %v1800_v19  ;;  %vm2498_vm15 = vcmask 519427  }
 0x140   : > { %1806 = vst.msk [vmem:[#allocation2 + $0xd4] sm:$0xe] %vm7861_vm6, %v1798_v49  ;;  %vm2515_vm6 = vcmask 781827  }
 0x143   : > { %v5432_v37 = vld [vmem:[#allocation2 + $0xd0] ss:$8 sps:$4 sm:$0xff]  }
 0x147   : > { %v5430_v38 = vld [vmem:[#allocation2 + $0xd4] ss:$8 sps:$4 sm:$0xff]  }
 0x148   : > { %2258 = vmatprep.mubr.bf16.mxu0 %v5430_v38 }
 0x149   : > { %2259 = vmatmul.mubr.bf16.gmra.mxu0 %v5432_v37 }
 0x186   : > { %v5113_v26 = vpop.f32.mrf.mxu0 }
 0x188   : > { %v5114_v15 = vpop.f32.mrf.mxu0 }
 0x189   : > { %v5115_v47 = vadd.f32 %v5114_v15, %v5113_v26 }
 0x18a   : > { %v5116_v58 = vpop.f32.mrf.mxu0 }
 0x18b   : > { %v2157_v24 = vadd.f32 %v5115_v47, %v6967_v33 }
 0x18c   : > { %v5117_v62 = vpop.f32.mrf.mxu0 }
 0x18d   : > { %v2274_v41 = vmax.f32 %v2157_v24, 0.0  ;;  %v5118_v61 = vadd.f32 %v5117_v62, %v5116_v58 }
 0x18e   : > { %v5119_v50 = vpop.f32.mrf.mxu0 }
 0x18f   : > { %2304 = vst.msk [vmem:[#allocation3] sm:$0xff] %vm2303_vm3, %v2274_v41  ;;  %v2160_v60 = vadd.f32 %v5118_v61, %v6967_v33 }
 0x190   : > { %v5120_v17 = vpop.f32.mrf.mxu0 }
 0x191   : > { %v2275_v54 = vmax.f32 %v2160_v60, 0.0  ;;  %v5121_v27 = vadd.f32 %v5120_v17, %v5119_v50 }
 0x192   : > { %v5122_v8 = vpop.f32.mrf.mxu0 }
 0x193   : > { %2305 = vst.msk [vmem:[#allocation3 + $0x8] sm:$0xff] %vm2303_vm3, %v2275_v54  ;;  %v2165_v5 = vadd.f32 %v5121_v27, %v6967_v33 }
 0x194   : > { %v5123_v35 = vpop.f32.mrf.mxu0 }
 0x195   : > { %v2276_v51 = vmax.f32 %v2165_v5, 0.0  ;;  %v5124_v4 = vadd.f32 %v5123_v35, %v5122_v8 }
 0x196   : > { %v5125_v13 = vpop.f32.mrf.mxu0 }
 0x197   : > { %2306 = vst.msk [vmem:[#allocation3 + $0x10] sm:$0xff] %vm2303_vm3, %v2276_v51  ;;  %v2168_v43 = vadd.f32 %v5124_v4, %v6967_v33 }
 0x198   : > { %v5126_v57 = vpop.f32.mrf.mxu0 }
 0x199   : > { %v2277_v23 = vmax.f32 %v2168_v43, 0.0  ;;  %v5127_v31 = vadd.f32 %v5126_v57, %v5125_v13 }
 0x19a   : > { %v5128_v44 = vpop.f32.mrf.mxu0  ;;  %v2338_v42 = vld [vmem:[#allocation3 + $0x1] ss:$2 sm:$0x3f]  ;;  %v2333_v2 = vld [vmem:[#allocation3] ss:$2 sm:$0x3f] }
 0x19b   : > { %2307 = vst.msk [vmem:[#allocation3 + $0x18] sm:$0xff] %vm2303_vm3, %v2277_v23  ;;  %v2173_v9 = vadd.f32 %v5127_v31, %v6967_v33  ;;  %v4982_v40 = vpack.c.bf16 %v2338_v42, %v2338_v42  ;;  %v2349_v59 = vld [vmem:[#allocation3 + $0x2] ss:$2 sm:$0x3f]  ;;  %v2334_v12 = vpack.c.bf16 %v2333_v2, %v2333_v2 }
 0x19c   : > { %v5129_v45 = vpop.f32.mrf.mxu0  ;;  %v4983_v0 = vpack.c.bf16 %v2349_v59, %v2349_v59  ;;  %v2360_v21 = vld [vmem:[#allocation3 + $0x3] ss:$2 sm:$0x3f] }
 0x19d   : > { %v2278_v46 = vmax.f32 %v2173_v9, 0.0  ;;  %v5130_v3 = vadd.f32 %v5129_v45, %v5128_v44  ;;  %2343 = vrot.lane.b32.xlu0 %v4982_v40, %s5587_s14  ;;  %2336 = vst.msk [vmem:[#allocation4] sm:$0x7] %vm2335_vm11, %v2334_v12  ;;  %v4984_v6 = vpack.c.bf16 %v2360_v21, %v2360_v21 }
 0x19e   : > { %v5131_v28 = vpop.f32.mrf.mxu0 }
 0x19f   : > { %2308 = vst.msk [vmem:[#allocation3 + $0x20] sm:$0xff] %vm2303_vm3, %v2278_v46  ;;  %v2176_v25 = vadd.f32 %v5130_v3, %v6967_v33 }
 0x1a0   : > { %v5132_v56 = vpop.f32.mrf.mxu0 }
 0x1a1   : > { %v2279_v20 = vmax.f32 %v2176_v25, 0.0  ;;  %v5133_v39 = vadd.f32 %v5132_v56, %v5131_v28  ;;  %2354 = vrot.lane.b32.xlu0 %v4983_v0, %s5586_s20 }
 0x1a2   : > { %v5134_v52 = vpop.f32.mrf.mxu0  ;;  %v2375_v53 = vld [vmem:[#allocation3 + $0x10] ss:$2 sm:$0x3f]  ;;  %v2371_v7 = vld [vmem:[#allocation3 + $0xf] ss:$2 sm:$0x3f] }
 0x1a3   : > { %2309 = vst.msk [vmem:[#allocation3 + $0x28] sm:$0xff] %vm2303_vm3, %v2279_v20  ;;  %v2181_v16 = vadd.f32 %v5133_v39, %v6967_v33  ;;  %v4985_v18 = vpack.c.bf16 %v2375_v53, %v2375_v53  ;;  %v2385_v29 = vld [vmem:[#allocation3 + $0x11] ss:$2 sm:$0x3f]  ;;  %v2372_v11 = vpack.c.bf16 %v2371_v7, %v2371_v7 }
 0x1a4   : > { %v5135_v22 = vpop.f32.mrf.mxu0  ;;  %v4986_v49 = vpack.c.bf16 %v2385_v29, %v2385_v29  ;;  %v2395_v37 = vld [vmem:[#allocation3 + $0x12] ss:$2 sm:$0x3f] }
 0x1a5   : > { %v2280_v48 = vmax.f32 %v2181_v16, 0.0  ;;  %v5136_v32 = vadd.f32 %v5135_v22, %v5134_v52  ;;  %2380 = vrot.lane.b32.xlu1 %v4985_v18, %s5587_s14  ;;  %2365 = vrot.lane.b32.xlu0 %v4984_v6, %s5588_s15  ;;  %2373 = vst.msk [vmem:[#allocation4 + $0x4] sm:$0x7] %vm2335_vm11, %v2372_v11  ;;  %v4987_v41 = vpack.c.bf16 %v2395_v37, %v2395_v37 }
 0x1a6   : > { %v5137_v14 = vpop.f32.mrf.mxu0 }
 0x1a7   : > { %2310 = vst.msk [vmem:[#allocation3 + $0x30] sm:$0xff] %vm2303_vm3, %v2280_v48  ;;  %v2184_v19 = vadd.f32 %v5136_v32, %v6967_v33 }
 0x1a8   : > { %v5138_v38 = vpop.f32.mrf.mxu0 }
 0x1a9   : > { %v2281_v26 = vmax.f32 %v2184_v19, 0.0  ;;  %v5139_v15 = vadd.f32 %v5138_v38, %v5137_v14  ;;  %2390 = vrot.lane.b32.xlu1 %v4986_v49, %s5586_s20 }
 0x1aa   : > { %v5140_v47 = vpop.f32.mrf.mxu0  ;;  %v2409_v58 = vld [vmem:[#allocation3 + $0x1f] ss:$2 sm:$0x3f]  ;;  %v2419_v60 = vld [vmem:[#allocation3 + $0x20] ss:$2 sm:$0x3f] }
 0x1ab   : > { %v2485_v24 = vld [vmem:[#allocation3 + $0x1f] ss:$2 sm:$0x3f]  ;;  %2311 = vst.msk [vmem:[#allocation3 + $0x38] sm:$0xff] %vm2303_vm3, %v2281_v26  ;;  %v2189_v62 = vadd.f32 %v5139_v15, %v6967_v33  ;;  %v4988_v61 = vpack.c.bf16 %v2409_v58, %v2409_v58  ;;  %v4989_v13 = vpack.c.bf16 %v2419_v60, %v2419_v60 }
 0x1ac   : > { %v4995_v50 = vpack.c.bf16 %v2485_v24, %v2485_v24  ;;  %v2502_v17 = vld [vmem:[#allocation3 + $0x20] ss:$2 sm:$0x3f]  ;;  %v5141_v54 = vpop.f32.mrf.mxu0  ;;  %v2519_v8 = vld [vmem:[#allocation3 + $0x21] ss:$2 sm:$0x3f] }
 0x1ad   : > { %v4996_v27 = vpack.c.bf16 %v2502_v17, %v2502_v17  ;;  %v2282_v5 = vmax.f32 %v2189_v62, 0.0  ;;  %v5142_v35 = vadd.f32 %v5141_v54, %v5140_v47  ;;  %2400 = vrot.lane.b32.xlu1 %v4987_v41, %s5588_s15  ;;  %2414 = vrot.lane.b32.xlu0 %v4988_v61, %s5587_s14  ;;  %v2405_v4 = vld [vmem:[#allocation3 + $0x1e] ss:$2 sm:$0x3f]  ;;  %v4997_v9 = vpack.c.bf16 %v2519_v8, %v2519_v8 }
 0x1ae   : > { %v2490_v51 = vrot.slane %v4995_v50, 5  ;;  %v2406_v57 = vpack.c.bf16 %v2405_v4, %v2405_v4  ;;  %v2472_v23 = vld [vmem:[#allocation3 + $0x1e] ss:$2 sm:$0x3f]  ;;  %v5143_v44 = vpop.f32.mrf.mxu0 }
 0x1af   : > { %v2507_v43 = vrot.slane %v4996_v27, 5  ;;  %2312 = vst.msk [vmem:[#allocation3 + $0x40] sm:$0xff] %vm2303_vm3, %v2282_v5  ;;  %v2192_v31 = vadd.f32 %v5142_v35, %v6967_v33  ;;  %v4994_v40 = vpack.c.bf16 %v2472_v23, %v2472_v23  ;;  %v2439_v2 = vld [vmem:[#allocation3 + $0x2d] ss:$2 sm:$0x3f]  ;;  %v2524_v39 = vrot.slane %v4997_v9, 5 }
 0x1b0   : > { %v2491_v42 = vrot.slane %v2490_v51, 4  ;;  %v2429_v45 = vld [vmem:[#allocation3 + $0x21] ss:$2 sm:$0x3f]  ;;  %2407 = vst.msk [vmem:[#allocation4 + $0x8] sm:$0x7] %vm2335_vm11, %v2406_v57  ;;  %v2440_v59 = vpack.c.bf16 %v2439_v2, %v2439_v2  ;;  %v5144_v3 = vpop.f32.mrf.mxu0 }
 0x1b1   : > { %v2536_v12 = vld [vmem:[#allocation3 + $0x2d] ss:$2 sm:$0x3f]  ;;  %v2283_v46 = vmax.f32 %v2192_v31, 0.0  ;;  %2424 = vrot.lane.b32.xlu0 %v4989_v13, %s5586_s20  ;;  %v2477_v28 = vrot.slane %v4994_v40, 5  ;;  %v5145_v25 = vadd.f32 %v5144_v3, %v5143_v44  ;;  %v2508_v21 = vrot.slane %v2507_v43, 4 }
 0x1b2   : > { %2494 = vrot.lane.b32.xlu1 %v2491_v42, %s5587_s14  ;;  %2441 = vst.msk [vmem:[#allocation4 + $0xc] sm:$0x7] %vm2335_vm11, %v2440_v59  ;;  %v4998_v0 = vpack.c.bf16 %v2536_v12, %v2536_v12  ;;  %v5146_v56 = vpop.f32.mrf.mxu0  ;;  %v4990_v20 = vpack.c.bf16 %v2429_v45, %v2429_v45  ;;  %v2525_v22 = vrot.slane %v2524_v39, 4  ;;  %v2443_v29 = vld [vmem:[#allocation3 + $0x2e] ss:$2 sm:$0x3f] }
 0x1b3   : > { %2313 = vst.msk [vmem:[#allocation3 + $0x48] sm:$0xff] %vm2303_vm3, %v2283_v46  ;;  %v2197_v52 = vadd.f32 %v5145_v25, %v6967_v33  ;;  %v2478_v16 = vrot.slane %v2477_v28, 4  ;;  %v4991_v37 = vpack.c.bf16 %v2443_v29, %v2443_v29  ;;  %v2453_v15 = vld [vmem:[#allocation3 + $0x2f] ss:$2 sm:$0x3f] }
 0x1b4   : > { %2482 = vst.msk [vmem:[#allocation4] sm:$0x8] %vm2481_vm12, %v2477_v28  ;;  %v5147_v53 = vpop.f32.mrf.mxu0  ;;  %v2541_v7 = vrot.slane %v4998_v0, 5  ;;  %v2547_v58 = vld [vmem:[#allocation3 + $0x2e] ss:$2 sm:$0x3f]  ;;  %v4992_v60 = vpack.c.bf16 %v2453_v15, %v2453_v15 }
 0x1b5   : > { %2434 = vrot.lane.b32.xlu0 %v4990_v20, %s5588_s15  ;;  %v2284_v18 = vmax.f32 %v2197_v52, 0.0  ;;  %v5148_v6 = vadd.f32 %v5147_v53, %v5146_v56  ;;  %2484 = vst.msk [vmem:[#allocation4 + $0x10] sm:$0x3] %vm2483_vm1, %v2478_v16  ;;  %v4999_v54 = vpack.c.bf16 %v2547_v58, %v2547_v58  ;;  %v2463_v8 = vld [vmem:[#allocation3 + $0x30] ss:$2 sm:$0x3f] }
 0x1b6   : > { %2511 = vrot.lane.b32.xlu1 %v2508_v21, %s5586_s20  ;;  %2545 = vst.msk [vmem:[#allocation4 + $0x4] sm:$0x8] %vm2481_vm12, %v2541_v7  ;;  %v2542_v48 = vrot.slane %v2541_v7, 4  ;;  %v2712_v32 = vld [vmem:[#allocation3 + $0x3c] ss:$2 sm:$0x3f]  ;;  %v4993_v13 = vpack.c.bf16 %v2463_v8, %v2463_v8 }
 0x1b7   : > { %2314 = vst.msk [vmem:[#allocation3 + $0x50] sm:$0xff] %vm2303_vm3, %v2284_v18  ;;  %v2200_v11 = vadd.f32 %v5148_v6, %v6967_v33  ;;  %v5010_v14 = vpack.c.bf16 %v2712_v32, %v2712_v32  ;;  %v2593_v19 = vld [vmem:[#allocation3 + $0x3c] ss:$2 sm:$0x3f] }
 0x1b8   : > { %2546 = vst.msk [vmem:[#allocation4 + $0x14] sm:$0x3] %vm2483_vm1, %v2542_v48  ;;  %v5002_v38 = vpack.c.bf16 %v2593_v19, %v2593_v19  ;;  %v2562_v5 = vld [vmem:[#allocation3 + $0x2f] ss:$2 sm:$0x3f] }
 0x1b9   : > { %2492 = vrot.lane.b32.xlu0 %v2490_v51, %s5587_s14  ;;  %v2285_v49 = vmax.f32 %v2200_v11, 0.0  ;;  %v5149_v26 = vpop.f32.mrf.mxu0  ;;  %v2717_v47 = vrot.slane %v5010_v14, 6  ;;  %v5000_v23 = vpack.c.bf16 %v2562_v5, %v2562_v5  ;;  %v2577_v31 = vld [vmem:[#allocation3 + $0x30] ss:$2 sm:$0x3f] }
 0x1ba   : > { %2528 = vrot.lane.b32.xlu1 %v2525_v22, %s5588_s15  ;;  %v2598_v24 = vrot.slane %v5002_v38, 5  ;;  %v5001_v45 = vpack.c.bf16 %v2577_v31, %v2577_v31  ;;  %v2725_v56 = vld [vmem:[#allocation3 + $0x3d] ss:$2 sm:$0x3f] }
 0x1bb   : > { %2315 = vst.msk [vmem:[#allocation3 + $0x58] sm:$0xff] %vm2303_vm3, %v2285_v49  ;;  %v5150_v62 = vpop.f32.mrf.mxu0  ;;  %v2718_v41 = vrot.slane %v2717_v47, 4  ;;  %v2567_v46 = vrot.slane %v5000_v23, 5  ;;  %v2605_v21 = vld [vmem:[#allocation3 + $0x3d] ss:$2 sm:$0x3f]  ;;  %v5011_v7 = vpack.c.bf16 %v2725_v56, %v2725_v56 }
 0x1bc   : > { %2722 = vst.msk [vmem:[#allocation4 + $0x10] sm:$0xc] %vm2721_vm5, %v2717_v47  ;;  %v5151_v61 = vadd.f32 %v5150_v62, %v5149_v26  ;;  %v2599_v50 = vrot.slane %v2598_v24, 4  ;;  %v2582_v6 = vrot.slane %v5001_v45, 5  ;;  %v5003_v22 = vpack.c.bf16 %v2605_v21, %v2605_v21  ;;  %v5435_v45 = vld [vmem:[%s7633_s2 + $0x70] sm:$0xff]  }
 0x1bd   : > { %2509 = vrot.lane.b32.xlu0 %v2507_v43, %s5586_s20  ;;  %2602 = vst.msk [vmem:[#allocation4 + $0x8] sm:$0x8] %vm2481_vm12, %v2598_v24  ;;  %v5152_v17 = vpop.f32.mrf.mxu0  ;;  %v2552_v43 = vrot.slane %v4999_v54, 5  ;;  %v2568_v18 = vrot.slane %v2567_v46, 4  ;;  %v2730_v14 = vrot.slane %v5011_v7, 6 }
 0x1be   : > { %2448 = vrot.lane.b32.xlu1 %v4991_v37, %s5587_s14  ;;  %2724 = vst.msk [vmem:[#allocation4 + $0x20] sm:$0x1] %vm2723_vm2, %v2718_v41  ;;  %v2205_v27 = vadd.f32 %v5151_v61, %v6967_v33  ;;  %v2776_v9 = vld [vmem:[#allocation3 + $0x4b] ss:$2 sm:$0x3f]  ;;  %v2583_v32 = vrot.slane %v2582_v6, 4 }
 0x1bf   : > { %2603 = vst.msk [vmem:[#allocation4 + $0x18] sm:$0x3] %vm2483_vm1, %v2599_v50  ;;  %v5153_v35 = vpop.f32.mrf.mxu0  ;;  %v2653_v59 = vld [vmem:[#allocation3 + $0x4b] ss:$2 sm:$0x3f]  ;;  %v2553_v12 = vrot.slane %v2552_v43, 4  ;;  %v5014_v28 = vpack.c.bf16 %v2776_v9, %v2776_v9 }
 0x1c0   : > { %v2286_v51 = vmax.f32 %v2205_v27, 0.0  ;;  %v5154_v4 = vadd.f32 %v5153_v35, %v5152_v17  ;;  %v5006_v25 = vpack.c.bf16 %v2653_v59, %v2653_v59  ;;  %v2621_v11 = vld [vmem:[#allocation3 + $0x3e] ss:$2 sm:$0x3f]  ;;  %v2610_v19 = vrot.slane %v5003_v22, 5 }
 0x1c1   : > { %2526 = vrot.lane.b32.xlu0 %v2524_v39, %s5588_s15  ;;  %v2781_v39 = vrot.slane %v5014_v28, 6  ;;  %v5004_v38 = vpack.c.bf16 %v2621_v11, %v2621_v11  ;;  %v2637_v37 = vld [vmem:[#allocation3 + $0x3f] ss:$2 sm:$0x3f]  ;;  %v2731_v23 = vrot.slane %v2730_v14, 4 }
 0x1c2   : > { %2458 = vrot.lane.b32.xlu1 %v4992_v60, %s5586_s20  ;;  %2316 = vst.msk [vmem:[#allocation3 + $0x60] sm:$0xff] %vm2303_vm3, %v2286_v51  ;;  %v2208_v44 = vadd.f32 %v5154_v4, %v6967_v33  ;;  %v2658_v52 = vrot.slane %v5006_v25, 5  ;;  %v2742_v62 = vld [vmem:[#allocation3 + $0x3e] ss:$2 sm:$0x3f]  ;;  %v2611_v41 = vrot.slane %v2610_v19, 4  ;;  %v5005_v60 = vpack.c.bf16 %v2637_v37, %v2637_v37 }
 0x1c3   : > { %v5155_v57 = vpop.f32.mrf.mxu0  ;;  %2785 = vst.msk [vmem:[#allocation4 + $0x14] sm:$0xc] %vm2721_vm5, %v2781_v39  ;;  %v2782_v26 = vrot.slane %v2781_v39, 4  ;;  %v7042_v61 = vrot.slane %v5004_v38, 5  ;;  %v5012_v51 = vpack.c.bf16 %v2742_v62, %v2742_v62  ;;  %v5438_v37 = vld [vmem:[%s7633_s2 + $0x28] sm:$0xff]  }
 0x1c4   : > { %v2287_v40 = vmax.f32 %v2208_v44, 0.0  ;;  %2662 = vst.msk [vmem:[#allocation4 + $0xc] sm:$0x8] %vm2481_vm12, %v2658_v52  ;;  %v2659_v15 = vrot.slane %v2658_v52, 4  ;;  %v7051_v31 = vrot.slane %v5005_v60, 5 }
 0x1c5   : > { %2554 = vrot.lane.b32.xlu0 %v2552_v43, %s5587_s14  ;;  %v5156_v42 = vpop.f32.mrf.mxu0  ;;  %2786 = vst.msk [vmem:[#allocation4 + $0x24] sm:$0x1] %vm2723_vm2, %v2782_v26  ;;  %v2759_v4 = vld [vmem:[#allocation3 + $0x3f] ss:$2 sm:$0x3f] }
 0x1c6   : > { %2468 = vrot.lane.b32.xlu1 %v4993_v13, %s5588_s15  ;;  %v5157_v2 = vadd.f32 %v5156_v42, %v5155_v57  ;;  %2317 = vst.msk [vmem:[#allocation3 + $0x68] sm:$0xff] %vm2303_vm3, %v2287_v40  ;;  %v5433_v13 = vld [vmem:[%s7633_s2 + $0x78] sm:$0xff]   ;;  %v2627_v57 = vrot.slane %v7042_v61, 4  ;;  %v5439_v26 = vld [vmem:[%s7633_s2 + $0x60] sm:$0xff]  }
 0x1c7   : > { %v5158_v3 = vpop.f32.mrf.mxu0  ;;  %2663 = vst.msk [vmem:[#allocation4 + $0x1c] sm:$0x3] %vm2483_vm1, %v2659_v15  ;;  %v2787_v9 = vld [vmem:[#allocation3 + $0x4c] ss:$2 sm:$0x3f]  ;;  %5203 = vmatprep.subr.bf16.mxu1 %v5433_v13 }
 0x1c8   : > { %v2213_v0 = vadd.f32 %v5157_v2, %v6967_v33  ;;  %v5434_v40 = vld [vmem:[%s7633_s2 + $0x38] sm:$0xff]   ;;  %v5015_v21 = vpack.c.bf16 %v2787_v9, %v2787_v9 }
 0x1c9   : > { %2569 = vrot.lane.b32.xlu0 %v2567_v46, %s5586_s20  ;;  %v5159_v20 = vpop.f32.mrf.mxu0  ;;  %v2952_v58 = vld [vmem:[#allocation3 + $0x5a] ss:$2 sm:$0x3f]  ;;  %v7063_v46 = vrot.slane %v5012_v51, 6  ;;  %5204 = vmatpush3.bf16.msra.mxu1 %v5434_v40  ;;  %v5443_v40 = vld [vmem:[%s7633_s2 + $0x50] sm:$0xff]  }
 0x1ca   : > { %2556 = vrot.lane.b32.xlu1 %v2553_v12, %s5587_s14  ;;  %v2288_v53 = vmax.f32 %v2213_v0, 0.0  ;;  %v5160_v16 = vadd.f32 %v5159_v20, %v5158_v3  ;;  %v2833_v17 = vld [vmem:[#allocation3 + $0x5a] ss:$2 sm:$0x3f]  ;;  %v5026_v27 = vpack.c.bf16 %v2952_v58, %v2952_v58  ;;  %v5013_v3 = vpack.c.bf16 %v2759_v4, %v2759_v4  ;;  %5205 = vmatprep.subr.bf16.mxu1 %v5435_v45 }
 0x1cb   : > { %v5018_v43 = vpack.c.bf16 %v2833_v17, %v2833_v17  ;;  %v2643_v0 = vrot.slane %v7051_v31, 4  ;;  %v2802_v52 = vld [vmem:[#allocation3 + $0x4d] ss:$2 sm:$0x3f]  ;;  %v5440_v17 = vld [vmem:[%s7633_s2 + $0x20] sm:$0xff]   ;;  %v2748_v45 = vrot.slane %v7063_v46, 4 }
 0x1cc   : > { %2318 = vst.msk [vmem:[#allocation3 + $0x70] sm:$0xff] %vm2303_vm3, %v2288_v53  ;;  %v2216_v29 = vadd.f32 %v5160_v16, %v6967_v33  ;;  %v2957_v2 = vrot.slane %v5026_v27, 7  ;;  %v5436_v53 = vld [vmem:[%s7633_s2 + $0x30] sm:$0xff]   ;;  %v7080_v11 = vrot.slane %v5013_v3, 6 }
 0x1cd   : > { %2584 = vrot.lane.b32.xlu0 %v2582_v6, %s5588_s15  ;;  %v5161_v49 = vpop.f32.mrf.mxu0  ;;  %v2838_v28 = vrot.slane %v5018_v43, 6  ;;  %v5437_v6 = vld [vmem:[%s7633_s2 + $0x68] sm:$0xff]   ;;  %5206 = vmatpush3.bf16.msra.mxu1 %v5436_v53 }
 0x1ce   : > { %2571 = vrot.lane.b32.xlu1 %v2568_v18, %s5586_s20  ;;  %v2289_v48 = vmax.f32 %v2216_v29, 0.0  ;;  %2960 = vst.msk [vmem:[#allocation4 + $0x20] sm:$0xe] %vm2959_vm0, %v2957_v2  ;;  %v2792_v29 = vrot.slane %v5015_v21, 6  ;;  %5207 = vmatprep.subr.bf16.mxu1 %v5437_v6  ;;  %v5446_v53 = vld [vmem:[%s7633_s2 + $0x8] sm:$0xff]  }
 0x1cf   : > { %v5162_v47 = vpop.f32.mrf.mxu0  ;;  %2842 = vst.msk [vmem:[#allocation4 + $0x18] sm:$0xc] %vm2721_vm5, %v2838_v28  ;;  %v2839_v16 = vrot.slane %v2838_v28, 4  ;;  %v5444_v28 = vld [vmem:[%s7633_s2 + $0x10] sm:$0xff]  }
 0x1d0   : > { %2319 = vst.msk [vmem:[#allocation3 + $0x78] sm:$0xff] %vm2303_vm3, %v2289_v48  ;;  %v5163_v24 = vadd.f32 %v5162_v47, %v5161_v49  ;;  %v5016_v48 = vpack.c.bf16 %v2802_v52, %v2802_v52  ;;  %v2793_v51 = vrot.slane %v2792_v29, 4  ;;  %v2817_v52 = vld [vmem:[#allocation3 + $0x4e] ss:$2 sm:$0x3f] }
 0x1d1   : > { %2732 = vrot.lane.b32.xlu0 %v2730_v14, %s5587_s14  ;;  %v5164_v50 = vpop.f32.mrf.mxu0  ;;  %2843 = vst.msk [vmem:[#allocation4 + $0x28] sm:$0x1] %vm2723_vm2, %v2839_v16  ;;  %5208 = vmatpush3.bf16.msra.mxu1 %v5438_v37 }
 0x1d2   : > { %2586 = vrot.lane.b32.xlu1 %v2583_v32, %s5588_s15  ;;  %v2221_v54 = vadd.f32 %v5163_v24, %v6967_v33  ;;  %v2807_v47 = vrot.slane %v5016_v48, 6  ;;  %5209 = vmatprep.subr.bf16.mxu1 %v5439_v26 }
 0x1d3   : > { %v5165_v8 = vpop.f32.mrf.mxu0  ;;  %v2994_v44 = vld [vmem:[#allocation3 + $0x69] ss:$2 sm:$0x3f] }
 0x1d4   : > { %v2290_v5 = vmax.f32 %v2221_v54, 0.0  ;;  %v5166_v35 = vadd.f32 %v5165_v8, %v5164_v50  ;;  %v5030_v59 = vpack.c.bf16 %v2994_v44, %v2994_v44  ;;  %v2893_v25 = vld [vmem:[#allocation3 + $0x69] ss:$2 sm:$0x3f]  ;;  %v2808_v2 = vrot.slane %v2807_v47, 4 }
 0x1d5   : > { %2612 = vrot.lane.b32.xlu0 %v2610_v19, %s5587_s14  ;;  %v5022_v39 = vpack.c.bf16 %v2893_v25, %v2893_v25  ;;  %v2665_v50 = vld [vmem:[#allocation3 + $0x4c] ss:$2 sm:$0x3f]  ;;  %5210 = vmatpush3.bf16.msra.mxu1 %v5440_v17 }
 0x1d6   : > { %2614 = vrot.lane.b32.xlu1 %v2611_v41, %s5587_s14  ;;  %2320 = vst.msk [vmem:[#allocation3 + $0x80] sm:$0xff] %vm2303_vm3, %v2290_v5  ;;  %v2224_v42 = vadd.f32 %v5166_v35, %v6967_v33  ;;  %v2999_v20 = vrot.slane %v5030_v59, 7  ;;  %v5441_v35 = vld [vmem:[%s7633_s2 + $0x58] sm:$0xff]   ;;  %v5007_v4 = vpack.c.bf16 %v2665_v50, %v2665_v50 }
 0x1d7   : > { %v2898_v7 = vrot.slane %v5022_v39, 6  ;;  %5211 = vmatprep.subr.bf16.mxu1 %v5441_v35 }
 0x1d8   : > { %v2291_v12 = vmax.f32 %v2224_v42, 0.0  ;;  %3001 = vst.msk [vmem:[#allocation4 + $0x24] sm:$0xe] %vm2959_vm0, %v2999_v20  ;;  %v2670_v59 = vrot.slane %v5007_v4, 5 }
 0x1d9   : > { %2734 = vrot.lane.b32.xlu0 %v2731_v23, %s5587_s14  ;;  %2902 = vst.msk [vmem:[#allocation4 + $0x1c] sm:$0xc] %vm2721_vm5, %v2898_v7  ;;  %v2899_v24 = vrot.slane %v2898_v7, 4  ;;  %v5442_v23 = vld [vmem:[%s7633_s2 + $0x18] sm:$0xff]   ;;  %vm2772_vm5 = vcmask 1044226  }
 0x1da   : > { %2630 = vrot.lane.b32.xlu1 %v2627_v57, %s5586_s20  ;;  %v5167_v56 = vpop.f32.mrf.mxu0  ;;  %2321 = vst.msk [vmem:[#allocation3 + $0x88] sm:$0xff] %vm2303_vm3, %v2291_v12  ;;  %v2681_v57 = vld [vmem:[#allocation3 + $0x4d] ss:$2 sm:$0x3f]  ;;  %5212 = vmatpush3.bf16.msra.mxu1 %v5442_v23 }
 0x1db   : > { %2903 = vst.msk [vmem:[#allocation4 + $0x2c] sm:$0x1] %vm2723_vm2, %v2899_v24  ;;  %v5008_v12 = vpack.c.bf16 %v2681_v57, %v2681_v57  ;;  %5213 = vmatprep.subr.bf16.mxu1 %v5443_v40  ;;  %vm2757_vm2 = vcmask 778752  }
 0x1dc   : > { %v5168_v18 = vpop.f32.mrf.mxu0 }
 0x1dd   : > { %2749 = vrot.lane.b32.xlu0 %v7063_v46, %s5586_s20  ;;  %v5169_v22 = vadd.f32 %v5168_v18, %v5167_v56  ;;  %v3116_v15 = vld [vmem:[#allocation3 + $0x78] ss:$2 sm:$0x3f]  ;;  %v2765_v56 = vrot.slane %v7080_v11, 4  ;;  %v2686_v21 = vrot.slane %v5008_v12, 5 }
 0x1de   : > { %2646 = vrot.lane.b32.xlu1 %v2643_v0, %s5588_s15  ;;  %v5170_v32 = vpop.f32.mrf.mxu0  ;;  %v3117_v62 = vpack.c.bf16 %v3116_v15, %v3116_v15  ;;  %v3033_v41 = vld [vmem:[#allocation3 + $0x78] ss:$2 sm:$0x3f]  ;;  %v2671_v0 = vrot.slane %v2670_v59, 4  ;;  %5214 = vmatpush3.bf16.msra.mxu1 %v5444_v28 }
 0x1df   : > { %v2229_v14 = vadd.f32 %v5169_v22, %v6967_v33  ;;  %v5034_v27 = vpack.c.bf16 %v3033_v41, %v3033_v41  ;;  %v5445_v46 = vld [vmem:[%s7633_s2 + $0x48] sm:$0xff]   ;;  %v5447_v18 = vld [vmem:[%s7633_s2 + $0x40] sm:$0xff]   ;;  %v2687_v7 = vrot.slane %v2686_v21, 4  ;;  %v5017_v22 = vpack.c.bf16 %v2817_v52, %v2817_v52 }
 0x1e0   : > { %v5171_v19 = vpop.f32.mrf.mxu0  ;;  %3118 = vst.msk [vmem:[#allocation4 + $0x30] sm:$0x7] %vm2335_vm11, %v3117_v62  ;;  %5215 = vmatprep.subr.bf16.mxu1 %v5445_v46  ;;  %v2983_v28 = vld [vmem:[#allocation3 + $0x5d] ss:$2 sm:$0x3f] }
 0x1e1   : > { %2766 = vrot.lane.b32.xlu0 %v7080_v11, %s5588_s15  ;;  %v2292_v49 = vmax.f32 %v2229_v14, 0.0  ;;  %v5172_v38 = vadd.f32 %v5171_v19, %v5170_v32  ;;  %v3038_v43 = vrot.slane %v5034_v27, 7  ;;  %v2697_v11 = vld [vmem:[#allocation3 + $0x4e] ss:$2 sm:$0x3f]  ;;  %v5029_v52 = vpack.c.bf16 %v2983_v28, %v2983_v28 }
 0x1e2   : > { %2794 = vrot.lane.b32.xlu1 %v2792_v29, %s5587_s14  ;;  %v5173_v58 = vpop.f32.mrf.mxu0  ;;  %5216 = vmatpush3.bf16.msra.mxu1 %v5446_v53  ;;  %v5448_v14 = vld [vmem:[%s7633_s2] sm:$0xff]   ;;  %v3022_v53 = vld [vmem:[#allocation3 + $0x6c] ss:$2 sm:$0x3f] }
 0x1e3   : > { %2322 = vst.msk [vmem:[#allocation3 + $0x90] sm:$0xff] %vm2303_vm3, %v2292_v49  ;;  %v2232_v60 = vadd.f32 %v5172_v38, %v6967_v33  ;;  %5217 = vmatprep.subr.bf16.mxu1 %v5447_v18  ;;  %v2822_v49 = vrot.slane %v5017_v22, 6  ;;  %v5009_v38 = vpack.c.bf16 %v2697_v11, %v2697_v11  ;;  %v2988_v22 = vrot.slane %v5029_v52, 7 }
 0x1e4   : > { %v5174_v54 = vpop.f32.mrf.mxu0  ;;  %3040 = vst.msk [vmem:[#allocation4 + $0x28] sm:$0xe] %vm2959_vm0, %v3038_v43  ;;  %v3002_v43 = vld [vmem:[#allocation3 + $0x6a] ss:$2 sm:$0x3f] }
 0x1e5   : > { %2628 = vrot.lane.b32.xlu0 %v7042_v61, %s5586_s20  ;;  %v2293_v8 = vmax.f32 %v2232_v60, 0.0  ;;  %v5175_v5 = vadd.f32 %v5174_v54, %v5173_v58 }
 0x1e6   : > { %2809 = vrot.lane.b32.xlu1 %v2807_v47, %s5586_s20  ;;  %v5176_v13 = vpop.f32.mrf.mxu0  ;;  %v2961_v47 = vld [vmem:[#allocation3 + $0x5b] ss:$2 sm:$0x3f]  ;;  %5218 = vmatpush3.bf16.msra.mxu1 %v5448_v14  ;;  %v2905_v14 = vld [vmem:[#allocation3 + $0x6a] ss:$2 sm:$0x3f] }
 0x1e7   : > { %2323 = vst.msk [vmem:[#allocation3 + $0x98] sm:$0xff] %vm2303_vm3, %v2293_v8  ;;  %v2237_v61 = vadd.f32 %v5175_v5, %v6967_v33  ;;  %v2823_v8 = vrot.slane %v2822_v49, 4  ;;  %v2702_v5 = vrot.slane %v5009_v38, 5  ;;  %v5027_v35 = vpack.c.bf16 %v2961_v47, %v2961_v47 }
 0x1e8   : > { %v5177_v44 = vpop.f32.mrf.mxu0  ;;  %v5023_v47 = vpack.c.bf16 %v2905_v14, %v2905_v14 }
 0x1e9   : > { %2644 = vrot.lane.b32.xlu0 %v7051_v31, %s5588_s15  ;;  %v2294_v42 = vmax.f32 %v2237_v61, 0.0  ;;  %v5178_v9 = vadd.f32 %v5177_v44, %v5176_v13 }
 0x1ea   : > { %2796 = vrot.lane.b32.xlu1 %v2793_v51, %s5587_s14  ;;  %v3146_v25 = vld [vmem:[#allocation3 + $0x87] ss:$2 sm:$0x3f]  ;;  %v2972_v51 = vld [vmem:[#allocation3 + $0x5c] ss:$2 sm:$0x3f] }
 0x1eb   : > { %2324 = vst.msk [vmem:[#allocation3 + $0xa0] sm:$0xff] %vm2303_vm3, %v2294_v42  ;;  %v2240_v3 = vadd.f32 %v5178_v9, %v6967_v33  ;;  %v3147_v20 = vpack.c.bf16 %v3146_v25, %v3146_v25  ;;  %v3075_v39 = vld [vmem:[#allocation3 + $0x87] ss:$2 sm:$0x3f]  ;;  %v5028_v12 = vpack.c.bf16 %v2972_v51, %v2972_v51 }
 0x1ec   : > { %v5038_v16 = vpack.c.bf16 %v3075_v39, %v3075_v39 }
 0x1ed   : > { %2751 = vrot.lane.b32.xlu0 %v2748_v45, %s5586_s20  ;;  %v2295_v31 = vmax.f32 %v2240_v3, 0.0  ;;  %3148 = vst.msk [vmem:[#allocation4 + $0x34] sm:$0x7] %vm2335_vm11, %v3147_v20  ;;  %v2966_v45 = vrot.slane %v5027_v35, 7  ;;  %v2977_v20 = vrot.slane %v5028_v12, 7 }
 0x1ee   : > { %2811 = vrot.lane.b32.xlu1 %v2808_v2, %s5586_s20  ;;  %v3080_v6 = vrot.slane %v5038_v16, 7  ;;  %v2703_v2 = vrot.slane %v2702_v5, 4  ;;  %v2845_v16 = vld [vmem:[#allocation3 + $0x5b] ss:$2 sm:$0x3f] }
 0x1ef   : > { %2325 = vst.msk [vmem:[#allocation3 + $0xa8] sm:$0xff] %vm2303_vm3, %v2295_v31  ;;  %v3012_v31 = vld [vmem:[#allocation3 + $0x6b] ss:$2 sm:$0x3f]  ;;  %v5019_v11 = vpack.c.bf16 %v2845_v16, %v2845_v16 }
 0x1f0   : > { %3082 = vst.msk [vmem:[#allocation4 + $0x2c] sm:$0xe] %vm2959_vm0, %v3080_v6  ;;  %v5032_v39 = vpack.c.bf16 %v3012_v31, %v3012_v31  ;;  %v3128_v16 = vld [vmem:[#allocation3 + $0x7a] ss:$2 sm:$0x3f]  ;;  %vm2774_vm0 = vcmask 1041152  }
 0x1f1   : > { %2768 = vrot.lane.b32.xlu0 %v2765_v56, %s5588_s15 }
 0x1f2   : > { %2674 = vrot.lane.b32.xlu1 %v2671_v0, %s5587_s14  ;;  %v5179_v29 = vpop.f32.mrf.mxu0  ;;  %v3177_v19 = vld [vmem:[#allocation3 + $0x96] ss:$2 sm:$0x3f] }
 0x1f3   : > { %v3178_v26 = vpack.c.bf16 %v3177_v19, %v3177_v19  ;;  %v3244_v62 = vld [vmem:[#allocation3 + $0x96] ss:$2 sm:$0x3f] }
 0x1f4   : > { %v5180_v48 = vpop.f32.mrf.mxu0  ;;  %v5054_v50 = vpack.c.bf16 %v3244_v62, %v3244_v62  ;;  %v2921_v62 = vld [vmem:[#allocation3 + $0x6b] ss:$2 sm:$0x3f] }
 0x1f5   : > { %2672 = vrot.lane.b32.xlu0 %v2670_v59, %s5587_s14  ;;  %v5181_v32 = vadd.f32 %v5180_v48, %v5179_v29  ;;  %3179 = vst.msk [vmem:[#allocation4 + $0x38] sm:$0x7] %vm2335_vm11, %v3178_v26  ;;  %v5031_v59 = vpack.c.bf16 %v3002_v43, %v3002_v43  ;;  %v5033_v29 = vpack.c.bf16 %v3022_v53, %v3022_v53  ;;  %v2861_v48 = vld [vmem:[#allocation3 + $0x5c] ss:$2 sm:$0x3f] }
 0x1f6   : > { %2690 = vrot.lane.b32.xlu1 %v2687_v7, %s5586_s20  ;;  %v5182_v37 = vpop.f32.mrf.mxu0  ;;  %v3211_v15 = vld [vmem:[#allocation3 + $0xa5] ss:$2 sm:$0x3f]  ;;  %v3249_v13 = vrot.slane %v5054_v50, 5  ;;  %v3017_v7 = vrot.slane %v5032_v39, 7  ;;  %v5024_v35 = vpack.c.bf16 %v2921_v62, %v2921_v62 }
 0x1f7   : > { %v2245_v58 = vadd.f32 %v5181_v32, %v6967_v33  ;;  %v3212_v24 = vpack.c.bf16 %v3211_v15, %v3211_v15  ;;  %v3300_v60 = vld [vmem:[#allocation3 + $0xa5] ss:$2 sm:$0x3f]  ;;  %v3027_v26 = vrot.slane %v5033_v29, 7  ;;  %v2850_v15 = vrot.slane %v5019_v11, 6 }
 0x1f8   : > { %v5183_v41 = vpop.f32.mrf.mxu0  ;;  %v5058_v27 = vpack.c.bf16 %v3300_v60, %v3300_v60  ;;  %3253 = vst.msk [vmem:[#allocation4 + $0x30] sm:$0x8] %vm2481_vm12, %v3249_v13  ;;  %v3250_v44 = vrot.slane %v3249_v13, 4  ;;  %v3149_v53 = vld [vmem:[#allocation3 + $0x88] ss:$2 sm:$0x3f] }
 0x1f9   : > { %2688 = vrot.lane.b32.xlu0 %v2686_v21, %s5586_s20  ;;  %v2296_v17 = vmax.f32 %v2245_v58, 0.0  ;;  %v5184_v54 = vadd.f32 %v5183_v41, %v5182_v37  ;;  %3213 = vst.msk [vmem:[#allocation4 + $0x3c] sm:$0x7] %vm2335_vm11, %v3212_v24  ;;  %v3007_v21 = vrot.slane %v5031_v59, 7  ;;  %v5020_v58 = vpack.c.bf16 %v2861_v48, %v2861_v48 }
 0x1fa   : > { %2824 = vrot.lane.b32.xlu1 %v2822_v49, %s5588_s15  ;;  %v3305_v61 = vrot.slane %v5058_v27, 5  ;;  %3254 = vst.msk [vmem:[#allocation4 + $0x40] sm:$0x3] %vm2483_vm1, %v3250_v44  ;;  %v2877_v41 = vld [vmem:[#allocation3 + $0x5d] ss:$2 sm:$0x3f] }
 0x1fb   : > { %2326 = vst.msk [vmem:[#allocation3 + $0xb0] sm:$0xff] %vm2303_vm3, %v2296_v17  ;;  %v2248_v57 = vadd.f32 %v5184_v54, %v6967_v33  ;;  %v5021_v51 = vpack.c.bf16 %v2877_v41, %v2877_v41  ;;  %v2851_v59 = vrot.slane %v2850_v15, 4  ;;  %v3137_v29 = vld [vmem:[#allocation3 + $0x7b] ss:$2 sm:$0x3f]  ;;  %vm2738_vm11 = vcmask 519426  }
 0x1fc   : > { %v5185_v4 = vpop.f32.mrf.mxu0  ;;  %3309 = vst.msk [vmem:[#allocation4 + $0x34] sm:$0x8] %vm2481_vm12, %v3305_v61  ;;  %v3306_v40 = vrot.slane %v3305_v61, 4  ;;  %v2926_v61 = vrot.slane %v5024_v35, 6 }
 0x1fd   : > { %2704 = vrot.lane.b32.xlu0 %v2702_v5, %s5588_s15  ;;  %v2297_v42 = vmax.f32 %v2248_v57, 0.0  ;;  %v2866_v5 = vrot.slane %v5020_v58, 6  ;;  %v3158_v11 = vld [vmem:[#allocation3 + $0x89] ss:$2 sm:$0x3f] }
 0x1fe   : > { %2826 = vrot.lane.b32.xlu1 %v2823_v8, %s5588_s15  ;;  %v5186_v23 = vpop.f32.mrf.mxu0  ;;  %3310 = vst.msk [vmem:[#allocation4 + $0x44] sm:$0x3] %vm2483_vm1, %v3306_v40  ;;  %v2910_v8 = vrot.slane %v5023_v47, 6  ;;  %v3042_v48 = vld [vmem:[#allocation3 + $0x79] ss:$2 sm:$0x3f] }
 0x1ff   : > { %v5187_v9 = vadd.f32 %v5186_v23, %v5185_v4  ;;  %2327 = vst.msk [vmem:[#allocation3 + $0xb8] sm:$0xff] %vm2303_vm3, %v2297_v42  ;;  %v2937_v4 = vld [vmem:[#allocation3 + $0x6c] ss:$2 sm:$0x3f]  ;;  %v2882_v23 = vrot.slane %v5021_v51, 6  ;;  %v2867_v31 = vrot.slane %v2866_v5, 4 }
 0x200   : > { %v5188_v3 = vpop.f32.mrf.mxu0  ;;  %v5025_v44 = vpack.c.bf16 %v2937_v4, %v2937_v4  ;;  %v3106_v4 = vld [vmem:[#allocation3 + $0x8a] ss:$2 sm:$0x3f] }
 0x201   : > { %v2253_v46 = vadd.f32 %v5187_v9, %v6967_v33  ;;  %2967 = vrot.lane.b32.xlu0 %v2966_v45, %s5587_s14 }
 0x202   : > { %2706 = vrot.lane.b32.xlu1 %v2703_v2, %s5588_s15  ;;  %v5189_v25 = vpop.f32.mrf.mxu0  ;;  %v2942_v45 = vrot.slane %v5025_v44, 6 }
 0x203   : > { %v2298_v0 = vmax.f32 %v2253_v46, 0.0  ;;  %v5190_v56 = vadd.f32 %v5189_v25, %v5188_v3  ;;  %v2911_v3 = vrot.slane %v2910_v8, 4  ;;  %v2927_v25 = vrot.slane %v2926_v61, 4 }
 0x204   : > { %v2943_v39 = vrot.slane %v2942_v45, 4 }
 0x205   : > { %2328 = vst.msk [vmem:[#allocation3 + $0xc0] sm:$0xff] %vm2303_vm3, %v2298_v0  ;;  %v2256_v18 = vadd.f32 %v5190_v56, %v6967_v33  ;;  %2978 = vrot.lane.b32.xlu0 %v2977_v20, %s5586_s20  ;;  %v2883_v0 = vrot.slane %v2882_v23, 4  ;;  %v3119_v56 = vld [vmem:[#allocation3 + $0x79] ss:$2 sm:$0x3f] }
 0x206   : > { %3008 = vrot.lane.b32.xlu1 %v3007_v21, %s5587_s14  ;;  %v3357_v19 = vld [vmem:[#allocation3 + $0xb4] ss:$2 sm:$0x3f]  ;;  %v5042_v52 = vpack.c.bf16 %v3119_v56, %v3119_v56  ;;  %v3311_v56 = vld [vmem:[#allocation3 + $0xa6] ss:$2 sm:$0x3f] }
 0x207   : > { %v2299_v6 = vmax.f32 %v2256_v18, 0.0  ;;  %v5062_v38 = vpack.c.bf16 %v3357_v19, %v3357_v19  ;;  %v5046_v19 = vpack.c.bf16 %v3158_v11, %v3158_v11 }
 0x209   : > { %v5191_v32 = vpop.f32.mrf.mxu0  ;;  %2329 = vst.msk [vmem:[#allocation3 + $0xc8] sm:$0xff] %vm2303_vm3, %v2299_v6  ;;  %2989 = vrot.lane.b32.xlu0 %v2988_v22, %s5588_s15  ;;  %v3362_v17 = vrot.slane %v5062_v38, 5  ;;  %v5043_v22 = vpack.c.bf16 %v3128_v16, %v3128_v16  ;;  %v5035_v38 = vpack.c.bf16 %v3042_v48, %v3042_v48  ;;  %v5059_v16 = vpack.c.bf16 %v3311_v56, %v3311_v56 }
 0x20a   : > { %3018 = vrot.lane.b32.xlu1 %v3017_v7, %s5586_s20  ;;  %v5045_v7 = vpack.c.bf16 %v3149_v53, %v3149_v53 }
 0x20b   : > { %v5192_v49 = vpop.f32.mrf.mxu0  ;;  %3366 = vst.msk [vmem:[#allocation4 + $0x38] sm:$0x8] %vm2481_vm12, %v3362_v17  ;;  %v3363_v43 = vrot.slane %v3362_v17, 4  ;;  %v3047_v62 = vrot.slane %v5035_v38, 7  ;;  %v3316_v11 = vrot.slane %v5059_v16, 5 }
 0x20c   : > { %v5193_v37 = vadd.f32 %v5192_v49, %v5191_v32  ;;  %v5044_v49 = vpack.c.bf16 %v3137_v29, %v3137_v29  ;;  %v3064_v17 = vld [vmem:[#allocation3 + $0x7b] ss:$2 sm:$0x3f] }
 0x20d   : > { %v5194_v24 = vpop.f32.mrf.mxu0  ;;  %2852 = vrot.lane.b32.xlu0 %v2850_v15, %s5587_s14  ;;  %3367 = vst.msk [vmem:[#allocation4 + $0x48] sm:$0x3] %vm2483_vm1, %v3363_v43  ;;  %v3084_v15 = vld [vmem:[#allocation3 + $0x88] ss:$2 sm:$0x3f]  ;;  %v5037_v51 = vpack.c.bf16 %v3064_v17, %v3064_v17 }
 0x20e   : > { %v2261_v50 = vadd.f32 %v5193_v37, %v6967_v33  ;;  %3028 = vrot.lane.b32.xlu1 %v3027_v26, %s5588_s15  ;;  %v3053_v37 = vld [vmem:[#allocation3 + $0x7a] ss:$2 sm:$0x3f]  ;;  %v3167_v26 = vld [vmem:[#allocation3 + $0x8a] ss:$2 sm:$0x3f]  ;;  %v5039_v41 = vpack.c.bf16 %v3084_v15, %v3084_v15 }
 0x20f   : > { %v5195_v60 = vpop.f32.mrf.mxu0  ;;  %v2344_v27 = vpop.permute.xlu0 %2343  ;;  %v5047_v24 = vpack.c.bf16 %v3167_v26, %v3167_v26 }
 0x210   : > { %v2300_v54 = vmax.f32 %v2261_v50, 0.0  ;;  %2347 = vst.msk [vmem:[#allocation4] sm:$0x7] %vm2346_vm7, %v2344_v27  ;;  %v3417_v33 = vld [vmem:[#allocation3 + $0xc3] ss:$2 sm:$0x3f]  ;;  %v5036_v50 = vpack.c.bf16 %v3053_v37, %v3053_v37 }
 0x211   : > { %2868 = vrot.lane.b32.xlu0 %v2866_v5, %s5586_s20  ;;  %v5066_v13 = vpack.c.bf16 %v3417_v33, %v3417_v33  ;;  %v3095_v60 = vld [vmem:[#allocation3 + $0x89] ss:$2 sm:$0x3f] }
 0x212   : > { %2330 = vst.msk [vmem:[#allocation3 + $0xd0] sm:$0xff] %vm2303_vm3, %v2300_v54  ;;  %2912 = vrot.lane.b32.xlu1 %v2910_v8, %s5587_s14  ;;  %vm2532_vm3 = vcmask 1044227   ;;  %v3089_v8 = vrot.slane %v5039_v41, 7  ;;  %v3058_v5 = vrot.slane %v5036_v50, 7  ;;  %v5040_v35 = vpack.c.bf16 %v3095_v60, %v3095_v60 }
 0x213   : > { %v2355_v57 = vpop.permute.xlu0 %2354  ;;  %v3422_v42 = vrot.slane %v5066_v13, 5  ;;  %v3317_v60 = vrot.slane %v3316_v11, 4 }
 0x214   : > { %2358 = vst.msk [vmem:[#allocation4] sm:$0x7] %vm2357_vm10, %v2355_v57  ;;  %v3100_v43 = vrot.slane %v5040_v35, 7  ;;  %v3069_v57 = vrot.slane %v5037_v51, 7 }
 0x215   : > { %2884 = vrot.lane.b32.xlu0 %v2882_v23, %s5588_s15  ;;  %3426 = vst.msk [vmem:[#allocation4 + $0x3c] sm:$0x8] %vm2481_vm12, %v3422_v42  ;;  %v3423_v9 = vrot.slane %v3422_v42, 4  ;;  %v3181_v23 = vld [vmem:[#allocation3 + $0x97] ss:$2 sm:$0x3f] }
 0x216   : > { %2928 = vrot.lane.b32.xlu1 %v2926_v61, %s5586_s20  ;;  %v5041_v61 = vpack.c.bf16 %v3106_v4, %v3106_v4  ;;  %vm2740_vm12 = vcmask 516352   ;;  %v3201_v35 = vld [vmem:[#allocation3 + $0x99] ss:$2 sm:$0x3f] }
 0x217   : > { %v2381_v40 = vpop.permute.xlu1 %2380  ;;  %v2366_v2 = vpop.permute.xlu0 %2365  ;;  %3427 = vst.msk [vmem:[#allocation4 + $0x4c] sm:$0x3] %vm2483_vm1, %v3423_v9  ;;  %vm2755_vm1 = vcmask 781826   ;;  %v3369_v51 = vld [vmem:[#allocation3 + $0xb5] ss:$2 sm:$0x3f] }
 0x218   : > { %2383 = vst.msk [vmem:[#allocation4 + $0x4] sm:$0x7] %vm2346_vm7, %v2381_v40  ;;  %v3111_v9 = vrot.slane %v5041_v61, 7  ;;  %v5048_v40 = vpack.c.bf16 %v3181_v23, %v3181_v23  ;;  %v5063_v61 = vpack.c.bf16 %v3369_v51, %v3369_v51  ;;  %v3429_v23 = vld [vmem:[#allocation3 + $0xc4] ss:$2 sm:$0x3f] }
 0x219   : > { %2369 = vst.msk [vmem:[#allocation4] sm:$0x7] %vm2368_vm13, %v2366_v2  ;;  %2854 = vrot.lane.b32.xlu0 %v2851_v59, %s5587_s14  ;;  %v3191_v2 = vld [vmem:[#allocation3 + $0x98] ss:$2 sm:$0x3f]  ;;  %v5462_v51 = vld [vmem:[%s7633_s2 + $0xd8] sm:$0xff]  }
 0x21a   : > { %2944 = vrot.lane.b32.xlu1 %v2942_v45, %s5588_s15  ;;  %v3215_v45 = vld [vmem:[#allocation3 + $0xa6] ss:$2 sm:$0x3f]  ;;  %v3255_v59 = vld [vmem:[#allocation3 + $0x97] ss:$2 sm:$0x3f] }
 0x21b   : > { %v2391_v12 = vpop.permute.xlu1 %2390 }
 0x21c   : > { %2393 = vst.msk [vmem:[#allocation4 + $0x4] sm:$0x7] %vm2357_vm10, %v2391_v12 }
 0x21d   : > { %2870 = vrot.lane.b32.xlu0 %v2867_v31, %s5586_s20  ;;  %v5051_v31 = vpack.c.bf16 %v3215_v45, %v3215_v45  ;;  %v5067_v45 = vpack.c.bf16 %v3429_v23, %v3429_v23  ;;  %v5465_v23 = vld [vmem:[%s7633_s2 + $0x90] sm:$0xff]  }
 0x21e   : > { %2914 = vrot.lane.b32.xlu1 %v2911_v3, %s5587_s14 }
 0x21f   : > { %v2401_v28 = vpop.permute.xlu1 %2400  ;;  %v2415_v46 = vpop.permute.xlu0 %2414 }
 0x220   : > { %2403 = vst.msk [vmem:[#allocation4 + $0x4] sm:$0x7] %vm2368_vm13, %v2401_v28  ;;  %v5049_v28 = vpack.c.bf16 %v3191_v2, %v3191_v2  ;;  %v3374_v2 = vrot.slane %v5063_v61, 5 }
 0x221   : > { %2417 = vst.msk [vmem:[#allocation4 + $0x8] sm:$0x7] %vm2346_vm7, %v2415_v46  ;;  %2886 = vrot.lane.b32.xlu0 %v2883_v0, %s5588_s15  ;;  %v3225_v46 = vld [vmem:[#allocation3 + $0xa7] ss:$2 sm:$0x3f] }
 0x222   : > { %2930 = vrot.lane.b32.xlu1 %v2927_v25, %s5586_s20  ;;  %v5055_v25 = vpack.c.bf16 %v3255_v59, %v3255_v59  ;;  %v3270_v0 = vld [vmem:[#allocation3 + $0x98] ss:$2 sm:$0x3f] }
 0x223   : > { %v2425_v20 = vpop.permute.xlu0 %2424 }
 0x224   : > { %v2495_v21 = vpop.permute.xlu1 %2494  ;;  %2427 = vst.msk [vmem:[#allocation4 + $0x8] sm:$0x7] %vm2357_vm10, %v2425_v20  ;;  %v3260_v53 = vrot.slane %v5055_v25, 5 }
 0x225   : > { %2501 = vst.msk [vmem:[#allocation4 + $0x10] sm:$0x3] %vm7687_vm4, %v2495_v21  ;;  %3124 = vrot.lane.b32.xlu0 %v5042_v52, %s5587_s14  ;;  %v5452_v21 = vld [vmem:[%s7633_s2 + $0xf8] sm:$0xff]   ;;  %v5052_v52 = vpack.c.bf16 %v3225_v46, %v3225_v46  ;;  %v3434_v46 = vrot.slane %v5067_v45, 5 }
 0x226   : > { %2946 = vrot.lane.b32.xlu1 %v2943_v39, %s5588_s15  ;;  %5237 = vmatprep.subr.bf16.mxu1 %v5452_v21  ;;  %v3461_v21 = vld [vmem:[#allocation3 + $0xc6] ss:$2 sm:$0x3f] }
 0x227   : > { %v2435_v6 = vpop.permute.xlu0 %2434  ;;  %v5069_v16 = vpack.c.bf16 %v3461_v21, %v3461_v21 }
 0x228   : > { %v2512_v18 = vpop.permute.xlu1 %2511  ;;  %2437 = vst.msk [vmem:[#allocation4 + $0x8] sm:$0x7] %vm2368_vm13, %v2435_v6  ;;  %v3326_v6 = vld [vmem:[#allocation3 + $0xa7] ss:$2 sm:$0x3f] }
 0x229   : > { %2518 = vst.msk [vmem:[#allocation4 + $0x10] sm:$0x3] %vm7686_vm14, %v2512_v18  ;;  %3133 = vrot.lane.b32.xlu0 %v5043_v22, %s5586_s20  ;;  %v5056_v18 = vpack.c.bf16 %v3270_v0, %v3270_v0 }
 0x22a   : > { %3154 = vrot.lane.b32.xlu1 %v5045_v7, %s5587_s14  ;;  %v3285_v7 = vld [vmem:[#allocation3 + $0x99] ss:$2 sm:$0x3f] }
 0x22b   : > { %v2493_v14 = vpop.permute.xlu0 %2492  ;;  %v3275_v48 = vrot.slane %v5056_v18, 5 }
 0x22c   : > { %v2529_v32 = vpop.permute.xlu1 %2528  ;;  %2499 = vst.msk [vmem:[#allocation4] sm:$0x8] %vm2498_vm15, %v2493_v14  ;;  %v5057_v14 = vpack.c.bf16 %v3285_v7, %v3285_v7  ;;  %v3466_v7 = vrot.slane %v5069_v16, 5 }
 0x22d   : > { %2535 = vst.msk [vmem:[#allocation4 + $0x10] sm:$0x3] %vm7688_vm8, %v2529_v32  ;;  %3142 = vrot.lane.b32.xlu0 %v5044_v49, %s5588_s15  ;;  %v5060_v32 = vpack.c.bf16 %v3326_v6, %v3326_v6  ;;  %v3276_v17 = vrot.slane %v3275_v48, 4 }
 0x22e   : > { %3163 = vrot.lane.b32.xlu1 %v5046_v19, %s5586_s20  ;;  %v3341_v19 = vld [vmem:[#allocation3 + $0xa8] ss:$2 sm:$0x3f]  ;;  %v3290_v26 = vrot.slane %v5057_v14, 5 }
 0x22f   : > { %v2510_v58 = vpop.permute.xlu0 %2509  ;;  %v3331_v37 = vrot.slane %v5060_v32, 5  ;;  %v5061_v15 = vpack.c.bf16 %v3341_v19, %v3341_v19 }
 0x230   : > { %v2449_v47 = vpop.permute.xlu1 %2448  ;;  %2516 = vst.msk [vmem:[#allocation4] sm:$0x8] %vm2515_vm6, %v2510_v58 }
 0x231   : > { %2451 = vst.msk [vmem:[#allocation4 + $0xc] sm:$0x7] %vm2346_vm7, %v2449_v47  ;;  %3048 = vrot.lane.b32.xlu0 %v3047_v62, %s5587_s14  ;;  %v3261_v62 = vrot.slane %v3260_v53, 4 }
 0x232   : > { %3172 = vrot.lane.b32.xlu1 %v5047_v24, %s5588_s15  ;;  %v3346_v24 = vrot.slane %v5061_v15, 5  ;;  %v5453_v15 = vld [vmem:[%s7633_s2 + $0xb8] sm:$0xff]  }
 0x233   : > { %v2527_v27 = vpop.permute.xlu0 %2526 }
 0x234   : > { %v2459_v54 = vpop.permute.xlu1 %2458  ;;  %2533 = vst.msk [vmem:[#allocation4] sm:$0x8] %vm2532_vm3, %v2527_v27 }
 0x235   : > { %2461 = vst.msk [vmem:[#allocation4 + $0xc] sm:$0x7] %vm2357_vm10, %v2459_v54  ;;  %3059 = vrot.lane.b32.xlu0 %v3058_v5, %s5586_s20  ;;  %v3291_v5 = vrot.slane %v3290_v26, 4 }
 0x236   : > { %3090 = vrot.lane.b32.xlu1 %v3089_v8, %s5587_s14  ;;  %v3332_v8 = vrot.slane %v3331_v37, 4 }
 0x237   : > { %v2555_v13 = vpop.permute.xlu0 %2554 }
 0x238   : > { %v2469_v33 = vpop.permute.xlu1 %2468  ;;  %2560 = vst.msk [vmem:[#allocation4 + $0x4] sm:$0x8] %vm2498_vm15, %v2555_v13  ;;  %v3347_v13 = vrot.slane %v3346_v24, 4 }
 0x239   : > { %2471 = vst.msk [vmem:[#allocation4 + $0xc] sm:$0x7] %vm2368_vm13, %v2469_v33  ;;  %3070 = vrot.lane.b32.xlu0 %v3069_v57, %s5588_s15  ;;  %v3235_v57 = vld [vmem:[#allocation3 + $0xa8] ss:$2 sm:$0x3f] }
 0x23a   : > { %3101 = vrot.lane.b32.xlu1 %v3100_v43, %s5586_s20  ;;  %v5050_v43 = vpack.c.bf16 %v3201_v35, %v3201_v35  ;;  %v5461_v35 = vld [vmem:[%s7633_s2 + $0xa0] sm:$0xff]  }
 0x23b   : > { %v2570_v42 = vpop.permute.xlu0 %2569 }
 0x23c   : > { %v2557_v44 = vpop.permute.xlu1 %2556  ;;  %2575 = vst.msk [vmem:[#allocation4 + $0x4] sm:$0x8] %vm2515_vm6, %v2570_v42 }
 0x23d   : > { %2561 = vst.msk [vmem:[#allocation4 + $0x14] sm:$0x3] %vm7687_vm4, %v2557_v44  ;;  %3186 = vrot.lane.b32.xlu0 %v5048_v40, %s5587_s14  ;;  %v3385_v44 = vld [vmem:[#allocation3 + $0xb6] ss:$2 sm:$0x3f]  ;;  %v5053_v40 = vpack.c.bf16 %v3235_v57, %v3235_v57 }
 0x23e   : > { %3112 = vrot.lane.b32.xlu1 %v3111_v9, %s5588_s15  ;;  %v5064_v59 = vpack.c.bf16 %v3385_v44, %v3385_v44  ;;  %v5467_v44 = vld [vmem:[%s7633_s2 + $0xc8] sm:$0xff]  }
 0x23f   : > { %v2585_v3 = vpop.permute.xlu0 %2584 }
 0x240   : > { %v2572_v12 = vpop.permute.xlu1 %2571  ;;  %2590 = vst.msk [vmem:[#allocation4 + $0x4] sm:$0x8] %vm2532_vm3, %v2585_v3  ;;  %v3401_v3 = vld [vmem:[#allocation3 + $0xb7] ss:$2 sm:$0x3f]  ;;  %v3390_v25 = vrot.slane %v5064_v59, 5 }
 0x241   : > { %2576 = vst.msk [vmem:[#allocation4 + $0x14] sm:$0x3] %vm7686_vm14, %v2572_v12  ;;  %3196 = vrot.lane.b32.xlu0 %v5049_v28, %s5586_s20  ;;  %v3445_v12 = vld [vmem:[#allocation3 + $0xc5] ss:$2 sm:$0x3f]  ;;  %v5065_v56 = vpack.c.bf16 %v3401_v3, %v3401_v3 }
 0x242   : > { %3220 = vrot.lane.b32.xlu1 %v5051_v31, %s5587_s14  ;;  %v5068_v0 = vpack.c.bf16 %v3445_v12, %v3445_v12  ;;  %v3391_v32 = vrot.slane %v3390_v25, 4  ;;  %v5473_v12 = vld [vmem:[%s7633_s2 + $0x80] sm:$0xff]  }
 0x243   : > { %v2733_v39 = vpop.permute.xlu0 %2732 }
 0x244   : > { %v2587_v20 = vpop.permute.xlu1 %2586  ;;  %2739 = vst.msk [vmem:[#allocation4 + $0x10] sm:$0xc] %vm2738_vm11, %v2733_v39 }
 0x245   : > { %2591 = vst.msk [vmem:[#allocation4 + $0x14] sm:$0x3] %vm7688_vm8, %v2587_v20  ;;  %3262 = vrot.lane.b32.xlu0 %v3260_v53, %s5587_s14  ;;  %v3406_v53 = vrot.slane %v5065_v56, 5 }
 0x246   : > { %3230 = vrot.lane.b32.xlu1 %v5052_v52, %s5586_s20  ;;  %v3450_v52 = vrot.slane %v5068_v0, 5 }
 0x247   : > { %v2613_v29 = vpop.permute.xlu0 %2612  ;;  %v3407_v14 = vrot.slane %v3406_v53, 4 }
 0x248   : > { %v2615_v22 = vpop.permute.xlu1 %2614  ;;  %2618 = vst.msk [vmem:[#allocation4 + $0x8] sm:$0x8] %vm2498_vm15, %v2613_v29 }
 0x249   : > { %2619 = vst.msk [vmem:[#allocation4 + $0x18] sm:$0x3] %vm7687_vm4, %v2615_v22  ;;  %3277 = vrot.lane.b32.xlu0 %v3275_v48, %s5586_s20  ;;  %v3375_v22 = vrot.slane %v3374_v2, 4  ;;  %v3435_v48 = vrot.slane %v3434_v46, 4 }
 0x24a   : > { %3318 = vrot.lane.b32.xlu1 %v3316_v11, %s5587_s14 }
 0x24b   : > { %v2735_v38 = vpop.permute.xlu0 %2734 }
 0x24c   : > { %v2631_v49 = vpop.permute.xlu1 %2630  ;;  %2741 = vst.msk [vmem:[#allocation4 + $0x20] sm:$0x1] %vm2740_vm12, %v2735_v38  ;;  %v3451_v38 = vrot.slane %v3450_v52, 4 }
 0x24d   : > { %2635 = vst.msk [vmem:[#allocation4 + $0x18] sm:$0x3] %vm7686_vm14, %v2631_v49  ;;  %3292 = vrot.lane.b32.xlu0 %v3290_v26, %s5588_s15 }
 0x24e   : > { %3333 = vrot.lane.b32.xlu1 %v3331_v37, %s5586_s20 }
 0x24f   : > { %v2750_v58 = vpop.permute.xlu0 %2749 }
 0x250   : > { %v2647_v47 = vpop.permute.xlu1 %2646  ;;  %2756 = vst.msk [vmem:[#allocation4 + $0x10] sm:$0xc] %vm2755_vm1, %v2750_v58 }
 0x251   : > { %2651 = vst.msk [vmem:[#allocation4 + $0x18] sm:$0x3] %vm7688_vm8, %v2647_v47  ;;  %3264 = vrot.lane.b32.xlu0 %v3261_v62, %s5587_s14  ;;  %v5454_v47 = vld [vmem:[%s7633_s2 + $0xf0] sm:$0xff]   ;;  %v3467_v62 = vrot.slane %v3466_v7, 4 }
 0x252   : > { %3348 = vrot.lane.b32.xlu1 %v3346_v24, %s5588_s15 }
 0x253   : > { %v2767_v50 = vpop.permute.xlu0 %2766 }
 0x254   : > { %v2795_v41 = vpop.permute.xlu1 %2794  ;;  %2773 = vst.msk [vmem:[#allocation4 + $0x10] sm:$0xc] %vm2772_vm5, %v2767_v50  ;;  %v5456_v50 = vld [vmem:[%s7633_s2 + $0xe8] sm:$0xff]  }
 0x255   : > { %2800 = vst.msk [vmem:[#allocation4 + $0x14] sm:$0xc] %vm2738_vm11, %v2795_v41  ;;  %3279 = vrot.lane.b32.xlu0 %v3276_v17, %s5586_s20  ;;  %v5455_v41 = vld [vmem:[%s7633_s2 + $0xb0] sm:$0xff]  }
 0x256   : > { %3320 = vrot.lane.b32.xlu1 %v3317_v60, %s5587_s14 }
 0x257   : > { %v2629_v27 = vpop.permute.xlu0 %2628 }
 0x258   : > { %v2810_v54 = vpop.permute.xlu1 %2809  ;;  %2634 = vst.msk [vmem:[#allocation4 + $0x8] sm:$0x8] %vm2515_vm6, %v2629_v27  ;;  %v5460_v27 = vld [vmem:[%s7633_s2 + $0xe0] sm:$0xff]  }
 0x259   : > { %2815 = vst.msk [vmem:[#allocation4 + $0x14] sm:$0xc] %vm2755_vm1, %v2810_v54  ;;  %3294 = vrot.lane.b32.xlu0 %v3291_v5, %s5588_s15  ;;  %v5457_v54 = vld [vmem:[%s7633_s2 + $0xa8] sm:$0xff]  }
 0x25a   : > { %3335 = vrot.lane.b32.xlu1 %v3332_v8, %s5586_s20 }
 0x25b   : > { %v2645_v33 = vpop.permute.xlu0 %2644  ;;  %v5449_v37 = vld [vmem:[#allocation4] ss:$16 sps:$4 sm:$0xff]  }
 0x25c   : > { %v2797_v4 = vpop.permute.xlu1 %2796  ;;  %2650 = vst.msk [vmem:[#allocation4 + $0x8] sm:$0x8] %vm2532_vm3, %v2645_v33 }
 0x25d   : > { %2801 = vst.msk [vmem:[#allocation4 + $0x24] sm:$0x1] %vm2740_vm12, %v2797_v4  ;;  %3206 = vrot.lane.b32.xlu0 %v5050_v43, %s5588_s15  ;;  %v5464_v43 = vld [vmem:[%s7633_s2 + $0xd0] sm:$0xff]  }
 0x25e   : > { %3350 = vrot.lane.b32.xlu1 %v3347_v13, %s5588_s15  ;;  %v5463_v13 = vld [vmem:[%s7633_s2 + $0x98] sm:$0xff]  }
 0x25f   : > { %v2752_v9 = vpop.permute.xlu0 %2751 }
 0x260   : > { %v2812_v42 = vpop.permute.xlu1 %2811  ;;  %2758 = vst.msk [vmem:[#allocation4 + $0x20] sm:$0x1] %vm2757_vm2, %v2752_v9 }
 0x261   : > { %2816 = vst.msk [vmem:[#allocation4 + $0x24] sm:$0x1] %vm2757_vm2, %v2812_v42  ;;  %3376 = vrot.lane.b32.xlu0 %v3374_v2, %s5587_s14  ;;  %v5472_v2 = vld [vmem:[%s7633_s2 + $0xc0] sm:$0xff]  }
 0x262   : > { %3240 = vrot.lane.b32.xlu1 %v5053_v40, %s5588_s15  ;;  %v5468_v40 = vld [vmem:[%s7633_s2 + $0x88] sm:$0xff]  }
 0x263   : > { %v2769_v28 = vpop.permute.xlu0 %2768 }
 0x264   : > { %v2675_v31 = vpop.permute.xlu1 %2674  ;;  %2775 = vst.msk [vmem:[#allocation4 + $0x20] sm:$0x1] %vm2774_vm0, %v2769_v28 }
 0x265   : > { %2679 = vst.msk [vmem:[#allocation4 + $0x1c] sm:$0x3] %vm7687_vm4, %v2675_v31  ;;  %3392 = vrot.lane.b32.xlu0 %v3390_v25, %s5586_s20  ;;  %vm2981_vm4 = vcmask 781825  }
 0x266   : > { %3436 = vrot.lane.b32.xlu1 %v3434_v46, %s5587_s14 }
 0x267   : > { %v2673_v39 = vpop.permute.xlu0 %2672 }
 0x268   : > { %v2691_v20 = vpop.permute.xlu1 %2690  ;;  %2678 = vst.msk [vmem:[#allocation4 + $0xc] sm:$0x8] %vm2498_vm15, %v2673_v39 }
 0x269   : > { %2695 = vst.msk [vmem:[#allocation4 + $0x1c] sm:$0x3] %vm7686_vm14, %v2691_v20  ;;  %3408 = vrot.lane.b32.xlu0 %v3406_v53, %s5588_s15  ;;  %vm2970_vm14 = vcmask 519425  }
 0x26a   : > { %3452 = vrot.lane.b32.xlu1 %v3450_v52, %s5586_s20 }
 0x26b   : > { %v2689_v6 = vpop.permute.xlu0 %2688 }
 0x26c   : > { %v2825_v18 = vpop.permute.xlu1 %2824  ;;  %2694 = vst.msk [vmem:[#allocation4 + $0xc] sm:$0x8] %vm2515_vm6, %v2689_v6 }
 0x26d   : > { %2830 = vst.msk [vmem:[#allocation4 + $0x14] sm:$0xc] %vm2772_vm5, %v2825_v18  ;;  %3378 = vrot.lane.b32.xlu0 %v3375_v22, %s5587_s14 }
 0x26e   : > { %3468 = vrot.lane.b32.xlu1 %v3466_v7, %s5588_s15 }
 0x26f   : > { %v2705_v11 = vpop.permute.xlu0 %2704 }
 0x270   : > { %v2827_v29 = vpop.permute.xlu1 %2826  ;;  %2710 = vst.msk [vmem:[#allocation4 + $0xc] sm:$0x8] %vm2532_vm3, %v2705_v11 }
 0x271   : > { %2831 = vst.msk [vmem:[#allocation4 + $0x24] sm:$0x1] %vm2774_vm0, %v2827_v29  ;;  %3394 = vrot.lane.b32.xlu0 %v3391_v32, %s5586_s20 }
 0x272   : > { %3438 = vrot.lane.b32.xlu1 %v3435_v48, %s5587_s14  ;;  %s5096_s14 = sshll.u32 %s5655_s28, 8  ;;  %s5591_s28 = smov [#allocation7]  }
 0x273   : > { %v2968_v49 = vpop.permute.xlu0 %2967  ;;  %s7589_s23 = scalar_lea.hbm %s7638_s7, %s5096_s14  ;;  %s5528_s9 = sshll.u32 %s5591_s28, 4  ;;  %s5529_s9 = int_to_ptr.vmem [resolvable:$false] %s5528_s9 }
 0x274   : > { %v2707_v19 = vpop.permute.xlu1 %2706  ;;  %v5451_v26 = vld [vmem:[#allocation4 + $0x4] ss:$16 sps:$4 sm:$0xff]   ;;  %2971 = vst.msk [vmem:[#allocation4 + $0x20] sm:$0xe] %vm2970_vm14, %v2968_v49  ;;  %s5530_s17 = scalar_lea.vmem %s5529_s9, 512 }
 0x275   : > { %2711 = vst.msk [vmem:[#allocation4 + $0x1c] sm:$0x3] %vm7688_vm8, %v2707_v19  ;;  %3410 = vrot.lane.b32.xlu0 %v3407_v14, %s5588_s15  ;;  %3835 = vmatprep.mubr.bf16.mxu1 %v5451_v26  ;;  %vm2992_vm8 = vcmask 1044225  }
 0x276   : > { %3454 = vrot.lane.b32.xlu1 %v3451_v38, %s5586_s20  ;;  %3836 = vmatmul.mubr.bf16.vlgmr.msra.gmra.mxu1 %v5449_v37 }
 0x277   : > { %v2979_v24 = vpop.permute.xlu0 %2978  ;;  %5238 = vmatpush3.bf16.msra.mxu1 %v5453_v15 }
 0x278   : > { %v3009_v58 = vpop.permute.xlu1 %3008  ;;  %2982 = vst.msk [vmem:[#allocation4 + $0x20] sm:$0xe] %vm2981_vm4, %v2979_v24  ;;  %5239 = vmatprep.subr.bf16.mxu1 %v5454_v47 }
 0x279   : > { %3011 = vst.msk [vmem:[#allocation4 + $0x24] sm:$0xe] %vm2970_vm14, %v3009_v58 }
 0x27a   : > { %3470 = vrot.lane.b32.xlu1 %v3467_v62, %s5588_s15 }
 0x27b   : > { %v2990_v17 = vpop.permute.xlu0 %2989  ;;  %5240 = vmatpush3.bf16.msra.mxu1 %v5455_v41 }
 0x27c   : > { %v3019_v60 = vpop.permute.xlu1 %3018  ;;  %2993 = vst.msk [vmem:[#allocation4 + $0x20] sm:$0xe] %vm2992_vm8, %v2990_v17  ;;  %5241 = vmatprep.subr.bf16.mxu1 %v5456_v50 }
 0x27d   : > { %3021 = vst.msk [vmem:[#allocation4 + $0x24] sm:$0xe] %vm2981_vm4, %v3019_v60 }
 0x27f   : > { %v2853_v5 = vpop.permute.xlu0 %2852  ;;  %5242 = vmatpush3.bf16.msra.mxu1 %v5457_v54 }
 0x280   : > { %v3029_v8 = vpop.permute.xlu1 %3028  ;;  %2858 = vst.msk [vmem:[#allocation4 + $0x18] sm:$0xc] %vm2738_vm11, %v2853_v5  ;;  %5243 = vmatprep.subr.bf16.mxu1 %v5460_v27 }
 0x281   : > { %3031 = vst.msk [vmem:[#allocation4 + $0x24] sm:$0xe] %vm2992_vm8, %v3029_v8 }
 0x283   : > { %v2869_v33 = vpop.permute.xlu0 %2868  ;;  %5244 = vmatpush3.bf16.msra.mxu1 %v5461_v35 }
 0x284   : > { %v2913_v4 = vpop.permute.xlu1 %2912  ;;  %2874 = vst.msk [vmem:[#allocation4 + $0x18] sm:$0xc] %vm2755_vm1, %v2869_v33  ;;  %5245 = vmatprep.subr.bf16.mxu1 %v5462_v51 }
 0x285   : > { %2918 = vst.msk [vmem:[#allocation4 + $0x1c] sm:$0xc] %vm2738_vm11, %v2913_v4 }
 0x287   : > { %v2885_v61 = vpop.permute.xlu0 %2884  ;;  %5246 = vmatpush3.bf16.msra.mxu1 %v5463_v13 }
 0x288   : > { %v2929_v57 = vpop.permute.xlu1 %2928  ;;  %2890 = vst.msk [vmem:[#allocation4 + $0x18] sm:$0xc] %vm2772_vm5, %v2885_v61  ;;  %5247 = vmatprep.subr.bf16.mxu1 %v5464_v43  ;;  %v3480_v24 = vld [vmem:[#allocation4 + $0x20] sm:$0xff] }
 0x289   : > { %2934 = vst.msk [vmem:[#allocation4 + $0x1c] sm:$0xc] %vm2755_vm1, %v2929_v57 }
 0x28b   : > { %v2855_v9 = vpop.permute.xlu0 %2854  ;;  %5248 = vmatpush3.bf16.msra.mxu1 %v5465_v23 }
 0x28c   : > { %v2945_v42 = vpop.permute.xlu1 %2944  ;;  %2859 = vst.msk [vmem:[#allocation4 + $0x28] sm:$0x1] %vm2740_vm12, %v2855_v9  ;;  %5249 = vmatprep.subr.bf16.mxu1 %v5467_v44 }
 0x28d   : > { %2950 = vst.msk [vmem:[#allocation4 + $0x1c] sm:$0xc] %vm2772_vm5, %v2945_v42  ;;  %vm3920_vm5 = vcmask 523264  }
 0x28f   : > { %v2871_v59 = vpop.permute.xlu0 %2870  ;;  %5250 = vmatpush3.bf16.msra.mxu1 %v5468_v40  ;;  %v5469_v23 = vld [vmem:[#allocation4 + $0x8] ss:$16 sps:$4 sm:$0xff]  }
 0x290   : > { %v2915_v45 = vpop.permute.xlu1 %2914  ;;  %2875 = vst.msk [vmem:[#allocation4 + $0x28] sm:$0x1] %vm2757_vm2, %v2871_v59  ;;  %5251 = vmatprep.subr.bf16.mxu1 %v5472_v2 }
 0x291   : > { %2919 = vst.msk [vmem:[#allocation4 + $0x2c] sm:$0x1] %vm2740_vm12, %v2915_v45 }
 0x293   : > { %v2887_v31 = vpop.permute.xlu0 %2886  ;;  %5252 = vmatpush3.bf16.msra.mxu1 %v5473_v12 }
 0x294   : > { %v2931_v3 = vpop.permute.xlu1 %2930  ;;  %2891 = vst.msk [vmem:[#allocation4 + $0x28] sm:$0x1] %vm2774_vm0, %v2887_v31  ;;  %v5471_v33 = vld [vmem:[#allocation4 + $0xc] ss:$16 sps:$4 sm:$0xff]  }
 0x295   : > { %2935 = vst.msk [vmem:[#allocation4 + $0x2c] sm:$0x1] %vm2757_vm2, %v2931_v3  ;;  %vm7874_vm2 = vcmask 517120  }
 0x297   : > { %v3125_v46 = vpop.permute.xlu0 %3124 }
 0x298   : > { %v2947_v28 = vpop.permute.xlu1 %2946  ;;  %3127 = vst.msk [vmem:[#allocation4 + $0x30] sm:$0x7] %vm2346_vm7, %v3125_v46 }
 0x299   : > { %2951 = vst.msk [vmem:[#allocation4 + $0x2c] sm:$0x1] %vm2774_vm0, %v2947_v28  ;;  %vm7875_vm0 = vmmov %vm7874_vm2 }
 0x29b   : > { %v3134_v0 = vpop.permute.xlu0 %3133 }
 0x29c   : > { %v3155_v25 = vpop.permute.xlu1 %3154  ;;  %3136 = vst.msk [vmem:[#allocation4 + $0x30] sm:$0x7] %vm2357_vm10, %v3134_v0  ;;  %v5479_v0 = vld [vmem:[%s7634_s3 + $0x38] sm:$0xff]  }
 0x29d   : > { %3157 = vst.msk [vmem:[#allocation4 + $0x34] sm:$0x7] %vm2346_vm7, %v3155_v25  ;;  %v5478_v25 = vld [vmem:[%s7634_s3 + $0x78] sm:$0xff]  }
 0x29e   : > { %5271 = vmatprep.subr.bf16.mxu1 %v5478_v25 }
 0x29f   : > { %v3143_v21 = vpop.permute.xlu0 %3142 }
 0x2a0   : > { %v3164_v56 = vpop.permute.xlu1 %3163  ;;  %3145 = vst.msk [vmem:[#allocation4 + $0x30] sm:$0x7] %vm2368_vm13, %v3143_v21  ;;  %v5481_v21 = vld [vmem:[%s7634_s3 + $0x30] sm:$0xff]  }
 0x2a1   : > { %3166 = vst.msk [vmem:[#allocation4 + $0x34] sm:$0x7] %vm2357_vm10, %v3164_v56  ;;  %v5480_v56 = vld [vmem:[%s7634_s3 + $0x70] sm:$0xff]  }
 0x2a3   : > { %v3049_v39 = vpop.permute.xlu0 %3048 }
 0x2a4   : > { %v3173_v20 = vpop.permute.xlu1 %3172  ;;  %3051 = vst.msk [vmem:[#allocation4 + $0x28] sm:$0xe] %vm2970_vm14, %v3049_v39 }
 0x2a5   : > { %3175 = vst.msk [vmem:[#allocation4 + $0x34] sm:$0x7] %vm2368_vm13, %v3173_v20 }
 0x2a7   : > { %v3060_v53 = vpop.permute.xlu0 %3059 }
 0x2a8   : > { %v3091_v52 = vpop.permute.xlu1 %3090  ;;  %3062 = vst.msk [vmem:[#allocation4 + $0x28] sm:$0xe] %vm2981_vm4, %v3060_v53 }
 0x2a9   : > { %3093 = vst.msk [vmem:[#allocation4 + $0x2c] sm:$0xe] %vm2970_vm14, %v3091_v52 }
 0x2ab   : > { %v3071_v18 = vpop.permute.xlu0 %3070 }
 0x2ac   : > { %v3102_v16 = vpop.permute.xlu1 %3101  ;;  %3073 = vst.msk [vmem:[#allocation4 + $0x28] sm:$0xe] %vm2992_vm8, %v3071_v18 }
 0x2ad   : > { %3104 = vst.msk [vmem:[#allocation4 + $0x2c] sm:$0xe] %vm2981_vm4, %v3102_v16  ;;  %vm7864_vm4 = vcmask 779776  }
 0x2ae   : > { %vm7865_vm14 = vmmov %vm7864_vm4 }
 0x2af   : > { %v3187_v7 = vpop.permute.xlu0 %3186  ;;  %vm7870_vm12 = vmmov %vm7864_vm4 }
 0x2b0   : > { %v3113_v6 = vpop.permute.xlu1 %3112  ;;  %3189 = vst.msk [vmem:[#allocation4 + $0x38] sm:$0x7] %vm2346_vm7, %v3187_v7 }
 0x2b1   : > { %3115 = vst.msk [vmem:[#allocation4 + $0x2c] sm:$0xe] %vm2992_vm8, %v3113_v6  ;;  %vm7866_vm8 = vcmask 1042176  }
 0x2b2   : > { %vm7867_vm11 = vmmov %vm7866_vm8 }
 0x2b3   : > { %v3197_v29 = vpop.permute.xlu0 %3196  ;;  %vm7872_vm1 = vmmov %vm7866_vm8 }
 0x2b4   : > { %v3221_v22 = vpop.permute.xlu1 %3220  ;;  %3199 = vst.msk [vmem:[#allocation4 + $0x38] sm:$0x7] %vm2357_vm10, %v3197_v29 }
 0x2b5   : > { %3223 = vst.msk [vmem:[#allocation4 + $0x3c] sm:$0x7] %vm2346_vm7, %v3221_v22  ;;  %vm7862_vm7 = vcmask 517376  }
 0x2b7   : > { %v3263_v48 = vpop.permute.xlu0 %3262 }
 0x2b8   : > { %v3231_v11 = vpop.permute.xlu1 %3230  ;;  %3268 = vst.msk [vmem:[#allocation4 + $0x30] sm:$0x8] %vm2498_vm15, %v3263_v48  ;;  %v3481_v2 = vld [vmem:[#allocation4 + $0x28] sm:$0xff] }
 0x2b9   : > { %3233 = vst.msk [vmem:[#allocation4 + $0x3c] sm:$0x7] %vm2357_vm10, %v3231_v11  ;;  %vm7863_vm10 = vmmov %vm7862_vm7 }
 0x2bb   : > { %v3278_v14 = vpop.permute.xlu0 %3277 }
 0x2bc   : > { %v3319_v32 = vpop.permute.xlu1 %3318  ;;  %3283 = vst.msk [vmem:[#allocation4 + $0x30] sm:$0x8] %vm2515_vm6, %v3278_v14  ;;  %v7402_v14 = vld [vmem:[%s7636_s5] ss:$0 sm:$0xff] }
 0x2bd   : > { %3324 = vst.msk [vmem:[#allocation4 + $0x34] sm:$0x8] %vm2498_vm15, %v3319_v32 }
 0x2bf   : > { %v3293_v49 = vpop.permute.xlu0 %3292 }
 0x2c0   : > { %v3334_v19 = vpop.permute.xlu1 %3333  ;;  %3298 = vst.msk [vmem:[#allocation4 + $0x30] sm:$0x8] %vm2532_vm3, %v3293_v49 }
 0x2c1   : > { %3339 = vst.msk [vmem:[#allocation4 + $0x34] sm:$0x8] %vm2515_vm6, %v3334_v19 }
 0x2c3   : > { %v3265_v37 = vpop.permute.xlu0 %3264 }
 0x2c4   : > { %v3349_v38 = vpop.permute.xlu1 %3348  ;;  %3269 = vst.msk [vmem:[#allocation4 + $0x40] sm:$0x3] %vm7862_vm7, %v3265_v37 }
 0x2c5   : > { %3354 = vst.msk [vmem:[#allocation4 + $0x34] sm:$0x8] %vm2532_vm3, %v3349_v38 }
 0x2c7   : > { %v3280_v15 = vpop.permute.xlu0 %3279 }
 0x2c8   : > { %v3321_v26 = vpop.permute.xlu1 %3320  ;;  %3284 = vst.msk [vmem:[#allocation4 + $0x40] sm:$0x3] %vm7864_vm4, %v3280_v15 }
 0x2c9   : > { %3325 = vst.msk [vmem:[#allocation4 + $0x44] sm:$0x3] %vm7863_vm10, %v3321_v26  ;;  %vm7877_vm10 = vmmov %vm7875_vm0 }
 0x2cb   : > { %v3295_v58 = vpop.permute.xlu0 %3294 }
 0x2cc   : > { %v3336_v47 = vpop.permute.xlu1 %3335  ;;  %v3482_v62 = vld [vmem:[#allocation4 + $0x30] sm:$0xff]  ;;  %3299 = vst.msk [vmem:[#allocation4 + $0x40] sm:$0x3] %vm7866_vm8, %v3295_v58  ;;  %vm7880_vm8 = vcmask 519170  }
 0x2cd   : > { %v5458_v41 = vld [vmem:[#allocation4 + $0x24] ss:$16 sps:$4 sm:$0xff]   ;;  %3340 = vst.msk [vmem:[#allocation4 + $0x44] sm:$0x3] %vm7865_vm14, %v3336_v47  ;;  %v4867_v50 = vcombine.low %v3480_v24, %v3482_v62  ;;  %v5482_v24 = vld [vmem:[%s7634_s3 + $0x68] sm:$0xff]   ;;  %vm7879_vm14 = vmmov %vm7875_vm0 }
 0x2ce   : > { %3843 = vmatprep.mubr.bf16.mxu1 %v5458_v41  ;;  %v5483_v62 = vld [vmem:[%s7634_s3 + $0x28] sm:$0xff]  }
 0x2cf   : > { %3844 = vmatmul.mubr.bf16.gmra.mxu1 %v4867_v50  ;;  %v3207_v17 = vpop.permute.xlu0 %3206 }
 0x2d0   : > { %v3351_v60 = vpop.permute.xlu1 %3350  ;;  %3209 = vst.msk [vmem:[#allocation4 + $0x38] sm:$0x7] %vm2368_vm13, %v3207_v17 }
 0x2d1   : > { %3355 = vst.msk [vmem:[#allocation4 + $0x44] sm:$0x3] %vm7867_vm11, %v3351_v60  ;;  %vm7881_vm11 = vmmov %vm7880_vm8 }
 0x2d3   : > { %v3377_v27 = vpop.permute.xlu0 %3376 }
 0x2d4   : > { %v3241_v54 = vpop.permute.xlu1 %3240  ;;  %3382 = vst.msk [vmem:[#allocation4 + $0x38] sm:$0x8] %vm2498_vm15, %v3377_v27 }
 0x2d5   : > { %3243 = vst.msk [vmem:[#allocation4 + $0x3c] sm:$0x7] %vm2368_vm13, %v3241_v54  ;;  %vm7868_vm13 = vmmov %vm7862_vm7 }
 0x2d7   : > { %v3393_v5 = vpop.permute.xlu0 %3392 }
 0x2d8   : > { %v3437_v8 = vpop.permute.xlu1 %3436  ;;  %v3484_v35 = vld [vmem:[#allocation4 + $0x40] sm:$0xff]  ;;  %3398 = vst.msk [vmem:[#allocation4 + $0x38] sm:$0x8] %vm2515_vm6, %v3393_v5 }
 0x2d9   : > { %3442 = vst.msk [vmem:[#allocation4 + $0x3c] sm:$0x8] %vm2498_vm15, %v3437_v8  ;;  %v4872_v51 = vcombine.high %v3484_v35, %v3484_v35  ;;  %v4871_v4 = vcombine.low %v3484_v35, %v3484_v35  ;;  %vm7869_vm15 = vmmov %vm7862_vm7 }
 0x2da   : > { %vm7876_vm7 = vmmov %vm7875_vm0 }
 0x2db   : > { %3851 = vmatprep.mubr.bf16.mxu1 %v4872_v51  ;;  %v3409_v43 = vpop.permute.xlu0 %3408 }
 0x2dc   : > { %v3453_v13 = vpop.permute.xlu1 %3452  ;;  %3852 = vmatmul.mubr.bf16.gmra.mxu1 %v4871_v4  ;;  %3414 = vst.msk [vmem:[#allocation4 + $0x38] sm:$0x8] %vm2532_vm3, %v3409_v43  ;;  %v5485_v43 = vld [vmem:[%s7634_s3 + $0x20] sm:$0xff]  }
 0x2dd   : > { %3458 = vst.msk [vmem:[#allocation4 + $0x3c] sm:$0x8] %vm2515_vm6, %v3453_v13  ;;  %3891 = vmatprep.mubr.bf16.mxu1 %v5471_v33  ;;  %vm7871_vm6 = vmmov %vm7864_vm4  ;;  %v5484_v13 = vld [vmem:[%s7634_s3 + $0x60] sm:$0xff]  }
 0x2de   : > { %vm7878_vm4 = vmmov %vm7875_vm0 }
 0x2df   : > { %v3379_v61 = vpop.permute.xlu0 %3378 }
 0x2e0   : > { %v3469_v57 = vpop.permute.xlu1 %3468  ;;  %3383 = vst.msk [vmem:[#allocation4 + $0x48] sm:$0x3] %vm7868_vm13, %v3379_v61  ;;  %vm7882_vm13 = vmmov %vm7875_vm0 }
 0x2e1   : > { %3474 = vst.msk [vmem:[#allocation4 + $0x3c] sm:$0x8] %vm2532_vm3, %v3469_v57  ;;  %vm7873_vm3 = vmmov %vm7872_vm1 }
 0x2e3   : > { %v3395_v42 = vpop.permute.xlu0 %3394 }
 0x2e4   : > { %v3439_v44 = vpop.permute.xlu1 %3438  ;;  %3892 = vmatmul.mubr.bf16.vlgmr.msra.gmra.mxu1 %v5469_v23  ;;  %3399 = vst.msk [vmem:[#allocation4 + $0x48] sm:$0x3] %vm7870_vm12, %v3395_v42  ;;  %vm7884_vm12 = vmmov %vm7880_vm8 }
 0x2e5   : > { %3443 = vst.msk [vmem:[#allocation4 + $0x4c] sm:$0x3] %vm7869_vm15, %v3439_v44  ;;  %5272 = vmatpush3.bf16.msra.mxu1 %v5479_v0  ;;  %vm7883_vm15 = vmmov %vm7875_vm0 }
 0x2e6   : > { %5273 = vmatprep.subr.bf16.mxu1 %v5480_v56 }
 0x2e7   : > { %v3411_v40 = vpop.permute.xlu0 %3410 }
 0x2e8   : > { %v3455_v9 = vpop.permute.xlu1 %3454  ;;  %v3483_v45 = vld [vmem:[#allocation4 + $0x38] sm:$0xff]  ;;  %3415 = vst.msk [vmem:[#allocation4 + $0x48] sm:$0x3] %vm7872_vm1, %v3411_v40 }
 0x2e9   : > { %v5474_v59 = vld [vmem:[#allocation4 + $0x2c] ss:$16 sps:$4 sm:$0xff]   ;;  %3459 = vst.msk [vmem:[#allocation4 + $0x4c] sm:$0x3] %vm7871_vm6, %v3455_v9  ;;  %v4869_v12 = vcombine.low %v3481_v2, %v3483_v45  ;;  %5274 = vmatpush3.bf16.msra.mxu1 %v5481_v21  ;;  %vm7885_vm6 = vmmov %vm7880_vm8 }
 0x2ea   : > { %3899 = vmatprep.mubr.bf16.mxu1 %v5474_v59  ;;  %5275 = vmatprep.subr.bf16.mxu1 %v5482_v24  ;;  %vm7886_vm1 = vmmov %vm7885_vm6 }
 0x2ec   : > { %v3471_v3 = vpop.permute.xlu1 %3470  ;;  %3900 = vmatmul.mubr.bf16.gmra.mxu1 %v4869_v12 }
 0x2ed   : > { %3475 = vst.msk [vmem:[#allocation4 + $0x4c] sm:$0x3] %vm7873_vm3, %v3471_v3  ;;  %5276 = vmatpush3.bf16.msra.mxu1 %v5483_v62  ;;  %vm7887_vm3 = vmmov %vm7875_vm0 }
 0x2ee   : > { %5277 = vmatprep.subr.bf16.mxu1 %v5484_v13 }
 0x2f1   : > { %5278 = vmatpush3.bf16.msra.mxu1 %v5485_v43 }
 0x2f4   : > { %v3485_v31 = vld [vmem:[#allocation4 + $0x48] sm:$0xff] }
 0x2f5   : > { %v4874_v28 = vcombine.high %v3485_v31, %v3485_v31  ;;  %v4873_v46 = vcombine.low %v3485_v31, %v3485_v31  ;;  %v5486_v31 = vld [vmem:[%s7634_s3 + $0x58] sm:$0xff]  }
 0x2f6   : > { %5279 = vmatprep.subr.bf16.mxu1 %v5486_v31 }
 0x2f7   : > { %3907 = vmatprep.mubr.bf16.mxu1 %v4874_v28  ;;  %v5487_v28 = vld [vmem:[%s7634_s3 + $0x18] sm:$0xff]  }
 0x2f8   : > { %3908 = vmatmul.mubr.bf16.gmra.mxu1 %v4873_v46 }
 0x2f9   : > { %5280 = vmatpush3.bf16.msra.mxu1 %v5487_v28 }
 0x336   : > { %v5219_v20 = vpop.f32.mrf.mxu1 }
 0x338   : > { %v5220_v39 = vpop.f32.mrf.mxu1 }
 0x339   : > { %v5221_v32 = vadd.f32 %v5220_v39, %v5219_v20 }
 0x33a   : > { %v5222_v52 = vpop.f32.mrf.mxu1 }
 0x33b   : > { %v3838_v38 = vadd.f32 %v5221_v32, %v7402_v14 }
 0x33c   : > { %v5223_v53 = vpop.f32.mrf.mxu1 }
 0x33d   : > { %v5224_v37 = vadd.f32 %v5223_v53, %v5222_v52 }
 0x33f   : > { %v3841_v41 = vadd.f32 %v5224_v37, %v7402_v14 }
 0x38f   : > { %v5225_v16 = vpop.f32.mrf.mxu1 }
 0x391   : > { %v5226_v18 = vpop.f32.mrf.mxu1 }
 0x392   : > { %v5227_v50 = vadd.f32 %v5226_v18, %v5225_v16 }
 0x393   : > { %v5228_v6 = vpop.f32.mrf.mxu1 }
 0x394   : > { %v3846_v5 = vadd.f32 %v5227_v50, %v7402_v14 }
 0x395   : > { %v5229_v7 = vpop.f32.mrf.mxu1 }
 0x396   : > { %v5230_v35 = vadd.f32 %v5229_v7, %v5228_v6 }
 0x398   : > { %v3849_v23 = vadd.f32 %v5230_v35, %v7402_v14 }
 0x39c   : > { %v5231_v22 = vpop.f32.mrf.mxu1 }
 0x39e   : > { %v5232_v29 = vpop.f32.mrf.mxu1 }
 0x39f   : > { %v5233_v46 = vadd.f32 %v5232_v29, %v5231_v22  ;;  %v5488_v22 = vld [vmem:[%s7634_s3 + $0x50] sm:$0xff]  }
 0x3a0   : > { %v5234_v11 = vpop.f32.mrf.mxu1  ;;  %v5489_v29 = vld [vmem:[%s7634_s3 + $0x10] sm:$0xff]   ;;  %5281 = vmatprep.subr.bf16.mxu1 %v5488_v22 }
 0x3a1   : > { %v3854_v11 = vadd.f32 %v5233_v46, %v7402_v14  ;;  %5282 = vmatpush3.bf16.msra.mxu1 %v5489_v29 }
 0x3a2   : > { %v5235_v48 = vpop.f32.mrf.mxu1 }
 0x3a4   : > { %v5253_v19 = vpop.f32.mrf.mxu1 }
 0x3a6   : > { %v5254_v49 = vpop.f32.mrf.mxu1 }
 0x3a7   : > { %v5255_v26 = vadd.f32 %v5254_v49, %v5253_v19 }
 0x3a8   : > { %v5256_v15 = vpop.f32.mrf.mxu1 }
 0x3a9   : > { %v3894_v47 = vadd.f32 %v5255_v26, %v3838_v38 }
 0x3aa   : > { %v5257_v58 = vpop.f32.mrf.mxu1 }
 0x3ab   : > { %v3915_v60 = vmax.f32 %v3894_v47, 0.0  ;;  %v5258_v17 = vadd.f32 %v5257_v58, %v5256_v15 }
 0x3ac   : > { %v5259_v54 = vpop.f32.mrf.mxu1 }
 0x3ad   : > { %3921 = vst.msk [vmem:[#allocation5] sm:$0xff] %vm3920_vm5, %v3915_v60  ;;  %v3897_v27 = vadd.f32 %v5258_v17, %v3841_v41 }
 0x3ae   : > { %v5260_v8 = vpop.f32.mrf.mxu1 }
 0x3af   : > { %v3916_v51 = vmax.f32 %v3897_v27, 0.0  ;;  %v5261_v4 = vadd.f32 %v5260_v8, %v5259_v54 }
 0x3b0   : > { %v5262_v33 = vpop.f32.mrf.mxu1 }
 0x3b1   : > { %3922 = vst.msk [vmem:[#allocation5 + $0x8] sm:$0xff] %vm3920_vm5, %v3916_v51  ;;  %v3902_v57 = vadd.f32 %v5261_v4, %v3846_v5 }
 0x3b2   : > { %v5263_v61 = vpop.f32.mrf.mxu1 }
 0x3b3   : > { %v3917_v44 = vmax.f32 %v3902_v57, 0.0  ;;  %v5264_v42 = vadd.f32 %v5263_v61, %v5262_v33 }
 0x3b4   : > { %v3929_v9 = vld [vmem:[#allocation5 + $0x1] sm:$0xf] }
 0x3b5   : > { %v3926_v40 = vld [vmem:[#allocation5] sm:$0xf]  ;;  %3923 = vst.msk [vmem:[#allocation5 + $0x10] sm:$0xff] %vm3920_vm5, %v3917_v44  ;;  %v3905_v45 = vadd.f32 %v5264_v42, %v3849_v23  ;;  %v5070_v59 = vpack.c.bf16 %v3929_v9, %v3929_v9 }
 0x3b6   : > { %v3938_v2 = vld [vmem:[#allocation5 + $0x2] sm:$0xf]  ;;  %v3927_v12 = vpack.c.bf16 %v3926_v40, %v3926_v40 }
 0x3b7   : > { %v3939_v3 = vpack.c.bf16 %v3938_v2, %v3938_v2  ;;  %v3918_v25 = vmax.f32 %v3905_v45, 0.0  ;;  %3934 = vrot.lane.b32.xlu0 %v5070_v59, %s5586_s20 }
 0x3b8   : > { %3928 = vst.msk [vmem:[#allocation6] sm:$0x3] %vm7874_vm2, %v3927_v12  ;;  %v5265_v0 = vpop.f32.mrf.mxu1  ;;  %v3941_v56 = vld [vmem:[#allocation5 + $0x6] sm:$0xf]  ;;  %v4003_v20 = vld [vmem:[#allocation5 + $0xc] sm:$0xf]  ;;  %vm7888_vm2 = vmmov %vm7886_vm1 }
 0x3b9   : > { %3940 = vst.msk [vmem:[#allocation6 + $0x4] sm:$0x3] %vm7875_vm0, %v3939_v3  ;;  %v3985_v21 = vld [vmem:[#allocation5 + $0x7] sm:$0xf]  ;;  %v5071_v39 = vpack.c.bf16 %v3941_v56, %v3941_v56  ;;  %v5077_v53 = vpack.c.bf16 %v4003_v20, %v4003_v20  ;;  %v4057_v7 = vld [vmem:[#allocation5 + $0xc] sm:$0xf] }
 0x3ba   : > { %3924 = vst.msk [vmem:[#allocation5 + $0x18] sm:$0xff] %vm3920_vm5, %v3918_v25  ;;  %v5075_v52 = vpack.c.bf16 %v3985_v21, %v3985_v21  ;;  %v3977_v16 = vld [vmem:[#allocation5 + $0x6] sm:$0xf]  ;;  %v5266_v6 = vpop.f32.mrf.mxu1  ;;  %v4058_v19 = vpack.c.bf16 %v4057_v7, %v4057_v7  ;;  %v3962_v38 = vld [vmem:[#allocation5 + $0xc] sm:$0xf] }
 0x3bb   : > { %v3995_v18 = vld [vmem:[#allocation5 + $0x8] sm:$0xf]  ;;  %v5267_v48 = vadd.f32 %v5266_v6, %v5265_v0  ;;  %3946 = vrot.lane.b32.xlu1 %v5071_v39, %s5586_s20  ;;  %v5074_v58 = vpack.c.bf16 %v3977_v16, %v3977_v16  ;;  %v3963_v62 = vpack.c.bf16 %v3962_v38, %v3962_v38  ;;  %v4008_v14 = vrot.slane %v5077_v53, 6  ;;  %v5492_v0 = vld [vmem:[%s7634_s3 + $0x40] sm:$0xff]  }
 0x3bc   : > { %v3990_v32 = vrot.slane %v5075_v52, 6  ;;  %v3950_v49 = vld [vmem:[#allocation5 + $0x7] sm:$0xf]  ;;  %v3974_v37 = vld [vmem:[#allocation5 + $0xe] sm:$0xf]  ;;  %v5268_v15 = vpop.f32.mrf.mxu1  ;;  %v5076_v8 = vpack.c.bf16 %v3995_v18, %v3995_v18 }
 0x3bd   : > { %v4049_v26 = vld [vmem:[#allocation5 + $0x14] sm:$0xf]  ;;  %v4060_v47 = vld [vmem:[#allocation5 + $0xd] sm:$0xf]  ;;  %v3951_v24 = vpack.c.bf16 %v3950_v49, %v3950_v49  ;;  %v3975_v41 = vpack.c.bf16 %v3974_v37, %v3974_v37  ;;  %v3910_v60 = vadd.f32 %v5267_v48, %v3854_v11  ;;  %4059 = vst.msk [vmem:[#allocation6 + $0x14] sm:$0x3] %vm7876_vm7, %v4058_v19  ;;  %vm7889_vm7 = vmmov %vm7886_vm1 }
 0x3be   : > { %v5082_v50 = vpack.c.bf16 %v4049_v26, %v4049_v26  ;;  %3991 = vrot.lane.b32.xlu0 %v3990_v32, %s5586_s20  ;;  %v4116_v17 = vld [vmem:[#allocation5 + $0x13] sm:$0xf]  ;;  %v5269_v54 = vpop.f32.mrf.mxu1  ;;  %3964 = vst.msk [vmem:[#allocation6 + $0xc] sm:$0x3] %vm7878_vm4, %v3963_v62  ;;  %v5083_v51 = vpack.c.bf16 %v4060_v47, %v4060_v47  ;;  %v4069_v33 = vld [vmem:[#allocation5 + $0xe] sm:$0xf]  ;;  %vm7891_vm4 = vmmov %vm7886_vm1 }
 0x3bf   : > { %v4072_v27 = vld [vmem:[#allocation5 + $0x12] sm:$0xf]  ;;  %3952 = vst.msk [vmem:[#allocation6 + $0x8] sm:$0x3] %vm7877_vm10, %v3951_v24  ;;  %v3919_v35 = vmax.f32 %v3910_v60, 0.0  ;;  %4009 = vrot.lane.b32.xlu1 %v4008_v14, %s5586_s20  ;;  %v5088_v4 = vpack.c.bf16 %v4116_v17, %v4116_v17  ;;  %v3982_v61 = vrot.slane %v5074_v58, 6  ;;  %v4070_v23 = vpack.c.bf16 %v4069_v33, %v4069_v33  ;;  %vm7890_vm10 = vmmov %vm7886_vm1 }
 0x3c0   : > { %3976 = vst.msk [vmem:[#allocation6 + $0x10] sm:$0x3] %vm7879_vm14, %v3975_v41  ;;  %v4054_v5 = vrot.slane %v5082_v50, 6  ;;  %v4108_v13 = vld [vmem:[#allocation5 + $0x12] sm:$0xf]  ;;  %v5084_v42 = vpack.c.bf16 %v4072_v27, %v4072_v27  ;;  %v4000_v2 = vrot.slane %v5076_v8, 6  ;;  %vm7892_vm14 = vmmov %vm7886_vm1 }
 0x3c1   : > { %v4105_v43 = vld [vmem:[#allocation5 + $0x1a] sm:$0xf]  ;;  %3925 = vst.msk [vmem:[#allocation5 + $0x20] sm:$0xff] %vm3920_vm5, %v3919_v35  ;;  %v3953_v40 = vld [vmem:[#allocation5 + $0x8] sm:$0xf]  ;;  %v5087_v45 = vpack.c.bf16 %v4108_v13, %v4108_v13  ;;  %v4121_v31 = vrot.slane %v5088_v4, 6 }
 0x3c2   : > { %v4134_v57 = vld [vmem:[#allocation5 + $0x18] sm:$0xf]  ;;  %4056 = vst.msk [vmem:[#allocation6 + $0x10] sm:$0xc] %vm7880_vm8, %v4054_v5  ;;  %v4106_v44 = vpack.c.bf16 %v4105_v43, %v4105_v43  ;;  %4065 = vrot.lane.b32.xlu0 %v5083_v51, %s5586_s20  ;;  %v4126_v59 = vld [vmem:[#allocation5 + $0x14] sm:$0xf]  ;;  %v5072_v38 = vpack.c.bf16 %v3953_v40, %v3953_v40 }
 0x3c3   : > { %v5090_v9 = vpack.c.bf16 %v4134_v57, %v4134_v57  ;;  %3984 = vst.msk [vmem:[#allocation6] sm:$0xc] %vm7881_vm11, %v3982_v61  ;;  %v5490_v12 = vld [vmem:[%s7634_s3 + $0x48] sm:$0xff]   ;;  %4077 = vrot.lane.b32.xlu1 %v5084_v42, %s5586_s20  ;;  %v5089_v46 = vpack.c.bf16 %v4126_v59, %v4126_v59  ;;  %v4113_v21 = vrot.slane %v5087_v45, 6  ;;  %v4031_v39 = vld [vmem:[#allocation5 + $0x12] sm:$0xf] }
 0x3c4   : > { %4071 = vst.msk [vmem:[#allocation6 + $0x18] sm:$0x3] %vm7882_vm13, %v4070_v23  ;;  %v5491_v3 = vld [vmem:[%s7634_s3 + $0x8] sm:$0xff]   ;;  %5283 = vmatprep.subr.bf16.mxu1 %v5490_v12  ;;  %v4081_v52 = vld [vmem:[#allocation5 + $0x13] sm:$0xf]  ;;  %v5493_v16 = vld [vmem:[%s7634_s3] sm:$0xff]   ;;  %v5080_v18 = vpack.c.bf16 %v4031_v39, %v4031_v39 }
 0x3c5   : > { %4107 = vst.msk [vmem:[#allocation6 + $0x24] sm:$0x3] %vm7883_vm15, %v4106_v44  ;;  %v4021_v28 = vld [vmem:[#allocation5 + $0xe] sm:$0xf]  ;;  %v4139_v56 = vrot.slane %v5090_v9, 6  ;;  %v4131_v53 = vrot.slane %v5089_v46, 6  ;;  %5284 = vmatpush3.bf16.msra.mxu1 %v5491_v3  ;;  %v4082_v6 = vpack.c.bf16 %v4081_v52, %v4081_v52 }
 0x3c6   : > { %v4013_v25 = vld [vmem:[#allocation5 + $0xd] sm:$0xf]  ;;  %4002 = vst.msk [vmem:[#allocation6 + $0x4] sm:$0xc] %vm7884_vm12, %v4000_v2  ;;  %4122 = vrot.lane.b32.xlu0 %v4121_v31, %s5586_s20  ;;  %v4093_v7 = vld [vmem:[#allocation5 + $0x18] sm:$0xf]  ;;  %5285 = vmatprep.subr.bf16.mxu1 %v5492_v0  ;;  %v5079_v37 = vpack.c.bf16 %v4021_v28, %v4021_v28 }
 0x3c7   : > { %v5078_v20 = vpack.c.bf16 %v4013_v25, %v4013_v25  ;;  %v4144_v22 = vld [vmem:[#allocation5 + $0x19] sm:$0xf]  ;;  %v3965_v29 = vld [vmem:[#allocation5 + $0xd] sm:$0xf]  ;;  %v4039_v11 = vld [vmem:[#allocation5 + $0x13] sm:$0xf]  ;;  %v4094_v19 = vpack.c.bf16 %v4093_v7, %v4093_v7  ;;  %4140 = vrot.lane.b32.xlu1 %v4139_v56, %s5586_s20 }
 0x3c8   : > { %4115 = vst.msk [vmem:[#allocation6 + $0x14] sm:$0xc] %vm7885_vm6, %v4113_v21  ;;  %v5497_v32 = vld [vmem:[%s7634_s3 + $0xf8] sm:$0xff]   ;;  %v5091_v49 = vpack.c.bf16 %v4144_v22, %v4144_v22  ;;  %v4036_v26 = vrot.slane %v5080_v18, 6  ;;  %v4180_v15 = vld [vmem:[#allocation5 + $0x20] sm:$0xf]  ;;  %v5073_v24 = vpack.c.bf16 %v3965_v29, %v3965_v29  ;;  %v5081_v62 = vpack.c.bf16 %v4039_v11, %v4039_v11 }
 0x3c9   : > { %v4018_v48 = vrot.slane %v5078_v20, 6  ;;  %4133 = vst.msk [vmem:[#allocation6 + $0x18] sm:$0xc] %vm7886_vm1, %v4131_v53  ;;  %v5095_v58 = vpack.c.bf16 %v4180_v15, %v4180_v15  ;;  %5286 = vmatpush3.bf16.msra.mxu1 %v5493_v16  ;;  %v4162_v41 = vld [vmem:[#allocation5 + $0x1e] sm:$0xf]  ;;  %v4026_v14 = vrot.slane %v5079_v37, 6 }
 0x3ca   : > { %4083 = vst.msk [vmem:[#allocation6 + $0x1c] sm:$0x3] %vm7887_vm3, %v4082_v6  ;;  %v4149_v47 = vrot.slane %v5091_v49, 6  ;;  %3958 = vrot.lane.b32.xlu0 %v5072_v38, %s5586_s20  ;;  %5293 = vmatprep.subr.bf16.mxu1 %v5497_v32  ;;  %v5093_v50 = vpack.c.bf16 %v4162_v41, %v4162_v41  ;;  %v4084_v17 = vld [vmem:[#allocation5 + $0x14] sm:$0xf]  ;;  %v4044_v8 = vrot.slane %v5081_v62, 6 }
 0x3cb   : > { %4020 = vst.msk [vmem:[#allocation6 + $0x8] sm:$0xc] %vm7888_vm2, %v4018_v48  ;;  %v4185_v60 = vrot.slane %v5095_v58, 6  ;;  %3970 = vrot.lane.b32.xlu1 %v5073_v24, %s5586_s20  ;;  %v4152_v54 = vld [vmem:[#allocation5 + $0x1a] sm:$0xf]  ;;  %v5085_v51 = vpack.c.bf16 %v4084_v17, %v4084_v17  ;;  %v1746_v61 = vrot.slane %v6665_v1, 4 }
 0x3cc   : > { %4095 = vst.msk [vmem:[#allocation6 + $0x20] sm:$0x3] %vm7875_vm0, %v4094_v19  ;;  %v4167_v27 = vrot.slane %v5093_v50, 6  ;;  %v4096_v5 = vld [vmem:[#allocation5 + $0x19] sm:$0xf]  ;;  %v5092_v4 = vpack.c.bf16 %v4152_v54, %v4152_v54  ;;  %v1796_v23 = vrot.slane %v6784_v30, 4 }
 0x3cd   : > { %4038 = vst.msk [vmem:[#allocation6 + $0xc] sm:$0xc] %vm7889_vm7, %v4036_v26  ;;  %v4170_v35 = vld [vmem:[#allocation5 + $0x1f] sm:$0xf]  ;;  %v5086_v33 = vpack.c.bf16 %v4096_v5, %v4096_v5  ;;  %v1719_v44 = vrot.slane %v1717_v10, 4  ;;  %v1769_v42 = vrot.slane %v1767_v55, 4 }
 0x3ce   : > { %4151 = vst.msk [vmem:[#allocation6 + $0x1c] sm:$0xc] %vm7890_vm10, %v4149_v47  ;;  %4027 = vrot.lane.b32.xlu0 %v4026_v14, %s5586_s20  ;;  %v5094_v13 = vpack.c.bf16 %v4170_v35, %v4170_v35  ;;  %v4157_v43 = vrot.slane %v5092_v4, 6  ;;  %v1775_v9 = vld [vmem:[#allocation2 + $0xe4] sm:$0x1]  ;;  %v7893_v2 = vld [vmem:[#allocation14_spill] sm:$0xff] }
 0x3cf   : > { %4187 = vst.msk [vmem:[#allocation6 + $0x24] sm:$0xc] %vm7891_vm4, %v4185_v60  ;;  %4045 = vrot.lane.b32.xlu1 %v4044_v8, %s5586_s20  ;;  %v1725_v40 = vld [vmem:[#allocation2 + $0xe0] sm:$0x1]  ;;  %vm7894_vm8 = vnez %v7893_v2  ;;  %vm7895_vm11 = vcmask 1041920   ;;  %vm7897_vm15 = vcmask 1043970  }
 0x3d0   : > { %4169 = vst.msk [vmem:[#allocation6 + $0x20] sm:$0xc] %vm7892_vm14, %v4167_v27  ;;  %v4175_v57 = vrot.slane %v5094_v13, 6  ;;  %v1776_v45 = vsel %vm7894_vm8, %v1769_v42, %v1775_v9  ;;  %v1726_v1 = vsel %vm7894_vm8, %v1719_v44, %v1725_v40  ;;  %vm7896_vm13 = vmmov %vm7895_vm11  ;;  %v5498_v25 = vld [vmem:[%s7634_s3 + $0xb8] sm:$0xff]   ;;  %v5499_v20 = vld [vmem:[%s7634_s3 + $0xf0] sm:$0xff]   ;;  %v5589_v27 = vmov 0.0  }
 0x3d1   : > { %1777 = vst [vmem:[#allocation2 + $0xe4] sm:$0x1] %v1776_v45  ;;  %1727 = vst [vmem:[#allocation2 + $0xe0] sm:$0x1] %v1726_v1  ;;  %v5500_v53 = vld [vmem:[%s7634_s3 + $0xb0] sm:$0xff]   ;;  %v5501_v16 = vld [vmem:[%s7634_s3 + $0xe8] sm:$0xff]  }
 0x3d2   : > { %4089 = vrot.lane.b32.xlu0 %v5085_v51, %s5586_s20  ;;  %vm7898_vm12 = vmmov %vm7897_vm15  ;;  %v5502_v7 = vld [vmem:[%s7634_s3 + $0xa8] sm:$0xff]   ;;  %v5503_v29 = vld [vmem:[%s7634_s3 + $0xe0] sm:$0xff]  }
 0x3d3   : > { %4101 = vrot.lane.b32.xlu1 %v5086_v33, %s5586_s20  ;;  %vm7899_vm6 = vmmov %vm7895_vm11  ;;  %v5504_v19 = vld [vmem:[%s7634_s3 + $0xa0] sm:$0xff]   ;;  %v5505_v38 = vld [vmem:[%s7634_s3 + $0xd8] sm:$0xff]  }
 0x3d4   : > { %vm7900_vm1 = vmmov %vm7899_vm6  ;;  %v5509_v15 = vld [vmem:[%s7634_s3 + $0x98] sm:$0xff]   ;;  %v5510_v47 = vld [vmem:[%s7634_s3 + $0xd0] sm:$0xff]  }
 0x3d5   : > { %vm7901_vm3 = vmmov %vm7898_vm12  ;;  %v5511_v58 = vld [vmem:[%s7634_s3 + $0x90] sm:$0xff]   ;;  %v5513_v50 = vld [vmem:[%s7634_s3 + $0x88] sm:$0xff]  }
 0x3d6   : > { %4158 = vrot.lane.b32.xlu0 %v4157_v43, %s5586_s20  ;;  %vm7902_vm2 = vmmov %vm7901_vm3  ;;  %v5514_v60 = vld [vmem:[%s7634_s3 + $0xc0] sm:$0xff]   ;;  %v5516_v17 = vld [vmem:[%s7634_s3 + $0x118] sm:$0xff]  }
 0x3d7   : > { %4176 = vrot.lane.b32.xlu1 %v4175_v57, %s5586_s20  ;;  %vm7903_vm0 = vmmov %vm7900_vm1  ;;  %v5515_v14 = vld [vmem:[%s7634_s3 + $0x80] sm:$0xff]   ;;  %v5517_v8 = vld [vmem:[%s7634_s3 + $0x110] sm:$0xff]  }
 0x3d8   : > { %vm7904_vm7 = vmmov %vm7903_vm0  ;;  %v1758_v22 = vld [vmem:[#allocation2 + $0xe0] sm:$0x1]  ;;  %v1808_v11 = vld [vmem:[#allocation2 + $0xe4] sm:$0x1] }
 0x3d9   : > { %vm7905_vm10 = vmmov %vm7902_vm2  ;;  %v5519_v5 = vld [vmem:[%s7634_s3 + $0x108] sm:$0xff]   ;;  %v5521_v35 = vld [vmem:[%s7634_s3 + $0x100] sm:$0xff]  }
 0x3da   : > { %1751 = vrot.lane.b32.xlu0 %v1746_v61, %s5586_s20  ;;  %vm7906_vm4 = vmmov %vm7902_vm2  ;;  %v5522_v51 = vld [vmem:[#allocation6 + $0x10] ss:$20 sps:$4 sm:$0xff]   ;;  %v4933_v45 = vld [vmem:[%s7637_s6] ss:$0 sm:$0xff] }
 0x3db   : > { %1801 = vrot.lane.b32.xlu1 %v1796_v23, %s5586_s20  ;;  %vm7907_vm14 = vmmov %vm7903_vm0  ;;  %s271_s20 = scalar_lea.vmem [#allocation7], %s4724_s18 }
 0x3dc   : > { %vm7908_vm8 = vmmov %vm7903_vm0  ;;  %s4658_s19 = sshll.u32 %s271_s20, 4  ;;  %s7584_s19 = int_to_ptr.vmem [resolvable:$true] %s4658_s19 }
 0x3dd   : > { %s5524_s8 = scalar_lea.vmem %s7584_s19, 256  ;;  %p5531_p0 = scmp.lt.s32.totalorder %s7584_s19, %s5529_s9 }
 0x3de   : > { %p5525_p11 = scmp.ne.s32.totalorder %s7584_s19, %s5524_s8  ;;  %p5532_p1 = scmp.lt.s32.totalorder %s5530_s17, %s5524_s8 }
 0x3e0   : > { %p5526_p12 = pnand %p5525_p11, %p5672_p5  ;;  %p5533_p2 = por %p5532_p1, %p5531_p0 }
 0x3e2   : > { %p5527_p13 = pneg %p5526_p12 }
 0x3e4   : > { %p5534_p3 = pnand %p5533_p2, %p5527_p13 }
 0x429   : > { %v3935_v30 = vpop.permute.xlu0 %3934 }
 0x42a   : > { %3937 = vst.msk [vmem:[#allocation6] sm:$0x3] %vm7895_vm11, %v3935_v30  ;;  %vm7909_vm11 = vmmov %vm7902_vm2 }
 0x42d   : > { %v3947_v63 = vpop.permute.xlu1 %3946 }
 0x42e   : > { %3949 = vst.msk [vmem:[#allocation6 + $0x4] sm:$0x3] %vm7896_vm13, %v3947_v63  ;;  %vm7910_vm13 = vmmov %vm7902_vm2 }
 0x430   : > { %v3992_v10 = vpop.permute.xlu0 %3991 }
 0x431   : > { %3994 = vst.msk [vmem:[#allocation6] sm:$0xc] %vm7897_vm15, %v3992_v10  ;;  %v4010_v34 = vpop.permute.xlu1 %4009 }
 0x432   : > { %4012 = vst.msk [vmem:[#allocation6 + $0x4] sm:$0xc] %vm7898_vm12, %v4010_v34 }
 0x434   : > { %v4066_v55 = vpop.permute.xlu0 %4065 }
 0x435   : > { %4068 = vst.msk [vmem:[#allocation6 + $0x14] sm:$0x3] %vm7899_vm6, %v4066_v55  ;;  %v4078_v59 = vpop.permute.xlu1 %4077 }
 0x436   : > { %4080 = vst.msk [vmem:[#allocation6 + $0x18] sm:$0x3] %vm7900_vm1, %v4078_v59 }
 0x438   : > { %v4123_v12 = vpop.permute.xlu0 %4122 }
 0x439   : > { %4125 = vst.msk [vmem:[#allocation6 + $0x14] sm:$0xc] %vm7901_vm3, %v4123_v12  ;;  %v4141_v3 = vpop.permute.xlu1 %4140 }
 0x43a   : > { %4143 = vst.msk [vmem:[#allocation6 + $0x18] sm:$0xc] %vm7902_vm2, %v4141_v3 }
 0x43c   : > { %v3959_v31 = vpop.permute.xlu0 %3958 }
 0x43d   : > { %3961 = vst.msk [vmem:[#allocation6 + $0x8] sm:$0x3] %vm7903_vm0, %v3959_v31  ;;  %v3971_v28 = vpop.permute.xlu1 %3970 }
 0x43e   : > { %3973 = vst.msk [vmem:[#allocation6 + $0xc] sm:$0x3] %vm7904_vm7, %v3971_v28 }
 0x440   : > { %v4028_v46 = vpop.permute.xlu0 %4027  ;;  %v5494_v56 = vld [vmem:[#allocation6] ss:$20 sps:$4 sm:$0xff]  }
 0x441   : > { %4030 = vst.msk [vmem:[#allocation6 + $0x8] sm:$0xc] %vm7905_vm10, %v4028_v46  ;;  %v4046_v0 = vpop.permute.xlu1 %4045  ;;  %v5496_v21 = vld [vmem:[#allocation6 + $0x4] ss:$20 sps:$4 sm:$0xff]  }
 0x442   : > { %4048 = vst.msk [vmem:[#allocation6 + $0xc] sm:$0xc] %vm7906_vm4, %v4046_v0  ;;  %4549 = vmatprep.mubr.bf16.mxu1 %v5496_v21 }
 0x443   : > { %4550 = vmatmul.mubr.bf16.vlgmr.msra.gmra.mxu1 %v5494_v56 }
 0x444   : > { %v4090_v39 = vpop.permute.xlu0 %4089  ;;  %5294 = vmatpush3.bf16.msra.mxu1 %v5498_v25 }
 0x445   : > { %4092 = vst.msk [vmem:[#allocation6 + $0x1c] sm:$0x3] %vm7907_vm14, %v4090_v39  ;;  %v4102_v52 = vpop.permute.xlu1 %4101  ;;  %5295 = vmatprep.subr.bf16.mxu1 %v5499_v20 }
 0x446   : > { %4104 = vst.msk [vmem:[#allocation6 + $0x20] sm:$0x3] %vm7908_vm8, %v4102_v52 }
 0x448   : > { %v4159_v18 = vpop.permute.xlu0 %4158  ;;  %5296 = vmatpush3.bf16.msra.mxu1 %v5500_v53 }
 0x449   : > { %4161 = vst.msk [vmem:[#allocation6 + $0x1c] sm:$0xc] %vm7909_vm11, %v4159_v18  ;;  %v4177_v6 = vpop.permute.xlu1 %4176  ;;  %5297 = vmatprep.subr.bf16.mxu1 %v5501_v16 }
 0x44a   : > { %4179 = vst.msk [vmem:[#allocation6 + $0x20] sm:$0xc] %vm7910_vm13, %v4177_v6 }
 0x44c   : > { %v1752_v48 = vpop.permute.xlu0 %1751  ;;  %5298 = vmatpush3.bf16.msra.mxu1 %v5502_v7 }
 0x44d   : > { %v1759_v32 = vsel %vm6847_vm9, %v1752_v48, %v1758_v22  ;;  %v1802_v49 = vpop.permute.xlu1 %1801  ;;  %5299 = vmatprep.subr.bf16.mxu1 %v5503_v29 }
 0x44e   : > { %1760 = vst [vmem:[#allocation2 + $0xe0] sm:$0x1] %v1759_v32  ;;  %v1809_v37 = vsel %vm6847_vm9, %v1802_v49, %v1808_v11  ;;  %vm5590_vm9 = vmmov 0  }
 0x44f   : > { %1810 = vst [vmem:[#allocation2 + $0xe4] sm:$0x1] %v1809_v37 }
 0x450   : > { %5300 = vmatpush3.bf16.msra.mxu1 %v5504_v19  ;;  %v5506_v54 = vld [vmem:[#allocation6 + $0x8] ss:$20 sps:$4 sm:$0xff]  }
 0x451   : > { %v5508_v26 = vld [vmem:[#allocation6 + $0xc] ss:$20 sps:$4 sm:$0xff]   ;;  %5301 = vmatprep.subr.bf16.mxu1 %v5505_v38 }
 0x452   : > { %4590 = vmatprep.mubr.bf16.mxu1 %v5508_v26 }
 0x454   : > { %5302 = vmatpush3.bf16.msra.mxu1 %v5509_v15 }
 0x455   : > { %5303 = vmatprep.subr.bf16.mxu1 %v5510_v47 }
 0x456   : > { %v1839_v24 = vld [vmem:[#allocation2 + $0xe0] sm:$0xff] }
 0x457   : > { %v4757_v62 = vcombine.high %v1839_v24, %v1839_v24  ;;  %v4756_v41 = vcombine.low %v1839_v24, %v1839_v24 }
 0x458   : > { %5304 = vmatpush3.bf16.msra.mxu1 %v5511_v58 }
 0x459   : > { %2266 = vmatprep.mubr.bf16.mxu0 %v4757_v62  ;;  %5305 = vmatprep.subr.bf16.mxu1 %v5512_v36 }
 0x45a   : > { %2267 = vmatmul.mubr.bf16.gmra.mxu0 %v4756_v41 }
 0x45c   : > { %5306 = vmatpush3.bf16.msra.mxu1 %v5513_v50 }
 0x45d   : > { %5307 = vmatprep.subr.bf16.mxu1 %v5514_v60 }
 0x460   : > { %5308 = vmatpush3.bf16.msra.mxu1 %v5515_v14 }
 0x461   : > { %5320 = vmatprep.subr.bf16.mxu1 %v5589_v27 }
 0x463   : > { %4591 = vmatmul.mubr.bf16.vlgmr.msra.gmra.mxu1 %v5506_v54 }
 0x464   : > { %5321 = vmatpush3.bf16.msra.mxu1 %v5516_v17  ;;  %5328 = vmatprep.mubr.msk.bf16.mxu1 %vm5590_vm9, %v5589_v27 }
 0x465   : > { %5322 = vmatprep.subr.bf16.mxu1 %v5589_v27 }
 0x468   : > { %5323 = vmatpush3.bf16.msra.mxu1 %v5517_v8 }
 0x469   : > { %5324 = vmatprep.subr.bf16.mxu1 %v5589_v27 }
 0x46c   : > { %5325 = vmatpush3.bf16.msra.mxu1 %v5519_v5 }
 0x46d   : > { %5326 = vmatprep.subr.bf16.mxu1 %v5589_v27 }
 0x470   : > { %5327 = vmatpush3.bf16.msra.mxu1 %v5521_v35 }
 0x473   : > { %5329 = vmatmul.mubr.msk.bf16.vlgmr.msra.gmra.mxu1 %vm3920_vm5, %v5522_v51 }
 0x503   : > { %v5287_v4 = vpop.f32.mrf.mxu1 }
 0x505   : > { %v5288_v33 = vpop.f32.mrf.mxu1 }
 0x506   : > { %v5289_v2 = vadd.f32 %v5288_v33, %v5287_v4 }
 0x507   : > { %v5290_v57 = vpop.f32.mrf.mxu1 }
 0x508   : > { %v4552_v63 = vadd.f32 %v5289_v2, %v4933_v45 }
 0x509   : > { %v5291_v44 = vpop.f32.mrf.mxu1 }
 0x50a   : > { %v5292_v10 = vadd.f32 %v5291_v44, %v5290_v57 }
 0x50c   : > { %v4555_v12 = vadd.f32 %v5292_v10, %v4933_v45 }
 0x51a   : > { %v5197_v13 = vpop.f32.mrf.mxu0 }
 0x51c   : > { %v5198_v43 = vpop.f32.mrf.mxu0 }
 0x51e   : > { %v5200_v61 = vpop.f32.mrf.mxu0 }
 0x520   : > { %v5201_v23 = vpop.f32.mrf.mxu0 }
 0x523   : > { %v5309_v42 = vpop.f32.mrf.mxu1 }
 0x525   : > { %v5310_v9 = vpop.f32.mrf.mxu1 }
 0x526   : > { %v5311_v1 = vadd.f32 %v5310_v9, %v5309_v42 }
 0x527   : > { %v5312_v40 = vpop.f32.mrf.mxu1 }
 0x528   : > { %v4593_v55 = vadd.f32 %v5311_v1, %v4552_v63 }
 0x529   : > { %v5313_v30 = vpop.f32.mrf.mxu1 }
 0x52a   : > { %v5314_v34 = vadd.f32 %v5313_v30, %v5312_v40 }
 0x52c   : > { %v4596_v46 = vadd.f32 %v5314_v34, %v4555_v12 }
 0x533   : > { %v4633_v59 = vpop.f32.mrf.mxu1 }
 0x534   : > { %v4634_v3 = vadd.f32 %v4633_v59, %v4593_v55 }
 0x535   : > { %v5330_v31 = vpop.f32.mrf.mxu1 }
 0x536   : > { %v4640_v28 = vmax.f32 %v4634_v3, 0.0 }
 0x537   : > { %v4636_v25 = vpop.f32.mrf.mxu1 }
 0x538   : > { %4642 = vst [vmem:[%s271_s20] sm:$0xff] %v4640_v28  ;;  %v4637_v0 = vadd.f32 %v4636_v25, %v4596_v46 }
 0x539   : > { %v5331_v56 = vpop.f32.mrf.mxu1 }
 0x53a   : > { %v4641_v21 = vmax.f32 %v4637_v0, 0.0 }
 0x53c   : > { %4643 = vst [vmem:[%s271_s20 + $0x8] sm:$0xff] %v4641_v21 }
 0x53d   : > { %5537 = shalt.err (!%p5534_p3)
}
 0x53e   : > { %s5538_s13 = scalar_lea.hbm %s7589_s23, 256  ;;  %s5542_s18 = scalar_lea.hbm %s7638_s7, 512 }
 0x53f   : > { %p5539_p4 = scmp.ne.s32.totalorder %s7589_s23, %s5538_s13  ;;  %p5543_p9 = scmp.lt.s32.totalorder %s7589_s23, %s7638_s7 }
 0x540   : > { %p5544_p10 = scmp.lt.s32.totalorder %s5542_s18, %s5538_s13 }
 0x541   : > { %p5540_p7 = pnand %p5539_p4, %p5672_p5 }
 0x542   : > { %p5545_p11 = por %p5544_p10, %p5543_p9 }
 0x543   : > { %p5541_p8 = pneg %p5540_p7 }
 0x545   : > { %p5546_p12 = pnand %p5545_p11, %p5541_p8 }
 0x547   : > { %5549 = shalt.err (!%p5546_p12)
}
 0x548   : > { %s5592_s21 = smov 128   ;;  %s5593_s22 = smov 8  }
 0x549   : > { %5332 = dma.vmem_to_hbm [thread:$0]  (%p5672_p5), %s7584_s19, 256, %s7589_s23, %s7591_s29, %s5592_s21, %s5592_s21, %s5593_s22  }
 0x54a PF: > { %p5338_p13 = scmp.ge.s32.totalorder %s5584_s27, 2  ;;  %s4673_s8 = sand.u32 1, %s5572_s24  }
 0x54b   : > { %s4674_s28 = scalar_lea.sflag [#allocation8], %s4673_s8 }
 0x54c   : > { %p5335_p0 = pnand %p5338_p13, %p5676_p6 }
 0x54e   : > { %p5336_p1 = pneg %p5335_p0 }
 0x550   : > { %5567 = dma.done.wait (%p5336_p1), %s4674_s28, 256  }
 0x551   : > { %5569 = vsyncadd (%p5336_p1), %s4674_s28, 4294967040  ;;  %p17_p2 = scmp.ge.s32.totalorder %s5659_s30, 4   ;;  %s7911_s24 = smov %s5576_s25 }
 0x552   : > { %s7912_s25 = smov %s5580_s26  ;;  %s7913_s26 = smov %s5670_s10 }
 0x553   : > { %s7914_s27 = smov %s5659_s30  ;;  %19 = sbr.rel (!%p17_p2) target bundleno = 3 (0x3), region = 138 }
 0x558   :  { %4679 = vsyncpa [#allocation8], 1 }
 0x559   :  { %4681 = vsyncpa [#allocation8 + $0x1], 1 }

</bundles_post_ra>
